<compile_context>
chip_gen: v7x
topology: tpu7x:2x2x1
jax: 0.10.0
libtpu: 0.0.40
codegen_flags: <defaults>
</compile_context>

<pallas_src>
import functools

import numpy as np
import jax
import jax.numpy as jnp
from jax.experimental import pallas as pl
from jax.experimental.pallas import tpu as pltpu

LANES = 128


# ----------------------------------------------------------------------------
# The fused LeNet kernel (one batch tile of `bt` images per grid step)
# ----------------------------------------------------------------------------
def _lenet_kernel(x_ref, a1_ref, b1_ref, w2_ref, b2_ref,
                  wf1_ref, bf1_ref, wf2_ref, bf2_ref, wf3_ref, bf3_ref,
                  out_ref, scr1, scr2, scr3, *, bt):
    f32 = jnp.float32
    bf16 = jnp.bfloat16

    # ---------------- conv1 (5x5, 1->6) as a banded GEMM, im2col-free --------------
    xv = x_ref[...]                                                   # (bt, 32, 32) bf16
    # 5-row sliding window flattened into lanes: xcat[(b,ho), di*32+w] = x[b, ho+di, w]
    xcat = jnp.concatenate([xv[:, d:d + 28, :] for d in range(5)], axis=-1)
    xcat = xcat.reshape(bt * 28, 160)
    # A1 lanes are ordered (wo parity, wo//2, cout-padded-to-128)
    h1 = jnp.dot(xcat, a1_ref[...], preferred_element_type=f32)       # (bt*28, 3584)
    h1 = jnp.maximum(h1 + b1_ref[...], 0.0)                           # bias + ReLU (f32)
    # horizontal 2:1 max-pool = max of the two lane halves (even wo vs odd wo)
    hw = jnp.maximum(h1[:, :14 * 128], h1[:, 14 * 128:])              # (bt*28, 1792)
    # split lanes (wo2,c) -> (sublane wo2, lane c) and stage for the vertical pass
    scr1[...] = hw.reshape(bt * 28, 14, 128)
    # vertical 2:1 max-pool: adjacent (b,ho) rows via stride-2 reads
    p1 = jnp.maximum(scr1[pl.ds(0, bt * 14, stride=2), :, :],
                     scr1[pl.ds(1, bt * 14, stride=2), :, :])         # (bt*14, 14, 128) f32
    p1 = p1.astype(bf16).reshape(bt, 14, 14, 128)                     # (b, ho, wo, cin-lanes)

    # ---------------- conv2 (5x5, 6->16): 25 lane-tile-aligned taps + one GEMM ------
    taps = [p1[:, di:di + 10, dj:dj + 10, :]
            for di in range(5) for dj in range(5)]                    # each (bt,10,10,128)
    pat2 = jnp.concatenate(taps, axis=-1).reshape(bt * 100, 25 * 128)  # (bt*100, 3200)
    h2 = jnp.dot(pat2, w2_ref[...], preferred_element_type=f32)       # (bt*100, 128)
    h2 = jnp.maximum(h2 + b2_ref[...], 0.0)
    # 2x2 max-pool on the 10x10 map: wo pairs are adjacent rows, then ho pairs
    scr2[...] = h2
    pw = jnp.maximum(scr2[pl.ds(0, bt * 50, stride=2), :],
                     scr2[pl.ds(1, bt * 50, stride=2), :])            # (bt*50, 128)
    scr3[...] = pw.reshape(bt * 10, 5, 128)
    p2 = jnp.maximum(scr3[pl.ds(0, bt * 5, stride=2), :, :],
                     scr3[pl.ds(1, bt * 5, stride=2), :, :])          # (bt*5, 5, 128) f32

    # ---------------- flatten (order folded into fc1 weights) + fused MLP -----------
    p2 = p2.astype(bf16).reshape(bt, 5, 5, 128)
    fc1_in = jnp.concatenate(
        [p2[:, h, w, :] for h in range(5) for w in range(5)], axis=-1)  # (bt, 3200)
    z = jnp.dot(fc1_in, wf1_ref[...], preferred_element_type=f32)
    z = jnp.maximum(z + bf1_ref[...], 0.0).astype(bf16)
    z = jnp.dot(z, wf2_ref[...], preferred_element_type=f32)
    z = jnp.maximum(z + bf2_ref[...], 0.0).astype(bf16)
    z = jnp.dot(z, wf3_ref[...], preferred_element_type=f32)
    out_ref[0] = z + bf3_ref[...]                                      # (bt, 128) f32


# ----------------------------------------------------------------------------
# Forward pass wrapper
# ----------------------------------------------------------------------------
def net_forward(kp, x):
    """x: (N, 1, 32, 32) f32 NCHW (PyTorch convention). Returns (N, 10) f32 logits."""
    N = x.shape[0]
    bt = max(1, min(8, N // 2))            # >=2 grid steps when N>=2 (v7x: both cores)
    nb = -(-N // bt)
    n_pad = nb * bt
    xi = x[:, 0].astype(jnp.bfloat16)      # (N, 32, 32) bf16
    if n_pad != N:
        xi = jnp.pad(xi, ((0, n_pad - N), (0, 0), (0, 0)))

    kernel = functools.partial(_lenet_kernel, bt=bt)
    out = pl.pallas_call(
        kernel,
        out_shape=jax.ShapeDtypeStruct((nb, bt, LANES), jnp.float32),
        grid=(nb,),
        in_specs=[
            pl.BlockSpec((bt, 32, 32), lambda i: (i, 0, 0)),     # image tile
            pl.BlockSpec((160, 3584), lambda i: (0, 0)),         # conv1 banded weights
            pl.BlockSpec((1, 3584), lambda i: (0, 0)),           # conv1 bias (tiled)
            pl.BlockSpec((3200, 128), lambda i: (0, 0)),         # conv2 weights
            pl.BlockSpec((1, 128), lambda i: (0, 0)),            # conv2 bias
            pl.BlockSpec((3200, 128), lambda i: (0, 0)),         # fc1 weights
            pl.BlockSpec((1, 128), lambda i: (0, 0)),            # fc1 bias
            pl.BlockSpec((128, 128), lambda i: (0, 0)),          # fc2 weights
            pl.BlockSpec((1, 128), lambda i: (0, 0)),            # fc2 bias
            pl.BlockSpec((128, 128), lambda i: (0, 0)),          # fc3 weights
            pl.BlockSpec((1, 128), lambda i: (0, 0)),            # fc3 bias
        ],
        out_specs=pl.BlockSpec((1, bt, LANES), lambda i: (i, 0, 0)),
        scratch_shapes=[
            pltpu.VMEM((bt * 28, 14, 128), jnp.float32),         # conv1 pre-vertical-pool
            pltpu.VMEM((bt * 100, 128), jnp.float32),            # conv2 pre-pool
            pltpu.VMEM((bt * 10, 5, 128), jnp.float32),          # conv2 pre-vertical-pool
        ],
        compiler_params=pltpu.CompilerParams(
            dimension_semantics=("parallel",),
            vmem_limit_bytes=48 * 1024 * 1024),
    )(xi, kp["A1"], kp["b1"], kp["W2"], kp["b2"],
      kp["Wf1"], kp["bf1"], kp["Wf2"], kp["bf2"], kp["Wf3"], kp["bf3"])
    return out.reshape(n_pad, LANES)[:N, :10]


# ----------------------------------------------------------------------------
# Parameters (PyTorch layout) + one-time kernel-ready preparation
# ----------------------------------------------------------------------------
def init_params(key):
    def uni(key, shape, fan_in):
        bound = 1.0 / jnp.sqrt(jnp.float32(fan_in))
        return jax.random.uniform(key, shape, jnp.float32, -bound, bound)

    ks = jax.random.split(key, 10)
    return {
        "conv1_w": uni(ks[0], (6, 1, 5, 5), 1 * 5 * 5),
        "conv1_b": uni(ks[1], (6,), 1 * 5 * 5),
        "conv2_w": uni(ks[2], (16, 6, 5, 5), 6 * 5 * 5),
        "conv2_b": uni(ks[3], (16,), 6 * 5 * 5),
        "fc1_w": uni(ks[4], (120, 400), 400),
        "fc1_b": uni(ks[5], (120,), 400),
        "fc2_w": uni(ks[6], (84, 120), 120),
        "fc2_b": uni(ks[7], (84,), 120),
        "fc3_w": uni(ks[8], (10, 84), 84),
        "fc3_b": uni(ks[9], (10,), 84),
    }


def prepare_params(p):
    """One-time host-side repack: fold im2col / flatten orders into padded bf16 weights."""
    w1 = np.asarray(p["conv1_w"], np.float32)   # (6,1,5,5)
    b1 = np.asarray(p["conv1_b"], np.float32)
    w2 = np.asarray(p["conv2_w"], np.float32)   # (16,6,5,5)
    b2 = np.asarray(p["conv2_b"], np.float32)
    f1w = np.asarray(p["fc1_w"], np.float32)    # (120,400)
    f1b = np.asarray(p["fc1_b"], np.float32)
    f2w = np.asarray(p["fc2_w"], np.float32)    # (84,120)
    f2b = np.asarray(p["fc2_b"], np.float32)
    f3w = np.asarray(p["fc3_w"], np.float32)    # (10,84)
    f3b = np.asarray(p["fc3_b"], np.float32)

    # conv1 banded GEMM weights: rows = (di, image column w), lanes = (wo parity, wo//2, cout)
    A1 = np.zeros((5 * 32, 28 * 128), np.float32)
    for di in range(5):
        for w2i in range(14):
            for par in range(2):
                wo = 2 * w2i + par
                col0 = par * (14 * 128) + w2i * 128
                for dj in range(5):
                    A1[di * 32 + wo + dj, col0:col0 + 6] = w1[:, 0, di, dj]
    b1big = np.tile(np.pad(b1, (0, 128 - 6)), 28)[None, :]            # (1, 3584)

    # conv2 weights: rows = (tap t=di*5+dj, cin-padded-to-128), cols = cout-padded
    W2big = np.zeros((25 * 128, 128), np.float32)
    for di in range(5):
        for dj in range(5):
            t = di * 5 + dj
            W2big[t * 128:t * 128 + 6, :16] = w2[:, :, di, dj].T
    b2row = np.zeros((1, 128), np.float32); b2row[0, :16] = b2

    # fc1 weights: rows = (spatial p=h*5+w, cout-padded-to-128), matching kernel gather order;
    # columns follow PyTorch's .view flatten order feature = c*25 + h*5 + w.
    Wf1 = np.zeros((25 * 128, 128), np.float32)
    for h in range(5):
        for w in range(5):
            pidx = h * 5 + w
            for c in range(16):
                Wf1[pidx * 128 + c, :120] = f1w[:, c * 25 + pidx]
    bf1 = np.zeros((1, 128), np.float32); bf1[0, :120] = f1b

    Wf2 = np.zeros((128, 128), np.float32); Wf2[:120, :84] = f2w.T
    bf2 = np.zeros((1, 128), np.float32); bf2[0, :84] = f2b
    Wf3 = np.zeros((128, 128), np.float32); Wf3[:84, :10] = f3w.T
    bf3 = np.zeros((1, 128), np.float32); bf3[0, :10] = f3b

    return {
        "A1": jnp.asarray(A1, jnp.bfloat16), "b1": jnp.asarray(b1big, jnp.float32),
        "W2": jnp.asarray(W2big, jnp.bfloat16), "b2": jnp.asarray(b2row, jnp.float32),
        "Wf1": jnp.asarray(Wf1, jnp.bfloat16), "bf1": jnp.asarray(bf1, jnp.float32),
        "Wf2": jnp.asarray(Wf2, jnp.bfloat16), "bf2": jnp.asarray(bf2, jnp.float32),
        "Wf3": jnp.asarray(Wf3, jnp.bfloat16), "bf3": jnp.asarray(bf3, jnp.float32),
    }


# ----------------------------------------------------------------------------
# Pure-JAX f32 reference (PyTorch semantics) for a tolerance check
# ----------------------------------------------------------------------------
def net_reference(p, x):
    n = x.shape[0]
    dn = ("NCHW", "OIHW", "NCHW")
    y = jax.lax.conv_general_dilated(x, p["conv1_w"], (1, 1), "VALID",
                                     dimension_numbers=dn)
    y = jax.nn.relu(y + p["conv1_b"][None, :, None, None])
    y = y.reshape(n, 6, 14, 2, 14, 2).max(axis=(3, 5))
    y = jax.lax.conv_general_dilated(y, p["conv2_w"], (1, 1), "VALID",
                                     dimension_numbers=dn)
    y = jax.nn.relu(y + p["conv2_b"][None, :, None, None])
    y = y.reshape(n, 16, 5, 2, 5, 2).max(axis=(3, 5))
    y = y.reshape(n, 16 * 5 * 5)
    y = jax.nn.relu(y @ p["fc1_w"].T + p["fc1_b"])
    y = jax.nn.relu(y @ p["fc2_w"].T + p["fc2_b"])
    return y @ p["fc3_w"].T + p["fc3_b"]


if __name__ == "__main__":
    key = jax.random.PRNGKey(0)
    k_params, k_x = jax.random.split(key)
    params = init_params(k_params)
    kp = prepare_params(params)            # one-time weight repack / pad / cast
    # LeNet-5 requires 32x32 single-channel input (so the flatten is 16*5*5).
    x = jax.random.normal(k_x, (2, 1, 32, 32), jnp.float32)

    fwd = jax.jit(net_forward)
    out = jax.block_until_ready(fwd(kp, x))
    assert out.shape == (2, 10) and out.dtype == jnp.float32

    # bf16 MXU operands / f32 accumulation => ~1e-2-level deviation from the f32 ref.
    ref = jax.block_until_ready(jax.jit(net_reference)(params, x))
    np.testing.assert_allclose(np.asarray(out), np.asarray(ref), rtol=5e-2, atol=5e-2)
    print("KERNEL_OK")
</pallas_src>

<mosaic_0001>
module attributes {stable_mosaic.version = 11 : i64} {
  func.func @_lenet_kernel(%arg0: i32, %arg1: memref<1x32x32xbf16, #tpu.memory_space<vmem>>, %arg2: memref<160x3584xbf16, #tpu.memory_space<vmem>>, %arg3: memref<1x3584xf32, #tpu.memory_space<vmem>>, %arg4: memref<3200x128xbf16, #tpu.memory_space<vmem>>, %arg5: memref<1x128xf32, #tpu.memory_space<vmem>>, %arg6: memref<3200x128xbf16, #tpu.memory_space<vmem>>, %arg7: memref<1x128xf32, #tpu.memory_space<vmem>>, %arg8: memref<128x128xbf16, #tpu.memory_space<vmem>>, %arg9: memref<1x128xf32, #tpu.memory_space<vmem>>, %arg10: memref<128x128xbf16, #tpu.memory_space<vmem>>, %arg11: memref<1x128xf32, #tpu.memory_space<vmem>>, %arg12: memref<1x1x128xf32, #tpu.memory_space<vmem>>, %arg13: memref<28x14x128xf32, #tpu.memory_space<vmem>>, %arg14: memref<100x128xf32, #tpu.memory_space<vmem>>, %arg15: memref<10x5x128xf32, #tpu.memory_space<vmem>>) attributes {dimension_semantics = [#tpu.dimension_semantics<parallel>], iteration_bounds = array<i64: 2>, scalar_prefetch = 0 : i64, scratch_operands = 3 : i64, tpu.core_type = #tpu.core_type<tc>, window_params = [{transform_indices = @transform_0, window_bounds = array<i64: 1, 32, 32>}, {pipeline_mode = #tpu.pipeline_mode<synchronous>, transform_indices = @transform_1, window_bounds = array<i64: 160, 3584>}, {pipeline_mode = #tpu.pipeline_mode<synchronous>, transform_indices = @transform_2, window_bounds = array<i64: 1, 3584>}, {pipeline_mode = #tpu.pipeline_mode<synchronous>, transform_indices = @transform_3, window_bounds = array<i64: 3200, 128>}, {pipeline_mode = #tpu.pipeline_mode<synchronous>, transform_indices = @transform_4, window_bounds = array<i64: 1, 128>}, {pipeline_mode = #tpu.pipeline_mode<synchronous>, transform_indices = @transform_5, window_bounds = array<i64: 3200, 128>}, {pipeline_mode = #tpu.pipeline_mode<synchronous>, transform_indices = @transform_6, window_bounds = array<i64: 1, 128>}, {pipeline_mode = #tpu.pipeline_mode<synchronous>, transform_indices = @transform_7, window_bounds = array<i64: 128, 128>}, {pipeline_mode = #tpu.pipeline_mode<synchronous>, transform_indices = @transform_8, window_bounds = array<i64: 1, 128>}, {pipeline_mode = #tpu.pipeline_mode<synchronous>, transform_indices = @transform_9, window_bounds = array<i64: 128, 128>}, {pipeline_mode = #tpu.pipeline_mode<synchronous>, transform_indices = @transform_10, window_bounds = array<i64: 1, 128>}, {transform_indices = @transform_11, window_bounds = array<i64: 1, 1, 128>}]} {
    %c0 = arith.constant 0 : index
    %c0_0 = arith.constant 0 : index
    %c0_1 = arith.constant 0 : index
    %0 = vector.load %arg1[%c0, %c0_0, %c0_1] : memref<1x32x32xbf16, #tpu.memory_space<vmem>>, vector<1x32x32xbf16>
    %1 = vector.extract_strided_slice %0 {offsets = [0, 0, 0], sizes = [1, 28, 32], strides = [1, 1, 1]} : vector<1x32x32xbf16> to vector<1x28x32xbf16>
    %2 = vector.extract_strided_slice %0 {offsets = [0, 1, 0], sizes = [1, 28, 32], strides = [1, 1, 1]} : vector<1x32x32xbf16> to vector<1x28x32xbf16>
    %3 = vector.extract_strided_slice %0 {offsets = [0, 2, 0], sizes = [1, 28, 32], strides = [1, 1, 1]} : vector<1x32x32xbf16> to vector<1x28x32xbf16>
    %4 = vector.extract_strided_slice %0 {offsets = [0, 3, 0], sizes = [1, 28, 32], strides = [1, 1, 1]} : vector<1x32x32xbf16> to vector<1x28x32xbf16>
    %5 = vector.extract_strided_slice %0 {offsets = [0, 4, 0], sizes = [1, 28, 32], strides = [1, 1, 1]} : vector<1x32x32xbf16> to vector<1x28x32xbf16>
    %6 = tpu.concatenate %1, %2, %3, %4, %5 in 2 : vector<1x28x32xbf16>, vector<1x28x32xbf16>, vector<1x28x32xbf16>, vector<1x28x32xbf16>, vector<1x28x32xbf16> -> vector<1x28x160xbf16>
    %7 = vector.shape_cast %6 : vector<1x28x160xbf16> to vector<28x160xbf16>
    %c0_2 = arith.constant 0 : index
    %c0_3 = arith.constant 0 : index
    %8 = vector.load %arg2[%c0_2, %c0_3] : memref<160x3584xbf16, #tpu.memory_space<vmem>>, vector<160x3584xbf16>
    %cst = arith.constant dense<0.000000e+00> : vector<28x3584xf32>
    %9 = tpu.matmul %7, %8, %cst {dimension_numbers = #tpu.dot_dimension_numbers<[1], [0], [0], [1], [0, 0, 1, 1], [], []>} : vector<28x160xbf16>, vector<160x3584xbf16>, vector<28x3584xf32> -> vector<28x3584xf32>
    %c0_4 = arith.constant 0 : index
    %c0_5 = arith.constant 0 : index
    %10 = vector.load %arg3[%c0_4, %c0_5] : memref<1x3584xf32, #tpu.memory_space<vmem>>, vector<1x3584xf32>
    %11 = vector.broadcast %10 : vector<1x3584xf32> to vector<28x3584xf32>
    %12 = arith.addf %9, %11 : vector<28x3584xf32>
    %cst_6 = arith.constant 0.000000e+00 : f32
    %13 = vector.broadcast %cst_6 : f32 to vector<28x3584xf32>
    %14 = arith.maximumf %12, %13 : vector<28x3584xf32>
    %15 = vector.extract_strided_slice %14 {offsets = [0, 0], sizes = [28, 1792], strides = [1, 1]} : vector<28x3584xf32> to vector<28x1792xf32>
    %16 = vector.extract_strided_slice %14 {offsets = [0, 1792], sizes = [28, 1792], strides = [1, 1]} : vector<28x3584xf32> to vector<28x1792xf32>
    %17 = arith.maximumf %15, %16 : vector<28x1792xf32>
    %18 = vector.shape_cast %17 : vector<28x1792xf32> to vector<28x14x128xf32>
    %c0_7 = arith.constant 0 : index
    %c0_8 = arith.constant 0 : index
    %c0_9 = arith.constant 0 : index
    %19 = vector.load %arg13[%c0_7, %c0_8, %c0_9] : memref<28x14x128xf32, #tpu.memory_space<vmem>>, vector<28x14x128xf32>
    tpu.vector_store %arg13[%c0_7, %c0_8, %c0_9], %18 {strides = array<i32>} : memref<28x14x128xf32, #tpu.memory_space<vmem>>, vector<28x14x128xf32>,
    %c0_10 = arith.constant 0 : index
    %c0_11 = arith.constant 0 : index
    %c0_12 = arith.constant 0 : index
    %20 = tpu.strided_load %arg13[%c0_10, %c0_11, %c0_12] {strides = array<i32: 2, 1, 1>} : memref<28x14x128xf32, #tpu.memory_space<vmem>>, vector<14x14x128xf32>
    %c1 = arith.constant 1 : index
    %c0_13 = arith.constant 0 : index
    %c0_14 = arith.constant 0 : index
    %21 = tpu.strided_load %arg13[%c1, %c0_13, %c0_14] {strides = array<i32: 2, 1, 1>} : memref<28x14x128xf32, #tpu.memory_space<vmem>>, vector<14x14x128xf32>
    %22 = arith.maximumf %20, %21 : vector<14x14x128xf32>
    %23 = arith.truncf %22 : vector<14x14x128xf32> to vector<14x14x128xbf16>
    %24 = vector.shape_cast %23 : vector<14x14x128xbf16> to vector<1x14x14x128xbf16>
    %25 = vector.extract_strided_slice %24 {offsets = [0, 0, 0, 0], sizes = [1, 10, 10, 128], strides = [1, 1, 1, 1]} : vector<1x14x14x128xbf16> to vector<1x10x10x128xbf16>
    %26 = vector.extract_strided_slice %24 {offsets = [0, 0, 1, 0], sizes = [1, 10, 10, 128], strides = [1, 1, 1, 1]} : vector<1x14x14x128xbf16> to vector<1x10x10x128xbf16>
    %27 = vector.extract_strided_slice %24 {offsets = [0, 0, 2, 0], sizes = [1, 10, 10, 128], strides = [1, 1, 1, 1]} : vector<1x14x14x128xbf16> to vector<1x10x10x128xbf16>
    %28 = vector.extract_strided_slice %24 {offsets = [0, 0, 3, 0], sizes = [1, 10, 10, 128], strides = [1, 1, 1, 1]} : vector<1x14x14x128xbf16> to vector<1x10x10x128xbf16>
    %29 = vector.extract_strided_slice %24 {offsets = [0, 0, 4, 0], sizes = [1, 10, 10, 128], strides = [1, 1, 1, 1]} : vector<1x14x14x128xbf16> to vector<1x10x10x128xbf16>
    %30 = vector.extract_strided_slice %24 {offsets = [0, 1, 0, 0], sizes = [1, 10, 10, 128], strides = [1, 1, 1, 1]} : vector<1x14x14x128xbf16> to vector<1x10x10x128xbf16>
    %31 = vector.extract_strided_slice %24 {offsets = [0, 1, 1, 0], sizes = [1, 10, 10, 128], strides = [1, 1, 1, 1]} : vector<1x14x14x128xbf16> to vector<1x10x10x128xbf16>
    %32 = vector.extract_strided_slice %24 {offsets = [0, 1, 2, 0], sizes = [1, 10, 10, 128], strides = [1, 1, 1, 1]} : vector<1x14x14x128xbf16> to vector<1x10x10x128xbf16>
    %33 = vector.extract_strided_slice %24 {offsets = [0, 1, 3, 0], sizes = [1, 10, 10, 128], strides = [1, 1, 1, 1]} : vector<1x14x14x128xbf16> to vector<1x10x10x128xbf16>
    %34 = vector.extract_strided_slice %24 {offsets = [0, 1, 4, 0], sizes = [1, 10, 10, 128], strides = [1, 1, 1, 1]} : vector<1x14x14x128xbf16> to vector<1x10x10x128xbf16>
    %35 = vector.extract_strided_slice %24 {offsets = [0, 2, 0, 0], sizes = [1, 10, 10, 128], strides = [1, 1, 1, 1]} : vector<1x14x14x128xbf16> to vector<1x10x10x128xbf16>
    %36 = vector.extract_strided_slice %24 {offsets = [0, 2, 1, 0], sizes = [1, 10, 10, 128], strides = [1, 1, 1, 1]} : vector<1x14x14x128xbf16> to vector<1x10x10x128xbf16>
    %37 = vector.extract_strided_slice %24 {offsets = [0, 2, 2, 0], sizes = [1, 10, 10, 128], strides = [1, 1, 1, 1]} : vector<1x14x14x128xbf16> to vector<1x10x10x128xbf16>
    %38 = vector.extract_strided_slice %24 {offsets = [0, 2, 3, 0], sizes = [1, 10, 10, 128], strides = [1, 1, 1, 1]} : vector<1x14x14x128xbf16> to vector<1x10x10x128xbf16>
    %39 = vector.extract_strided_slice %24 {offsets = [0, 2, 4, 0], sizes = [1, 10, 10, 128], strides = [1, 1, 1, 1]} : vector<1x14x14x128xbf16> to vector<1x10x10x128xbf16>
    %40 = vector.extract_strided_slice %24 {offsets = [0, 3, 0, 0], sizes = [1, 10, 10, 128], strides = [1, 1, 1, 1]} : vector<1x14x14x128xbf16> to vector<1x10x10x128xbf16>
    %41 = vector.extract_strided_slice %24 {offsets = [0, 3, 1, 0], sizes = [1, 10, 10, 128], strides = [1, 1, 1, 1]} : vector<1x14x14x128xbf16> to vector<1x10x10x128xbf16>
    %42 = vector.extract_strided_slice %24 {offsets = [0, 3, 2, 0], sizes = [1, 10, 10, 128], strides = [1, 1, 1, 1]} : vector<1x14x14x128xbf16> to vector<1x10x10x128xbf16>
    %43 = vector.extract_strided_slice %24 {offsets = [0, 3, 3, 0], sizes = [1, 10, 10, 128], strides = [1, 1, 1, 1]} : vector<1x14x14x128xbf16> to vector<1x10x10x128xbf16>
    %44 = vector.extract_strided_slice %24 {offsets = [0, 3, 4, 0], sizes = [1, 10, 10, 128], strides = [1, 1, 1, 1]} : vector<1x14x14x128xbf16> to vector<1x10x10x128xbf16>
    %45 = vector.extract_strided_slice %24 {offsets = [0, 4, 0, 0], sizes = [1, 10, 10, 128], strides = [1, 1, 1, 1]} : vector<1x14x14x128xbf16> to vector<1x10x10x128xbf16>
    %46 = vector.extract_strided_slice %24 {offsets = [0, 4, 1, 0], sizes = [1, 10, 10, 128], strides = [1, 1, 1, 1]} : vector<1x14x14x128xbf16> to vector<1x10x10x128xbf16>
    %47 = vector.extract_strided_slice %24 {offsets = [0, 4, 2, 0], sizes = [1, 10, 10, 128], strides = [1, 1, 1, 1]} : vector<1x14x14x128xbf16> to vector<1x10x10x128xbf16>
    %48 = vector.extract_strided_slice %24 {offsets = [0, 4, 3, 0], sizes = [1, 10, 10, 128], strides = [1, 1, 1, 1]} : vector<1x14x14x128xbf16> to vector<1x10x10x128xbf16>
    %49 = vector.extract_strided_slice %24 {offsets = [0, 4, 4, 0], sizes = [1, 10, 10, 128], strides = [1, 1, 1, 1]} : vector<1x14x14x128xbf16> to vector<1x10x10x128xbf16>
    %50 = tpu.concatenate %25, %26, %27, %28, %29, %30, %31, %32, %33, %34, %35, %36, %37, %38, %39, %40 in 3 : vector<1x10x10x128xbf16>, vector<1x10x10x128xbf16>, vector<1x10x10x128xbf16>, vector<1x10x10x128xbf16>, vector<1x10x10x128xbf16>, vector<1x10x10x128xbf16>, vector<1x10x10x128xbf16>, vector<1x10x10x128xbf16>, vector<1x10x10x128xbf16>, vector<1x10x10x128xbf16>, vector<1x10x10x128xbf16>, vector<1x10x10x128xbf16>, vector<1x10x10x128xbf16>, vector<1x10x10x128xbf16>, vector<1x10x10x128xbf16>, vector<1x10x10x128xbf16> -> vector<1x10x10x2048xbf16>
    %51 = tpu.concatenate %41, %42, %43, %44, %45, %46, %47, %48, %49 in 3 : vector<1x10x10x128xbf16>, vector<1x10x10x128xbf16>, vector<1x10x10x128xbf16>, vector<1x10x10x128xbf16>, vector<1x10x10x128xbf16>, vector<1x10x10x128xbf16>, vector<1x10x10x128xbf16>, vector<1x10x10x128xbf16>, vector<1x10x10x128xbf16> -> vector<1x10x10x1152xbf16>
    %52 = tpu.concatenate %50, %51 in 3 : vector<1x10x10x2048xbf16>, vector<1x10x10x1152xbf16> -> vector<1x10x10x3200xbf16>
    %53 = vector.shape_cast %52 : vector<1x10x10x3200xbf16> to vector<100x3200xbf16>
    %c0_15 = arith.constant 0 : index
    %c0_16 = arith.constant 0 : index
    %54 = vector.load %arg4[%c0_15, %c0_16] : memref<3200x128xbf16, #tpu.memory_space<vmem>>, vector<3200x128xbf16>
    %cst_17 = arith.constant dense<0.000000e+00> : vector<100x128xf32>
    %55 = tpu.matmul %53, %54, %cst_17 {dimension_numbers = #tpu.dot_dimension_numbers<[1], [0], [0], [1], [0, 0, 1, 1], [], []>} : vector<100x3200xbf16>, vector<3200x128xbf16>, vector<100x128xf32> -> vector<100x128xf32>
    %c0_18 = arith.constant 0 : index
    %c0_19 = arith.constant 0 : index
    %56 = vector.load %arg5[%c0_18, %c0_19] : memref<1x128xf32, #tpu.memory_space<vmem>>, vector<1x128xf32>
    %57 = vector.broadcast %56 : vector<1x128xf32> to vector<100x128xf32>
    %58 = arith.addf %55, %57 : vector<100x128xf32>
    %cst_20 = arith.constant 0.000000e+00 : f32
    %59 = vector.broadcast %cst_20 : f32 to vector<100x128xf32>
    %60 = arith.maximumf %58, %59 : vector<100x128xf32>
    %c0_21 = arith.constant 0 : index
    %c0_22 = arith.constant 0 : index
    %61 = vector.load %arg14[%c0_21, %c0_22] : memref<100x128xf32, #tpu.memory_space<vmem>>, vector<100x128xf32>
    tpu.vector_store %arg14[%c0_21, %c0_22], %60 {strides = array<i32>} : memref<100x128xf32, #tpu.memory_space<vmem>>, vector<100x128xf32>,
    %c0_23 = arith.constant 0 : index
    %c0_24 = arith.constant 0 : index
    %62 = tpu.strided_load %arg14[%c0_23, %c0_24] {strides = array<i32: 2, 1>} : memref<100x128xf32, #tpu.memory_space<vmem>>, vector<50x128xf32>
    %c1_25 = arith.constant 1 : index
    %c0_26 = arith.constant 0 : index
    %63 = tpu.strided_load %arg14[%c1_25, %c0_26] {strides = array<i32: 2, 1>} : memref<100x128xf32, #tpu.memory_space<vmem>>, vector<50x128xf32>
    %64 = arith.maximumf %62, %63 : vector<50x128xf32>
    %65 = vector.shape_cast %64 : vector<50x128xf32> to vector<10x5x128xf32>
    %c0_27 = arith.constant 0 : index
    %c0_28 = arith.constant 0 : index
    %c0_29 = arith.constant 0 : index
    %66 = vector.load %arg15[%c0_27, %c0_28, %c0_29] : memref<10x5x128xf32, #tpu.memory_space<vmem>>, vector<10x5x128xf32>
    tpu.vector_store %arg15[%c0_27, %c0_28, %c0_29], %65 {strides = array<i32>} : memref<10x5x128xf32, #tpu.memory_space<vmem>>, vector<10x5x128xf32>,
    %c0_30 = arith.constant 0 : index
    %c0_31 = arith.constant 0 : index
    %c0_32 = arith.constant 0 : index
    %67 = tpu.strided_load %arg15[%c0_30, %c0_31, %c0_32] {strides = array<i32: 2, 1, 1>} : memref<10x5x128xf32, #tpu.memory_space<vmem>>, vector<5x5x128xf32>
    %c1_33 = arith.constant 1 : index
    %c0_34 = arith.constant 0 : index
    %c0_35 = arith.constant 0 : index
    %68 = tpu.strided_load %arg15[%c1_33, %c0_34, %c0_35] {strides = array<i32: 2, 1, 1>} : memref<10x5x128xf32, #tpu.memory_space<vmem>>, vector<5x5x128xf32>
    %69 = arith.maximumf %67, %68 : vector<5x5x128xf32>
    %70 = arith.truncf %69 : vector<5x5x128xf32> to vector<5x5x128xbf16>
    %71 = vector.shape_cast %70 : vector<5x5x128xbf16> to vector<1x5x5x128xbf16>
    %72 = vector.extract_strided_slice %71 {offsets = [0, 0, 0, 0], sizes = [1, 1, 1, 128], strides = [1, 1, 1, 1]} : vector<1x5x5x128xbf16> to vector<1x1x1x128xbf16>
    %73 = vector.shape_cast %72 : vector<1x1x1x128xbf16> to vector<1x128xbf16>
    %74 = vector.extract_strided_slice %71 {offsets = [0, 0, 1, 0], sizes = [1, 1, 1, 128], strides = [1, 1, 1, 1]} : vector<1x5x5x128xbf16> to vector<1x1x1x128xbf16>
    %75 = vector.shape_cast %74 : vector<1x1x1x128xbf16> to vector<1x128xbf16>
    %76 = vector.extract_strided_slice %71 {offsets = [0, 0, 2, 0], sizes = [1, 1, 1, 128], strides = [1, 1, 1, 1]} : vector<1x5x5x128xbf16> to vector<1x1x1x128xbf16>
    %77 = vector.shape_cast %76 : vector<1x1x1x128xbf16> to vector<1x128xbf16>
    %78 = vector.extract_strided_slice %71 {offsets = [0, 0, 3, 0], sizes = [1, 1, 1, 128], strides = [1, 1, 1, 1]} : vector<1x5x5x128xbf16> to vector<1x1x1x128xbf16>
    %79 = vector.shape_cast %78 : vector<1x1x1x128xbf16> to vector<1x128xbf16>
    %80 = vector.extract_strided_slice %71 {offsets = [0, 0, 4, 0], sizes = [1, 1, 1, 128], strides = [1, 1, 1, 1]} : vector<1x5x5x128xbf16> to vector<1x1x1x128xbf16>
    %81 = vector.shape_cast %80 : vector<1x1x1x128xbf16> to vector<1x128xbf16>
    %82 = vector.extract_strided_slice %71 {offsets = [0, 1, 0, 0], sizes = [1, 1, 1, 128], strides = [1, 1, 1, 1]} : vector<1x5x5x128xbf16> to vector<1x1x1x128xbf16>
    %83 = vector.shape_cast %82 : vector<1x1x1x128xbf16> to vector<1x128xbf16>
    %84 = vector.extract_strided_slice %71 {offsets = [0, 1, 1, 0], sizes = [1, 1, 1, 128], strides = [1, 1, 1, 1]} : vector<1x5x5x128xbf16> to vector<1x1x1x128xbf16>
    %85 = vector.shape_cast %84 : vector<1x1x1x128xbf16> to vector<1x128xbf16>
    %86 = vector.extract_strided_slice %71 {offsets = [0, 1, 2, 0], sizes = [1, 1, 1, 128], strides = [1, 1, 1, 1]} : vector<1x5x5x128xbf16> to vector<1x1x1x128xbf16>
    %87 = vector.shape_cast %86 : vector<1x1x1x128xbf16> to vector<1x128xbf16>
    %88 = vector.extract_strided_slice %71 {offsets = [0, 1, 3, 0], sizes = [1, 1, 1, 128], strides = [1, 1, 1, 1]} : vector<1x5x5x128xbf16> to vector<1x1x1x128xbf16>
    %89 = vector.shape_cast %88 : vector<1x1x1x128xbf16> to vector<1x128xbf16>
    %90 = vector.extract_strided_slice %71 {offsets = [0, 1, 4, 0], sizes = [1, 1, 1, 128], strides = [1, 1, 1, 1]} : vector<1x5x5x128xbf16> to vector<1x1x1x128xbf16>
    %91 = vector.shape_cast %90 : vector<1x1x1x128xbf16> to vector<1x128xbf16>
    %92 = vector.extract_strided_slice %71 {offsets = [0, 2, 0, 0], sizes = [1, 1, 1, 128], strides = [1, 1, 1, 1]} : vector<1x5x5x128xbf16> to vector<1x1x1x128xbf16>
    %93 = vector.shape_cast %92 : vector<1x1x1x128xbf16> to vector<1x128xbf16>
    %94 = vector.extract_strided_slice %71 {offsets = [0, 2, 1, 0], sizes = [1, 1, 1, 128], strides = [1, 1, 1, 1]} : vector<1x5x5x128xbf16> to vector<1x1x1x128xbf16>
    %95 = vector.shape_cast %94 : vector<1x1x1x128xbf16> to vector<1x128xbf16>
    %96 = vector.extract_strided_slice %71 {offsets = [0, 2, 2, 0], sizes = [1, 1, 1, 128], strides = [1, 1, 1, 1]} : vector<1x5x5x128xbf16> to vector<1x1x1x128xbf16>
    %97 = vector.shape_cast %96 : vector<1x1x1x128xbf16> to vector<1x128xbf16>
    %98 = vector.extract_strided_slice %71 {offsets = [0, 2, 3, 0], sizes = [1, 1, 1, 128], strides = [1, 1, 1, 1]} : vector<1x5x5x128xbf16> to vector<1x1x1x128xbf16>
    %99 = vector.shape_cast %98 : vector<1x1x1x128xbf16> to vector<1x128xbf16>
    %100 = vector.extract_strided_slice %71 {offsets = [0, 2, 4, 0], sizes = [1, 1, 1, 128], strides = [1, 1, 1, 1]} : vector<1x5x5x128xbf16> to vector<1x1x1x128xbf16>
    %101 = vector.shape_cast %100 : vector<1x1x1x128xbf16> to vector<1x128xbf16>
    %102 = vector.extract_strided_slice %71 {offsets = [0, 3, 0, 0], sizes = [1, 1, 1, 128], strides = [1, 1, 1, 1]} : vector<1x5x5x128xbf16> to vector<1x1x1x128xbf16>
    %103 = vector.shape_cast %102 : vector<1x1x1x128xbf16> to vector<1x128xbf16>
    %104 = vector.extract_strided_slice %71 {offsets = [0, 3, 1, 0], sizes = [1, 1, 1, 128], strides = [1, 1, 1, 1]} : vector<1x5x5x128xbf16> to vector<1x1x1x128xbf16>
    %105 = vector.shape_cast %104 : vector<1x1x1x128xbf16> to vector<1x128xbf16>
    %106 = vector.extract_strided_slice %71 {offsets = [0, 3, 2, 0], sizes = [1, 1, 1, 128], strides = [1, 1, 1, 1]} : vector<1x5x5x128xbf16> to vector<1x1x1x128xbf16>
    %107 = vector.shape_cast %106 : vector<1x1x1x128xbf16> to vector<1x128xbf16>
    %108 = vector.extract_strided_slice %71 {offsets = [0, 3, 3, 0], sizes = [1, 1, 1, 128], strides = [1, 1, 1, 1]} : vector<1x5x5x128xbf16> to vector<1x1x1x128xbf16>
    %109 = vector.shape_cast %108 : vector<1x1x1x128xbf16> to vector<1x128xbf16>
    %110 = vector.extract_strided_slice %71 {offsets = [0, 3, 4, 0], sizes = [1, 1, 1, 128], strides = [1, 1, 1, 1]} : vector<1x5x5x128xbf16> to vector<1x1x1x128xbf16>
    %111 = vector.shape_cast %110 : vector<1x1x1x128xbf16> to vector<1x128xbf16>
    %112 = vector.extract_strided_slice %71 {offsets = [0, 4, 0, 0], sizes = [1, 1, 1, 128], strides = [1, 1, 1, 1]} : vector<1x5x5x128xbf16> to vector<1x1x1x128xbf16>
    %113 = vector.shape_cast %112 : vector<1x1x1x128xbf16> to vector<1x128xbf16>
    %114 = vector.extract_strided_slice %71 {offsets = [0, 4, 1, 0], sizes = [1, 1, 1, 128], strides = [1, 1, 1, 1]} : vector<1x5x5x128xbf16> to vector<1x1x1x128xbf16>
    %115 = vector.shape_cast %114 : vector<1x1x1x128xbf16> to vector<1x128xbf16>
    %116 = vector.extract_strided_slice %71 {offsets = [0, 4, 2, 0], sizes = [1, 1, 1, 128], strides = [1, 1, 1, 1]} : vector<1x5x5x128xbf16> to vector<1x1x1x128xbf16>
    %117 = vector.shape_cast %116 : vector<1x1x1x128xbf16> to vector<1x128xbf16>
    %118 = vector.extract_strided_slice %71 {offsets = [0, 4, 3, 0], sizes = [1, 1, 1, 128], strides = [1, 1, 1, 1]} : vector<1x5x5x128xbf16> to vector<1x1x1x128xbf16>
    %119 = vector.shape_cast %118 : vector<1x1x1x128xbf16> to vector<1x128xbf16>
    %120 = vector.extract_strided_slice %71 {offsets = [0, 4, 4, 0], sizes = [1, 1, 1, 128], strides = [1, 1, 1, 1]} : vector<1x5x5x128xbf16> to vector<1x1x1x128xbf16>
    %121 = vector.shape_cast %120 : vector<1x1x1x128xbf16> to vector<1x128xbf16>
    %122 = tpu.concatenate %73, %75, %77, %79, %81, %83, %85, %87, %89, %91, %93, %95, %97, %99, %101, %103 in 1 : vector<1x128xbf16>, vector<1x128xbf16>, vector<1x128xbf16>, vector<1x128xbf16>, vector<1x128xbf16>, vector<1x128xbf16>, vector<1x128xbf16>, vector<1x128xbf16>, vector<1x128xbf16>, vector<1x128xbf16>, vector<1x128xbf16>, vector<1x128xbf16>, vector<1x128xbf16>, vector<1x128xbf16>, vector<1x128xbf16>, vector<1x128xbf16> -> vector<1x2048xbf16>
    %123 = tpu.concatenate %105, %107, %109, %111, %113, %115, %117, %119, %121 in 1 : vector<1x128xbf16>, vector<1x128xbf16>, vector<1x128xbf16>, vector<1x128xbf16>, vector<1x128xbf16>, vector<1x128xbf16>, vector<1x128xbf16>, vector<1x128xbf16>, vector<1x128xbf16> -> vector<1x1152xbf16>
    %124 = tpu.concatenate %122, %123 in 1 : vector<1x2048xbf16>, vector<1x1152xbf16> -> vector<1x3200xbf16>
    %c0_36 = arith.constant 0 : index
    %c0_37 = arith.constant 0 : index
    %125 = vector.load %arg6[%c0_36, %c0_37] : memref<3200x128xbf16, #tpu.memory_space<vmem>>, vector<3200x128xbf16>
    %cst_38 = arith.constant dense<0.000000e+00> : vector<1x128xf32>
    %126 = tpu.matmul %124, %125, %cst_38 {dimension_numbers = #tpu.dot_dimension_numbers<[1], [0], [0], [1], [0, 0, 1, 1], [], []>} : vector<1x3200xbf16>, vector<3200x128xbf16>, vector<1x128xf32> -> vector<1x128xf32>
    %c0_39 = arith.constant 0 : index
    %c0_40 = arith.constant 0 : index
    %127 = vector.load %arg7[%c0_39, %c0_40] : memref<1x128xf32, #tpu.memory_space<vmem>>, vector<1x128xf32>
    %128 = arith.addf %126, %127 : vector<1x128xf32>
    %cst_41 = arith.constant 0.000000e+00 : f32
    %129 = vector.broadcast %cst_41 : f32 to vector<1x128xf32>
    %130 = arith.maximumf %128, %129 : vector<1x128xf32>
    %131 = arith.truncf %130 : vector<1x128xf32> to vector<1x128xbf16>
    %c0_42 = arith.constant 0 : index
    %c0_43 = arith.constant 0 : index
    %132 = vector.load %arg8[%c0_42, %c0_43] : memref<128x128xbf16, #tpu.memory_space<vmem>>, vector<128x128xbf16>
    %cst_44 = arith.constant dense<0.000000e+00> : vector<1x128xf32>
    %133 = tpu.matmul %131, %132, %cst_44 {dimension_numbers = #tpu.dot_dimension_numbers<[1], [0], [0], [1], [0, 0, 1, 1], [], []>} : vector<1x128xbf16>, vector<128x128xbf16>, vector<1x128xf32> -> vector<1x128xf32>
    %c0_45 = arith.constant 0 : index
    %c0_46 = arith.constant 0 : index
    %134 = vector.load %arg9[%c0_45, %c0_46] : memref<1x128xf32, #tpu.memory_space<vmem>>, vector<1x128xf32>
    %135 = arith.addf %133, %134 : vector<1x128xf32>
    %cst_47 = arith.constant 0.000000e+00 : f32
    %136 = vector.broadcast %cst_47 : f32 to vector<1x128xf32>
    %137 = arith.maximumf %135, %136 : vector<1x128xf32>
    %138 = arith.truncf %137 : vector<1x128xf32> to vector<1x128xbf16>
    %c0_48 = arith.constant 0 : index
    %c0_49 = arith.constant 0 : index
    %139 = vector.load %arg10[%c0_48, %c0_49] : memref<128x128xbf16, #tpu.memory_space<vmem>>, vector<128x128xbf16>
    %cst_50 = arith.constant dense<0.000000e+00> : vector<1x128xf32>
    %140 = tpu.matmul %138, %139, %cst_50 {dimension_numbers = #tpu.dot_dimension_numbers<[1], [0], [0], [1], [0, 0, 1, 1], [], []>} : vector<1x128xbf16>, vector<128x128xbf16>, vector<1x128xf32> -> vector<1x128xf32>
    %c0_51 = arith.constant 0 : index
    %c0_52 = arith.constant 0 : index
    %141 = vector.load %arg11[%c0_51, %c0_52] : memref<1x128xf32, #tpu.memory_space<vmem>>, vector<1x128xf32>
    %142 = arith.addf %140, %141 : vector<1x128xf32>
    %c0_53 = arith.constant 0 : index
    %c0_54 = arith.constant 0 : index
    %c0_55 = arith.constant 0 : index
    %143 = vector.load %arg12[%c0_53, %c0_54, %c0_55] : memref<1x1x128xf32, #tpu.memory_space<vmem>>, vector<1x1x128xf32>
    %144 = vector.shape_cast %143 : vector<1x1x128xf32> to vector<1x128xf32>
    %145 = vector.shape_cast %142 : vector<1x128xf32> to vector<1x1x128xf32>
    tpu.vector_store %arg12[%c0_53, %c0_54, %c0_55], %145 {strides = array<i32>} : memref<1x1x128xf32, #tpu.memory_space<vmem>>, vector<1x1x128xf32>,
    return
  }
  func.func @transform_0(%arg0: i32) -> (i32, i32, i32) {
    %c0_i32 = arith.constant 0 : i32
    %c0_i32_0 = arith.constant 0 : i32
    %c0_i32_1 = arith.constant 0 : i32
    return %arg0, %c0_i32, %c0_i32_0 : i32, i32, i32
  }
  func.func @transform_1(%arg0: i32) -> (i32, i32) {
    %c0_i32 = arith.constant 0 : i32
    %c0_i32_0 = arith.constant 0 : i32
    %c0_i32_1 = arith.constant 0 : i32
    return %c0_i32, %c0_i32_0 : i32, i32
  }
  func.func @transform_2(%arg0: i32) -> (i32, i32) {
    %c0_i32 = arith.constant 0 : i32
    %c0_i32_0 = arith.constant 0 : i32
    %c0_i32_1 = arith.constant 0 : i32
    return %c0_i32, %c0_i32_0 : i32, i32
  }
  func.func @transform_3(%arg0: i32) -> (i32, i32) {
    %c0_i32 = arith.constant 0 : i32
    %c0_i32_0 = arith.constant 0 : i32
    %c0_i32_1 = arith.constant 0 : i32
    return %c0_i32, %c0_i32_0 : i32, i32
  }
  func.func @transform_4(%arg0: i32) -> (i32, i32) {
    %c0_i32 = arith.constant 0 : i32
    %c0_i32_0 = arith.constant 0 : i32
    %c0_i32_1 = arith.constant 0 : i32
    return %c0_i32, %c0_i32_0 : i32, i32
  }
  func.func @transform_5(%arg0: i32) -> (i32, i32) {
    %c0_i32 = arith.constant 0 : i32
    %c0_i32_0 = arith.constant 0 : i32
    %c0_i32_1 = arith.constant 0 : i32
    return %c0_i32, %c0_i32_0 : i32, i32
  }
  func.func @transform_6(%arg0: i32) -> (i32, i32) {
    %c0_i32 = arith.constant 0 : i32
    %c0_i32_0 = arith.constant 0 : i32
    %c0_i32_1 = arith.constant 0 : i32
    return %c0_i32, %c0_i32_0 : i32, i32
  }
  func.func @transform_7(%arg0: i32) -> (i32, i32) {
    %c0_i32 = arith.constant 0 : i32
    %c0_i32_0 = arith.constant 0 : i32
    %c0_i32_1 = arith.constant 0 : i32
    return %c0_i32, %c0_i32_0 : i32, i32
  }
  func.func @transform_8(%arg0: i32) -> (i32, i32) {
    %c0_i32 = arith.constant 0 : i32
    %c0_i32_0 = arith.constant 0 : i32
    %c0_i32_1 = arith.constant 0 : i32
    return %c0_i32, %c0_i32_0 : i32, i32
  }
  func.func @transform_9(%arg0: i32) -> (i32, i32) {
    %c0_i32 = arith.constant 0 : i32
    %c0_i32_0 = arith.constant 0 : i32
    %c0_i32_1 = arith.constant 0 : i32
    return %c0_i32, %c0_i32_0 : i32, i32
  }
  func.func @transform_10(%arg0: i32) -> (i32, i32) {
    %c0_i32 = arith.constant 0 : i32
    %c0_i32_0 = arith.constant 0 : i32
    %c0_i32_1 = arith.constant 0 : i32
    return %c0_i32, %c0_i32_0 : i32, i32
  }
  func.func @transform_11(%arg0: i32) -> (i32, i32, i32) {
    %c0_i32 = arith.constant 0 : i32
    %c0_i32_0 = arith.constant 0 : i32
    %c0_i32_1 = arith.constant 0 : i32
    return %arg0, %c0_i32, %c0_i32_0 : i32, i32, i32
  }
}

</mosaic_0001>

<bundles_post_ra>
// kernel: net_forward.1
= control target key start
LH: loop header
LB: loop body
LE: loop exit
PB: predicated region body
PF: predicated region fallthrough
CT: control target
= control target key end

     0   :  { %s26099_s0 = inlined_call_operand.vmem [shape: bf16[2,32,32], index: 0, kind: input, shape index: {}]   ;;  %s26100_s1 = inlined_call_operand.hbm [shape: bf16[160,3584], index: 1, kind: input, shape index: {}]   ;;  %s26101_s2 = inlined_call_operand.hbm [shape: f32[1,3584], index: 2, kind: input, shape index: {}]   ;;  %s26102_s3 = inlined_call_operand.hbm [shape: bf16[3200,128], index: 3, kind: input, shape index: {}]   ;;  %s26103_s4 = inlined_call_operand.hbm [shape: f32[1,128], index: 4, kind: input, shape index: {}]   ;;  %s26104_s5 = inlined_call_operand.hbm [shape: bf16[3200,128], index: 5, kind: input, shape index: {}]   ;;  %s26105_s6 = inlined_call_operand.hbm [shape: f32[1,128], index: 6, kind: input, shape index: {}]   ;;  %s26106_s7 = inlined_call_operand.hbm [shape: bf16[128,128], index: 7, kind: input, shape index: {}]   ;;  %s26107_s8 = inlined_call_operand.hbm [shape: f32[1,128], index: 8, kind: input, shape index: {}]   ;;  %s26108_s9 = inlined_call_operand.hbm [shape: bf16[128,128], index: 9, kind: input, shape index: {}]   ;;  %s26109_s10 = inlined_call_operand.hbm [shape: f32[1,128], index: 10, kind: input, shape index: {}]   ;;  %s26110_s11 = inlined_call_operand.hbm [shape: f32[2,1,128], index: 11, kind: output, shape index: {}]  }
   0x1   :  { %26394 = sst [smem:[#allocation154_spill]] %s26101_s2 }
   0x2   :  { %26395 = sst [smem:[#allocation155_spill]] %s26103_s4 }
   0x3   :  { %16 = vsyncpa [#allocation6], 0 }
   0x4   :  { %17 = vsyncpa [#allocation9], 0 }
   0x5   :  { %18 = vsyncpa [#allocation12], 0 }
   0x6   :  { %19 = vsyncpa [#allocation15], 0 }
   0x7   :  { %20 = vsyncpa [#allocation18], 0 }
   0x8   :  { %21 = vsyncpa [#allocation21], 0 }
   0x9   :  { %22 = vsyncpa [#allocation7], 0 }
   0xa   :  { %24 = vsyncpa [#allocation7 + $0x1], 0  ;;  %s21151_s17 = smov 0   ;;  %s21153_s18 = smov 0  }
   0xb   :  { %s21155_s19 = smov 0   ;;  %s21157_s20 = smov 0  }
   0xc LB: > { %26396 = sst [smem:[#allocation30_spill]] %s21054_s17  ;;  %s21172_s21 = sadd.s32 4294967295, %s21066_s20   ;;  %s21066_s20 = sphi %s21157_s20, %s27212_s20   ;;  %s21062_s19 = sphi %s21155_s19, %s27214_s19   ;;  %s21058_s18 = sphi %s21153_s18, %s27216_s18   ;;  %s21054_s17 = sphi %s21151_s17, %s27215_s17  }
   0xd   : > { %26397 = sst [smem:[#allocation31_spill]] %s21062_s19  ;;  %s17686_s22 = sadd.s32 4294967294, %s21066_s20  }
   0xe   : > { %s21176_s23 = sadd.s32 1, %s21066_s20   ;;  %s273_s24 = sadd.s32 1, %s21062_s19 }
   0xf   : > { %26398 = sst [smem:[#allocation32_spill]] %s21176_s23  ;;  %s270_s25 = ssub.s32 %s21066_s20, %s21176_s23 }
  0x10   : > { %p283_p0 = scmp.ne.s32.totalorder %s21062_s19, %s21058_s18  ;;  %p271_p1 = scmp.eq.s32.totalorder %s270_s25, 0 }
  0x11   : > { %p284_p2 = scmp.eq.s32.totalorder %s21172_s21, 1  ;;  %p289_p3 = scmp.ne.s32.totalorder %s21058_s18, %s21054_s17 }
  0x12   : > { %p290_p4 = scmp.eq.s32.totalorder %s17686_s22, 1  ;;  %p17687_p7 = scmp.ge.s32.totalorder %s21066_s20, 1 }
  0x13   : > { %s21187_s26 = scalar_select %p271_p1, %s21062_s19, %s273_s24  }
  0x14   : > { %p21189_p5 = por %p284_p2, %p283_p0  ;;  %p21193_p6 = por %p290_p4, %p289_p3 }
  0x15   : > { %26399 = sst [smem:[#allocation33_spill]] %s21187_s26  ;;  %p297_p8 = scmp.lt.s32.totalorder %s21066_s20, 3 }
  0x16   : > { %s26400_s27 = scalar_select %p21189_p5, 1, 0 }
  0x17   : > { %s26401_s28 = scalar_select %p21193_p6, 1, 0 }
  0x18   : > { %p26114_p9 = scmp.eq.s32.totalorder %s21172_s21, 0  ;;  %p21200_p10 = pnand %p17687_p7, %p297_p8 }
  0x19   : > { %26402 = sst [smem:[#allocation34_spill]] %s26401_s28  ;;  %s21068_s30 = smov [#allocation8]  }
  0x1a   : > { %s26403_s29 = scalar_select %p21200_p10, 1, 0 }
  0x1b   : > { %s323_s12 = sshll.u32 %s21068_s30, 4  ;;  %p19751_p11 = pneg %p21200_p10  ;;  %s324_s12 = int_to_ptr.vmem [resolvable:$true] %s323_s12 }
  0x1c   : > { %s21069_s13 = smov [#allocation11]   ;;  %s21070_s16 = smov [#allocation14]  }
  0x1d   : > { %s347_s14 = sshll.u32 %s21069_s13, 4  ;;  %p21208_p12 = pnand %p26114_p9, %p19751_p11  ;;  %s21212_s14 = int_to_ptr.vmem [resolvable:$true] %s347_s14 }
  0x1e   : > { %s371_s22 = sshll.u32 %s21070_s16, 4  ;;  %s26405_s2 = sld [smem:[#allocation154_spill]]  ;;  %s21214_s22 = int_to_ptr.vmem [resolvable:$true] %s371_s22 }
  0x1f   : > { %p21224_p0 = pneg %p21208_p12 }
  0x24   : > { %s20700_s30 = scalar_lea.hbm %s26405_s2, 448 }
  0x25   : > { %p20701_p13 = scmp.ne.s32.totalorder %s26405_s2, %s20700_s30  ;;  %p20707_p3 = scmp.lt.u32.totalorder %s20700_s30, %s26405_s2 }
  0x27   : > { %p20703_p1 = pnand %p21224_p0, %p20701_p13 }
  0x29   : > { %p20704_p2 = pneg %p20703_p1 }
  0x2b   : > { %p20709_p4 = pnand %p20707_p3, %p20704_p2 }
  0x2d   : > { %20712 = shalt.err (!%p20709_p4)
}
  0x2e   : > { %s20713_s24 = scalar_lea.vmem %s324_s12, 448  ;;  %p20721_p9 = scmp.lt.s32.totalorder %s324_s12, %s324_s12 }
  0x2f   : > { %p20714_p7 = scmp.ne.s32.totalorder %s324_s12, %s20713_s24  ;;  %p20722_p6 = scmp.lt.s32.totalorder %s20713_s24, %s20713_s24 }
  0x31   : > { %p20716_p8 = pnand %p20714_p7, %p21224_p0  ;;  %p20723_p5 = por %p20722_p6, %p20721_p9 }
  0x33   : > { %p20717_p11 = pneg %p20716_p8 }
  0x35   : > { %p20724_p10 = pnand %p20723_p5, %p20717_p11 }
  0x37   : > { %20727 = shalt.err (!%p20724_p10)
}
  0x38   : > { %19757 = dma.hbm_to_vmem [thread:$0]  (!%p21208_p12), %s26405_s2, 448, %s324_s12, [#allocation9]  }
  0x39   : > { %s26407_s4 = sld [smem:[#allocation155_spill]] }
  0x3f   : > { %s20728_s30 = scalar_lea.hbm %s26407_s4, 16 }
  0x40   : > { %p20729_p13 = scmp.ne.s32.totalorder %s26407_s4, %s20728_s30  ;;  %p20735_p5 = scmp.lt.u32.totalorder %s20728_s30, %s26407_s4 }
  0x42   : > { %p20731_p1 = pnand %p20729_p13, %p21224_p0 }
  0x44   : > { %p20732_p6 = pneg %p20731_p1 }
  0x46   : > { %p20737_p9 = pnand %p20735_p5, %p20732_p6 }
  0x48   : > { %20740 = shalt.err (!%p20737_p9)
}
  0x49   : > { %s20741_s12 = scalar_lea.vmem %s21212_s14, 16  ;;  %s20748_s28 = scalar_lea.vmem %s21212_s14, 32 }
  0x4a   : > { %p20742_p10 = scmp.ne.s32.totalorder %s21212_s14, %s20741_s12  ;;  %p20749_p4 = scmp.lt.s32.totalorder %s21212_s14, %s21212_s14 }
  0x4b   : > { %p20750_p7 = scmp.lt.s32.totalorder %s20748_s28, %s20741_s12 }
  0x4c   : > { %p20744_p2 = pnand %p20742_p10, %p21224_p0 }
  0x4d   : > { %p20751_p8 = por %p20750_p7, %p20749_p4 }
  0x4e   : > { %p20745_p3 = pneg %p20744_p2 }
  0x50   : > { %p20752_p11 = pnand %p20751_p8, %p20745_p3 }
  0x52   : > { %20755 = shalt.err (!%p20752_p11)
}
  0x53   : > { %19763 = dma.hbm_to_vmem [thread:$0]  (!%p21208_p12), %s26407_s4, 16, %s21212_s14, [#allocation12]  }
  0x54   : > { %s20756_s25 = scalar_lea.hbm %s26105_s6, 16 }
  0x55   : > { %p20757_p13 = scmp.ne.s32.totalorder %s26105_s6, %s20756_s25  ;;  %p20763_p5 = scmp.lt.u32.totalorder %s20756_s25, %s26105_s6 }
  0x57   : > { %p20759_p1 = pnand %p20757_p13, %p21224_p0 }
  0x59   : > { %p20760_p6 = pneg %p20759_p1 }
  0x5b   : > { %p20765_p9 = pnand %p20763_p5, %p20760_p6 }
  0x5d   : > { %20768 = shalt.err (!%p20765_p9)
}
  0x5e   : > { %s20769_s14 = scalar_lea.vmem %s21214_s22, 16  ;;  %s20776_s28 = scalar_lea.vmem %s21214_s22, 32 }
  0x5f   : > { %p20770_p10 = scmp.ne.s32.totalorder %s21214_s22, %s20769_s14  ;;  %p20777_p4 = scmp.lt.s32.totalorder %s21214_s22, %s21214_s22 }
  0x60   : > { %p20778_p7 = scmp.lt.s32.totalorder %s20776_s28, %s20769_s14 }
  0x61   : > { %p20772_p2 = pnand %p20770_p10, %p21224_p0 }
  0x62   : > { %p20779_p8 = por %p20778_p7, %p20777_p4 }
  0x63   : > { %p20773_p3 = pneg %p20772_p2 }
  0x65   : > { %p20780_p11 = pnand %p20779_p8, %p20773_p3 }
  0x67   : > { %20783 = shalt.err (!%p20780_p11)
}
  0x68   : > { %19769 = dma.hbm_to_vmem [thread:$0]  (!%p21208_p12), %s26105_s6, 16, %s21214_s22, [#allocation15]  }
  0x69   : > { %s21071_s26 = smov [#allocation17]   ;;  %s21072_s25 = smov [#allocation5]  }
  0x6a   : > { %s395_s23 = sshll.u32 %s21071_s26, 4  ;;  %s309_s30 = sshll.u32 %s21072_s25, 4  ;;  %s396_s23 = int_to_ptr.vmem [resolvable:$true] %s395_s23  ;;  %s310_s30 = int_to_ptr.vmem [resolvable:$true] %s309_s30 }
  0x6b   : > { %s20784_s12 = scalar_lea.hbm %s26107_s8, 16 }
  0x6c   : > { %p20785_p13 = scmp.ne.s32.totalorder %s26107_s8, %s20784_s12  ;;  %p20791_p5 = scmp.lt.u32.totalorder %s20784_s12, %s26107_s8 }
  0x6e   : > { %p20787_p1 = pnand %p20785_p13, %p21224_p0 }
  0x70   : > { %p20788_p6 = pneg %p20787_p1 }
  0x72   : > { %p20793_p9 = pnand %p20791_p5, %p20788_p6 }
  0x74   : > { %20796 = shalt.err (!%p20793_p9)
}
  0x75   : > { %s20797_s22 = scalar_lea.vmem %s396_s23, 16  ;;  %s20804_s19 = scalar_lea.vmem %s396_s23, 32 }
  0x76   : > { %p20798_p10 = scmp.ne.s32.totalorder %s396_s23, %s20797_s22  ;;  %p20805_p4 = scmp.lt.s32.totalorder %s396_s23, %s396_s23 }
  0x77   : > { %p20806_p7 = scmp.lt.s32.totalorder %s20804_s19, %s20797_s22 }
  0x78   : > { %p20800_p2 = pnand %p20798_p10, %p21224_p0 }
  0x79   : > { %p20807_p8 = por %p20806_p7, %p20805_p4 }
  0x7a   : > { %p20801_p3 = pneg %p20800_p2 }
  0x7c   : > { %p20808_p11 = pnand %p20807_p8, %p20801_p3 }
  0x7e   : > { %20811 = shalt.err (!%p20808_p11)
}
  0x7f   : > { %19775 = dma.hbm_to_vmem [thread:$0]  (!%p21208_p12), %s26107_s8, 16, %s396_s23, [#allocation18]  }
  0x80   : > { %s20812_s24 = scalar_lea.hbm %s26100_s1, 35840 }
  0x81   : > { %p20813_p13 = scmp.ne.s32.totalorder %s26100_s1, %s20812_s24  ;;  %p20819_p5 = scmp.lt.u32.totalorder %s20812_s24, %s26100_s1 }
  0x83   : > { %p20815_p1 = pnand %p20813_p13, %p21224_p0 }
  0x85   : > { %p20816_p6 = pneg %p20815_p1 }
  0x87   : > { %p20821_p9 = pnand %p20819_p5, %p20816_p6 }
  0x89   : > { %20824 = shalt.err (!%p20821_p9)
}
  0x8a   : > { %s20825_s22 = scalar_lea.vmem %s310_s30, 35840  ;;  %p20833_p4 = scmp.lt.s32.totalorder %s310_s30, %s310_s30 }
  0x8b   : > { %p20826_p10 = scmp.ne.s32.totalorder %s310_s30, %s20825_s22  ;;  %p20834_p7 = scmp.lt.s32.totalorder %s20825_s22, %s20825_s22 }
  0x8d   : > { %p20828_p2 = pnand %p20826_p10, %p21224_p0  ;;  %p20835_p8 = por %p20834_p7, %p20833_p4 }
  0x8f   : > { %p20829_p3 = pneg %p20828_p2 }
  0x91   : > { %p20836_p11 = pnand %p20835_p8, %p20829_p3 }
  0x93   : > { %20839 = shalt.err (!%p20836_p11)
}
  0x94   : > { %s21073_s23 = smov 1792   ;;  %s21074_s19 = smov 112  }
  0x95   : > { %19754 = dma.hbm_to_vmem [thread:$0]  (!%p21208_p12), %s26100_s1, 35840, %s310_s30, [#allocation6], %s21073_s23, %s21073_s23, %s21074_s19  }
  0x96   : > { %s21075_s2 = smov [#allocation10]   ;;  %s20840_s14 = scalar_lea.hbm %s26102_s3, 25600 }
  0x97   : > { %s333_s16 = sshll.u32 %s21075_s2, 4  ;;  %p20841_p13 = scmp.ne.s32.totalorder %s26102_s3, %s20840_s14  ;;  %s334_s16 = int_to_ptr.vmem [resolvable:$true] %s333_s16 }
  0x98   : > { %p20847_p5 = scmp.lt.u32.totalorder %s20840_s14, %s26102_s3 }
  0x99   : > { %p20843_p1 = pnand %p20841_p13, %p21224_p0 }
  0x9b   : > { %p20844_p6 = pneg %p20843_p1 }
  0x9d   : > { %p20849_p9 = pnand %p20847_p5, %p20844_p6 }
  0x9f   : > { %20852 = shalt.err (!%p20849_p9)
}
  0xa0   : > { %s20853_s30 = scalar_lea.vmem %s334_s16, 25600  ;;  %p20861_p4 = scmp.lt.s32.totalorder %s334_s16, %s334_s16 }
  0xa1   : > { %p20854_p10 = scmp.ne.s32.totalorder %s334_s16, %s20853_s30  ;;  %p20862_p7 = scmp.lt.s32.totalorder %s20853_s30, %s20853_s30 }
  0xa3   : > { %p20856_p2 = pnand %p20854_p10, %p21224_p0  ;;  %p20863_p8 = por %p20862_p7, %p20861_p4 }
  0xa5   : > { %p20857_p3 = pneg %p20856_p2 }
  0xa7   : > { %p20864_p11 = pnand %p20863_p8, %p20857_p3 }
  0xa9   : > { %20867 = shalt.err (!%p20864_p11)
}
  0xaa   : > { %s21076_s23 = smov 64   ;;  %s21077_s19 = smov 4  }
  0xab   : > { %19760 = dma.hbm_to_vmem [thread:$0]  (!%p21208_p12), %s26102_s3, 25600, %s334_s16, [#allocation9], %s21076_s23, %s21076_s23, %s21077_s19  }
  0xac   : > { %s21078_s25 = smov [#allocation13]   ;;  %s21079_s24 = smov [#allocation16]  }
  0xad   : > { %s357_s2 = sshll.u32 %s21078_s25, 4  ;;  %s381_s12 = sshll.u32 %s21079_s24, 4  ;;  %s358_s2 = int_to_ptr.vmem [resolvable:$true] %s357_s2  ;;  %s21345_s12 = int_to_ptr.vmem [resolvable:$true] %s381_s12 }
  0xae   : > { %s20868_s17 = scalar_lea.hbm %s26104_s5, 25600 }
  0xaf   : > { %p20869_p13 = scmp.ne.s32.totalorder %s26104_s5, %s20868_s17  ;;  %p20875_p5 = scmp.lt.u32.totalorder %s20868_s17, %s26104_s5 }
  0xb1   : > { %p20871_p1 = pnand %p20869_p13, %p21224_p0 }
  0xb3   : > { %p20872_p6 = pneg %p20871_p1 }
  0xb5   : > { %p20877_p9 = pnand %p20875_p5, %p20872_p6 }
  0xb7   : > { %20880 = shalt.err (!%p20877_p9)
}
  0xb8   : > { %s20881_s26 = scalar_lea.vmem %s358_s2, 25600  ;;  %p20889_p4 = scmp.lt.s32.totalorder %s358_s2, %s358_s2 }
  0xb9   : > { %p20882_p10 = scmp.ne.s32.totalorder %s358_s2, %s20881_s26  ;;  %p20890_p7 = scmp.lt.s32.totalorder %s20881_s26, %s20881_s26 }
  0xbb   : > { %p20884_p2 = pnand %p20882_p10, %p21224_p0  ;;  %p20891_p8 = por %p20890_p7, %p20889_p4 }
  0xbd   : > { %p20885_p3 = pneg %p20884_p2 }
  0xbf   : > { %p20892_p11 = pnand %p20891_p8, %p20885_p3 }
  0xc1   : > { %20895 = shalt.err (!%p20892_p11)
}
  0xc2   : > { %19766 = dma.hbm_to_vmem [thread:$0]  (!%p21208_p12), %s26104_s5, 25600, %s358_s2, [#allocation12], %s21076_s23, %s21076_s23, %s21077_s19  }
  0xc3   : > { %s20896_s17 = scalar_lea.hbm %s26106_s7, 1024 }
  0xc4   : > { %p20897_p13 = scmp.ne.s32.totalorder %s26106_s7, %s20896_s17  ;;  %p20903_p5 = scmp.lt.u32.totalorder %s20896_s17, %s26106_s7 }
  0xc6   : > { %p20899_p1 = pnand %p20897_p13, %p21224_p0 }
  0xc8   : > { %p20900_p6 = pneg %p20899_p1 }
  0xca   : > { %p20905_p9 = pnand %p20903_p5, %p20900_p6 }
  0xcc   : > { %20908 = shalt.err (!%p20905_p9)
}
  0xcd   : > { %s20909_s2 = scalar_lea.vmem %s21345_s12, 1024  ;;  %p20917_p4 = scmp.lt.s32.totalorder %s21345_s12, %s21345_s12 }
  0xce   : > { %p20910_p10 = scmp.ne.s32.totalorder %s21345_s12, %s20909_s2  ;;  %p20918_p7 = scmp.lt.s32.totalorder %s20909_s2, %s20909_s2 }
  0xd0   : > { %p20912_p2 = pnand %p20910_p10, %p21224_p0  ;;  %p20919_p8 = por %p20918_p7, %p20917_p4 }
  0xd2   : > { %p20913_p3 = pneg %p20912_p2 }
  0xd4   : > { %p20920_p11 = pnand %p20919_p8, %p20913_p3 }
  0xd6   : > { %20923 = shalt.err (!%p20920_p11)
}
  0xd7   : > { %19772 = dma.hbm_to_vmem [thread:$0]  (!%p21208_p12), %s26106_s7, 1024, %s21345_s12, [#allocation15], %s21076_s23, %s21076_s23, %s21077_s19  }
  0xd8   : > { %s21080_s24 = smov [#allocation19]   ;;  %s21081_s28 = smov [#allocation20]  }
  0xd9   : > { %s405_s14 = sshll.u32 %s21080_s24, 4  ;;  %s419_s17 = sshll.u32 %s21081_s28, 4  ;;  %s406_s14 = int_to_ptr.vmem [resolvable:$true] %s405_s14  ;;  %s21394_s17 = int_to_ptr.vmem [resolvable:$true] %s419_s17 }
  0xda   : > { %s20924_s4 = scalar_lea.hbm %s26108_s9, 1024 }
  0xdb   : > { %p20925_p13 = scmp.ne.s32.totalorder %s26108_s9, %s20924_s4  ;;  %p20931_p5 = scmp.lt.u32.totalorder %s20924_s4, %s26108_s9 }
  0xdd   : > { %p20927_p1 = pnand %p20925_p13, %p21224_p0 }
  0xdf   : > { %p20928_p6 = pneg %p20927_p1 }
  0xe1   : > { %p20933_p9 = pnand %p20931_p5, %p20928_p6 }
  0xe3   : > { %20936 = shalt.err (!%p20933_p9)
}
  0xe4   : > { %s20937_s25 = scalar_lea.vmem %s406_s14, 1024  ;;  %p20945_p4 = scmp.lt.s32.totalorder %s406_s14, %s406_s14 }
  0xe5   : > { %p20938_p10 = scmp.ne.s32.totalorder %s406_s14, %s20937_s25  ;;  %p20946_p7 = scmp.lt.s32.totalorder %s20937_s25, %s20937_s25 }
  0xe7   : > { %p20940_p2 = pnand %p20938_p10, %p21224_p0  ;;  %p20947_p8 = por %p20946_p7, %p20945_p4 }
  0xe9   : > { %p20941_p3 = pneg %p20940_p2 }
  0xeb   : > { %p20948_p11 = pnand %p20947_p8, %p20941_p3 }
  0xed   : > { %20951 = shalt.err (!%p20948_p11)
}
  0xee   : > { %19778 = dma.hbm_to_vmem [thread:$0]  (!%p21208_p12), %s26108_s9, 1024, %s406_s14, [#allocation18], %s21076_s23, %s21076_s23, %s21077_s19  }
  0xef   : > { %s20952_s4 = scalar_lea.hbm %s26109_s10, 16 }
  0xf0   : > { %p20953_p13 = scmp.ne.s32.totalorder %s26109_s10, %s20952_s4  ;;  %p20959_p5 = scmp.lt.u32.totalorder %s20952_s4, %s26109_s10 }
  0xf2   : > { %p20955_p1 = pnand %p20953_p13, %p21224_p0 }
  0xf4   : > { %p20956_p6 = pneg %p20955_p1 }
  0xf6   : > { %p20961_p9 = pnand %p20959_p5, %p20956_p6 }
  0xf8   : > { %20964 = shalt.err (!%p20961_p9)
}
  0xf9   : > { %s20965_s23 = scalar_lea.vmem %s21394_s17, 16  ;;  %s20972_s19 = scalar_lea.vmem %s21394_s17, 32 }
  0xfa   : > { %p20966_p10 = scmp.ne.s32.totalorder %s21394_s17, %s20965_s23  ;;  %p20973_p4 = scmp.lt.s32.totalorder %s21394_s17, %s21394_s17 }
  0xfb   : > { %p20974_p7 = scmp.lt.s32.totalorder %s20972_s19, %s20965_s23 }
  0xfc   : > { %p20968_p2 = pnand %p20966_p10, %p21224_p0 }
  0xfd   : > { %p20975_p8 = por %p20974_p7, %p20973_p4 }
  0xfe   : > { %p20969_p3 = pneg %p20968_p2 }
 0x100   : > { %p20976_p11 = pnand %p20975_p8, %p20969_p3 }
 0x102   : > { %20979 = shalt.err (!%p20976_p11)
}
 0x103   : > { %19781 = dma.hbm_to_vmem [thread:$0]  (!%p21208_p12), %s26109_s10, 16, %s21394_s17, [#allocation21]  }
 0x104   : > { %p26408_p13 = scmp.ne.s32.totalorder %s26403_s29, 0 }
 0x106   : > { %440 = sbr.rel (%p26408_p13) target bundleno = 2609 (0xa31), region = 64 }
 0x10d   : > { %p26409_p0 = scmp.eq.s32.totalorder %s21172_s21, 0 }
 0x10f   : > { %21025 = dma.done.wait (%p26409_p0), [#allocation6], 35840   ;;  %p26410_p1 = pmov %p26409_p0 }
 0x110   : > { %p26411_p6 = pmov %p26409_p0 }
 0x111   : > { %21027 = vsyncadd (%p26410_p1), [#allocation6], 4294931456 }
 0x112   : > { %21029 = dma.done.wait (%p26411_p6), [#allocation9], 26048   ;;  %p26412_p5 = pmov %p26409_p0 }
 0x113   : > { %p26413_p9 = pmov %p26409_p0 }
 0x114   : > { %21031 = vsyncadd (%p26412_p5), [#allocation9], 4294941248 }
 0x115   : > { %21033 = dma.done.wait (%p26413_p9), [#allocation12], 25616   ;;  %p26414_p12 = pmov %p26409_p0 }
 0x116   : > { %p26415_p10 = pmov %p26409_p0 }
 0x117   : > { %21035 = vsyncadd (%p26414_p12), [#allocation12], 4294941680 }
 0x118   : > { %21037 = dma.done.wait (%p26415_p10), [#allocation15], 1040   ;;  %p26416_p2 = pmov %p26409_p0 }
 0x119   : > { %p26417_p3 = pmov %p26409_p0 }
 0x11a   : > { %21039 = vsyncadd (%p26416_p2), [#allocation15], 4294966256 }
 0x11b   : > { %21041 = dma.done.wait (%p26417_p3), [#allocation18], 1040   ;;  %p26418_p4 = pmov %p26409_p0 }
 0x11c   : > { %p26419_p7 = pmov %p26409_p0 }
 0x11d   : > { %21043 = vsyncadd (%p26418_p4), [#allocation18], 4294966256 }
 0x11e   : > { %21045 = dma.done.wait (%p26419_p7), [#allocation21], 16   ;;  %p26420_p8 = pmov %p26409_p0 }
 0x11f   : > { %p515_p11 = scmp.lt.s32.totalorder %s21172_s21, 1  ;;  %vm535_vm0 = vsmask.f32 7424  ;;  %vm575_vm1 = vcmask 1045504   ;;  %vm555_vm2 = vcmask 1046528   ;;  %vm579_vm4 = vcmask 261120  }
 0x120   : > { %21047 = vsyncadd (%p26420_p8), [#allocation21], 4294967280  ;;  %vm563_vm3 = vsmask.f32 6400  ;;  %v19863_v2 = vld [vmem:[#allocation5 + $0x4] ss:$112 sps:$4 sm:$0xff]  }
 0x121   : > { %s516_s29 = scalar_select %p515_p11, %s21172_s21, 1  ;;  %2430 = vmatprep.subr.bf16.mxu0 %v19863_v2  ;;  %v19865_v9 = vld [vmem:[#allocation5 + $0xc] ss:$112 sps:$4 sm:$0xff]   ;;  %v19867_v14 = vld [vmem:[#allocation5] ss:$112 sps:$4 sm:$0xff]   ;;  %vm584_vm5 = vcmask 523264  }
 0x122   : > { %2483 = vmatprep.subr.bf16.mxu1 %v19865_v9  ;;  %v19868_v18 = vld [vmem:[#allocation5 + $0x8] ss:$112 sps:$4 sm:$0xff]   ;;  %2431 = vmatpush1.bf16.msra.mxu0 %v19867_v14  ;;  %v19869_v23 = vld [vmem:[#allocation5 + $0xe4] ss:$112 sps:$4 sm:$0xff]   ;;  %v19871_v25 = vld [vmem:[#allocation5 + $0xec] ss:$112 sps:$4 sm:$0xff]  }
 0x123   : > { %s18602_s15 = sshll.u32 %s516_s29, 4  ;;  %2484 = vmatpush1.bf16.msra.mxu1 %v19868_v18  ;;  %v19873_v26 = vld [vmem:[#allocation5 + $0xe0] ss:$112 sps:$4 sm:$0xff]   ;;  %v19874_v27 = vld [vmem:[#allocation5 + $0xe8] ss:$112 sps:$4 sm:$0xff]   ;;  %2432 = vmatprep.subr.bf16.mxu0 %v19869_v23  ;;  %s21082_s28 = smov 32  }
 0x124   : > { %s519_s24 = scalar_lea.vmem %s26099_s0, %s18602_s15  ;;  %v19875_v29 = vld [vmem:[#allocation5 + $0x1c4] ss:$112 sps:$4 sm:$0xff]   ;;  %2485 = vmatprep.subr.bf16.mxu1 %v19871_v25  ;;  %v19877_v31 = vld [vmem:[#allocation5 + $0x1cc] ss:$112 sps:$4 sm:$0xff]   ;;  %s21083_s22 = smov 96   ;;  %vm589_vm6 = vcmask 785408  }
 0x125   : > { %v21472_v0 = vld [vmem:[%s519_s24] sm:$0xff]   ;;  %v21474_v1 = vld [vmem:[%s519_s24 + $0x8] sm:$0xff]   ;;  %s21084_s30 = smov 64   ;;  %vm21089_vm7 = vmmov 0   ;;  %s513_s4 = sand.u32 1, %s21058_s18  }
 0x126   : > { %v537_v3 = vshrl.u32 %v21472_v0, 16  ;;  %v539_v4 = vshll.u32 %v21472_v0, 16  ;;  %v544_v5 = vshll.u32 %v21474_v1, 16  ;;  %v576_v6 = vrot.slane %v21472_v0, 2  ;;  %2433 = vmatpush1.bf16.msra.mxu0 %v19873_v26  ;;  %v19879_v34 = vld [vmem:[#allocation5 + $0x1c0] ss:$112 sps:$4 sm:$0xff]  }
 0x127   : > { %v21481_v7 = vrot.slane %v21474_v1, 2  ;;  %v548_v8 = vshrl.u32 %v21474_v1, 16  ;;  %v556_v20 = vrot.slane %v21472_v0, 1  ;;  %v557_v21 = vrot.slane %v21474_v1, 1  ;;  %v19880_v35 = vld [vmem:[#allocation5 + $0x1c8] ss:$112 sps:$4 sm:$0xff]   ;;  %2486 = vmatpush1.bf16.msra.mxu1 %v19874_v27  ;;  %2434 = vmatprep.subr.bf16.mxu0 %v19875_v29 }
 0x128   : > { %v541_v10 = vrot.slane %v539_v4, 1  ;;  %v546_v11 = vrot.slane %v544_v5, 1  ;;  %v564_v12 = vrot.slane %v537_v3, 1  ;;  %v565_v13 = vrot.slane %v539_v4, 2  ;;  %v19881_v36 = vld [vmem:[#allocation5 + $0x2a4] ss:$112 sps:$4 sm:$0xff]   ;;  %2487 = vmatprep.subr.bf16.mxu1 %v19877_v31 }
 0x129   : > { %v21486_v15 = vsel %vm575_vm1, %v576_v6, %v21481_v7  ;;  %v567_v16 = vrot.slane %v548_v8, 1  ;;  %v568_v17 = vrot.slane %v544_v5, 2  ;;  %v558_v32 = vsel %vm555_vm2, %v556_v20, %v557_v21  ;;  %v19883_v37 = vld [vmem:[#allocation5 + $0x2ac] ss:$112 sps:$4 sm:$0xff]   ;;  %v19885_v38 = vld [vmem:[#allocation5 + $0x2a0] ss:$112 sps:$4 sm:$0xff]  }
 0x12a   : > { %v542_v19 = vor.u32 %v541_v10, %v537_v3  ;;  %v566_v22 = vor.u32 %v565_v13, %v564_v12  ;;  %17994 = vmatprep.mubr.msk.bf16.mxu0 %vm579_vm4, %v21486_v15  ;;  %17996 = vmatprep.mubr.msk.bf16.mxu1 %vm579_vm4, %v21486_v15  ;;  %v550_v33 = vor.u32 %v548_v8, %v546_v11  ;;  %v19886_v39 = vld [vmem:[#allocation5 + $0x2a8] ss:$112 sps:$4 sm:$0xff]   ;;  %v19887_v40 = vld [vmem:[#allocation5 + $0x384] ss:$112 sps:$4 sm:$0xff]   ;;  %v19889_v41 = vld [vmem:[#allocation5 + $0x38c] ss:$112 sps:$4 sm:$0xff]  }
 0x12b   : > { %v569_v24 = vor.u32 %v568_v17, %v567_v16  ;;  %2435 = vmatpush1.bf16.msra.mxu0 %v19879_v34  ;;  %2488 = vmatpush1.bf16.msra.mxu1 %v19880_v35  ;;  %v19891_v42 = vld [vmem:[#allocation5 + $0x380] ss:$112 sps:$4 sm:$0xff]   ;;  %v19892_v43 = vld [vmem:[#allocation5 + $0x388] ss:$112 sps:$4 sm:$0xff]   ;;  %v19893_v44 = vld [vmem:[#allocation5 + $0x464] ss:$112 sps:$4 sm:$0xff]  }
 0x12c   : > { %v547_v28 = vsel %vm535_vm0, %v542_v19, %v546_v11  ;;  %2436 = vmatprep.subr.bf16.mxu0 %v19881_v36  ;;  %2489 = vmatprep.subr.bf16.mxu1 %v19883_v37  ;;  %v19895_v45 = vld [vmem:[#allocation5 + $0x46c] ss:$112 sps:$4 sm:$0xff]   ;;  %v19897_v46 = vld [vmem:[#allocation5 + $0x460] ss:$112 sps:$4 sm:$0xff]   ;;  %v19898_v47 = vld [vmem:[#allocation5 + $0x468] ss:$112 sps:$4 sm:$0xff]  }
 0x12d   : > { %551 = vrot.lane.b32.xlu0 %v547_v28, %s21082_s28  ;;  %v570_v30 = vsel %vm563_vm3, %v566_v22, %v569_v24  ;;  %v19899_v48 = vld [vmem:[#allocation5 + $0x544] ss:$112 sps:$4 sm:$0xff]   ;;  %v19901_v49 = vld [vmem:[#allocation5 + $0x54c] ss:$112 sps:$4 sm:$0xff]   ;;  %v19903_v50 = vld [vmem:[#allocation5 + $0x540] ss:$112 sps:$4 sm:$0xff]  }
 0x12e   : > { %571 = vrot.lane.b32.xlu1 %v570_v30, %s21083_s22  ;;  %v19904_v51 = vld [vmem:[#allocation5 + $0x548] ss:$112 sps:$4 sm:$0xff]   ;;  %v19905_v52 = vld [vmem:[#allocation5 + $0x624] ss:$112 sps:$4 sm:$0xff]   ;;  %v19907_v53 = vld [vmem:[#allocation5 + $0x62c] ss:$112 sps:$4 sm:$0xff]  }
 0x12f   : > { %2437 = vmatpush1.bf16.msra.mxu0 %v19885_v38  ;;  %2490 = vmatpush1.bf16.msra.mxu1 %v19886_v39  ;;  %v19909_v54 = vld [vmem:[#allocation5 + $0x620] ss:$112 sps:$4 sm:$0xff]   ;;  %v19910_v55 = vld [vmem:[#allocation5 + $0x628] ss:$112 sps:$4 sm:$0xff]   ;;  %v19911_v56 = vld [vmem:[#allocation5 + $0x704] ss:$112 sps:$4 sm:$0xff]  }
 0x130   : > { %2438 = vmatprep.subr.bf16.mxu0 %v19887_v40  ;;  %2491 = vmatprep.subr.bf16.mxu1 %v19889_v41  ;;  %v19913_v57 = vld [vmem:[#allocation5 + $0x70c] ss:$112 sps:$4 sm:$0xff]   ;;  %v19915_v58 = vld [vmem:[#allocation5 + $0x700] ss:$112 sps:$4 sm:$0xff]   ;;  %v19916_v59 = vld [vmem:[#allocation5 + $0x708] ss:$112 sps:$4 sm:$0xff]  }
 0x131   : > { %559 = vrot.lane.b32.xlu0 %v558_v32, %s21084_s30  ;;  %v19917_v60 = vld [vmem:[#allocation5 + $0x7e4] ss:$112 sps:$4 sm:$0xff]   ;;  %v19919_v61 = vld [vmem:[#allocation5 + $0x7ec] ss:$112 sps:$4 sm:$0xff]   ;;  %v19921_v62 = vld [vmem:[#allocation5 + $0x7e0] ss:$112 sps:$4 sm:$0xff]  }
 0x132   : > { %553 = vrot.lane.b32.xlu1 %v550_v33, %s21082_s28  ;;  %v19922_v63 = vld [vmem:[#allocation5 + $0x7e8] ss:$112 sps:$4 sm:$0xff]   ;;  %v19925_v2 = vld [vmem:[#allocation5 + $0x14] ss:$112 sps:$4 sm:$0xff]   ;;  %v19928_v3 = vld [vmem:[#allocation5 + $0x1c] ss:$112 sps:$4 sm:$0xff]  }
 0x133   : > { %2439 = vmatpush1.bf16.msra.mxu0 %v19891_v42  ;;  %2492 = vmatpush1.bf16.msra.mxu1 %v19892_v43  ;;  %v19923_v6 = vld [vmem:[#allocation5 + $0x10] ss:$112 sps:$4 sm:$0xff]   ;;  %v19926_v8 = vld [vmem:[#allocation5 + $0x18] ss:$112 sps:$4 sm:$0xff]   ;;  %v19931_v12 = vld [vmem:[#allocation5 + $0xf4] ss:$112 sps:$4 sm:$0xff]  }
 0x134   : > { %2440 = vmatprep.subr.bf16.mxu0 %v19893_v44  ;;  %2493 = vmatprep.subr.bf16.mxu1 %v19895_v45  ;;  %v19934_v13 = vld [vmem:[#allocation5 + $0xfc] ss:$112 sps:$4 sm:$0xff]   ;;  %v19929_v18 = vld [vmem:[#allocation5 + $0xf0] ss:$112 sps:$4 sm:$0xff]   ;;  %v19937_v20 = vld [vmem:[#allocation5 + $0x1d4] ss:$112 sps:$4 sm:$0xff]  }
 0x135   : > { %561 = vrot.lane.b32.xlu0 %v557_v21, %s21084_s30  ;;  %v19940_v21 = vld [vmem:[#allocation5 + $0x1dc] ss:$112 sps:$4 sm:$0xff]   ;;  %v19943_v26 = vld [vmem:[#allocation5 + $0x2b4] ss:$112 sps:$4 sm:$0xff]   ;;  %v19941_v28 = vld [vmem:[#allocation5 + $0x2b0] ss:$112 sps:$4 sm:$0xff]  }
 0x136   : > { %573 = vrot.lane.b32.xlu1 %v569_v24, %s21083_s22  ;;  %v19938_v24 = vld [vmem:[#allocation5 + $0x1d8] ss:$112 sps:$4 sm:$0xff]   ;;  %v19946_v27 = vld [vmem:[#allocation5 + $0x2bc] ss:$112 sps:$4 sm:$0xff]   ;;  %v19949_v30 = vld [vmem:[#allocation5 + $0x394] ss:$112 sps:$4 sm:$0xff]  }
 0x137   : > { %2441 = vmatpush1.bf16.msra.mxu0 %v19897_v46  ;;  %2494 = vmatpush1.bf16.msra.mxu1 %v19898_v47  ;;  %v19944_v29 = vld [vmem:[#allocation5 + $0x2b8] ss:$112 sps:$4 sm:$0xff]   ;;  %v19952_v31 = vld [vmem:[#allocation5 + $0x39c] ss:$112 sps:$4 sm:$0xff]   ;;  %v19947_v32 = vld [vmem:[#allocation5 + $0x390] ss:$112 sps:$4 sm:$0xff]  }
 0x138   : > { %2442 = vmatprep.subr.bf16.mxu0 %v19899_v48  ;;  %2495 = vmatprep.subr.bf16.mxu1 %v19901_v49  ;;  %v19950_v33 = vld [vmem:[#allocation5 + $0x398] ss:$112 sps:$4 sm:$0xff]   ;;  %v19955_v34 = vld [vmem:[#allocation5 + $0x474] ss:$112 sps:$4 sm:$0xff]   ;;  %v19958_v35 = vld [vmem:[#allocation5 + $0x47c] ss:$112 sps:$4 sm:$0xff]  }
 0x139   : > { %v19953_v36 = vld [vmem:[#allocation5 + $0x470] ss:$112 sps:$4 sm:$0xff]   ;;  %v19956_v37 = vld [vmem:[#allocation5 + $0x478] ss:$112 sps:$4 sm:$0xff]   ;;  %v19961_v38 = vld [vmem:[#allocation5 + $0x554] ss:$112 sps:$4 sm:$0xff]  }
 0x13a   : > { %v19964_v39 = vld [vmem:[#allocation5 + $0x55c] ss:$112 sps:$4 sm:$0xff]   ;;  %v19959_v40 = vld [vmem:[#allocation5 + $0x550] ss:$112 sps:$4 sm:$0xff]   ;;  %v19962_v41 = vld [vmem:[#allocation5 + $0x558] ss:$112 sps:$4 sm:$0xff]  }
 0x13b   : > { %2443 = vmatpush1.bf16.msra.mxu0 %v19903_v50  ;;  %2496 = vmatpush1.bf16.msra.mxu1 %v19904_v51  ;;  %v19967_v42 = vld [vmem:[#allocation5 + $0x634] ss:$112 sps:$4 sm:$0xff]   ;;  %v19970_v43 = vld [vmem:[#allocation5 + $0x63c] ss:$112 sps:$4 sm:$0xff]   ;;  %v19965_v44 = vld [vmem:[#allocation5 + $0x630] ss:$112 sps:$4 sm:$0xff]  }
 0x13c   : > { %2444 = vmatprep.subr.bf16.mxu0 %v19905_v52  ;;  %2497 = vmatprep.subr.bf16.mxu1 %v19907_v53  ;;  %v19968_v45 = vld [vmem:[#allocation5 + $0x638] ss:$112 sps:$4 sm:$0xff]   ;;  %v19973_v46 = vld [vmem:[#allocation5 + $0x714] ss:$112 sps:$4 sm:$0xff]   ;;  %v19976_v47 = vld [vmem:[#allocation5 + $0x71c] ss:$112 sps:$4 sm:$0xff]  }
 0x13d   : > { %v19971_v48 = vld [vmem:[#allocation5 + $0x710] ss:$112 sps:$4 sm:$0xff]   ;;  %v19974_v49 = vld [vmem:[#allocation5 + $0x718] ss:$112 sps:$4 sm:$0xff]   ;;  %v19979_v50 = vld [vmem:[#allocation5 + $0x7f4] ss:$112 sps:$4 sm:$0xff]  }
 0x13e   : > { %v19982_v51 = vld [vmem:[#allocation5 + $0x7fc] ss:$112 sps:$4 sm:$0xff]   ;;  %v19977_v52 = vld [vmem:[#allocation5 + $0x7f0] ss:$112 sps:$4 sm:$0xff]   ;;  %v19980_v53 = vld [vmem:[#allocation5 + $0x7f8] ss:$112 sps:$4 sm:$0xff]  }
 0x13f   : > { %2445 = vmatpush1.bf16.msra.mxu0 %v19909_v54  ;;  %2498 = vmatpush1.bf16.msra.mxu1 %v19910_v55  ;;  %v19985_v54 = vld [vmem:[#allocation5 + $0x24] ss:$112 sps:$4 sm:$0xff]   ;;  %v19988_v55 = vld [vmem:[#allocation5 + $0x2c] ss:$112 sps:$4 sm:$0xff]   ;;  %s18599_s16 = sshll.u32 %s21172_s21, 4  ;;  %s514_s2 = scalar_lea.vmem [#allocation22], %s513_s4 }
 0x140   : > { %2446 = vmatprep.subr.bf16.mxu0 %v19911_v56  ;;  %2499 = vmatprep.subr.bf16.mxu1 %v19913_v57  ;;  %v19983_v56 = vld [vmem:[#allocation5 + $0x20] ss:$112 sps:$4 sm:$0xff]   ;;  %v19986_v57 = vld [vmem:[#allocation5 + $0x28] ss:$112 sps:$4 sm:$0xff]   ;;  %s17533_s26 = sshll.u32 %s514_s2, 4  ;;  %s26057_s19 = scalar_lea.hbm %s26110_s11, %s18599_s16  ;;  %s26059_s26 = int_to_ptr.vmem [resolvable:$true] %s17533_s26 }
 0x141   : > { %s17521_s14 = scalar_lea.sflag [#allocation7], %s513_s4  ;;  %s20980_s21 = scalar_lea.vmem %s26059_s26, 16 }
 0x142   : > { %p20981_p13 = scmp.ne.s32.totalorder %s26059_s26, %s20980_s21  ;;  %p27208_p0 = scmp.ne.s32.totalorder %s26400_s27, 0 }
 0x143   : > { %2447 = vmatpush1.bf16.msra.mxu0 %v19915_v58  ;;  %2500 = vmatpush1.bf16.msra.mxu1 %v19916_v59  ;;  %v19991_v58 = vld [vmem:[#allocation5 + $0x104] ss:$112 sps:$4 sm:$0xff]   ;;  %v19994_v59 = vld [vmem:[#allocation5 + $0x10c] ss:$112 sps:$4 sm:$0xff]   ;;  %s21090_s25 = smov [#allocation22]  }
 0x144   : > { %2448 = vmatprep.subr.bf16.mxu0 %v19917_v60  ;;  %2501 = vmatprep.subr.bf16.mxu1 %v19919_v61  ;;  %v19989_v60 = vld [vmem:[#allocation5 + $0x100] ss:$112 sps:$4 sm:$0xff]   ;;  %v19992_v61 = vld [vmem:[#allocation5 + $0x108] ss:$112 sps:$4 sm:$0xff]   ;;  %p20982_p1 = pnand %p20981_p13, %p27208_p0  ;;  %s20984_s29 = sshll.u32 %s21090_s25, 4  ;;  %s20985_s29 = int_to_ptr.vmem [resolvable:$false] %s20984_s29 }
 0x145   : > { %s20986_s15 = scalar_lea.vmem %s20985_s29, 32  ;;  %p20987_p5 = scmp.lt.s32.totalorder %s26059_s26, %s20985_s29 }
 0x146   : > { %p20983_p6 = pneg %p20982_p1  ;;  %p20988_p9 = scmp.lt.s32.totalorder %s20986_s15, %s20980_s21 }
 0x147   : > { %2449 = vmatpush1.bf16.msra.mxu0 %v19921_v62  ;;  %2502 = vmatpush1.bf16.msra.mxu1 %v19922_v63  ;;  %v19997_v62 = vld [vmem:[#allocation5 + $0x1e4] ss:$112 sps:$4 sm:$0xff]   ;;  %v20000_v63 = vld [vmem:[#allocation5 + $0x1ec] ss:$112 sps:$4 sm:$0xff]  }
 0x148   : > { %2536 = vmatprep.subr.bf16.mxu0 %v19925_v2  ;;  %2589 = vmatprep.subr.bf16.mxu1 %v19928_v3  ;;  %v19995_v2 = vld [vmem:[#allocation5 + $0x1e0] ss:$112 sps:$4 sm:$0xff]   ;;  %v19998_v3 = vld [vmem:[#allocation5 + $0x1e8] ss:$112 sps:$4 sm:$0xff]   ;;  %p20989_p12 = por %p20988_p9, %p20987_p5 }
 0x14a   : > { %p20990_p10 = pnand %p20989_p12, %p20983_p6 }
 0x19f   : > { %v552_v4 = vpop.permute.xlu0 %551 }
 0x1a0   : > { %v572_v5 = vpop.permute.xlu1 %571  ;;  %v581_v9 = vsel %vm579_vm4, %v21472_v0, %v552_v4  ;;  %v19932_v0 = vld [vmem:[#allocation5 + $0xf8] ss:$112 sps:$4 sm:$0xff]   ;;  %v20003_v4 = vld [vmem:[#allocation5 + $0x2c4] ss:$112 sps:$4 sm:$0xff]  }
 0x1a3   : > { %v560_v10 = vpop.permute.xlu0 %559 }
 0x1a4   : > { %v586_v11 = vsel %vm584_vm5, %v581_v9, %v560_v10  ;;  %v554_v14 = vpop.permute.xlu1 %553  ;;  %v20009_v9 = vld [vmem:[#allocation5 + $0x3a4] ss:$112 sps:$4 sm:$0xff]   ;;  %v20012_v10 = vld [vmem:[#allocation5 + $0x3ac] ss:$112 sps:$4 sm:$0xff]  }
 0x1a5   : > { %v21501_v16 = vsel %vm589_vm6, %v586_v11, %v572_v5  ;;  %v583_v17 = vsel %vm579_vm4, %v21474_v1, %v554_v14  ;;  %v19935_v1 = vld [vmem:[#allocation5 + $0x1d0] ss:$112 sps:$4 sm:$0xff]   ;;  %v20006_v5 = vld [vmem:[#allocation5 + $0x2cc] ss:$112 sps:$4 sm:$0xff]  }
 0x1a6   : > { %2463 = vmatmul.mubr.bf16.vlgmr.msra.gmra.mrb[0].mxu0 %v21501_v16  ;;  %2516 = vmatmul.mubr.bf16.vlgmr.msra.gmra.mrb[0].mxu1 %v21501_v16  ;;  %v20007_v11 = vld [vmem:[#allocation5 + $0x3a0] ss:$112 sps:$4 sm:$0xff]   ;;  %v20018_v14 = vld [vmem:[#allocation5 + $0x48c] ss:$112 sps:$4 sm:$0xff]  }
 0x1a7   : > { %2537 = vmatpush1.bf16.msra.mxu0 %v19923_v6  ;;  %2590 = vmatpush1.bf16.msra.mxu1 %v19926_v8  ;;  %v562_v19 = vpop.permute.xlu0 %561  ;;  %v20001_v6 = vld [vmem:[#allocation5 + $0x2c0] ss:$112 sps:$4 sm:$0xff]   ;;  %v20004_v8 = vld [vmem:[#allocation5 + $0x2c8] ss:$112 sps:$4 sm:$0xff]  }
 0x1a8   : > { %2538 = vmatprep.subr.bf16.mxu0 %v19931_v12  ;;  %2591 = vmatprep.subr.bf16.mxu1 %v19934_v13  ;;  %v588_v22 = vsel %vm584_vm5, %v583_v17, %v562_v19  ;;  %v574_v23 = vpop.permute.xlu1 %573  ;;  %v20010_v12 = vld [vmem:[#allocation5 + $0x3a8] ss:$112 sps:$4 sm:$0xff]   ;;  %v20015_v13 = vld [vmem:[#allocation5 + $0x484] ss:$112 sps:$4 sm:$0xff]   ;;  %v20013_v17 = vld [vmem:[#allocation5 + $0x480] ss:$112 sps:$4 sm:$0xff]  }
 0x1a9   : > { %17995 = vmatprep.mubr.msk.bf16.mxu0 %vm579_vm4, %v21481_v7  ;;  %17997 = vmatprep.mubr.msk.bf16.mxu1 %vm579_vm4, %v21481_v7  ;;  %v21513_v25 = vsel %vm589_vm6, %v588_v22, %v574_v23  ;;  %v20024_v19 = vld [vmem:[#allocation5 + $0x56c] ss:$112 sps:$4 sm:$0xff]   ;;  %v20027_v22 = vld [vmem:[#allocation5 + $0x644] ss:$112 sps:$4 sm:$0xff]  }
 0x1aa   : > { %v20030_v23 = vld [vmem:[#allocation5 + $0x64c] ss:$112 sps:$4 sm:$0xff]  }
 0x1ab   : > { %2539 = vmatpush1.bf16.msra.mxu0 %v19929_v18  ;;  %2592 = vmatpush1.bf16.msra.mxu1 %v19932_v0  ;;  %v20016_v18 = vld [vmem:[#allocation5 + $0x488] ss:$112 sps:$4 sm:$0xff]   ;;  %v20021_v0 = vld [vmem:[#allocation5 + $0x564] ss:$112 sps:$4 sm:$0xff]  }
 0x1ac   : > { %2540 = vmatprep.subr.bf16.mxu0 %v19937_v20  ;;  %2593 = vmatprep.subr.bf16.mxu1 %v19940_v21  ;;  %v20019_v20 = vld [vmem:[#allocation5 + $0x560] ss:$112 sps:$4 sm:$0xff]   ;;  %v20022_v21 = vld [vmem:[#allocation5 + $0x568] ss:$112 sps:$4 sm:$0xff]  }
 0x1ae   : > { %2473 = vmatmul.mubr.bf16.gmra.mrb[4].mxu0 %v21513_v25  ;;  %2526 = vmatmul.mubr.bf16.gmra.mrb[4].mxu1 %v21513_v25 }
 0x1af   : > { %2541 = vmatpush1.bf16.msra.mxu0 %v19935_v1  ;;  %2594 = vmatpush1.bf16.msra.mxu1 %v19938_v24  ;;  %v20025_v1 = vld [vmem:[#allocation5 + $0x640] ss:$112 sps:$4 sm:$0xff]   ;;  %v20028_v24 = vld [vmem:[#allocation5 + $0x648] ss:$112 sps:$4 sm:$0xff]  }
 0x1b0   : > { %2542 = vmatprep.subr.bf16.mxu0 %v19943_v26  ;;  %2595 = vmatprep.subr.bf16.mxu1 %v19946_v27  ;;  %v20033_v26 = vld [vmem:[#allocation5 + $0x724] ss:$112 sps:$4 sm:$0xff]   ;;  %v20036_v27 = vld [vmem:[#allocation5 + $0x72c] ss:$112 sps:$4 sm:$0xff]  }
 0x1b1   : > { %17998 = vmatprep.mubr.msk.bf16.mxu0 %vm579_vm4, %v21486_v15  ;;  %18000 = vmatprep.mubr.msk.bf16.mxu1 %vm579_vm4, %v21486_v15 }
 0x1b3   : > { %2543 = vmatpush1.bf16.msra.mxu0 %v19941_v28  ;;  %2596 = vmatpush1.bf16.msra.mxu1 %v19944_v29  ;;  %v20031_v28 = vld [vmem:[#allocation5 + $0x720] ss:$112 sps:$4 sm:$0xff]   ;;  %v20034_v29 = vld [vmem:[#allocation5 + $0x728] ss:$112 sps:$4 sm:$0xff]  }
 0x1b4   : > { %2544 = vmatprep.subr.bf16.mxu0 %v19949_v30  ;;  %2597 = vmatprep.subr.bf16.mxu1 %v19952_v31  ;;  %v20039_v30 = vld [vmem:[#allocation5 + $0x804] ss:$112 sps:$4 sm:$0xff]   ;;  %v20042_v31 = vld [vmem:[#allocation5 + $0x80c] ss:$112 sps:$4 sm:$0xff]  }
 0x1b7   : > { %2545 = vmatpush1.bf16.msra.mxu0 %v19947_v32  ;;  %2598 = vmatpush1.bf16.msra.mxu1 %v19950_v33  ;;  %v20037_v32 = vld [vmem:[#allocation5 + $0x800] ss:$112 sps:$4 sm:$0xff]   ;;  %v20040_v33 = vld [vmem:[#allocation5 + $0x808] ss:$112 sps:$4 sm:$0xff]  }
 0x1b8   : > { %2546 = vmatprep.subr.bf16.mxu0 %v19955_v34  ;;  %2599 = vmatprep.subr.bf16.mxu1 %v19958_v35  ;;  %v20045_v34 = vld [vmem:[#allocation5 + $0x34] ss:$112 sps:$4 sm:$0xff]   ;;  %v20048_v35 = vld [vmem:[#allocation5 + $0x3c] ss:$112 sps:$4 sm:$0xff]  }
 0x1bb   : > { %2547 = vmatpush1.bf16.msra.mxu0 %v19953_v36  ;;  %2600 = vmatpush1.bf16.msra.mxu1 %v19956_v37  ;;  %v20043_v36 = vld [vmem:[#allocation5 + $0x30] ss:$112 sps:$4 sm:$0xff]   ;;  %v20046_v37 = vld [vmem:[#allocation5 + $0x38] ss:$112 sps:$4 sm:$0xff]  }
 0x1bc   : > { %2548 = vmatprep.subr.bf16.mxu0 %v19961_v38  ;;  %2601 = vmatprep.subr.bf16.mxu1 %v19964_v39  ;;  %v20051_v38 = vld [vmem:[#allocation5 + $0x114] ss:$112 sps:$4 sm:$0xff]   ;;  %v20054_v39 = vld [vmem:[#allocation5 + $0x11c] ss:$112 sps:$4 sm:$0xff]  }
 0x1bf   : > { %2549 = vmatpush1.bf16.msra.mxu0 %v19959_v40  ;;  %2602 = vmatpush1.bf16.msra.mxu1 %v19962_v41  ;;  %v20049_v40 = vld [vmem:[#allocation5 + $0x110] ss:$112 sps:$4 sm:$0xff]   ;;  %v20052_v41 = vld [vmem:[#allocation5 + $0x118] ss:$112 sps:$4 sm:$0xff]  }
 0x1c0   : > { %2550 = vmatprep.subr.bf16.mxu0 %v19967_v42  ;;  %2603 = vmatprep.subr.bf16.mxu1 %v19970_v43  ;;  %v20057_v42 = vld [vmem:[#allocation5 + $0x1f4] ss:$112 sps:$4 sm:$0xff]   ;;  %v20060_v43 = vld [vmem:[#allocation5 + $0x1fc] ss:$112 sps:$4 sm:$0xff]  }
 0x1c3   : > { %2551 = vmatpush1.bf16.msra.mxu0 %v19965_v44  ;;  %2604 = vmatpush1.bf16.msra.mxu1 %v19968_v45  ;;  %v20055_v44 = vld [vmem:[#allocation5 + $0x1f0] ss:$112 sps:$4 sm:$0xff]   ;;  %v20058_v45 = vld [vmem:[#allocation5 + $0x1f8] ss:$112 sps:$4 sm:$0xff]  }
 0x1c4   : > { %2552 = vmatprep.subr.bf16.mxu0 %v19973_v46  ;;  %2605 = vmatprep.subr.bf16.mxu1 %v19976_v47  ;;  %v20063_v46 = vld [vmem:[#allocation5 + $0x2d4] ss:$112 sps:$4 sm:$0xff]   ;;  %v20066_v47 = vld [vmem:[#allocation5 + $0x2dc] ss:$112 sps:$4 sm:$0xff]  }
 0x1c7   : > { %2553 = vmatpush1.bf16.msra.mxu0 %v19971_v48  ;;  %2606 = vmatpush1.bf16.msra.mxu1 %v19974_v49  ;;  %v20061_v48 = vld [vmem:[#allocation5 + $0x2d0] ss:$112 sps:$4 sm:$0xff]   ;;  %v20064_v49 = vld [vmem:[#allocation5 + $0x2d8] ss:$112 sps:$4 sm:$0xff]  }
 0x1c8   : > { %2554 = vmatprep.subr.bf16.mxu0 %v19979_v50  ;;  %2607 = vmatprep.subr.bf16.mxu1 %v19982_v51  ;;  %v20069_v50 = vld [vmem:[#allocation5 + $0x3b4] ss:$112 sps:$4 sm:$0xff]   ;;  %v20072_v51 = vld [vmem:[#allocation5 + $0x3bc] ss:$112 sps:$4 sm:$0xff]  }
 0x1cb   : > { %2555 = vmatpush1.bf16.msra.mxu0 %v19977_v52  ;;  %2608 = vmatpush1.bf16.msra.mxu1 %v19980_v53  ;;  %v20067_v52 = vld [vmem:[#allocation5 + $0x3b0] ss:$112 sps:$4 sm:$0xff]   ;;  %v20070_v53 = vld [vmem:[#allocation5 + $0x3b8] ss:$112 sps:$4 sm:$0xff]  }
 0x1cc   : > { %2642 = vmatprep.subr.bf16.mxu0 %v19985_v54  ;;  %2695 = vmatprep.subr.bf16.mxu1 %v19988_v55  ;;  %v20075_v54 = vld [vmem:[#allocation5 + $0x494] ss:$112 sps:$4 sm:$0xff]   ;;  %v20078_v55 = vld [vmem:[#allocation5 + $0x49c] ss:$112 sps:$4 sm:$0xff]  }
 0x1ce   : > { %2569 = vmatmul.mubr.bf16.vlgmr.msra.gmra.mrb[8].mxu0 %v21501_v16  ;;  %2622 = vmatmul.mubr.bf16.vlgmr.msra.gmra.mrb[8].mxu1 %v21501_v16 }
 0x1cf   : > { %2643 = vmatpush1.bf16.msra.mxu0 %v19983_v56  ;;  %2696 = vmatpush1.bf16.msra.mxu1 %v19986_v57  ;;  %v20073_v56 = vld [vmem:[#allocation5 + $0x490] ss:$112 sps:$4 sm:$0xff]   ;;  %v20076_v57 = vld [vmem:[#allocation5 + $0x498] ss:$112 sps:$4 sm:$0xff]  }
 0x1d0   : > { %2644 = vmatprep.subr.bf16.mxu0 %v19991_v58  ;;  %2697 = vmatprep.subr.bf16.mxu1 %v19994_v59  ;;  %v20081_v58 = vld [vmem:[#allocation5 + $0x574] ss:$112 sps:$4 sm:$0xff]   ;;  %v20084_v59 = vld [vmem:[#allocation5 + $0x57c] ss:$112 sps:$4 sm:$0xff]  }
 0x1d1   : > { %17999 = vmatprep.mubr.msk.bf16.mxu0 %vm579_vm4, %v21481_v7  ;;  %18001 = vmatprep.mubr.msk.bf16.mxu1 %vm579_vm4, %v21481_v7 }
 0x1d3   : > { %2645 = vmatpush1.bf16.msra.mxu0 %v19989_v60  ;;  %2698 = vmatpush1.bf16.msra.mxu1 %v19992_v61  ;;  %v20079_v60 = vld [vmem:[#allocation5 + $0x570] ss:$112 sps:$4 sm:$0xff]   ;;  %v20082_v61 = vld [vmem:[#allocation5 + $0x578] ss:$112 sps:$4 sm:$0xff]  }
 0x1d4   : > { %2646 = vmatprep.subr.bf16.mxu0 %v19997_v62  ;;  %2699 = vmatprep.subr.bf16.mxu1 %v20000_v63  ;;  %v20087_v62 = vld [vmem:[#allocation5 + $0x654] ss:$112 sps:$4 sm:$0xff]   ;;  %v20090_v63 = vld [vmem:[#allocation5 + $0x65c] ss:$112 sps:$4 sm:$0xff]  }
 0x1d6   : > { %2579 = vmatmul.mubr.bf16.gmra.mrb[12].mxu0 %v21513_v25  ;;  %2632 = vmatmul.mubr.bf16.gmra.mrb[12].mxu1 %v21513_v25 }
 0x1d7   : > { %2647 = vmatpush1.bf16.msra.mxu0 %v19995_v2  ;;  %2700 = vmatpush1.bf16.msra.mxu1 %v19998_v3  ;;  %v20085_v2 = vld [vmem:[#allocation5 + $0x650] ss:$112 sps:$4 sm:$0xff]   ;;  %v20088_v3 = vld [vmem:[#allocation5 + $0x658] ss:$112 sps:$4 sm:$0xff]  }
 0x1d8   : > { %2648 = vmatprep.subr.bf16.mxu0 %v20003_v4  ;;  %2701 = vmatprep.subr.bf16.mxu1 %v20006_v5  ;;  %v20093_v4 = vld [vmem:[#allocation5 + $0x734] ss:$112 sps:$4 sm:$0xff]   ;;  %v20096_v5 = vld [vmem:[#allocation5 + $0x73c] ss:$112 sps:$4 sm:$0xff]  }
 0x1d9   : > { %18002 = vmatprep.mubr.msk.bf16.mxu0 %vm579_vm4, %v21486_v15  ;;  %18004 = vmatprep.mubr.msk.bf16.mxu1 %vm579_vm4, %v21486_v15 }
 0x1db   : > { %2649 = vmatpush1.bf16.msra.mxu0 %v20001_v6  ;;  %2702 = vmatpush1.bf16.msra.mxu1 %v20004_v8  ;;  %v20091_v6 = vld [vmem:[#allocation5 + $0x730] ss:$112 sps:$4 sm:$0xff]   ;;  %v20094_v8 = vld [vmem:[#allocation5 + $0x738] ss:$112 sps:$4 sm:$0xff]  }
 0x1dc   : > { %2650 = vmatprep.subr.bf16.mxu0 %v20009_v9  ;;  %2703 = vmatprep.subr.bf16.mxu1 %v20012_v10  ;;  %v20099_v9 = vld [vmem:[#allocation5 + $0x814] ss:$112 sps:$4 sm:$0xff]   ;;  %v20102_v10 = vld [vmem:[#allocation5 + $0x81c] ss:$112 sps:$4 sm:$0xff]  }
 0x1df   : > { %2651 = vmatpush1.bf16.msra.mxu0 %v20007_v11  ;;  %2704 = vmatpush1.bf16.msra.mxu1 %v20010_v12  ;;  %v20097_v11 = vld [vmem:[#allocation5 + $0x810] ss:$112 sps:$4 sm:$0xff]   ;;  %v20100_v12 = vld [vmem:[#allocation5 + $0x818] ss:$112 sps:$4 sm:$0xff]  }
 0x1e0   : > { %2652 = vmatprep.subr.bf16.mxu0 %v20015_v13  ;;  %2705 = vmatprep.subr.bf16.mxu1 %v20018_v14  ;;  %v20105_v13 = vld [vmem:[#allocation5 + $0x44] ss:$112 sps:$4 sm:$0xff]   ;;  %v20108_v14 = vld [vmem:[#allocation5 + $0x4c] ss:$112 sps:$4 sm:$0xff]  }
 0x1e3   : > { %2653 = vmatpush1.bf16.msra.mxu0 %v20013_v17  ;;  %2706 = vmatpush1.bf16.msra.mxu1 %v20016_v18  ;;  %v20103_v17 = vld [vmem:[#allocation5 + $0x40] ss:$112 sps:$4 sm:$0xff]   ;;  %v20106_v18 = vld [vmem:[#allocation5 + $0x48] ss:$112 sps:$4 sm:$0xff]  }
 0x1e4   : > { %2654 = vmatprep.subr.bf16.mxu0 %v20021_v0  ;;  %2707 = vmatprep.subr.bf16.mxu1 %v20024_v19  ;;  %v20111_v0 = vld [vmem:[#allocation5 + $0x124] ss:$112 sps:$4 sm:$0xff]   ;;  %v20114_v19 = vld [vmem:[#allocation5 + $0x12c] ss:$112 sps:$4 sm:$0xff]  }
 0x1e7   : > { %2655 = vmatpush1.bf16.msra.mxu0 %v20019_v20  ;;  %2708 = vmatpush1.bf16.msra.mxu1 %v20022_v21  ;;  %v20109_v20 = vld [vmem:[#allocation5 + $0x120] ss:$112 sps:$4 sm:$0xff]   ;;  %v20112_v21 = vld [vmem:[#allocation5 + $0x128] ss:$112 sps:$4 sm:$0xff]  }
 0x1e8   : > { %2656 = vmatprep.subr.bf16.mxu0 %v20027_v22  ;;  %2709 = vmatprep.subr.bf16.mxu1 %v20030_v23  ;;  %v20117_v22 = vld [vmem:[#allocation5 + $0x204] ss:$112 sps:$4 sm:$0xff]   ;;  %v20120_v23 = vld [vmem:[#allocation5 + $0x20c] ss:$112 sps:$4 sm:$0xff]  }
 0x1eb   : > { %2657 = vmatpush1.bf16.msra.mxu0 %v20025_v1  ;;  %2710 = vmatpush1.bf16.msra.mxu1 %v20028_v24  ;;  %v20115_v1 = vld [vmem:[#allocation5 + $0x200] ss:$112 sps:$4 sm:$0xff]   ;;  %v20118_v24 = vld [vmem:[#allocation5 + $0x208] ss:$112 sps:$4 sm:$0xff]  }
 0x1ec   : > { %2658 = vmatprep.subr.bf16.mxu0 %v20033_v26  ;;  %2711 = vmatprep.subr.bf16.mxu1 %v20036_v27  ;;  %v20123_v26 = vld [vmem:[#allocation5 + $0x2e4] ss:$112 sps:$4 sm:$0xff]   ;;  %v20126_v27 = vld [vmem:[#allocation5 + $0x2ec] ss:$112 sps:$4 sm:$0xff]  }
 0x1ef   : > { %2659 = vmatpush1.bf16.msra.mxu0 %v20031_v28  ;;  %2712 = vmatpush1.bf16.msra.mxu1 %v20034_v29  ;;  %v20121_v28 = vld [vmem:[#allocation5 + $0x2e0] ss:$112 sps:$4 sm:$0xff]   ;;  %v20124_v29 = vld [vmem:[#allocation5 + $0x2e8] ss:$112 sps:$4 sm:$0xff]  }
 0x1f0   : > { %2660 = vmatprep.subr.bf16.mxu0 %v20039_v30  ;;  %2713 = vmatprep.subr.bf16.mxu1 %v20042_v31  ;;  %v20129_v30 = vld [vmem:[#allocation5 + $0x3c4] ss:$112 sps:$4 sm:$0xff]   ;;  %v20132_v31 = vld [vmem:[#allocation5 + $0x3cc] ss:$112 sps:$4 sm:$0xff]  }
 0x1f3   : > { %2661 = vmatpush1.bf16.msra.mxu0 %v20037_v32  ;;  %2714 = vmatpush1.bf16.msra.mxu1 %v20040_v33  ;;  %v20127_v32 = vld [vmem:[#allocation5 + $0x3c0] ss:$112 sps:$4 sm:$0xff]   ;;  %v20130_v33 = vld [vmem:[#allocation5 + $0x3c8] ss:$112 sps:$4 sm:$0xff]  }
 0x1f4   : > { %2748 = vmatprep.subr.bf16.mxu0 %v20045_v34  ;;  %2801 = vmatprep.subr.bf16.mxu1 %v20048_v35  ;;  %v20135_v34 = vld [vmem:[#allocation5 + $0x4a4] ss:$112 sps:$4 sm:$0xff]   ;;  %v20138_v35 = vld [vmem:[#allocation5 + $0x4ac] ss:$112 sps:$4 sm:$0xff]  }
 0x1f6   : > { %2675 = vmatmul.mubr.bf16.vlgmr.msra.gmra.mrb[16].mxu0 %v21501_v16  ;;  %2728 = vmatmul.mubr.bf16.vlgmr.msra.gmra.mrb[16].mxu1 %v21501_v16 }
 0x1f7   : > { %2749 = vmatpush1.bf16.msra.mxu0 %v20043_v36  ;;  %2802 = vmatpush1.bf16.msra.mxu1 %v20046_v37  ;;  %v20133_v36 = vld [vmem:[#allocation5 + $0x4a0] ss:$112 sps:$4 sm:$0xff]   ;;  %v20136_v37 = vld [vmem:[#allocation5 + $0x4a8] ss:$112 sps:$4 sm:$0xff]  }
 0x1f8   : > { %2750 = vmatprep.subr.bf16.mxu0 %v20051_v38  ;;  %2803 = vmatprep.subr.bf16.mxu1 %v20054_v39  ;;  %v20141_v38 = vld [vmem:[#allocation5 + $0x584] ss:$112 sps:$4 sm:$0xff]   ;;  %v20144_v39 = vld [vmem:[#allocation5 + $0x58c] ss:$112 sps:$4 sm:$0xff]  }
 0x1f9   : > { %18003 = vmatprep.mubr.msk.bf16.mxu0 %vm579_vm4, %v21481_v7  ;;  %18005 = vmatprep.mubr.msk.bf16.mxu1 %vm579_vm4, %v21481_v7 }
 0x1fb   : > { %2751 = vmatpush1.bf16.msra.mxu0 %v20049_v40  ;;  %2804 = vmatpush1.bf16.msra.mxu1 %v20052_v41  ;;  %v20139_v40 = vld [vmem:[#allocation5 + $0x580] ss:$112 sps:$4 sm:$0xff]   ;;  %v20142_v41 = vld [vmem:[#allocation5 + $0x588] ss:$112 sps:$4 sm:$0xff]  }
 0x1fc   : > { %2752 = vmatprep.subr.bf16.mxu0 %v20057_v42  ;;  %2805 = vmatprep.subr.bf16.mxu1 %v20060_v43  ;;  %v20147_v42 = vld [vmem:[#allocation5 + $0x664] ss:$112 sps:$4 sm:$0xff]   ;;  %v20150_v43 = vld [vmem:[#allocation5 + $0x66c] ss:$112 sps:$4 sm:$0xff]  }
 0x1fe   : > { %2685 = vmatmul.mubr.bf16.gmra.mrb[20].mxu0 %v21513_v25  ;;  %2738 = vmatmul.mubr.bf16.gmra.mrb[20].mxu1 %v21513_v25 }
 0x1ff   : > { %2753 = vmatpush1.bf16.msra.mxu0 %v20055_v44  ;;  %2806 = vmatpush1.bf16.msra.mxu1 %v20058_v45  ;;  %v20145_v44 = vld [vmem:[#allocation5 + $0x660] ss:$112 sps:$4 sm:$0xff]   ;;  %v20148_v45 = vld [vmem:[#allocation5 + $0x668] ss:$112 sps:$4 sm:$0xff]  }
 0x200   : > { %2754 = vmatprep.subr.bf16.mxu0 %v20063_v46  ;;  %2807 = vmatprep.subr.bf16.mxu1 %v20066_v47  ;;  %v20153_v46 = vld [vmem:[#allocation5 + $0x744] ss:$112 sps:$4 sm:$0xff]   ;;  %v20156_v47 = vld [vmem:[#allocation5 + $0x74c] ss:$112 sps:$4 sm:$0xff]  }
 0x201   : > { %18006 = vmatprep.mubr.msk.bf16.mxu0 %vm579_vm4, %v21486_v15  ;;  %18008 = vmatprep.mubr.msk.bf16.mxu1 %vm579_vm4, %v21486_v15 }
 0x203   : > { %2755 = vmatpush1.bf16.msra.mxu0 %v20061_v48  ;;  %2808 = vmatpush1.bf16.msra.mxu1 %v20064_v49  ;;  %v20151_v48 = vld [vmem:[#allocation5 + $0x740] ss:$112 sps:$4 sm:$0xff]   ;;  %v20154_v49 = vld [vmem:[#allocation5 + $0x748] ss:$112 sps:$4 sm:$0xff]  }
 0x204   : > { %2756 = vmatprep.subr.bf16.mxu0 %v20069_v50  ;;  %2809 = vmatprep.subr.bf16.mxu1 %v20072_v51  ;;  %v20159_v50 = vld [vmem:[#allocation5 + $0x824] ss:$112 sps:$4 sm:$0xff]   ;;  %v20162_v51 = vld [vmem:[#allocation5 + $0x82c] ss:$112 sps:$4 sm:$0xff]  }
 0x207   : > { %2757 = vmatpush1.bf16.msra.mxu0 %v20067_v52  ;;  %2810 = vmatpush1.bf16.msra.mxu1 %v20070_v53  ;;  %v20157_v52 = vld [vmem:[#allocation5 + $0x820] ss:$112 sps:$4 sm:$0xff]   ;;  %v20160_v53 = vld [vmem:[#allocation5 + $0x828] ss:$112 sps:$4 sm:$0xff]  }
 0x208   : > { %2758 = vmatprep.subr.bf16.mxu0 %v20075_v54  ;;  %2811 = vmatprep.subr.bf16.mxu1 %v20078_v55  ;;  %v20165_v54 = vld [vmem:[#allocation5 + $0x54] ss:$112 sps:$4 sm:$0xff]   ;;  %v20168_v55 = vld [vmem:[#allocation5 + $0x5c] ss:$112 sps:$4 sm:$0xff]  }
 0x20b   : > { %2759 = vmatpush1.bf16.msra.mxu0 %v20073_v56  ;;  %2812 = vmatpush1.bf16.msra.mxu1 %v20076_v57  ;;  %v20163_v56 = vld [vmem:[#allocation5 + $0x50] ss:$112 sps:$4 sm:$0xff]   ;;  %v20166_v57 = vld [vmem:[#allocation5 + $0x58] ss:$112 sps:$4 sm:$0xff]  }
 0x20c   : > { %2760 = vmatprep.subr.bf16.mxu0 %v20081_v58  ;;  %2813 = vmatprep.subr.bf16.mxu1 %v20084_v59  ;;  %v20171_v58 = vld [vmem:[#allocation5 + $0x134] ss:$112 sps:$4 sm:$0xff]   ;;  %v20174_v59 = vld [vmem:[#allocation5 + $0x13c] ss:$112 sps:$4 sm:$0xff]  }
 0x20f   : > { %2761 = vmatpush1.bf16.msra.mxu0 %v20079_v60  ;;  %2814 = vmatpush1.bf16.msra.mxu1 %v20082_v61  ;;  %v20169_v60 = vld [vmem:[#allocation5 + $0x130] ss:$112 sps:$4 sm:$0xff]   ;;  %v20172_v61 = vld [vmem:[#allocation5 + $0x138] ss:$112 sps:$4 sm:$0xff]  }
 0x210   : > { %2762 = vmatprep.subr.bf16.mxu0 %v20087_v62  ;;  %2815 = vmatprep.subr.bf16.mxu1 %v20090_v63  ;;  %v20177_v62 = vld [vmem:[#allocation5 + $0x214] ss:$112 sps:$4 sm:$0xff]   ;;  %v20180_v63 = vld [vmem:[#allocation5 + $0x21c] ss:$112 sps:$4 sm:$0xff]  }
 0x213   : > { %2763 = vmatpush1.bf16.msra.mxu0 %v20085_v2  ;;  %2816 = vmatpush1.bf16.msra.mxu1 %v20088_v3  ;;  %v20175_v2 = vld [vmem:[#allocation5 + $0x210] ss:$112 sps:$4 sm:$0xff]   ;;  %v20178_v3 = vld [vmem:[#allocation5 + $0x218] ss:$112 sps:$4 sm:$0xff]  }
 0x214   : > { %2764 = vmatprep.subr.bf16.mxu0 %v20093_v4  ;;  %2817 = vmatprep.subr.bf16.mxu1 %v20096_v5  ;;  %v20183_v4 = vld [vmem:[#allocation5 + $0x2f4] ss:$112 sps:$4 sm:$0xff]   ;;  %v20186_v5 = vld [vmem:[#allocation5 + $0x2fc] ss:$112 sps:$4 sm:$0xff]  }
 0x217   : > { %2765 = vmatpush1.bf16.msra.mxu0 %v20091_v6  ;;  %2818 = vmatpush1.bf16.msra.mxu1 %v20094_v8  ;;  %v20181_v6 = vld [vmem:[#allocation5 + $0x2f0] ss:$112 sps:$4 sm:$0xff]   ;;  %v20184_v8 = vld [vmem:[#allocation5 + $0x2f8] ss:$112 sps:$4 sm:$0xff]  }
 0x218   : > { %2766 = vmatprep.subr.bf16.mxu0 %v20099_v9  ;;  %2819 = vmatprep.subr.bf16.mxu1 %v20102_v10  ;;  %v20189_v9 = vld [vmem:[#allocation5 + $0x3d4] ss:$112 sps:$4 sm:$0xff]   ;;  %v20192_v10 = vld [vmem:[#allocation5 + $0x3dc] ss:$112 sps:$4 sm:$0xff]  }
 0x21b   : > { %2767 = vmatpush1.bf16.msra.mxu0 %v20097_v11  ;;  %2820 = vmatpush1.bf16.msra.mxu1 %v20100_v12  ;;  %v20187_v11 = vld [vmem:[#allocation5 + $0x3d0] ss:$112 sps:$4 sm:$0xff]   ;;  %v20190_v12 = vld [vmem:[#allocation5 + $0x3d8] ss:$112 sps:$4 sm:$0xff]  }
 0x21c   : > { %2854 = vmatprep.subr.bf16.mxu0 %v20105_v13  ;;  %2907 = vmatprep.subr.bf16.mxu1 %v20108_v14  ;;  %v20195_v13 = vld [vmem:[#allocation5 + $0x4b4] ss:$112 sps:$4 sm:$0xff]   ;;  %v20198_v14 = vld [vmem:[#allocation5 + $0x4bc] ss:$112 sps:$4 sm:$0xff]  }
 0x21e   : > { %2781 = vmatmul.mubr.bf16.vlgmr.msra.gmra.mrb[24].mxu0 %v21501_v16  ;;  %2834 = vmatmul.mubr.bf16.vlgmr.msra.gmra.mrb[24].mxu1 %v21501_v16 }
 0x21f   : > { %2855 = vmatpush1.bf16.msra.mxu0 %v20103_v17  ;;  %2908 = vmatpush1.bf16.msra.mxu1 %v20106_v18  ;;  %v20193_v17 = vld [vmem:[#allocation5 + $0x4b0] ss:$112 sps:$4 sm:$0xff]   ;;  %v20196_v18 = vld [vmem:[#allocation5 + $0x4b8] ss:$112 sps:$4 sm:$0xff]  }
 0x220   : > { %2856 = vmatprep.subr.bf16.mxu0 %v20111_v0  ;;  %2909 = vmatprep.subr.bf16.mxu1 %v20114_v19  ;;  %v20201_v0 = vld [vmem:[#allocation5 + $0x594] ss:$112 sps:$4 sm:$0xff]   ;;  %v20204_v19 = vld [vmem:[#allocation5 + $0x59c] ss:$112 sps:$4 sm:$0xff]  }
 0x221   : > { %18007 = vmatprep.mubr.msk.bf16.mxu0 %vm579_vm4, %v21481_v7  ;;  %18009 = vmatprep.mubr.msk.bf16.mxu1 %vm579_vm4, %v21481_v7 }
 0x223   : > { %2857 = vmatpush1.bf16.msra.mxu0 %v20109_v20  ;;  %2910 = vmatpush1.bf16.msra.mxu1 %v20112_v21  ;;  %v20199_v20 = vld [vmem:[#allocation5 + $0x590] ss:$112 sps:$4 sm:$0xff]   ;;  %v20202_v21 = vld [vmem:[#allocation5 + $0x598] ss:$112 sps:$4 sm:$0xff]  }
 0x224   : > { %2858 = vmatprep.subr.bf16.mxu0 %v20117_v22  ;;  %2911 = vmatprep.subr.bf16.mxu1 %v20120_v23  ;;  %v20207_v22 = vld [vmem:[#allocation5 + $0x674] ss:$112 sps:$4 sm:$0xff]   ;;  %v20210_v23 = vld [vmem:[#allocation5 + $0x67c] ss:$112 sps:$4 sm:$0xff]  }
 0x226   : > { %2791 = vmatmul.mubr.bf16.gmra.mrb[28].mxu0 %v21513_v25  ;;  %2844 = vmatmul.mubr.bf16.gmra.mrb[28].mxu1 %v21513_v25 }
 0x227   : > { %2859 = vmatpush1.bf16.msra.mxu0 %v20115_v1  ;;  %2912 = vmatpush1.bf16.msra.mxu1 %v20118_v24  ;;  %v20205_v1 = vld [vmem:[#allocation5 + $0x670] ss:$112 sps:$4 sm:$0xff]   ;;  %v20208_v24 = vld [vmem:[#allocation5 + $0x678] ss:$112 sps:$4 sm:$0xff]  }
 0x228   : > { %2860 = vmatprep.subr.bf16.mxu0 %v20123_v26  ;;  %2913 = vmatprep.subr.bf16.mxu1 %v20126_v27  ;;  %v20213_v26 = vld [vmem:[#allocation5 + $0x754] ss:$112 sps:$4 sm:$0xff]   ;;  %v20216_v27 = vld [vmem:[#allocation5 + $0x75c] ss:$112 sps:$4 sm:$0xff]  }
 0x229   : > { %18010 = vmatprep.mubr.msk.bf16.mxu0 %vm579_vm4, %v21486_v15  ;;  %18012 = vmatprep.mubr.msk.bf16.mxu1 %vm579_vm4, %v21486_v15 }
 0x22b   : > { %2861 = vmatpush1.bf16.msra.mxu0 %v20121_v28  ;;  %2914 = vmatpush1.bf16.msra.mxu1 %v20124_v29  ;;  %v20211_v28 = vld [vmem:[#allocation5 + $0x750] ss:$112 sps:$4 sm:$0xff]   ;;  %v20214_v29 = vld [vmem:[#allocation5 + $0x758] ss:$112 sps:$4 sm:$0xff]  }
 0x22c   : > { %2862 = vmatprep.subr.bf16.mxu0 %v20129_v30  ;;  %2915 = vmatprep.subr.bf16.mxu1 %v20132_v31  ;;  %v20219_v30 = vld [vmem:[#allocation5 + $0x834] ss:$112 sps:$4 sm:$0xff]   ;;  %v20222_v31 = vld [vmem:[#allocation5 + $0x83c] ss:$112 sps:$4 sm:$0xff]  }
 0x22f   : > { %2863 = vmatpush1.bf16.msra.mxu0 %v20127_v32  ;;  %2916 = vmatpush1.bf16.msra.mxu1 %v20130_v33  ;;  %v20217_v32 = vld [vmem:[#allocation5 + $0x830] ss:$112 sps:$4 sm:$0xff]   ;;  %v20220_v33 = vld [vmem:[#allocation5 + $0x838] ss:$112 sps:$4 sm:$0xff]  }
 0x230   : > { %2864 = vmatprep.subr.bf16.mxu0 %v20135_v34  ;;  %2917 = vmatprep.subr.bf16.mxu1 %v20138_v35  ;;  %v20225_v34 = vld [vmem:[#allocation5 + $0x64] ss:$112 sps:$4 sm:$0xff]   ;;  %v20228_v35 = vld [vmem:[#allocation5 + $0x6c] ss:$112 sps:$4 sm:$0xff]  }
 0x233   : > { %2865 = vmatpush1.bf16.msra.mxu0 %v20133_v36  ;;  %2918 = vmatpush1.bf16.msra.mxu1 %v20136_v37  ;;  %v20223_v36 = vld [vmem:[#allocation5 + $0x60] ss:$112 sps:$4 sm:$0xff]   ;;  %v20226_v37 = vld [vmem:[#allocation5 + $0x68] ss:$112 sps:$4 sm:$0xff]  }
 0x234   : > { %2866 = vmatprep.subr.bf16.mxu0 %v20141_v38  ;;  %2919 = vmatprep.subr.bf16.mxu1 %v20144_v39  ;;  %v20231_v38 = vld [vmem:[#allocation5 + $0x144] ss:$112 sps:$4 sm:$0xff]   ;;  %v20234_v39 = vld [vmem:[#allocation5 + $0x14c] ss:$112 sps:$4 sm:$0xff]  }
 0x237   : > { %2867 = vmatpush1.bf16.msra.mxu0 %v20139_v40  ;;  %2920 = vmatpush1.bf16.msra.mxu1 %v20142_v41  ;;  %v20229_v40 = vld [vmem:[#allocation5 + $0x140] ss:$112 sps:$4 sm:$0xff]   ;;  %v20232_v41 = vld [vmem:[#allocation5 + $0x148] ss:$112 sps:$4 sm:$0xff]  }
 0x238   : > { %2868 = vmatprep.subr.bf16.mxu0 %v20147_v42  ;;  %2921 = vmatprep.subr.bf16.mxu1 %v20150_v43  ;;  %v20237_v42 = vld [vmem:[#allocation5 + $0x224] ss:$112 sps:$4 sm:$0xff]   ;;  %v20240_v43 = vld [vmem:[#allocation5 + $0x22c] ss:$112 sps:$4 sm:$0xff]  }
 0x23b   : > { %2869 = vmatpush1.bf16.msra.mxu0 %v20145_v44  ;;  %2922 = vmatpush1.bf16.msra.mxu1 %v20148_v45  ;;  %v20235_v44 = vld [vmem:[#allocation5 + $0x220] ss:$112 sps:$4 sm:$0xff]   ;;  %v20238_v45 = vld [vmem:[#allocation5 + $0x228] ss:$112 sps:$4 sm:$0xff]  }
 0x23c   : > { %2870 = vmatprep.subr.bf16.mxu0 %v20153_v46  ;;  %2923 = vmatprep.subr.bf16.mxu1 %v20156_v47  ;;  %v20243_v46 = vld [vmem:[#allocation5 + $0x304] ss:$112 sps:$4 sm:$0xff]   ;;  %v20246_v47 = vld [vmem:[#allocation5 + $0x30c] ss:$112 sps:$4 sm:$0xff]  }
 0x23f   : > { %2871 = vmatpush1.bf16.msra.mxu0 %v20151_v48  ;;  %2924 = vmatpush1.bf16.msra.mxu1 %v20154_v49  ;;  %v20241_v48 = vld [vmem:[#allocation5 + $0x300] ss:$112 sps:$4 sm:$0xff]   ;;  %v20244_v49 = vld [vmem:[#allocation5 + $0x308] ss:$112 sps:$4 sm:$0xff]  }
 0x240   : > { %2872 = vmatprep.subr.bf16.mxu0 %v20159_v50  ;;  %2925 = vmatprep.subr.bf16.mxu1 %v20162_v51  ;;  %v20249_v50 = vld [vmem:[#allocation5 + $0x3e4] ss:$112 sps:$4 sm:$0xff]   ;;  %v20252_v51 = vld [vmem:[#allocation5 + $0x3ec] ss:$112 sps:$4 sm:$0xff]  }
 0x243   : > { %2873 = vmatpush1.bf16.msra.mxu0 %v20157_v52  ;;  %2926 = vmatpush1.bf16.msra.mxu1 %v20160_v53 }
 0x244   : > { %2960 = vmatprep.subr.bf16.mxu0 %v20165_v54  ;;  %3013 = vmatprep.subr.bf16.mxu1 %v20168_v55  ;;  %v20247_v54 = vld [vmem:[#allocation5 + $0x3e0] ss:$112 sps:$4 sm:$0xff]   ;;  %v20250_v55 = vld [vmem:[#allocation5 + $0x3e8] ss:$112 sps:$4 sm:$0xff]  }
 0x246   : > { %2887 = vmatmul.mubr.bf16.vlgmr.msra.gmra.mrb[32].mxu0 %v21501_v16  ;;  %2940 = vmatmul.mubr.bf16.vlgmr.msra.gmra.mrb[32].mxu1 %v21501_v16 }
 0x247   : > { %2961 = vmatpush1.bf16.msra.mxu0 %v20163_v56  ;;  %3014 = vmatpush1.bf16.msra.mxu1 %v20166_v57 }
 0x248   : > { %2962 = vmatprep.subr.bf16.mxu0 %v20171_v58  ;;  %3015 = vmatprep.subr.bf16.mxu1 %v20174_v59  ;;  %v20255_v58 = vld [vmem:[#allocation5 + $0x4c4] ss:$112 sps:$4 sm:$0xff]  }
 0x249   : > { %18011 = vmatprep.mubr.msk.bf16.mxu0 %vm579_vm4, %v21481_v7  ;;  %18013 = vmatprep.mubr.msk.bf16.mxu1 %vm579_vm4, %v21481_v7 }
 0x24b   : > { %2963 = vmatpush1.bf16.msra.mxu0 %v20169_v60  ;;  %3016 = vmatpush1.bf16.msra.mxu1 %v20172_v61 }
 0x24c   : > { %2964 = vmatprep.subr.bf16.mxu0 %v20177_v62  ;;  %3017 = vmatprep.subr.bf16.mxu1 %v20180_v63  ;;  %v20258_v63 = vld [vmem:[#allocation5 + $0x4cc] ss:$112 sps:$4 sm:$0xff]  }
 0x24e   : > { %2897 = vmatmul.mubr.bf16.gmra.mrb[36].mxu0 %v21513_v25  ;;  %2950 = vmatmul.mubr.bf16.gmra.mrb[36].mxu1 %v21513_v25 }
 0x24f   : > { %2965 = vmatpush1.bf16.msra.mxu0 %v20175_v2  ;;  %3018 = vmatpush1.bf16.msra.mxu1 %v20178_v3  ;;  %v20253_v2 = vld [vmem:[#allocation5 + $0x4c0] ss:$112 sps:$4 sm:$0xff]   ;;  %v20261_v3 = vld [vmem:[#allocation5 + $0x5a4] ss:$112 sps:$4 sm:$0xff]  }
 0x250   : > { %2966 = vmatprep.subr.bf16.mxu0 %v20183_v4  ;;  %3019 = vmatprep.subr.bf16.mxu1 %v20186_v5  ;;  %v20264_v4 = vld [vmem:[#allocation5 + $0x5ac] ss:$112 sps:$4 sm:$0xff]   ;;  %v20259_v5 = vld [vmem:[#allocation5 + $0x5a0] ss:$112 sps:$4 sm:$0xff]  }
 0x251   : > { %18014 = vmatprep.mubr.msk.bf16.mxu0 %vm579_vm4, %v21486_v15  ;;  %18016 = vmatprep.mubr.msk.bf16.mxu1 %vm579_vm4, %v21486_v15 }
 0x253   : > { %2967 = vmatpush1.bf16.msra.mxu0 %v20181_v6  ;;  %3020 = vmatpush1.bf16.msra.mxu1 %v20184_v8  ;;  %v20262_v6 = vld [vmem:[#allocation5 + $0x5a8] ss:$112 sps:$4 sm:$0xff]  }
 0x254   : > { %2968 = vmatprep.subr.bf16.mxu0 %v20189_v9  ;;  %3021 = vmatprep.subr.bf16.mxu1 %v20192_v10  ;;  %v20267_v10 = vld [vmem:[#allocation5 + $0x684] ss:$112 sps:$4 sm:$0xff]  }
 0x257   : > { %2969 = vmatpush1.bf16.msra.mxu0 %v20187_v11  ;;  %3022 = vmatpush1.bf16.msra.mxu1 %v20190_v12 }
 0x258   : > { %2970 = vmatprep.subr.bf16.mxu0 %v20195_v13  ;;  %3023 = vmatprep.subr.bf16.mxu1 %v20198_v14 }
 0x25b   : > { %2971 = vmatpush1.bf16.msra.mxu0 %v20193_v17  ;;  %3024 = vmatpush1.bf16.msra.mxu1 %v20196_v18  ;;  %v20270_v17 = vld [vmem:[#allocation5 + $0x68c] ss:$112 sps:$4 sm:$0xff]  }
 0x25c   : > { %2972 = vmatprep.subr.bf16.mxu0 %v20201_v0  ;;  %3025 = vmatprep.subr.bf16.mxu1 %v20204_v19  ;;  %v20265_v19 = vld [vmem:[#allocation5 + $0x680] ss:$112 sps:$4 sm:$0xff]  }
 0x25f   : > { %2973 = vmatpush1.bf16.msra.mxu0 %v20199_v20  ;;  %3026 = vmatpush1.bf16.msra.mxu1 %v20202_v21  ;;  %v20268_v20 = vld [vmem:[#allocation5 + $0x688] ss:$112 sps:$4 sm:$0xff]   ;;  %v20273_v21 = vld [vmem:[#allocation5 + $0x764] ss:$112 sps:$4 sm:$0xff]  }
 0x260   : > { %2974 = vmatprep.subr.bf16.mxu0 %v20207_v22  ;;  %3027 = vmatprep.subr.bf16.mxu1 %v20210_v23  ;;  %v20276_v22 = vld [vmem:[#allocation5 + $0x76c] ss:$112 sps:$4 sm:$0xff]   ;;  %v20271_v23 = vld [vmem:[#allocation5 + $0x760] ss:$112 sps:$4 sm:$0xff]  }
 0x263   : > { %2975 = vmatpush1.bf16.msra.mxu0 %v20205_v1  ;;  %3028 = vmatpush1.bf16.msra.mxu1 %v20208_v24  ;;  %v20274_v1 = vld [vmem:[#allocation5 + $0x768] ss:$112 sps:$4 sm:$0xff]   ;;  %v20279_v24 = vld [vmem:[#allocation5 + $0x844] ss:$112 sps:$4 sm:$0xff]  }
 0x264   : > { %2976 = vmatprep.subr.bf16.mxu0 %v20213_v26  ;;  %3029 = vmatprep.subr.bf16.mxu1 %v20216_v27  ;;  %v20282_v26 = vld [vmem:[#allocation5 + $0x84c] ss:$112 sps:$4 sm:$0xff]   ;;  %v20277_v27 = vld [vmem:[#allocation5 + $0x840] ss:$112 sps:$4 sm:$0xff]  }
 0x267   : > { %2977 = vmatpush1.bf16.msra.mxu0 %v20211_v28  ;;  %3030 = vmatpush1.bf16.msra.mxu1 %v20214_v29  ;;  %v20280_v28 = vld [vmem:[#allocation5 + $0x848] ss:$112 sps:$4 sm:$0xff]  }
 0x268   : > { %2978 = vmatprep.subr.bf16.mxu0 %v20219_v30  ;;  %3031 = vmatprep.subr.bf16.mxu1 %v20222_v31 }
 0x26b   : > { %2979 = vmatpush1.bf16.msra.mxu0 %v20217_v32  ;;  %3032 = vmatpush1.bf16.msra.mxu1 %v20220_v33 }
 0x26c   : > { %3066 = vmatprep.subr.bf16.mxu0 %v20225_v34  ;;  %3119 = vmatprep.subr.bf16.mxu1 %v20228_v35 }
 0x26e   : > { %2993 = vmatmul.mubr.bf16.vlgmr.msra.gmra.mrb[40].mxu0 %v21501_v16  ;;  %3046 = vmatmul.mubr.bf16.vlgmr.msra.gmra.mrb[40].mxu1 %v21501_v16 }
 0x26f   : > { %3067 = vmatpush1.bf16.msra.mxu0 %v20223_v36  ;;  %3120 = vmatpush1.bf16.msra.mxu1 %v20226_v37 }
 0x270   : > { %3068 = vmatprep.subr.bf16.mxu0 %v20231_v38  ;;  %3121 = vmatprep.subr.bf16.mxu1 %v20234_v39 }
 0x271   : > { %18015 = vmatprep.mubr.msk.bf16.mxu0 %vm579_vm4, %v21481_v7  ;;  %18017 = vmatprep.mubr.msk.bf16.mxu1 %vm579_vm4, %v21481_v7 }
 0x273   : > { %3069 = vmatpush1.bf16.msra.mxu0 %v20229_v40  ;;  %3122 = vmatpush1.bf16.msra.mxu1 %v20232_v41 }
 0x274   : > { %3070 = vmatprep.subr.bf16.mxu0 %v20237_v42  ;;  %3123 = vmatprep.subr.bf16.mxu1 %v20240_v43 }
 0x276   : > { %3003 = vmatmul.mubr.bf16.gmra.mrb[44].mxu0 %v21513_v25  ;;  %3056 = vmatmul.mubr.bf16.gmra.mrb[44].mxu1 %v21513_v25 }
 0x277   : > { %3071 = vmatpush1.bf16.msra.mxu0 %v20235_v44  ;;  %3124 = vmatpush1.bf16.msra.mxu1 %v20238_v45 }
 0x278   : > { %3072 = vmatprep.subr.bf16.mxu0 %v20243_v46  ;;  %3125 = vmatprep.subr.bf16.mxu1 %v20246_v47  ;;  %v884_v46 = vlaneseq }
 0x279   : > { %v21577_v52 = vpop.f32.mrb[0].mxu0  ;;  %v21579_v53 = vpop.f32.mrb[0].mxu1  ;;  %18018 = vmatprep.mubr.msk.bf16.mxu0 %vm579_vm4, %v21486_v15  ;;  %18020 = vmatprep.mubr.msk.bf16.mxu1 %vm579_vm4, %v21486_v15  ;;  %v20256_v15 = vld [vmem:[#allocation5 + $0x4c8] ss:$112 sps:$4 sm:$0xff]  }
 0x27a   : > { %v21585_v56 = vpop.f32.mrb[1].mxu0  ;;  %v21587_v57 = vpop.f32.mrb[1].mxu1 }
 0x27b   : > { %3073 = vmatpush1.bf16.msra.mxu0 %v20241_v48  ;;  %3126 = vmatpush1.bf16.msra.mxu1 %v20244_v49  ;;  %v21589_v59 = vpop.f32.mrb[2].mxu0  ;;  %v21591_v60 = vpop.f32.mrb[2].mxu1 }
 0x27c   : > { %v21593_v61 = vpop.f32.mrb[3].mxu0  ;;  %v21595_v62 = vpop.f32.mrb[3].mxu1  ;;  %3074 = vmatprep.subr.bf16.mxu0 %v20249_v50  ;;  %3127 = vmatprep.subr.bf16.mxu1 %v20252_v51  ;;  %v21669_v51 = vshrl.u32 %v884_v46, 7 }
 0x27e   : > { %26431 = vst [vmem:[#allocation45_spill] sm:$0xff] %v21669_v51 }
 0x27f   : > { %3075 = vmatpush1.bf16.msra.mxu0 %v20247_v54  ;;  %3128 = vmatpush1.bf16.msra.mxu1 %v20250_v55 }
 0x280   : > { %3076 = vmatprep.subr.bf16.mxu0 %v20255_v58  ;;  %3129 = vmatprep.subr.bf16.mxu1 %v20258_v63 }
 0x281   : > { %v21597_v8 = vpop.f32.mrb[4].mxu0  ;;  %v21599_v9 = vpop.f32.mrb[4].mxu1 }
 0x282   : > { %v21601_v11 = vpop.f32.mrb[5].mxu0  ;;  %v21603_v12 = vpop.f32.mrb[5].mxu1 }
 0x283   : > { %3077 = vmatpush1.bf16.msra.mxu0 %v20253_v2  ;;  %3130 = vmatpush1.bf16.msra.mxu1 %v20256_v15  ;;  %v21605_v13 = vpop.f32.mrb[6].mxu0  ;;  %v21607_v14 = vpop.f32.mrb[6].mxu1 }
 0x284   : > { %3078 = vmatprep.subr.bf16.mxu0 %v20261_v3  ;;  %3131 = vmatprep.subr.bf16.mxu1 %v20264_v4  ;;  %v21609_v18 = vpop.f32.mrb[7].mxu0  ;;  %v21611_v0 = vpop.f32.mrb[7].mxu1  ;;  %v21684_v3 = vsub.s32 0, %v21669_v51  ;;  %v21687_v4 = vsub.s32 2, %v21669_v51 }
 0x286   : > { %26438 = vst [vmem:[#allocation52_spill] sm:$0xff] %v21684_v3  ;;  %26439 = vst [vmem:[#allocation53_spill] sm:$0xff] %v21687_v4 }
 0x287   : > { %3079 = vmatpush1.bf16.msra.mxu0 %v20259_v5  ;;  %3132 = vmatpush1.bf16.msra.mxu1 %v20262_v6 }
 0x288   : > { %3080 = vmatprep.subr.bf16.mxu0 %v20267_v10  ;;  %3133 = vmatprep.subr.bf16.mxu1 %v20270_v17  ;;  %v21694_v10 = vsub.s32 1, %v21669_v51  ;;  %v21697_v17 = vsub.s32 3, %v21669_v51 }
 0x28a   : > { %26442 = vst [vmem:[#allocation56_spill] sm:$0xff] %v21694_v10  ;;  %26443 = vst [vmem:[#allocation57_spill] sm:$0xff] %v21697_v17 }
 0x28b   : > { %3081 = vmatpush1.bf16.msra.mxu0 %v20265_v19  ;;  %3134 = vmatpush1.bf16.msra.mxu1 %v20268_v20  ;;  %v21700_v19 = vsub.s32 4, %v21669_v51  ;;  %v21703_v20 = vsub.s32 6, %v21669_v51 }
 0x28c   : > { %3082 = vmatprep.subr.bf16.mxu0 %v20273_v21  ;;  %3135 = vmatprep.subr.bf16.mxu1 %v20276_v22  ;;  %v21706_v21 = vsub.s32 5, %v21669_v51  ;;  %v21709_v22 = vsub.s32 7, %v21669_v51 }
 0x28e   : > { %26444 = vst [vmem:[#allocation58_spill] sm:$0xff] %v21706_v21  ;;  %26445 = vst [vmem:[#allocation59_spill] sm:$0xff] %v21709_v22 }
 0x28f   : > { %3083 = vmatpush1.bf16.msra.mxu0 %v20271_v23  ;;  %3136 = vmatpush1.bf16.msra.mxu1 %v20274_v1  ;;  %v21711_v23 = vld [vmem:[#allocation8] sm:$0xff]  ;;  %v21713_v1 = vld [vmem:[#allocation8 + $0x8] sm:$0xff] }
 0x290   : > { %3084 = vmatprep.subr.bf16.mxu0 %v20279_v24  ;;  %3137 = vmatprep.subr.bf16.mxu1 %v20282_v26  ;;  %v887_v24 = vrot.slane %v21711_v23, %v21684_v3  ;;  %v891_v26 = vrot.slane %v21711_v23, %v21694_v10 }
 0x292   : > { %v2465_v46 = vadd.f32 %v21577_v52, %v887_v24 }
 0x293   : > { %3085 = vmatpush1.bf16.msra.mxu0 %v20277_v27  ;;  %3138 = vmatpush1.bf16.msra.mxu1 %v20280_v28  ;;  %v943_v27 = vrot.slane %v21713_v1, %v21703_v20  ;;  %v947_v28 = vrot.slane %v21713_v1, %v21709_v22 }
 0x296   : > { %3099 = vmatmul.mubr.bf16.vlgmr.msra.gmra.mrb[48].mxu0 %v21501_v16  ;;  %3152 = vmatmul.mubr.bf16.vlgmr.msra.gmra.mrb[48].mxu1 %v21501_v16 }
 0x297   : > { %18019 = vmatprep.mubr.msk.bf16.mxu0 %vm579_vm4, %v21481_v7  ;;  %18021 = vmatprep.mubr.msk.bf16.mxu1 %vm579_vm4, %v21481_v7 }
 0x29e   : > { %3109 = vmatmul.mubr.bf16.gmra.mrb[52].mxu0 %v21513_v25  ;;  %3162 = vmatmul.mubr.bf16.gmra.mrb[52].mxu1 %v21513_v25 }
 0x2a1   : > { %v21621_v29 = vpop.f32.mrb[8].mxu0  ;;  %v21623_v30 = vpop.f32.mrb[8].mxu1 }
 0x2a2   : > { %v21625_v31 = vpop.f32.mrb[9].mxu0  ;;  %v21627_v32 = vpop.f32.mrb[9].mxu1 }
 0x2a3   : > { %v21629_v33 = vpop.f32.mrb[10].mxu0  ;;  %v21631_v16 = vpop.f32.mrb[10].mxu1 }
 0x2a4   : > { %v21633_v34 = vpop.f32.mrb[11].mxu0  ;;  %v21635_v35 = vpop.f32.mrb[11].mxu1 }
 0x2a9   : > { %v21637_v7 = vpop.f32.mrb[12].mxu0  ;;  %v21639_v36 = vpop.f32.mrb[12].mxu1 }
 0x2aa   : > { %v21641_v25 = vpop.f32.mrb[13].mxu0  ;;  %v21643_v37 = vpop.f32.mrb[13].mxu1 }
 0x2ab   : > { %v21645_v38 = vpop.f32.mrb[14].mxu0  ;;  %v21647_v39 = vpop.f32.mrb[14].mxu1 }
 0x2ac   : > { %26421 = vst [vmem:[#allocation35_spill] sm:$0xff] %v21647_v39  ;;  %v21649_v40 = vpop.f32.mrb[15].mxu0  ;;  %v21651_v41 = vpop.f32.mrb[15].mxu1 }
 0x2ad   : > { %26422 = vst [vmem:[#allocation36_spill] sm:$0xff] %v21651_v41 }
 0x2c9   : > { %v21653_v42 = vpop.f32.mrb[16].mxu0  ;;  %v21655_v43 = vpop.f32.mrb[16].mxu1 }
 0x2ca   : > { %26423 = vst [vmem:[#allocation37_spill] sm:$0xff] %v21653_v42  ;;  %26424 = vst [vmem:[#allocation38_spill] sm:$0xff] %v21655_v43  ;;  %v21657_v44 = vpop.f32.mrb[17].mxu0  ;;  %v21659_v45 = vpop.f32.mrb[17].mxu1 }
 0x2cb   : > { %26425 = vst [vmem:[#allocation39_spill] sm:$0xff] %v21657_v44  ;;  %26426 = vst [vmem:[#allocation40_spill] sm:$0xff] %v21659_v45  ;;  %v21661_v47 = vpop.f32.mrb[18].mxu0  ;;  %v21663_v48 = vpop.f32.mrb[18].mxu1 }
 0x2cc   : > { %26427 = vst [vmem:[#allocation41_spill] sm:$0xff] %v21661_v47  ;;  %26428 = vst [vmem:[#allocation42_spill] sm:$0xff] %v21663_v48  ;;  %v21665_v49 = vpop.f32.mrb[19].mxu0  ;;  %v21667_v50 = vpop.f32.mrb[19].mxu1  ;;  %v3172_v47 = vmax.f32 %v2465_v46, 0.0 }
 0x2cd   : > { %26429 = vst [vmem:[#allocation43_spill] sm:$0xff] %v21665_v49  ;;  %26430 = vst [vmem:[#allocation44_spill] sm:$0xff] %v21667_v50 }
 0x2d1   : > { %v21671_v54 = vpop.f32.mrb[20].mxu0  ;;  %v21673_v55 = vpop.f32.mrb[20].mxu1 }
 0x2d2   : > { %26432 = vst [vmem:[#allocation46_spill] sm:$0xff] %v21671_v54  ;;  %26433 = vst [vmem:[#allocation47_spill] sm:$0xff] %v21673_v55  ;;  %v21675_v58 = vpop.f32.mrb[21].mxu0  ;;  %v21677_v63 = vpop.f32.mrb[21].mxu1  ;;  %v2471_v54 = vadd.f32 %v21593_v61, %v891_v26 }
 0x2d3   : > { %26434 = vst [vmem:[#allocation48_spill] sm:$0xff] %v21675_v58  ;;  %26435 = vst [vmem:[#allocation49_spill] sm:$0xff] %v21677_v63  ;;  %v21679_v2 = vpop.f32.mrb[22].mxu0  ;;  %v21681_v15 = vpop.f32.mrb[22].mxu1 }
 0x2d4   : > { %26436 = vst [vmem:[#allocation50_spill] sm:$0xff] %v21679_v2  ;;  %26437 = vst [vmem:[#allocation51_spill] sm:$0xff] %v21681_v15  ;;  %v21689_v5 = vpop.f32.mrb[23].mxu0  ;;  %v21691_v6 = vpop.f32.mrb[23].mxu1  ;;  %v2469_v2 = vadd.f32 %v21589_v59, %v887_v24  ;;  %v3201_v41 = vmax.f32 %v2471_v54, 0.0 }
 0x2d5   : > { %26440 = vst [vmem:[#allocation54_spill] sm:$0xff] %v21689_v5  ;;  %26441 = vst [vmem:[#allocation55_spill] sm:$0xff] %v21691_v6  ;;  %v2467_v6 = vadd.f32 %v21585_v56, %v891_v26 }
 0x2d6   : > { %v3200_v59 = vmax.f32 %v2469_v2, 0.0  ;;  %v2479_v2 = vadd.f32 %v21605_v13, %v887_v24 }
 0x2d8   : > { %v3256_v13 = vmax.f32 %v2479_v2, 0.0 }
 0x2f1   : > { %v21725_v5 = vpop.f32.mrb[24].mxu0  ;;  %v2835_v15 = vpop.f32.mrb[24].mxu1 }
 0x2f2   : > { %26446 = vst [vmem:[#allocation60_spill] sm:$0xff] %v21725_v5  ;;  %v2836_v63 = vadd.f32 %v2835_v15, %v943_v27  ;;  %v21728_v58 = vpop.f32.mrb[25].mxu0  ;;  %v2837_v55 = vpop.f32.mrb[25].mxu1  ;;  %v3173_v5 = vmax.f32 %v2467_v6, 0.0 }
 0x2f3   : > { %26447 = vst [vmem:[#allocation61_spill] sm:$0xff] %v21728_v58  ;;  %v2838_v50 = vadd.f32 %v2837_v55, %v947_v28  ;;  %v21731_v49 = vpop.f32.mrb[26].mxu0  ;;  %v2839_v48 = vpop.f32.mrb[26].mxu1  ;;  %v2475_v55 = vadd.f32 %v21597_v8, %v887_v24 }
 0x2f4   : > { %26448 = vst [vmem:[#allocation62_spill] sm:$0xff] %v21731_v49  ;;  %v3186_v45 = vmax.f32 %v2836_v63, 0.0  ;;  %v2840_v52 = vadd.f32 %v2839_v48, %v943_v27  ;;  %v21733_v44 = vpop.f32.mrb[27].mxu0  ;;  %v2841_v56 = vpop.f32.mrb[27].mxu1  ;;  %v2477_v48 = vadd.f32 %v21601_v11, %v891_v26 }
 0x2f5   : > { %26449 = vst [vmem:[#allocation63_spill] sm:$0xff] %v21733_v44  ;;  %v3187_v43 = vmax.f32 %v2838_v50, 0.0  ;;  %v2842_v42 = vadd.f32 %v2841_v56, %v947_v28 }
 0x2f6   : > { %v21735_v15 = vmax.f32 %v3172_v47, %v3186_v45  ;;  %v3214_v58 = vmax.f32 %v2840_v52, 0.0  ;;  %v3229_v56 = vmax.f32 %v2477_v48, 0.0 }
 0x2f7   : > { %v21737_v39 = vmax.f32 %v3173_v5, %v3187_v43  ;;  %v3215_v61 = vmax.f32 %v2842_v42, 0.0  ;;  %v2481_v43 = vadd.f32 %v21609_v18, %v891_v26 }
 0x2f8   : > { %v21740_v49 = vmax.f32 %v3200_v59, %v3214_v58  ;;  %v3228_v58 = vmax.f32 %v2475_v55, 0.0  ;;  %v899_v55 = vrot.slane %v21711_v23, %v21697_v17 }
 0x2f9   : > { %v21743_v63 = vmax.f32 %v3201_v41, %v3215_v61  ;;  %v21745_v46 = vpop.f32.mrb[28].mxu0  ;;  %v2845_v50 = vpop.f32.mrb[28].mxu1 }
 0x2fa   : > { %26450 = vst [vmem:[#allocation64_spill] sm:$0xff] %v21745_v46  ;;  %v2846_v45 = vadd.f32 %v2845_v50, %v943_v27  ;;  %v21748_v47 = vpop.f32.mrb[29].mxu0  ;;  %v2847_v54 = vpop.f32.mrb[29].mxu1  ;;  %v21771_v48 = vadd.f32 %v21587_v57, %v899_v55  ;;  %v21793_v57 = vrot.slane %v21711_v23, %v21709_v22 }
 0x2fb   : > { %26451 = vst [vmem:[#allocation65_spill] sm:$0xff] %v21748_v47  ;;  %v2848_v42 = vadd.f32 %v2847_v54, %v947_v28  ;;  %v21751_v5 = vpop.f32.mrb[30].mxu0  ;;  %v2849_v8 = vpop.f32.mrb[30].mxu1  ;;  %v3257_v47 = vmax.f32 %v2481_v43, 0.0  ;;  %v21785_v43 = vrot.slane %v21711_v23, %v21703_v20 }
 0x2fc   : > { %26452 = vst [vmem:[#allocation66_spill] sm:$0xff] %v21751_v5  ;;  %v3242_v6 = vmax.f32 %v2846_v45, 0.0  ;;  %v2850_v11 = vadd.f32 %v2849_v8, %v943_v27  ;;  %v21753_v41 = vpop.f32.mrb[31].mxu0  ;;  %v2851_v52 = vpop.f32.mrb[31].mxu1  ;;  %v895_v27 = vrot.slane %v21711_v23, %v21687_v4  ;;  %v21778_v45 = vrot.slane %v21711_v23, %v21700_v19 }
 0x2fd   : > { %26453 = vst [vmem:[#allocation67_spill] sm:$0xff] %v21753_v41  ;;  %v3243_v59 = vmax.f32 %v2848_v42, 0.0  ;;  %v2852_v61 = vadd.f32 %v2851_v52, %v947_v28  ;;  %v21800_v42 = vrot.slane %v21713_v1, %v21684_v3  ;;  %v21085_v8 = vmov 1983009808   ;;  %v21822_v52 = vld [vmem:[#allocation8 + $0x10] sm:$0xff] }
 0x2fe   : > { %v21755_v24 = vmax.f32 %v3228_v58, %v3242_v6  ;;  %v3270_v50 = vmax.f32 %v2850_v11, 0.0  ;;  %v21768_v28 = vadd.f32 %v21579_v53, %v895_v27  ;;  %v21774_v2 = vadd.f32 %v21591_v60, %v895_v27 }
 0x2ff   : > { %v21757_v46 = vmax.f32 %v3229_v56, %v3243_v59  ;;  %v3271_v18 = vmax.f32 %v2852_v61, 0.0  ;;  %v21789_v53 = vrot.slane %v21711_v23, %v21706_v21  ;;  %v21796_v60 = vadd.f32 %v21599_v9, %v895_v27 }
 0x300   : > { %v21759_v26 = vmax.f32 %v3256_v13, %v3270_v50  ;;  %v3341_v58 = vunpack.c.l.s4 %v21085_v8  ;;  %v21808_v6 = vrot.slane %v21713_v1, %v21694_v10  ;;  %v21812_v23 = vrot.slane %v21713_v1, %v21697_v17 }
 0x301   : > { %v21761_v54 = vmax.f32 %v3257_v47, %v3271_v18  ;;  %v21781_v47 = vadd.f32 %v21595_v62, %v899_v55  ;;  %v21804_v62 = vrot.slane %v21713_v1, %v21687_v4  ;;  %v21816_v9 = vrot.slane %v21713_v1, %v21700_v19 }
 0x302   : > { %v21820_v11 = vrot.slane %v21713_v1, %v21706_v21  ;;  %v3174_v56 = vmax.f32 %v21768_v28, 0.0  ;;  %v21086_v13 = vmov 1934713408   ;;  %v21829_v8 = vadd.f32 %v21603_v12, %v899_v55 }
 0x303   : > { %26454 = vst [vmem:[#allocation68_spill] sm:$0xff] %v21816_v9  ;;  %v3405_v50 = vunpack.c.l.s4 %v21086_v13  ;;  %v21832_v41 = vadd.f32 %v21607_v14, %v895_v27  ;;  %v21835_v1 = vadd.f32 %v21611_v0, %v899_v55  ;;  %v2571_v28 = vadd.f32 %v21621_v29, %v21778_v45 }
 0x304   : > { %26455 = vst [vmem:[#allocation69_spill] sm:$0xff] %v21820_v11  ;;  %v21842_v61 = vrot.slane %v21822_v52, %v21684_v3  ;;  %v3342_v13 = vunpack.c.0.s8 %v3341_v58  ;;  %v21846_v12 = vadd.f32 %v21623_v30, %v21785_v43  ;;  %v2573_v14 = vadd.f32 %v21625_v31, %v21789_v53 }
 0x305   : > { %v21852_v0 = vadd.f32 %v21627_v32, %v21793_v57  ;;  %v2575_v27 = vadd.f32 %v21629_v33, %v21778_v45  ;;  %v21858_v29 = vadd.f32 %v21631_v16, %v21785_v43  ;;  %v2577_v55 = vadd.f32 %v21633_v34, %v21789_v53 }
 0x306   : > { %26456 = vst [vmem:[#allocation70_spill] sm:$0xff] %v21846_v12  ;;  %v21864_v30 = vadd.f32 %v21635_v35, %v21793_v57  ;;  %v3406_v58 = vunpack.c.0.s8 %v3405_v50  ;;  %v21871_v33 = vrot.slane %v21822_v52, %v21687_v4  ;;  %v3176_v16 = vmax.f32 %v2571_v28, 0.0 }
 0x307   : > { %26457 = vst [vmem:[#allocation71_spill] sm:$0xff] %v21852_v0  ;;  %26458 = vst [vmem:[#allocation72_spill] sm:$0xff] %v21858_v29  ;;  %v21874_v18 = vsub.s32 %v3342_v13, %v21669_v51  ;;  %v21878_v34 = vrot.slane %v21822_v52, %v21694_v10  ;;  %v21882_v35 = vrot.slane %v21822_v52, %v21697_v17  ;;  %v3177_v32 = vmax.f32 %v2573_v14, 0.0 }
 0x308   : > { %26459 = vst [vmem:[#allocation73_spill] sm:$0xff] %v21864_v30  ;;  %v3204_v31 = vmax.f32 %v2575_v27, 0.0  ;;  %v3205_v28 = vmax.f32 %v2577_v55, 0.0  ;;  %v21889_v10 = vsub.s32 %v3406_v58, %v21669_v51  ;;  %v21893_v17 = vadd.f32 %v21637_v7, %v21778_v45 }
 0x309   : > { %v21897_v14 = vadd.f32 %v21639_v36, %v21785_v43  ;;  %v21903_v13 = vadd.f32 %v21641_v25, %v21789_v53  ;;  %v21907_v58 = vadd.f32 %v21643_v37, %v21793_v57 }
 0x30a   : > { %26460 = vst [vmem:[#allocation74_spill] sm:$0xff] %v21889_v10 }
 0x319   : > { %v2888_v4 = vpop.f32.mrb[32].mxu0  ;;  %v2941_v3 = vpop.f32.mrb[32].mxu1 }
 0x31a   : > { %v2889_v27 = vadd.f32 %v2888_v4, %v21842_v61  ;;  %v2942_v59 = vadd.f32 %v2941_v3, %v21871_v33  ;;  %v2890_v55 = vpop.f32.mrb[33].mxu0  ;;  %v2943_v5 = vpop.f32.mrb[33].mxu1 }
 0x31b   : > { %v2891_v7 = vadd.f32 %v2890_v55, %v21878_v34  ;;  %v2944_v50 = vadd.f32 %v2943_v5, %v21882_v35  ;;  %v2892_v36 = vpop.f32.mrb[34].mxu0  ;;  %v2945_v51 = vpop.f32.mrb[34].mxu1 }
 0x31c   : > { %v3188_v30 = vmax.f32 %v2889_v27, 0.0  ;;  %v3190_v4 = vmax.f32 %v2942_v59, 0.0  ;;  %v2893_v3 = vadd.f32 %v2892_v36, %v21842_v61  ;;  %v2946_v29 = vadd.f32 %v2945_v51, %v21871_v33  ;;  %v2894_v0 = vpop.f32.mrb[35].mxu0  ;;  %v2947_v12 = vpop.f32.mrb[35].mxu1 }
 0x31d   : > { %v3189_v25 = vmax.f32 %v2891_v7, 0.0  ;;  %v3191_v10 = vmax.f32 %v2944_v50, 0.0  ;;  %v2895_v44 = vadd.f32 %v2894_v0, %v21878_v34  ;;  %v2948_v37 = vadd.f32 %v2947_v12, %v21882_v35 }
 0x31e   : > { %v3286_v11 = vmax.f32 %v3174_v56, %v3188_v30  ;;  %v21915_v55 = vmax.f32 %v3176_v16, %v3190_v4  ;;  %v3216_v5 = vmax.f32 %v2893_v3, 0.0  ;;  %v3218_v9 = vmax.f32 %v2946_v29, 0.0  ;;  %v20283_v56 = vld [vmem:[#allocation10 + $0x40] sm:$0xff]  }
 0x31f   : > { %v26461_v27 = vmax.f32 %v21771_v48, 0.0  ;;  %v21919_v22 = vmax.f32 %v3177_v32, %v3191_v10  ;;  %v3217_v36 = vmax.f32 %v2895_v44, 0.0  ;;  %v3219_v51 = vmax.f32 %v2948_v37, 0.0  ;;  %v20285_v30 = vld [vmem:[#allocation10 + $0xc0] sm:$0xff]   ;;  %18603 = vmatprep.subr.bf16.mxu0 %v20283_v56  ;;  %v20289_v56 = vld [vmem:[#allocation10 + $0xc8] sm:$0xff]  }
 0x320   : > { %v3338_v21 = vcombine.low %v21735_v15, %v3286_v11  ;;  %v3339_v50 = vcombine.high %v21735_v15, %v3286_v11  ;;  %v26462_v0 = vmax.f32 %v21774_v2, 0.0  ;;  %v21925_v12 = vmax.f32 %v3204_v31, %v3218_v9  ;;  %v20284_v3 = vld [vmem:[#allocation10] sm:$0xff]   ;;  %18661 = vmatprep.subr.bf16.mxu1 %v20285_v30 }
 0x321   : > { %v3287_v59 = vmax.f32 %v26461_v27, %v3189_v25  ;;  %v26463_v10 = vmax.f32 %v21781_v47, 0.0  ;;  %v21931_v44 = vmax.f32 %v3205_v28, %v3219_v51  ;;  %v2898_v16 = vpop.f32.mrb[36].mxu0  ;;  %v2951_v4 = vpop.f32.mrb[36].mxu1  ;;  %v20286_v15 = vld [vmem:[#allocation10 + $0x80] sm:$0xff]   ;;  %18604 = vmatpush3.bf16.msra.mxu0 %v20284_v3 }
 0x322   : > { %v3300_v7 = vmax.f32 %v26462_v0, %v3216_v5  ;;  %v21934_v2 = vrot.slane %v3338_v21, %v21874_v18  ;;  %v21937_v9 = vrot.slane %v3339_v50, %v21874_v18  ;;  %v2953_v25 = vpop.f32.mrb[37].mxu1  ;;  %v2952_v51 = vadd.f32 %v2951_v4, %v21871_v33  ;;  %18662 = vmatpush3.bf16.msra.mxu1 %v20286_v15  ;;  %v20291_v4 = vld [vmem:[#allocation10 + $0x50] sm:$0xff]  }
 0x323   : > { %v3354_v29 = vcombine.low %v21737_v39, %v3287_v59  ;;  %v3355_v48 = vcombine.high %v21737_v39, %v3287_v59  ;;  %v3301_v32 = vmax.f32 %v26463_v10, %v3217_v36  ;;  %v2900_v39 = vpop.f32.mrb[37].mxu0  ;;  %v2955_v27 = vpop.f32.mrb[38].mxu1  ;;  %v2899_v36 = vadd.f32 %v2898_v16, %v21842_v61  ;;  %v20290_v16 = vld [vmem:[#allocation10 + $0x88] sm:$0xff]   ;;  %18663 = vmatprep.subr.bf16.mxu1 %v20289_v56 }
 0x324   : > { %v3608_v11 = vcombine.low %v21740_v49, %v3300_v7  ;;  %v3609_v31 = vcombine.high %v21740_v49, %v3300_v7  ;;  %v2902_v5 = vpop.f32.mrb[38].mxu0  ;;  %v2957_v0 = vpop.f32.mrb[39].mxu1  ;;  %v20287_v7 = vld [vmem:[#allocation10 + $0x48] sm:$0xff]   ;;  %v2585_v15 = vadd.f32 %v21645_v38, %v21778_v45  ;;  %v2587_v10 = vadd.f32 %v21649_v40, %v21789_v53 }
 0x325   : > { %v21942_v47 = vrot.slane %v3354_v29, %v21874_v18  ;;  %v21945_v28 = vrot.slane %v3355_v48, %v21874_v18  ;;  %v3624_v37 = vcombine.low %v21743_v63, %v3301_v32  ;;  %v3625_v21 = vcombine.high %v21743_v63, %v3301_v32  ;;  %v2904_v50 = vpop.f32.mrb[39].mxu0  ;;  %v20288_v32 = vld [vmem:[#allocation10 + $0x8] sm:$0xff]   ;;  %18605 = vmatprep.subr.bf16.mxu0 %v20287_v7  ;;  %v20293_v29 = vld [vmem:[#allocation10 + $0xd0] sm:$0xff]   ;;  %v20295_v7 = vld [vmem:[#allocation10 + $0x58] sm:$0xff]  }
 0x326   : > { %v21950_v59 = vrot.slane %v3608_v11, %v21874_v18  ;;  %v21953_v49 = vrot.slane %v3609_v31, %v21874_v18  ;;  %v3244_v11 = vmax.f32 %v2899_v36, 0.0  ;;  %v3246_v31 = vmax.f32 %v2952_v51, 0.0  ;;  %18606 = vmatpush3.bf16.msra.mxu0 %v20288_v32  ;;  %18664 = vmatpush3.bf16.msra.mxu1 %v20290_v16  ;;  %v20294_v32 = vld [vmem:[#allocation10 + $0x90] sm:$0xff]  }
 0x327   : > { %v21966_v30 = vrot.slane %v3624_v37, %v21874_v18  ;;  %v21969_v3 = vrot.slane %v3625_v21, %v21874_v18  ;;  %v3232_v48 = vmax.f32 %v21893_v17, 0.0  ;;  %v20292_v37 = vld [vmem:[#allocation10 + $0x10] sm:$0xff]   ;;  %18607 = vmatprep.subr.bf16.mxu0 %v20291_v4  ;;  %v26464_v38 = vmax.f32 %v21796_v60, 0.0  ;;  %18665 = vmatprep.subr.bf16.mxu1 %v20293_v29 }
 0x328   : > { %v2901_v53 = vadd.f32 %v2900_v39, %v21878_v34  ;;  %v2954_v56 = vadd.f32 %v2953_v25, %v21882_v35  ;;  %v3233_v63 = vmax.f32 %v21903_v13, 0.0  ;;  %v26465_v36 = vld [vmem:[#allocation35_spill] sm:$0xff]  ;;  %v26466_v4 = vld [vmem:[#allocation36_spill] sm:$0xff]  ;;  %v3260_v29 = vmax.f32 %v2585_v15, 0.0 }
 0x329   : > { %v3314_v45 = vmax.f32 %v26464_v38, %v3244_v11  ;;  %v21987_v40 = vmax.f32 %v3232_v48, %v3246_v31  ;;  %v21995_v17 = vadd.f32 %v26465_v36, %v21785_v43  ;;  %v21999_v60 = vadd.f32 %v26466_v4, %v21793_v57  ;;  %v20297_v48 = vld [vmem:[#allocation10 + $0xd8] sm:$0xff]   ;;  %v20299_v57 = vld [vmem:[#allocation10 + $0x60] sm:$0xff]  }
 0x32a   : > { %v3245_v16 = vmax.f32 %v2901_v53, 0.0  ;;  %v3247_v11 = vmax.f32 %v2954_v56, 0.0  ;;  %18608 = vmatpush3.bf16.msra.mxu0 %v20292_v37  ;;  %v20296_v13 = vld [vmem:[#allocation10 + $0x18] sm:$0xff]   ;;  %v2903_v31 = vadd.f32 %v2902_v5, %v21842_v61  ;;  %v2956_v38 = vadd.f32 %v2955_v27, %v21871_v33  ;;  %18666 = vmatpush3.bf16.msra.mxu1 %v20294_v32  ;;  %v20301_v33 = vld [vmem:[#allocation10 + $0xe0] sm:$0xff]   ;;  %v20303_v56 = vld [vmem:[#allocation10 + $0x68] sm:$0xff]  }
 0x32b   : > { %v3878_v39 = vcombine.low %v21755_v24, %v3314_v45  ;;  %v3879_v25 = vcombine.high %v21755_v24, %v3314_v45  ;;  %v2905_v43 = vadd.f32 %v2904_v50, %v21878_v34  ;;  %v2958_v36 = vadd.f32 %v2957_v0, %v21882_v35  ;;  %18609 = vmatprep.subr.bf16.mxu0 %v20295_v7  ;;  %v20298_v37 = vld [vmem:[#allocation10 + $0x98] sm:$0xff]   ;;  %v20300_v50 = vld [vmem:[#allocation10 + $0x20] sm:$0xff]  }
 0x32c   : > { %v3261_v4 = vmax.f32 %v2587_v10, 0.0  ;;  %v26467_v51 = vmax.f32 %v21829_v8, 0.0  ;;  %v22009_v24 = vmax.f32 %v3233_v63, %v3247_v11  ;;  %v3272_v45 = vmax.f32 %v2903_v31, 0.0  ;;  %18667 = vmatprep.subr.bf16.mxu1 %v20297_v48  ;;  %v26470_v48 = vld [vmem:[#allocation37_spill] sm:$0xff] }
 0x32d   : > { %v3274_v53 = vmax.f32 %v2956_v38, 0.0  ;;  %v3273_v61 = vmax.f32 %v2905_v43, 0.0  ;;  %v3275_v5 = vmax.f32 %v2958_v36, 0.0  ;;  %v22012_v34 = vrot.slane %v3878_v39, %v21874_v18  ;;  %v20305_v38 = vld [vmem:[#allocation10 + $0xe8] sm:$0xff]  }
 0x32e   : > { %v3315_v21 = vmax.f32 %v26467_v51, %v3245_v16  ;;  %v22015_v35 = vrot.slane %v3879_v25, %v21874_v18  ;;  %18610 = vmatpush3.bf16.msra.mxu0 %v20296_v13  ;;  %v26468_v0 = vmax.f32 %v21832_v41, 0.0  ;;  %v26469_v15 = vmax.f32 %v21835_v1, 0.0  ;;  %18668 = vmatpush3.bf16.msra.mxu1 %v20298_v37  ;;  %v26471_v1 = vld [vmem:[#allocation38_spill] sm:$0xff]  ;;  %v26473_v16 = vld [vmem:[#allocation39_spill] sm:$0xff] }
 0x32f   : > { %v22021_v10 = vmax.f32 %v3260_v29, %v3274_v53  ;;  %v22025_v7 = vmax.f32 %v3261_v4, %v3275_v5  ;;  %18611 = vmatprep.subr.bf16.mxu0 %v20299_v57  ;;  %v22030_v39 = vadd.f32 %v26470_v48, %v21800_v42  ;;  %v22040_v25 = vadd.f32 %v26471_v1, %v21804_v62  ;;  %v20304_v4 = vld [vmem:[#allocation10 + $0x28] sm:$0xff]   ;;  %v20309_v1 = vld [vmem:[#allocation10 + $0xf0] sm:$0xff]  }
 0x330   : > { %v3894_v27 = vcombine.low %v21757_v46, %v3315_v21  ;;  %v3895_v8 = vcombine.high %v21757_v46, %v3315_v21  ;;  %v3328_v63 = vmax.f32 %v26468_v0, %v3272_v45  ;;  %v3329_v51 = vmax.f32 %v26469_v15, %v3273_v61  ;;  %v20302_v21 = vld [vmem:[#allocation10 + $0xa0] sm:$0xff]   ;;  %18669 = vmatprep.subr.bf16.mxu1 %v20301_v33  ;;  %v20307_v61 = vld [vmem:[#allocation10 + $0x70] sm:$0xff]  }
 0x331   : > { %26472 = vst [vmem:[#allocation35_spill] sm:$0xff] %v22040_v25  ;;  %v22044_v11 = vadd.f32 %v26473_v16, %v21808_v6  ;;  %v22069_v5 = vrot.slane %v21822_v52, %v21700_v19  ;;  %v22073_v33 = vrot.slane %v21822_v52, %v21703_v20  ;;  %v26479_v15 = vld [vmem:[#allocation41_spill] sm:$0xff]  ;;  %v26480_v19 = vld [vmem:[#allocation42_spill] sm:$0xff]  ;;  %v26517_v25 = vcombine.high %v21934_v2, %v21942_v47 }
 0x332   : > { %v22033_v46 = vrot.slane %v3894_v27, %v21874_v18  ;;  %v22036_v41 = vrot.slane %v3895_v8, %v21874_v18  ;;  %v4148_v13 = vcombine.low %v21759_v26, %v3328_v63  ;;  %v4156_v31 = vcombine.low %v21761_v54, %v3329_v51  ;;  %18612 = vmatpush3.bf16.msra.mxu0 %v20300_v50  ;;  %v26474_v54 = vld [vmem:[#allocation40_spill] sm:$0xff]  ;;  %v26477_v27 = vld [vmem:[#allocation58_spill] sm:$0xff]  ;;  %v26478_v50 = vld [vmem:[#allocation59_spill] sm:$0xff] }
 0x333   : > { %v22059_v37 = vadd.f32 %v26474_v54, %v21812_v23  ;;  %18613 = vmatprep.subr.bf16.mxu0 %v20303_v56  ;;  %v22077_v8 = vrot.slane %v21822_v52, %v26477_v27  ;;  %v22081_v0 = vrot.slane %v21822_v52, %v26478_v50  ;;  %18670 = vmatpush3.bf16.msra.mxu1 %v20302_v21  ;;  %v20306_v63 = vld [vmem:[#allocation10 + $0xa8] sm:$0xff]   ;;  %v20308_v54 = vld [vmem:[#allocation10 + $0x30] sm:$0xff]   ;;  %v20311_v20 = vld [vmem:[#allocation10 + $0x78] sm:$0xff]  }
 0x334   : > { %v22062_v45 = vrot.slane %v4148_v13, %v21874_v18  ;;  %v22065_v53 = vrot.slane %v4156_v31, %v21874_v18  ;;  %v22085_v51 = vadd.f32 %v26479_v15, %v21800_v42  ;;  %v22089_v56 = vadd.f32 %v26480_v19, %v21804_v62  ;;  %18671 = vmatprep.subr.bf16.mxu1 %v20305_v38  ;;  %v26482_v13 = vld [vmem:[#allocation43_spill] sm:$0xff]  ;;  %v26483_v50 = vld [vmem:[#allocation44_spill] sm:$0xff]  ;;  %v26485_v38 = vld [vmem:[#allocation46_spill] sm:$0xff] }
 0x335   : > { %26475 = vst [vmem:[#allocation36_spill] sm:$0xff] %v22059_v37  ;;  %v22100_v31 = vadd.f32 %v26482_v13, %v21808_v6  ;;  %v22105_v15 = vadd.f32 %v26483_v50, %v21812_v23  ;;  %v22109_v19 = vadd.f32 %v26485_v38, %v21800_v42  ;;  %v26486_v21 = vld [vmem:[#allocation47_spill] sm:$0xff]  ;;  %v26488_v13 = vld [vmem:[#allocation48_spill] sm:$0xff]  ;;  %v26489_v27 = vld [vmem:[#allocation49_spill] sm:$0xff] }
 0x336   : > { %26476 = vst [vmem:[#allocation37_spill] sm:$0xff] %v22065_v53  ;;  %26481 = vst [vmem:[#allocation38_spill] sm:$0xff] %v22089_v56  ;;  %18614 = vmatpush3.bf16.msra.mxu0 %v20304_v4  ;;  %v22113_v48 = vadd.f32 %v26486_v21, %v21804_v62  ;;  %v22117_v4 = vadd.f32 %v26488_v13, %v21808_v6  ;;  %v22121_v29 = vadd.f32 %v26489_v27, %v21812_v23  ;;  %v26491_v50 = vld [vmem:[#allocation50_spill] sm:$0xff]  ;;  %v26492_v38 = vld [vmem:[#allocation51_spill] sm:$0xff] }
 0x337   : > { %26484 = vst [vmem:[#allocation39_spill] sm:$0xff] %v22105_v15  ;;  %18615 = vmatprep.subr.bf16.mxu0 %v20307_v61  ;;  %v22125_v57 = vadd.f32 %v26491_v50, %v21800_v42  ;;  %v22129_v36 = vadd.f32 %v26492_v38, %v21804_v62  ;;  %18672 = vmatpush3.bf16.msra.mxu1 %v20306_v63  ;;  %v20310_v21 = vld [vmem:[#allocation10 + $0xb0] sm:$0xff]   ;;  %v26494_v13 = vld [vmem:[#allocation54_spill] sm:$0xff]  ;;  %v20313_v42 = vld [vmem:[#allocation10 + $0xf8] sm:$0xff]   ;;  %v26530_v53 = vmax.f32 %v22044_v11, 0.0 }
 0x338   : > { %26487 = vst [vmem:[#allocation40_spill] sm:$0xff] %v22113_v48  ;;  %26490 = vst [vmem:[#allocation58_spill] sm:$0xff] %v22121_v29  ;;  %v22135_v26 = vadd.f32 %v26494_v13, %v21808_v6  ;;  %v26495_v27 = vld [vmem:[#allocation55_spill] sm:$0xff]  ;;  %18673 = vmatprep.subr.bf16.mxu1 %v20309_v1  ;;  %v26497_v62 = vld [vmem:[#allocation68_spill] sm:$0xff]  ;;  %v26512_v50 = vcombine.low %v21934_v2, %v21942_v47 }
 0x339   : > { %26493 = vst [vmem:[#allocation59_spill] sm:$0xff] %v22129_v36  ;;  %v22139_v32 = vadd.f32 %v26495_v27, %v21812_v23  ;;  %v26498_v38 = vld [vmem:[#allocation60_spill] sm:$0xff]  ;;  %v26500_v16 = vld [vmem:[#allocation69_spill] sm:$0xff]  ;;  %v26503_v43 = vld [vmem:[#allocation62_spill] sm:$0xff] }
 0x33a   : > { %v22144_v63 = vadd.f32 %v26498_v38, %v26497_v62  ;;  %v26501_v61 = vld [vmem:[#allocation61_spill] sm:$0xff]  ;;  %v22152_v6 = vadd.f32 %v26503_v43, %v26497_v62  ;;  %18616 = vmatpush3.bf16.msra.mxu0 %v20308_v54  ;;  %v26505_v38 = vld [vmem:[#allocation63_spill] sm:$0xff]  ;;  %v26507_v48 = vld [vmem:[#allocation52_spill] sm:$0xff] }
 0x33b   : > { %26496 = vst [vmem:[#allocation41_spill] sm:$0xff] %v22139_v32  ;;  %v22148_v52 = vadd.f32 %v26501_v61, %v26500_v16  ;;  %v879_v13 = vld [vmem:[#allocation8 + $0x18] sm:$0xf]  ;;  %v22159_v56 = vadd.f32 %v26505_v38, %v26500_v16  ;;  %18617 = vmatprep.subr.bf16.mxu0 %v20311_v20  ;;  %v20315_v61 = vld [vmem:[#allocation10 + $0x140] sm:$0xff]   ;;  %18674 = vmatpush3.bf16.msra.mxu1 %v20310_v21 }
 0x33c   : > { %26499 = vst [vmem:[#allocation42_spill] sm:$0xff] %v22144_v63  ;;  %26504 = vst [vmem:[#allocation44_spill] sm:$0xff] %v22152_v6  ;;  %v20312_v23 = vld [vmem:[#allocation10 + $0x38] sm:$0xff]   ;;  %v22168_v15 = vrot.slane %v879_v13, %v26507_v48  ;;  %18675 = vmatprep.subr.bf16.mxu1 %v20313_v42  ;;  %v26511_v54 = vld [vmem:[#allocation74_spill] sm:$0xff]  ;;  %v26518_v21 = vcombine.low %v21937_v9, %v21945_v28 }
 0x33d   : > { %26502 = vst [vmem:[#allocation43_spill] sm:$0xff] %v22148_v52  ;;  %26506 = vst [vmem:[#allocation46_spill] sm:$0xff] %v22159_v56  ;;  %v20314_v1 = vld [vmem:[#allocation10 + $0xb8] sm:$0xff]   ;;  %v22181_v27 = vrot.slane %v26512_v50, %v26511_v54  ;;  %v26519_v50 = vcombine.high %v21937_v9, %v21945_v28  ;;  %v26522_v9 = vcombine.low %v21953_v49, %v21969_v3 }
 0x33e   : > { %26508 = vst [vmem:[#allocation47_spill] sm:$0xff] %v22168_v15  ;;  %v26509_v38 = vld [vmem:[#allocation53_spill] sm:$0xff]  ;;  %18618 = vmatpush3.bf16.msra.mxu0 %v20312_v23  ;;  %v26513_v48 = vld [vmem:[#allocation56_spill] sm:$0xff]  ;;  %v22193_v23 = vrot.slane %v26517_v25, %v26511_v54  ;;  %v22199_v43 = vrot.slane %v26518_v21, %v26511_v54  ;;  %v26521_v25 = vcombine.high %v21950_v59, %v21966_v30 }
 0x33f   : > { %v22171_v20 = vrot.slane %v879_v13, %v26509_v38  ;;  %v22184_v32 = vrot.slane %v879_v13, %v26513_v48  ;;  %v26515_v38 = vld [vmem:[#allocation57_spill] sm:$0xff]  ;;  %18719 = vmatprep.subr.bf16.mxu0 %v20315_v61  ;;  %v22205_v48 = vrot.slane %v26519_v50, %v26511_v54  ;;  %18676 = vmatpush3.bf16.msra.mxu1 %v20314_v1 }
 0x340   : > { %v22187_v42 = vrot.slane %v879_v13, %v26515_v38  ;;  %v26520_v13 = vcombine.low %v21950_v59, %v21966_v30  ;;  %v22217_v21 = vrot.slane %v26521_v25, %v26511_v54  ;;  %v22223_v28 = vrot.slane %v26522_v9, %v26511_v54  ;;  %v26536_v11 = vld [vmem:[#allocation73_spill] sm:$0xff] }
 0x341   : > { %26510 = vst [vmem:[#allocation48_spill] sm:$0xff] %v22171_v20  ;;  %26514 = vst [vmem:[#allocation49_spill] sm:$0xff] %v22184_v32  ;;  %v2994_v2 = vpop.f32.mrb[40].mxu0  ;;  %v3047_v47 = vpop.f32.mrb[40].mxu1  ;;  %v26523_v1 = vcombine.high %v21953_v49, %v21969_v3 }
 0x342   : > { %26516 = vst [vmem:[#allocation50_spill] sm:$0xff] %v22187_v42  ;;  %v22211_v61 = vrot.slane %v26520_v13, %v26511_v54  ;;  %v2995_v38 = vadd.f32 %v2994_v2, %v22069_v5  ;;  %v3048_v50 = vadd.f32 %v3047_v47, %v22073_v33  ;;  %v2996_v13 = vpop.f32.mrb[41].mxu0  ;;  %v3049_v37 = vpop.f32.mrb[41].mxu1 }
 0x343   : > { %v22231_v36 = vrot.slane %v26523_v1, %v26511_v54  ;;  %v2997_v59 = vadd.f32 %v2996_v13, %v22077_v8  ;;  %v3050_v30 = vadd.f32 %v3049_v37, %v22081_v0  ;;  %v2998_v25 = vpop.f32.mrb[42].mxu0  ;;  %v3051_v29 = vpop.f32.mrb[42].mxu1  ;;  %v26524_v1 = vld [vmem:[#allocation70_spill] sm:$0xff]  ;;  %v26526_v37 = vmax.f32 %v22030_v39, 0.0 }
 0x344   : > { %v3192_v9 = vmax.f32 %v2995_v38, 0.0  ;;  %v3194_v56 = vmax.f32 %v3048_v50, 0.0  ;;  %v2999_v2 = vadd.f32 %v2998_v25, %v22069_v5  ;;  %v3052_v47 = vadd.f32 %v3051_v29, %v22073_v33  ;;  %v3000_v6 = vpop.f32.mrb[43].mxu0  ;;  %v3053_v52 = vpop.f32.mrb[43].mxu1  ;;  %v26528_v25 = vld [vmem:[#allocation71_spill] sm:$0xff] }
 0x345   : > { %v3193_v63 = vmax.f32 %v2997_v59, 0.0  ;;  %v3195_v42 = vmax.f32 %v3050_v30, 0.0  ;;  %v3001_v49 = vadd.f32 %v3000_v6, %v22077_v8  ;;  %v3054_v3 = vadd.f32 %v3053_v52, %v22081_v0 }
 0x346   : > { %v26525_v13 = vmax.f32 %v26524_v1, 0.0  ;;  %v22243_v20 = vmax.f32 %v26526_v37, %v3194_v56  ;;  %v3220_v38 = vmax.f32 %v2999_v2, 0.0  ;;  %v3222_v50 = vmax.f32 %v3052_v47, 0.0 }
 0x347   : > { %v26529_v15 = vmax.f32 %v26528_v25, 0.0  ;;  %v22249_v59 = vmax.f32 %v26530_v53, %v3195_v42  ;;  %v3221_v30 = vmax.f32 %v3001_v49, 0.0  ;;  %v3223_v6 = vmax.f32 %v3054_v3, 0.0 }
 0x348   : > { %v3290_v32 = vmax.f32 %v26525_v13, %v3192_v9  ;;  %26527 = vst [vmem:[#allocation51_spill] sm:$0xff] %v22243_v20  ;;  %v26532_v9 = vld [vmem:[#allocation72_spill] sm:$0xff]  ;;  %v26534_v56 = vmax.f32 %v22085_v51, 0.0  ;;  %v26537_v53 = vmax.f32 %v26536_v11, 0.0  ;;  %v26538_v42 = vmax.f32 %v22100_v31, 0.0 }
 0x349   : > { %v3291_v29 = vmax.f32 %v26529_v15, %v3193_v63  ;;  %26531 = vst [vmem:[#allocation54_spill] sm:$0xff] %v22249_v59  ;;  %v26533_v13 = vmax.f32 %v26532_v9, 0.0  ;;  %v3004_v3 = vpop.f32.mrb[44].mxu0 }
 0x34a   : > { %v3370_v52 = vcombine.low %v21915_v55, %v3290_v32  ;;  %v3371_v1 = vcombine.high %v21915_v55, %v3290_v32  ;;  %v22257_v2 = vmax.f32 %v26534_v56, %v3222_v50  ;;  %v3305_v63 = vmax.f32 %v26537_v53, %v3221_v30  ;;  %v3057_v55 = vpop.f32.mrb[44].mxu1  ;;  %v22271_v50 = vpop.f32.mrb[45].mxu0 }
 0x34b   : > { %v3304_v39 = vmax.f32 %v26533_v13, %v3220_v38  ;;  %v3386_v47 = vcombine.low %v21919_v22, %v3291_v29  ;;  %v3387_v15 = vcombine.high %v21919_v22, %v3291_v29  ;;  %v22265_v49 = vmax.f32 %v26538_v42, %v3223_v6  ;;  %v22273_v22 = vpop.f32.mrb[45].mxu1  ;;  %v3008_v6 = vpop.f32.mrb[46].mxu0 }
 0x34c   : > { %26535 = vst [vmem:[#allocation55_spill] sm:$0xff] %v22257_v2  ;;  %v3378_v32 = vrot.slane %v3370_v52, %v21874_v18  ;;  %v3385_v37 = vrot.slane %v3371_v1, %v21874_v18  ;;  %v3656_v29 = vcombine.low %v21931_v44, %v3305_v63  ;;  %v3657_v30 = vcombine.high %v21931_v44, %v3305_v63  ;;  %v3061_v52 = vpop.f32.mrb[46].mxu1 }
 0x34d   : > { %26539 = vst [vmem:[#allocation68_spill] sm:$0xff] %v22265_v49  ;;  %v3640_v51 = vcombine.low %v21925_v12, %v3304_v39  ;;  %v3641_v38 = vcombine.high %v21925_v12, %v3304_v39  ;;  %v3394_v25 = vrot.slane %v3386_v47, %v21874_v18  ;;  %v3401_v31 = vrot.slane %v3387_v15, %v21874_v18  ;;  %v3010_v39 = vpop.f32.mrb[47].mxu0  ;;  %v3063_v56 = vpop.f32.mrb[47].mxu1 }
 0x34e   : > { %v3005_v12 = vadd.f32 %v3004_v3, %v22069_v5  ;;  %v3058_v13 = vadd.f32 %v3057_v55, %v22073_v33  ;;  %v3664_v42 = vrot.slane %v3656_v29, %v21874_v18  ;;  %v3671_v44 = vrot.slane %v3657_v30, %v21874_v18 }
 0x34f   : > { %v3648_v1 = vrot.slane %v3640_v51, %v21874_v18  ;;  %v3655_v9 = vrot.slane %v3641_v38, %v21874_v18  ;;  %v3434_v11 = vcombine.low %v3378_v32, %v3394_v25  ;;  %v3435_v47 = vcombine.high %v3378_v32, %v3394_v25 }
 0x350   : > { %v3450_v53 = vcombine.low %v3385_v37, %v3401_v31  ;;  %v3451_v15 = vcombine.high %v3385_v37, %v3401_v31  ;;  %v3248_v63 = vmax.f32 %v3005_v12, 0.0  ;;  %v3250_v49 = vmax.f32 %v3058_v13, 0.0 }
 0x351   : > { %v3442_v51 = vrot.slane %v3434_v11, %v26511_v54  ;;  %v3449_v38 = vrot.slane %v3435_v47, %v26511_v54  ;;  %v3704_v2 = vcombine.low %v3648_v1, %v3664_v42  ;;  %v3705_v59 = vcombine.high %v3648_v1, %v3664_v42 }
 0x352   : > { %v3458_v3 = vrot.slane %v3450_v53, %v26511_v54  ;;  %v3465_v55 = vrot.slane %v3451_v15, %v26511_v54  ;;  %v3720_v20 = vcombine.low %v3655_v9, %v3671_v44  ;;  %v3721_v32 = vcombine.high %v3655_v9, %v3671_v44 }
 0x353   : > { %v3466_v37 = vcombine.low %v22181_v27, %v3442_v51  ;;  %v3467_v25 = vcombine.high %v22181_v27, %v3442_v51  ;;  %v3468_v31 = vcombine.low %v22193_v23, %v3449_v38  ;;  %v3469_v29 = vcombine.high %v22193_v23, %v3449_v38 }
 0x354   : > { %v3470_v30 = vcombine.low %v22199_v43, %v3458_v3  ;;  %v3471_v12 = vcombine.high %v22199_v43, %v3458_v3  ;;  %v3472_v13 = vcombine.low %v22205_v48, %v3465_v55  ;;  %v3473_v11 = vcombine.high %v22205_v48, %v3465_v55 }
 0x355   : > { %4284 = vst [vmem:[#allocation2] sm:$0xff] %v3466_v37  ;;  %4286 = vst [vmem:[#allocation2 + $0x10] sm:$0xff] %v3467_v25  ;;  %v22297_v1 = vmax.f32 %v3468_v31, %v3469_v29  ;;  %v3712_v9 = vrot.slane %v3704_v2, %v26511_v54  ;;  %v3719_v27 = vrot.slane %v3705_v59, %v26511_v54  ;;  %v26540_v15 = vmax.f32 %v21897_v14, 0.0  ;;  %v26543_v29 = vld [vmem:[#allocation65_spill] sm:$0xff] }
 0x356   : > { %v3728_v47 = vrot.slane %v3720_v20, %v26511_v54  ;;  %v22302_v53 = vmax.f32 %v3470_v30, %v3471_v12  ;;  %v22304_v23 = vmax.f32 %v3472_v13, %v3473_v11  ;;  %v3735_v43 = vrot.slane %v3721_v32, %v26511_v54  ;;  %v26544_v11 = vld [vmem:[#allocation66_spill] sm:$0xff] }
 0x357   : > { %v3318_v42 = vmax.f32 %v26540_v15, %v3248_v63  ;;  %v3736_v48 = vcombine.low %v22211_v61, %v3712_v9  ;;  %v3737_v44 = vcombine.high %v22211_v61, %v3712_v9  ;;  %v3738_v51 = vcombine.low %v22217_v21, %v3719_v27 }
 0x358   : > { %v3739_v2 = vcombine.high %v22217_v21, %v3719_v27  ;;  %v3740_v59 = vcombine.low %v22223_v28, %v3728_v47  ;;  %v3741_v20 = vcombine.high %v22223_v28, %v3728_v47  ;;  %v3742_v38 = vcombine.low %v22231_v36, %v3735_v43 }
 0x359   : > { %v3743_v3 = vcombine.high %v22231_v36, %v3735_v43  ;;  %v22317_v55 = vmax.f32 %v3736_v48, %v3737_v44  ;;  %v3910_v63 = vcombine.low %v21987_v40, %v3318_v42  ;;  %v3911_v61 = vcombine.high %v21987_v40, %v3318_v42  ;;  %v26542_v36 = vld [vmem:[#allocation64_spill] sm:$0xff] }
 0x35a   : > { %v22319_v14 = vmax.f32 %v3738_v51, %v3739_v2  ;;  %v22323_v32 = vmax.f32 %v3740_v59, %v3741_v20  ;;  %v26541_v21 = vmax.f32 %v22109_v19, 0.0  ;;  %v3007_v28 = vadd.f32 %v22271_v50, %v22077_v8 }
 0x35b   : > { %v22325_v37 = vmax.f32 %v3742_v38, %v3743_v3  ;;  %v22335_v31 = vadd.f32 %v26542_v36, %v26497_v62  ;;  %v22339_v30 = vadd.f32 %v26543_v29, %v26500_v16  ;;  %v3060_v40 = vadd.f32 %v22273_v22, %v22081_v0 }
 0x35c   : > { %v22329_v25 = vmax.f32 %v26541_v21, %v3250_v49  ;;  %v3009_v12 = vadd.f32 %v3008_v6, %v22069_v5  ;;  %v3249_v13 = vmax.f32 %v3007_v28, 0.0  ;;  %v3062_v19 = vadd.f32 %v3061_v52, %v22073_v33 }
 0x35d   : > { %v3011_v49 = vadd.f32 %v3010_v39, %v22077_v8  ;;  %v3064_v50 = vadd.f32 %v3063_v56, %v22081_v0  ;;  %v22349_v9 = vadd.f32 %v26544_v11, %v26497_v62  ;;  %v3251_v27 = vmax.f32 %v3060_v40, 0.0 }
 0x35e   : > { %v3276_v47 = vmax.f32 %v3009_v12, 0.0  ;;  %v21087_v43 = vmov 1966171168   ;;  %v26545_v22 = vmax.f32 %v21907_v58, 0.0  ;;  %v3278_v5 = vmax.f32 %v3062_v19, 0.0 }
 0x35f   : > { %v22351_v15 = vunpack.c.l.s4 %v21087_v43  ;;  %v3277_v6 = vmax.f32 %v3011_v49, 0.0  ;;  %v3279_v48 = vmax.f32 %v3064_v50, 0.0  ;;  %v3918_v33 = vrot.slane %v3910_v63, %v21874_v18  ;;  %v26551_v63 = vld [vmem:[#allocation67_spill] sm:$0xff] }
 0x360   : > { %v3319_v42 = vmax.f32 %v26545_v22, %v3249_v13  ;;  %v3925_v8 = vrot.slane %v3911_v61, %v21874_v18  ;;  %v26546_v0 = vmax.f32 %v22117_v4, 0.0  ;;  %v26547_v62 = vmax.f32 %v21995_v17, 0.0 }
 0x361   : > { %v26548_v58 = vmax.f32 %v22125_v57, 0.0  ;;  %v26549_v2 = vmax.f32 %v21999_v60, 0.0  ;;  %v26550_v17 = vmax.f32 %v22135_v26, 0.0  ;;  %v4950_v36 = vunpack.c.0.s8 %v22351_v15 }
 0x362   : > { %v22359_v52 = vmax.f32 %v26546_v0, %v3251_v27  ;;  %v3332_v39 = vmax.f32 %v26547_v62, %v3276_v47  ;;  %v3926_v56 = vcombine.low %v22009_v24, %v3319_v42  ;;  %v3927_v44 = vcombine.high %v22009_v24, %v3319_v42 }
 0x363   : > { %v22367_v51 = vmax.f32 %v26548_v58, %v3278_v5  ;;  %v3333_v59 = vmax.f32 %v26549_v2, %v3277_v6  ;;  %v22376_v3 = vmax.f32 %v26550_v17, %v3279_v48  ;;  %v22380_v24 = vadd.f32 %v26551_v63, %v26500_v16 }
 0x364   : > { %v4164_v38 = vcombine.low %v22021_v10, %v3332_v39  ;;  %v3934_v57 = vrot.slane %v3926_v56, %v21874_v18  ;;  %v3941_v61 = vrot.slane %v3927_v44, %v21874_v18  ;;  %v26552_v10 = vcombine.low %v22012_v34, %v22033_v46 }
 0x365   : > { %v4172_v60 = vcombine.low %v22025_v7, %v3333_v59  ;;  %v26553_v13 = vcombine.high %v22012_v34, %v22033_v46  ;;  %v26554_v19 = vcombine.low %v22015_v35, %v22036_v41  ;;  %v26555_v50 = vcombine.high %v22015_v35, %v22036_v41  ;;  %v26556_v46 = vld [vmem:[#allocation37_spill] sm:$0xff] }
 0x366   : > { %v3950_v28 = vrot.slane %v26552_v10, %v26511_v54  ;;  %v4171_v26 = vrot.slane %v4164_v38, %v21874_v18  ;;  %v3974_v29 = vcombine.low %v3918_v33, %v3934_v57  ;;  %v3975_v16 = vcombine.high %v3918_v33, %v3934_v57  ;;  %v22430_v10 = vld [vmem:[#allocation2 + $0x10] sm:$0xff] }
 0x367   : > { %v3990_v40 = vcombine.low %v3925_v8, %v3941_v61  ;;  %v3991_v12 = vcombine.high %v3925_v8, %v3941_v61  ;;  %v3957_v7 = vrot.slane %v26553_v13, %v26511_v54  ;;  %v3966_v49 = vrot.slane %v26554_v19, %v26511_v54 }
 0x368   : > { %v3973_v11 = vrot.slane %v26555_v50, %v26511_v54  ;;  %v4179_v27 = vrot.slane %v4172_v60, %v21874_v18  ;;  %v3982_v47 = vrot.slane %v3974_v29, %v26511_v54  ;;  %v3989_v43 = vrot.slane %v3975_v16, %v26511_v54  ;;  %v22428_v60 = vld [vmem:[#allocation2] sm:$0xff] }
 0x369   : > { %v3998_v15 = vrot.slane %v3990_v40, %v26511_v54  ;;  %v4005_v34 = vrot.slane %v3991_v12, %v26511_v54  ;;  %v26557_v22 = vcombine.low %v22062_v45, %v26556_v46  ;;  %v26558_v35 = vcombine.high %v22062_v45, %v26556_v46  ;;  %v3100_v57 = vpop.f32.mrb[48].mxu0  ;;  %v3153_v61 = vpop.f32.mrb[48].mxu1 }
 0x36a   : > { %v4196_v5 = vcombine.low %v4171_v26, %v4179_v27  ;;  %v4197_v6 = vcombine.high %v4171_v26, %v4179_v27  ;;  %v4006_v48 = vcombine.low %v3950_v28, %v3982_v47  ;;  %v4007_v33 = vcombine.high %v3950_v28, %v3982_v47  ;;  %v20323_v28 = vld [vmem:[#allocation10 + $0x1c0] sm:$0xff]   ;;  %v3102_v12 = vpop.f32.mrb[49].mxu0  ;;  %v3155_v13 = vpop.f32.mrb[49].mxu1 }
 0x36b   : > { %v4188_v42 = vrot.slane %v26557_v22, %v26511_v54  ;;  %v4195_v41 = vrot.slane %v26558_v35, %v26511_v54  ;;  %v4008_v8 = vcombine.low %v3957_v7, %v3989_v43  ;;  %v4009_v0 = vcombine.high %v3957_v7, %v3989_v43  ;;  %v26559_v7 = vld [vmem:[#allocation47_spill] sm:$0xff]  ;;  %v26562_v47 = vld [vmem:[#allocation50_spill] sm:$0xff]  ;;  %18777 = vmatprep.subr.bf16.mxu1 %v20323_v28 }
 0x36c   : > { %v4010_v62 = vcombine.low %v3966_v49, %v3998_v15  ;;  %v4011_v39 = vcombine.high %v3966_v49, %v3998_v15  ;;  %v4012_v56 = vcombine.low %v3973_v11, %v4005_v34  ;;  %v4013_v44 = vcombine.high %v3973_v11, %v4005_v34  ;;  %v26560_v49 = vld [vmem:[#allocation48_spill] sm:$0xff]  ;;  %v26561_v11 = vld [vmem:[#allocation49_spill] sm:$0xff]  ;;  %v3104_v15 = vpop.f32.mrb[50].mxu0  ;;  %v3157_v34 = vpop.f32.mrb[50].mxu1 }
 0x36d   : > { %v22417_v58 = vmax.f32 %v4006_v48, %v4007_v33  ;;  %v22419_v2 = vmax.f32 %v4008_v8, %v4009_v0  ;;  %v4204_v59 = vrot.slane %v4196_v5, %v26511_v54  ;;  %v4211_v38 = vrot.slane %v4197_v6, %v26511_v54  ;;  %v3159_v35 = vpop.f32.mrb[51].mxu1  ;;  %v26563_v5 = vld [vmem:[#allocation45_spill] sm:$0xff] }
 0x36e   : > { %v22424_v17 = vmax.f32 %v4010_v62, %v4011_v39  ;;  %v22426_v63 = vmax.f32 %v4012_v56, %v4013_v44  ;;  %v3101_v19 = vadd.f32 %v3100_v57, %v26559_v7  ;;  %v3154_v50 = vadd.f32 %v3153_v61, %v26560_v49  ;;  %v26567_v61 = vld [vmem:[#allocation42_spill] sm:$0xff] }
 0x36f   : > { %v4212_v26 = vcombine.low %v4188_v42, %v4204_v59  ;;  %v4213_v29 = vcombine.high %v4188_v42, %v4204_v59  ;;  %v4214_v16 = vcombine.low %v4195_v41, %v4211_v38  ;;  %v4215_v40 = vcombine.high %v4195_v41, %v4211_v38  ;;  %v3106_v42 = vpop.f32.mrb[51].mxu0  ;;  %v26565_v59 = vld [vmem:[#allocation35_spill] sm:$0xff] }
 0x370   : > { %v3103_v27 = vadd.f32 %v3102_v12, %v26561_v11  ;;  %v3156_v43 = vadd.f32 %v3155_v13, %v26562_v47  ;;  %v3105_v46 = vadd.f32 %v3104_v15, %v26559_v7  ;;  %v3158_v22 = vadd.f32 %v3157_v34, %v26560_v49 }
 0x371   : > { %4332 = vst [vmem:[#allocation2 + $0x180] sm:$0xff] %v4212_v26  ;;  %4334 = vst [vmem:[#allocation2 + $0x190] sm:$0xff] %v4213_v29  ;;  %v22441_v6 = vsub.s32 %v4950_v36, %v26563_v5  ;;  %v3196_v48 = vmax.f32 %v3101_v19, 0.0  ;;  %v3198_v33 = vmax.f32 %v3154_v50, 0.0  ;;  %v22444_v56 = vadd.f32 %v3106_v42, %v26561_v11  ;;  %v26569_v36 = vld [vmem:[#allocation36_spill] sm:$0xff]  ;;  %v26573_v19 = vld [vmem:[#allocation38_spill] sm:$0xff] }
 0x372   : > { %4336 = vst [vmem:[#allocation2 + $0x1a0] sm:$0xff] %v4214_v16  ;;  %4338 = vst [vmem:[#allocation2 + $0x1b0] sm:$0xff] %v4215_v40  ;;  %v3197_v8 = vmax.f32 %v3103_v27, 0.0  ;;  %v3199_v0 = vmax.f32 %v3156_v43, 0.0  ;;  %v3224_v62 = vmax.f32 %v3105_v46, 0.0  ;;  %v3226_v39 = vmax.f32 %v3158_v22, 0.0 }
 0x373   : > { %26564 = vst [vmem:[#allocation60_spill] sm:$0xff] %v22441_v6  ;;  %v22447_v44 = vadd.f32 %v3159_v35, %v26562_v47  ;;  %v26566_v38 = vmax.f32 %v26565_v59, 0.0  ;;  %v26568_v28 = vmax.f32 %v26567_v61, 0.0  ;;  %v26570_v29 = vmax.f32 %v26569_v36, 0.0  ;;  %v26571_v40 = vld [vmem:[#allocation43_spill] sm:$0xff]  ;;  %v26575_v43 = vld [vmem:[#allocation44_spill] sm:$0xff] }
 0x374   : > { %v26572_v12 = vmax.f32 %v26571_v40, 0.0  ;;  %v26574_v50 = vmax.f32 %v26573_v19, 0.0  ;;  %v26576_v15 = vmax.f32 %v26575_v43, 0.0  ;;  %v3225_v46 = vmax.f32 %v22444_v56, 0.0  ;;  %v26577_v42 = vld [vmem:[#allocation51_spill] sm:$0xff]  ;;  %v3163_v59 = vpop.f32.mrb[52].mxu1 }
 0x375   : > { %v3294_v57 = vmax.f32 %v26566_v38, %v3196_v48  ;;  %v3296_v26 = vmax.f32 %v26568_v28, %v3198_v33  ;;  %v3295_v16 = vmax.f32 %v26570_v29, %v3197_v8  ;;  %v3227_v22 = vmax.f32 %v22447_v44, 0.0  ;;  %v26578_v38 = vld [vmem:[#allocation54_spill] sm:$0xff]  ;;  %v3165_v28 = vpop.f32.mrb[53].mxu1  ;;  %v26579_v40 = vld [vmem:[#allocation55_spill] sm:$0xff] }
 0x376   : > { %v3297_v13 = vmax.f32 %v26572_v12, %v3199_v0  ;;  %v3308_v27 = vmax.f32 %v26574_v50, %v3224_v62  ;;  %v3310_v34 = vmax.f32 %v26576_v15, %v3226_v39  ;;  %v26156_v48 = vmov 0.0   ;;  %v3110_v0 = vpop.f32.mrb[52].mxu0  ;;  %v22475_v19 = vpop.f32.mrb[54].mxu1 }
 0x377   : > { %v3474_v35 = vcombine.low %v26577_v42, %v3294_v57  ;;  %v3475_v5 = vcombine.high %v26577_v42, %v3294_v57  ;;  %v3506_v33 = vcombine.high %v3296_v26, %v26156_v48  ;;  %v3513_v8 = vrot.slane %v3296_v26, %v21874_v18  ;;  %v3112_v44 = vpop.f32.mrb[53].mxu0  ;;  %v22482_v42 = vpop.f32.mrb[55].mxu1 }
 0x378   : > { %v3490_v62 = vcombine.low %v26578_v38, %v3295_v16  ;;  %v3491_v61 = vcombine.high %v26578_v38, %v3295_v16  ;;  %v3521_v39 = vcombine.high %v3297_v13, %v26156_v48  ;;  %v3528_v56 = vrot.slane %v3297_v13, %v21874_v18  ;;  %v3114_v12 = vpop.f32.mrb[54].mxu0 }
 0x379   : > { %v3482_v36 = vrot.slane %v3474_v35, %v21874_v18  ;;  %v3489_v57 = vrot.slane %v3475_v5, %v21874_v18  ;;  %v3520_v29 = vrot.slane %v3506_v33, %v21874_v18  ;;  %v3744_v26 = vcombine.low %v26579_v40, %v3308_v27  ;;  %v22480_v15 = vpop.f32.mrb[55].mxu0 }
 0x37a   : > { %v3498_v50 = vrot.slane %v3490_v62, %v21874_v18  ;;  %v3505_v16 = vrot.slane %v3491_v61, %v21874_v18  ;;  %v3535_v43 = vrot.slane %v3521_v39, %v21874_v18  ;;  %v3568_v13 = vcombine.low %v3513_v8, %v3528_v56 }
 0x37b   : > { %v3569_v35 = vcombine.high %v3513_v8, %v3528_v56  ;;  %v3745_v5 = vcombine.high %v26579_v40, %v3308_v27  ;;  %v22486_v33 = vrot.slane %v3744_v26, %v21874_v18  ;;  %v3776_v38 = vcombine.high %v3310_v34, %v26156_v48 }
 0x37c   : > { %v3536_v41 = vcombine.low %v3482_v36, %v3498_v50  ;;  %v3537_v45 = vcombine.high %v3482_v36, %v3498_v50  ;;  %v3552_v62 = vcombine.low %v3489_v57, %v3505_v16  ;;  %v3553_v21 = vcombine.high %v3489_v57, %v3505_v16 }
 0x37d   : > { %v3576_v61 = vrot.slane %v3568_v13, %v26511_v54  ;;  %v3583_v39 = vrot.slane %v3569_v35, %v26511_v54  ;;  %v3584_v4 = vcombine.low %v3520_v29, %v3535_v43  ;;  %v3585_v20 = vcombine.high %v3520_v29, %v3535_v43 }
 0x37e   : > { %v3544_v6 = vrot.slane %v3536_v41, %v26511_v54  ;;  %v3551_v8 = vrot.slane %v3537_v45, %v26511_v54  ;;  %v3560_v27 = vrot.slane %v3552_v62, %v26511_v54  ;;  %v3567_v56 = vrot.slane %v3553_v21, %v26511_v54  ;;  %v26580_v21 = vld [vmem:[#allocation39_spill] sm:$0xff] }
 0x37f   : > { %v3592_v40 = vrot.slane %v3584_v4, %v26511_v54  ;;  %v3599_v36 = vrot.slane %v3585_v20, %v26511_v54  ;;  %v3759_v57 = vrot.slane %v3745_v5, %v21874_v18  ;;  %v3783_v26 = vrot.slane %v3310_v34, %v21874_v18  ;;  %v26582_v5 = vld [vmem:[#allocation46_spill] sm:$0xff] }
 0x380   : > { %v3600_v50 = vcombine.low %v3544_v6, %v3576_v61  ;;  %v3601_v16 = vcombine.high %v3544_v6, %v3576_v61  ;;  %v3602_v13 = vcombine.low %v3551_v8, %v3583_v39  ;;  %v3603_v29 = vcombine.high %v3551_v8, %v3583_v39 }
 0x381   : > { %v3604_v43 = vcombine.low %v3560_v27, %v3592_v40  ;;  %v3605_v41 = vcombine.high %v3560_v27, %v3592_v40  ;;  %v3606_v35 = vcombine.low %v3567_v56, %v3599_v36  ;;  %v3607_v45 = vcombine.high %v3567_v56, %v3599_v36 }
 0x382   : > { %4285 = vst [vmem:[#allocation2 + $0x8] sm:$0x3f] %v3600_v50  ;;  %4287 = vst [vmem:[#allocation2 + $0x18] sm:$0x3f] %v3601_v16  ;;  %v3790_v4 = vrot.slane %v3776_v38, %v21874_v18  ;;  %v26581_v20 = vmax.f32 %v26580_v21, 0.0  ;;  %v26583_v48 = vmax.f32 %v26582_v5, 0.0  ;;  %v3111_v6 = vadd.f32 %v3110_v0, %v26559_v7 }
 0x383   : > { %4289 = vst [vmem:[#allocation2 + $0x28] sm:$0x3f] %v3602_v13  ;;  %4291 = vst [vmem:[#allocation2 + $0x38] sm:$0x3f] %v3603_v29  ;;  %v3164_v61 = vadd.f32 %v3163_v59, %v26560_v49  ;;  %v3113_v39 = vadd.f32 %v3112_v44, %v26561_v11  ;;  %v22508_v8 = vadd.f32 %v3165_v28, %v26562_v47  ;;  %v26586_v13 = vld [vmem:[#allocation40_spill] sm:$0xff] }
 0x384   : > { %v3309_v62 = vmax.f32 %v26581_v20, %v3225_v46  ;;  %v3311_v34 = vmax.f32 %v26583_v48, %v3227_v22  ;;  %4293 = vst [vmem:[#allocation2 + $0x48] sm:$0x3f] %v3604_v43  ;;  %4295 = vst [vmem:[#allocation2 + $0x58] sm:$0x3f] %v3605_v41  ;;  %v22511_v38 = vadd.f32 %v3114_v12, %v26559_v7  ;;  %v26584_v46 = vld [vmem:[#allocation68_spill] sm:$0xff]  ;;  %v26585_v48 = vmov 0.0  }
 0x385   : > { %4297 = vst [vmem:[#allocation2 + $0x68] sm:$0x3f] %v3606_v35  ;;  %4299 = vst [vmem:[#allocation2 + $0x78] sm:$0x3f] %v3607_v45  ;;  %v3252_v40 = vmax.f32 %v3111_v6, 0.0  ;;  %v3254_v36 = vmax.f32 %v3164_v61, 0.0 }
 0x386   : > { %v3760_v27 = vcombine.low %v26584_v46, %v3309_v62  ;;  %v3761_v22 = vcombine.high %v26584_v46, %v3309_v62  ;;  %v3791_v0 = vcombine.high %v3311_v34, %v26585_v48  ;;  %v3798_v56 = vrot.slane %v3311_v34, %v21874_v18  ;;  %v26589_v45 = vld [vmem:[#allocation58_spill] sm:$0xff] }
 0x387   : > { %v3253_v50 = vmax.f32 %v3113_v39, 0.0  ;;  %v3255_v59 = vmax.f32 %v22508_v8, 0.0  ;;  %v26587_v29 = vmax.f32 %v26586_v13, 0.0  ;;  %v26588_v41 = vmax.f32 %v22335_v31, 0.0 }
 0x388   : > { %v3768_v44 = vrot.slane %v3760_v27, %v21874_v18  ;;  %v3775_v28 = vrot.slane %v3761_v22, %v21874_v18  ;;  %v3805_v7 = vrot.slane %v3791_v0, %v21874_v18  ;;  %v3838_v12 = vcombine.low %v3783_v26, %v3798_v56 }
 0x389   : > { %v3839_v16 = vcombine.high %v3783_v26, %v3798_v56  ;;  %v3322_v43 = vmax.f32 %v26587_v29, %v3252_v40  ;;  %v3324_v35 = vmax.f32 %v26588_v41, %v3254_v36  ;;  %v26590_v21 = vmax.f32 %v26589_v45, 0.0 }
 0x38a   : > { %v3806_v62 = vcombine.low %v22486_v33, %v3768_v44  ;;  %v3807_v5 = vcombine.high %v22486_v33, %v3768_v44  ;;  %v3822_v34 = vcombine.low %v3759_v57, %v3775_v28  ;;  %v3823_v6 = vcombine.high %v3759_v57, %v3775_v28  ;;  %v4343_v61 = vld [vmem:[#allocation2 + $0x28] sm:$0x3f]  ;;  %v4372_v39 = vld [vmem:[#allocation2 + $0x38] sm:$0x3f] }
 0x38b   : > { %v3323_v20 = vmax.f32 %v26590_v21, %v3253_v50  ;;  %v3846_v8 = vrot.slane %v3838_v12, %v26511_v54  ;;  %v3853_v26 = vrot.slane %v3839_v16, %v26511_v54  ;;  %v3854_v46 = vcombine.low %v3790_v4, %v3805_v7  ;;  %v4345_v22 = vld [vmem:[#allocation2 + $0x48] sm:$0x3f]  ;;  %v4374_v0 = vld [vmem:[#allocation2 + $0x58] sm:$0x3f] }
 0x38c   : > { %v3855_v27 = vcombine.high %v3790_v4, %v3805_v7  ;;  %v4347_v31 = vld [vmem:[#allocation2 + $0x68] sm:$0x3f]  ;;  %v4400_v56 = vmax.f32 %v4343_v61, %v4372_v39  ;;  %v3814_v40 = vrot.slane %v3806_v62, %v26511_v54  ;;  %v3821_v36 = vrot.slane %v3807_v5, %v26511_v54  ;;  %v4376_v50 = vld [vmem:[#allocation2 + $0x78] sm:$0x3f] }
 0x38d   : > { %v3830_v33 = vrot.slane %v3822_v34, %v26511_v54  ;;  %v4402_v57 = vmax.f32 %v4345_v22, %v4374_v0  ;;  %v3837_v44 = vrot.slane %v3823_v6, %v26511_v54  ;;  %v3862_v28 = vrot.slane %v3854_v46, %v26511_v54 }
 0x38e   : > { %v3869_v12 = vrot.slane %v3855_v27, %v26511_v54  ;;  %v4404_v16 = vmax.f32 %v4347_v31, %v4376_v50  ;;  %v22538_v4 = vpack.c.bf16 %v4400_v56, %v22297_v1  ;;  %v3870_v7 = vcombine.low %v3814_v40, %v3846_v8 }
 0x38f   : > { %v3871_v13 = vcombine.high %v3814_v40, %v3846_v8  ;;  %v22541_v29 = vpack.c.bf16 %v4402_v57, %v22302_v53  ;;  %v3872_v41 = vcombine.low %v3821_v36, %v3853_v26  ;;  %v3873_v45 = vcombine.high %v3821_v36, %v3853_v26 }
 0x390   : > { %v3874_v21 = vcombine.low %v3830_v33, %v3862_v28  ;;  %v22544_v62 = vpack.c.bf16 %v4404_v16, %v22304_v23  ;;  %v3875_v5 = vcombine.high %v3830_v33, %v3862_v28  ;;  %v3876_v34 = vcombine.low %v3837_v44, %v3869_v12  ;;  %4301 = vst [vmem:[#allocation2 + $0x88] sm:$0x3f] %v3870_v7 }
 0x391   : > { %v3877_v6 = vcombine.high %v3837_v44, %v3869_v12  ;;  %4303 = vst [vmem:[#allocation2 + $0x98] sm:$0x3f] %v3871_v13  ;;  %4305 = vst [vmem:[#allocation2 + $0xa8] sm:$0x3f] %v3872_v41  ;;  %v4014_v1 = vcombine.low %v22329_v25, %v3322_v43  ;;  %v4015_v61 = vcombine.high %v22329_v25, %v3322_v43  ;;  %v26591_v26 = vmax.f32 %v22339_v30, 0.0 }
 0x392   : > { %4307 = vst [vmem:[#allocation2 + $0xb8] sm:$0x3f] %v3873_v45  ;;  %4309 = vst [vmem:[#allocation2 + $0xc8] sm:$0x3f] %v3874_v21  ;;  %v4046_v53 = vcombine.high %v3324_v35, %v26585_v48  ;;  %v4053_v39 = vrot.slane %v3324_v35, %v21874_v18  ;;  %v4030_v23 = vcombine.low %v22359_v52, %v3323_v20  ;;  %v3280_v27 = vmax.f32 %v22511_v38, 0.0 }
 0x393   : > { %4311 = vst [vmem:[#allocation2 + $0xd8] sm:$0x3f] %v3875_v5  ;;  %4313 = vst [vmem:[#allocation2 + $0xe8] sm:$0x3f] %v3876_v34  ;;  %v4031_v8 = vcombine.high %v22359_v52, %v3323_v20  ;;  %v3325_v46 = vmax.f32 %v26591_v26, %v3255_v59  ;;  %v4022_v22 = vrot.slane %v4014_v1, %v21874_v18  ;;  %v26592_v59 = vld [vmem:[#allocation59_spill] sm:$0xff] }
 0x394   : > { %4315 = vst [vmem:[#allocation2 + $0xf8] sm:$0x3f] %v3877_v6  ;;  %v4029_v25 = vrot.slane %v4015_v61, %v21874_v18  ;;  %v4060_v43 = vrot.slane %v4046_v53, %v21874_v18  ;;  %v3168_v35 = vadd.f32 %v22475_v19, %v26560_v49  ;;  %v4038_v31 = vrot.slane %v4030_v23, %v21874_v18 }
 0x395   : > { %v4045_v0 = vrot.slane %v4031_v8, %v21874_v18  ;;  %v4061_v52 = vcombine.high %v3325_v46, %v26585_v48  ;;  %v4068_v30 = vrot.slane %v3325_v46, %v21874_v18  ;;  %v26593_v20 = vmax.f32 %v26592_v59, 0.0 }
 0x396   : > { %v3282_v56 = vmax.f32 %v3168_v35, 0.0  ;;  %v3117_v40 = vadd.f32 %v22480_v15, %v26561_v11  ;;  %v3170_v36 = vadd.f32 %v22482_v42, %v26562_v47  ;;  %v4076_v33 = vcombine.low %v4022_v22, %v4038_v31 }
 0x397   : > { %v3336_v38 = vmax.f32 %v26593_v20, %v3280_v27  ;;  %v4077_v49 = vcombine.high %v4022_v22, %v4038_v31  ;;  %v4092_v19 = vcombine.low %v4029_v25, %v4045_v0  ;;  %v4093_v50 = vcombine.high %v4029_v25, %v4045_v0  ;;  %v4349_v57 = vld [vmem:[#allocation2 + $0x88] sm:$0x3f] }
 0x398   : > { %v4378_v44 = vld [vmem:[#allocation2 + $0x98] sm:$0x3f]  ;;  %v4075_v28 = vrot.slane %v4061_v52, %v21874_v18  ;;  %v4108_v12 = vcombine.low %v4053_v39, %v4068_v30  ;;  %v4109_v16 = vcombine.high %v4053_v39, %v4068_v30  ;;  %v4351_v13 = vld [vmem:[#allocation2 + $0xa8] sm:$0x3f]  ;;  %v4084_v11 = vrot.slane %v4076_v33, %v26511_v54 }
 0x399   : > { %v4216_v7 = vcombine.low %v22367_v51, %v3336_v38  ;;  %v4353_v41 = vld [vmem:[#allocation2 + $0xc8] sm:$0x3f]  ;;  %v4380_v45 = vld [vmem:[#allocation2 + $0xb8] sm:$0x3f]  ;;  %v4406_v21 = vmax.f32 %v4349_v57, %v4378_v44  ;;  %v4091_v47 = vrot.slane %v4077_v49, %v26511_v54  ;;  %v4100_v15 = vrot.slane %v4092_v19, %v26511_v54  ;;  %v26595_v44 = vld [vmem:[#allocation41_spill] sm:$0xff] }
 0x39a   : > { %v4355_v42 = vld [vmem:[#allocation2 + $0xe8] sm:$0x3f]  ;;  %v4382_v5 = vld [vmem:[#allocation2 + $0xd8] sm:$0x3f]  ;;  %v4408_v6 = vmax.f32 %v4351_v13, %v4380_v45  ;;  %v4107_v1 = vrot.slane %v4093_v50, %v26511_v54  ;;  %v4116_v61 = vrot.slane %v4108_v12, %v26511_v54  ;;  %v4123_v51 = vrot.slane %v4109_v16, %v26511_v54 }
 0x39b   : > { %v4384_v34 = vld [vmem:[#allocation2 + $0xf8] sm:$0x3f]  ;;  %v4410_v53 = vmax.f32 %v4353_v41, %v4382_v5  ;;  %v22579_v23 = vpack.c.bf16 %v4406_v21, %v22317_v55  ;;  %v4124_v8 = vcombine.low %v4060_v43, %v4075_v28  ;;  %v4125_v46 = vcombine.high %v4060_v43, %v4075_v28  ;;  %v4341_v52 = vld [vmem:[#allocation2 + $0x8] sm:$0x3f] }
 0x39c   : > { %v4412_v39 = vmax.f32 %v4355_v42, %v4384_v34  ;;  %v22582_v26 = vpack.c.bf16 %v4408_v6, %v22319_v14  ;;  %v4140_v27 = vcombine.low %v4084_v11, %v4116_v61  ;;  %v4141_v22 = vcombine.high %v4084_v11, %v4116_v61  ;;  %v4370_v30 = vld [vmem:[#allocation2 + $0x18] sm:$0x3f] }
 0x39d   : > { %v22585_v25 = vpack.c.bf16 %v4410_v53, %v22323_v32  ;;  %v4132_v31 = vrot.slane %v4124_v8, %v26511_v54  ;;  %v4142_v0 = vcombine.low %v4091_v47, %v4123_v51  ;;  %v4139_v55 = vrot.slane %v4125_v46, %v26511_v54 }
 0x39e   : > { %v22588_v35 = vpack.c.bf16 %v4412_v39, %v22325_v37  ;;  %v4143_v59 = vcombine.high %v4091_v47, %v4123_v51  ;;  %4317 = vst [vmem:[#allocation2 + $0x108] sm:$0x3f] %v4140_v27  ;;  %4319 = vst [vmem:[#allocation2 + $0x118] sm:$0x3f] %v4141_v22  ;;  %v4223_v14 = vrot.slane %v4216_v7, %v21874_v18  ;;  %v26594_v43 = vmax.f32 %v22349_v9, 0.0 }
 0x39f   : > { %v4144_v32 = vcombine.low %v4100_v15, %v4132_v31  ;;  %v4145_v38 = vcombine.high %v4100_v15, %v4132_v31  ;;  %4321 = vst [vmem:[#allocation2 + $0x128] sm:$0x3f] %v4142_v0  ;;  %v3281_v37 = vmax.f32 %v3117_v40, 0.0  ;;  %v3283_v33 = vmax.f32 %v3170_v36, 0.0 }
 0x3a0   : > { %v4232_v20 = vmax.f32 %v26594_v43, %v3282_v56  ;;  %v4146_v49 = vcombine.low %v4107_v1, %v4139_v55  ;;  %v4147_v19 = vcombine.high %v4107_v1, %v4139_v55  ;;  %4323 = vst [vmem:[#allocation2 + $0x138] sm:$0x3f] %v4143_v59  ;;  %v4398_v57 = vmax.f32 %v4341_v52, %v4370_v30 }
 0x3a1   : > { %4325 = vst [vmem:[#allocation2 + $0x148] sm:$0x3f] %v4144_v32  ;;  %4327 = vst [vmem:[#allocation2 + $0x158] sm:$0x3f] %v4145_v38  ;;  %v26596_v28 = vmax.f32 %v26595_v44, 0.0  ;;  %v26597_v16 = vmax.f32 %v22380_v24, 0.0  ;;  %v26598_v40 = vmax.f32 %v22428_v60, %v22430_v10 }
 0x3a2   : > { %v4239_v50 = vrot.slane %v4232_v20, %v21874_v18  ;;  %v4447_v56 = vshrl.u32 %v22538_v4, 16  ;;  %v4449_v7 = vshll.u32 %v22538_v4, 16  ;;  %4329 = vst [vmem:[#allocation2 + $0x168] sm:$0x3f] %v4146_v49  ;;  %4331 = vst [vmem:[#allocation2 + $0x178] sm:$0x3f] %v4147_v19 }
 0x3a3   : > { %v3337_v12 = vmax.f32 %v26596_v28, %v3281_v37  ;;  %v4240_v9 = vmax.f32 %v26597_v16, %v3283_v33  ;;  %v22605_v36 = vpack.c.bf16 %v4398_v57, %v26598_v40  ;;  %v4454_v13 = vshrl.u32 %v22541_v29, 16 }
 0x3a4   : > { %v4456_v41 = vshll.u32 %v22541_v29, 16  ;;  %v22610_v45 = vrot.slane %v22538_v4, 1  ;;  %v4451_v11 = vrot.slane %v4449_v7, 1  ;;  %v22615_v47 = vrot.slane %v22541_v29, 1 }
 0x3a5   : > { %v4224_v24 = vcombine.low %v22376_v3, %v3337_v12  ;;  %v4247_v21 = vrot.slane %v4240_v9, %v21874_v18  ;;  %v4440_v15 = vshrl.u32 %v22605_v36, 16  ;;  %v4442_v60 = vshll.u32 %v22605_v36, 16  ;;  %v4357_v5 = vld [vmem:[#allocation2 + $0x108] sm:$0x3f]  ;;  %v4386_v34 = vld [vmem:[#allocation2 + $0x118] sm:$0x3f] }
 0x3a6   : > { %v4458_v10 = vrot.slane %v4456_v41, 1  ;;  %v4519_v42 = vrot.slane %v22605_v36, 1  ;;  %v22623_v61 = vor.u32 %v4451_v11, %v4447_v56  ;;  %v4359_v51 = vld [vmem:[#allocation2 + $0x128] sm:$0x3f]  ;;  %v4414_v53 = vmax.f32 %v4357_v5, %v4386_v34 }
 0x3a7   : > { %v4231_v6 = vrot.slane %v4224_v24, %v21874_v18  ;;  %v4264_v3 = vcombine.low %v4239_v50, %v4247_v21  ;;  %v4265_v1 = vcombine.high %v4239_v50, %v4247_v21  ;;  %v4444_v39 = vrot.slane %v4442_v60, 1  ;;  %v4388_v27 = vld [vmem:[#allocation2 + $0x138] sm:$0x3f] }
 0x3a8   : > { %v22627_v8 = vor.u32 %v4458_v10, %v4454_v13  ;;  %v4529_v46 = vrot.slane %v4440_v15, 1  ;;  %v4361_v18 = vld [vmem:[#allocation2 + $0x148] sm:$0x3f]  ;;  %v4390_v30 = vld [vmem:[#allocation2 + $0x158] sm:$0x3f]  ;;  %v4416_v55 = vmax.f32 %v4359_v51, %v4388_v27  ;;  %v22632_v59 = vpack.c.bf16 %v4414_v53, %v22417_v58 }
 0x3a9   : > { %v4248_v22 = vcombine.low %v4223_v14, %v4231_v6  ;;  %v4249_v31 = vcombine.high %v4223_v14, %v4231_v6  ;;  %v4272_v0 = vrot.slane %v4264_v3, %v26511_v54  ;;  %v4279_v52 = vrot.slane %v4265_v1, %v26511_v54  ;;  %v4363_v32 = vld [vmem:[#allocation2 + $0x168] sm:$0x3f]  ;;  %v4392_v38 = vld [vmem:[#allocation2 + $0x178] sm:$0x3f] }
 0x3aa   : > { %v4445_v43 = vor.u32 %v4444_v39, %v4440_v15  ;;  %v4530_v20 = vrot.slane %v4442_v60, 2  ;;  %v4418_v37 = vmax.f32 %v4361_v18, %v4390_v30  ;;  %v4532_v14 = vrot.slane %v4447_v56, 1  ;;  %v26602_v60 = vld [vmem:[#allocation60_spill] sm:$0xff] }
 0x3ab   : > { %v4256_v33 = vrot.slane %v4248_v22, %v26511_v54  ;;  %v4263_v49 = vrot.slane %v4249_v31, %v26511_v54  ;;  %v4420_v19 = vmax.f32 %v4363_v32, %v4392_v38  ;;  %v22637_v50 = vpack.c.bf16 %v4416_v55, %v22419_v2 }
 0x3ac   : > { %v22640_v57 = vshll.u32 %v22632_v59, 16  ;;  %v4531_v44 = vor.u32 %v4530_v20, %v4529_v46  ;;  %v22643_v58 = vpack.c.bf16 %v4418_v37, %v22424_v17  ;;  %v4533_v54 = vrot.slane %v4449_v7, 2 }
 0x3ad   : > { %v4280_v28 = vcombine.low %v4256_v33, %v4272_v0  ;;  %v4281_v12 = vcombine.high %v4256_v33, %v4272_v0  ;;  %v4282_v16 = vcombine.low %v4263_v49, %v4279_v52  ;;  %v22646_v9 = vpack.c.bf16 %v4420_v19, %v22426_v63 }
 0x3ae   : > { %26599 = vst [vmem:[#allocation69_spill] sm:$0xff] %v22640_v57  ;;  %v4283_v40 = vcombine.high %v4263_v49, %v4279_v52  ;;  %v22649_v56 = vrot.slane %v22538_v4, 2  ;;  %v4940_v2 = vcombine.low %v22605_v36, %v4445_v43  ;;  %v4941_v24 = vcombine.high %v22605_v36, %v4445_v43 }
 0x3af   : > { %26600 = vst [vmem:[#allocation61_spill] sm:$0xff] %v22646_v9  ;;  %4333 = vst [vmem:[#allocation2 + $0x188] sm:$0x3f] %v4280_v28  ;;  %v4942_v17 = vcombine.low %v4519_v42, %v4531_v44  ;;  %v4943_v21 = vcombine.high %v4519_v42, %v4531_v44  ;;  %v22653_v11 = vor.u32 %v4533_v54, %v4532_v14  ;;  %v4461_v27 = vshrl.u32 %v22544_v62, 16  ;;  %v20344_v9 = vld [vmem:[#allocation10 + $0x1b0] sm:$0xff]  }
 0x3b0   : > { %4335 = vst [vmem:[#allocation2 + $0x198] sm:$0x3f] %v4281_v12  ;;  %4337 = vst [vmem:[#allocation2 + $0x1a8] sm:$0x3f] %v4282_v16  ;;  %v5330_v63 = vcombine.low %v22538_v4, %v22623_v61  ;;  %v5334_v7 = vcombine.low %v22649_v56, %v22541_v29  ;;  %v5336_v15 = vcombine.low %v22627_v8, %v22615_v47  ;;  %v4463_v0 = vshll.u32 %v22544_v62, 16 }
 0x3b1   : > { %4339 = vst [vmem:[#allocation2 + $0x1b8] sm:$0x3f] %v4283_v40  ;;  %26601 = vst [vmem:[#allocation62_spill] sm:$0xff] %v22653_v11  ;;  %v4954_v10 = vrot.slane %v4940_v2, %v26602_v60  ;;  %v4961_v5 = vrot.slane %v4941_v24, %v26602_v60  ;;  %v4968_v34 = vrot.slane %v4942_v17, %v26602_v60  ;;  %v22674_v52 = vrot.slane %v22544_v62, 1 }
 0x3b2   : > { %v4975_v42 = vrot.slane %v4943_v21, %v26602_v60  ;;  %v5332_v6 = vcombine.low %v22610_v45, %v22653_v11  ;;  %v5344_v3 = vrot.slane %v5330_v63, %v26602_v60  ;;  %v5372_v1 = vrot.slane %v5334_v7, %v26602_v60 }
 0x3b3   : > { %v5386_v51 = vrot.slane %v5336_v15, %v26602_v60  ;;  %v5004_v53 = vcombine.low %v4954_v10, %v4968_v34  ;;  %v5005_v39 = vcombine.high %v4954_v10, %v4968_v34  ;;  %26603 = vst [vmem:[#allocation63_spill] sm:$0xff] %v22674_v52  ;;  %v4535_v43 = vrot.slane %v4454_v13, 1 }
 0x3b4   : > { %v5006_v46 = vcombine.low %v4961_v5, %v4975_v42  ;;  %v5358_v22 = vrot.slane %v5332_v6, %v26602_v60  ;;  %v4465_v37 = vrot.slane %v4463_v0, 1  ;;  %v4536_v14 = vrot.slane %v4456_v41, 2 }
 0x3b5   : > { %v5397_v31 = vcombine.low %v5372_v1, %v5386_v51  ;;  %v5016_v18 = vrot.slane %v5004_v53, %v26602_v60  ;;  %v5030_v55 = vrot.slane %v5005_v39, %v26602_v60  ;;  %v4538_v19 = vrot.slane %v4461_v27, 1 }
 0x3b6   : > { %v5023_v30 = vrot.slane %v5006_v46, %v26602_v60  ;;  %v5394_v20 = vcombine.low %v5344_v3, %v5358_v22  ;;  %v5395_v32 = vcombine.high %v5344_v3, %v5358_v22  ;;  %v22690_v12 = vor.u32 %v4465_v37, %v4461_v27 }
 0x3b7   : > { %v22682_v38 = vrot.slane %v5397_v31, %v26602_v60  ;;  %v18023_v33 = vcombine.low %v5016_v18, %v5030_v55  ;;  %v18025_v49 = vcombine.high %v5016_v18, %v5030_v55  ;;  %v4539_v13 = vrot.slane %v4463_v0, 2 }
 0x3b8   : > { %v5406_v44 = vrot.slane %v5394_v20, %v26602_v60  ;;  %v22688_v28 = vrot.slane %v5395_v32, %v26602_v60  ;;  %26604 = vst [vmem:[#allocation52_spill] sm:$0xff] %v22690_v12  ;;  %v22694_v54 = vor.u32 %v4536_v14, %v4535_v43  ;;  %v5059_v2 = vcombine.low %v22541_v29, %v22627_v8 }
 0x3b9   : > { %v8877_v16 = vrot.slane %v18023_v33, %v26602_v60  ;;  %v8891_v40 = vrot.slane %v18025_v49, %v26602_v60  ;;  %v22699_v17 = vor.u32 %v4539_v13, %v4538_v19  ;;  %v5060_v21 = vcombine.high %v22541_v29, %v22627_v8 }
 0x3ba   : > { %26605 = vst [vmem:[#allocation53_spill] sm:$0xff] %v22694_v54  ;;  %v5443_v41 = vcombine.high %v5406_v44, %v22682_v38  ;;  %v18027_v24 = vcombine.low %v5023_v30, %v5406_v44  ;;  %v5061_v15 = vcombine.low %v22615_v47, %v22694_v54  ;;  %v5062_v10 = vcombine.high %v22615_v47, %v22694_v54 }
 0x3bb   : > { %26606 = vst [vmem:[#allocation74_spill] sm:$0xff] %v22699_v17  ;;  %v8927_v63 = vcombine.low %v8877_v16, %v8891_v40  ;;  %v8928_v7 = vcombine.high %v8877_v16, %v8891_v40  ;;  %v22710_v42 = vrot.slane %v5059_v2, %v26602_v60  ;;  %v22713_v6 = vrot.slane %v5060_v21, %v26602_v60 }
 0x3bc   : > { %v18029_v5 = vcombine.low %v22688_v28, %v5443_v41  ;;  %v8905_v34 = vrot.slane %v18027_v24, %v26602_v60  ;;  %v22718_v39 = vrot.slane %v5061_v15, %v26602_v60  ;;  %v22721_v46 = vrot.slane %v5062_v10, %v26602_v60  ;;  %v20316_v10 = vld [vmem:[#allocation10 + $0x100] sm:$0xff]  }
 0x3bd   : > { %26607 = vst [vmem:[#allocation56_spill] sm:$0xff] %v22710_v42  ;;  %26608 = vst [vmem:[#allocation57_spill] sm:$0xff] %v22713_v6  ;;  %v8955_v3 = vrot.slane %v8928_v7, %v26602_v60  ;;  %v8941_v53 = vrot.slane %v8927_v63, %v26602_v60  ;;  %v5331_v22 = vcombine.high %v22538_v4, %v22623_v61 }
 0x3be   : > { %26609 = vst [vmem:[#allocation70_spill] sm:$0xff] %v22718_v39  ;;  %26610 = vst [vmem:[#allocation71_spill] sm:$0xff] %v22721_v46  ;;  %v8919_v27 = vrot.slane %v18029_v5, %v26602_v60  ;;  %v5333_v31 = vcombine.high %v22610_v45, %v22653_v11  ;;  %v5398_v0 = vcombine.high %v5372_v1, %v5386_v51  ;;  %v20324_v5 = vld [vmem:[#allocation10 + $0x180] sm:$0xff]   ;;  %v20343_v11 = vld [vmem:[#allocation10 + $0x138] sm:$0xff]  }
 0x3bf   : > { %v5449_v18 = vcombine.low %v22544_v62, %v22690_v12  ;;  %v5451_v30 = vcombine.low %v22674_v52, %v22699_v17  ;;  %v5736_v55 = vcombine.low %v22710_v42, %v22718_v39  ;;  %v5737_v43 = vcombine.high %v22710_v42, %v22718_v39 }
 0x3c0   : > { %v8931_v20 = vcombine.low %v8905_v34, %v8919_v27  ;;  %v8932_v32 = vcombine.high %v8905_v34, %v8919_v27  ;;  %v5351_v37 = vrot.slane %v5331_v22, %v26602_v60  ;;  %v5365_v33 = vrot.slane %v5333_v31, %v26602_v60 }
 0x3c1   : > { %v22739_v1 = vrot.slane %v5398_v0, %v26602_v60  ;;  %v22742_v51 = vrot.slane %v5449_v18, %v26602_v60  ;;  %v22745_v49 = vrot.slane %v5451_v30, %v26602_v60  ;;  %v5738_v14 = vcombine.low %v22713_v6, %v22721_v46  ;;  %v20317_v0 = vld [vmem:[#allocation10 + $0x148] sm:$0xff]  }
 0x3c2   : > { %v8983_v19 = vrot.slane %v8932_v32, %v26602_v60  ;;  %v8969_v44 = vrot.slane %v8931_v20, %v26602_v60  ;;  %v5396_v13 = vcombine.low %v5351_v37, %v5365_v33  ;;  %v5748_v16 = vrot.slane %v5736_v55, %v26602_v60  ;;  %v20327_v55 = vld [vmem:[#allocation10 + $0x1c8] sm:$0xff]  }
 0x3c3   : > { %26611 = vst [vmem:[#allocation72_spill] sm:$0xff] %v22742_v51  ;;  %26612 = vst [vmem:[#allocation73_spill] sm:$0xff] %v22745_v49  ;;  %v5446_v40 = vcombine.high %v22688_v28, %v22739_v1  ;;  %v5755_v2 = vrot.slane %v5738_v14, %v26602_v60  ;;  %v5762_v41 = vrot.slane %v5737_v43, %v26602_v60  ;;  %v22765_v18 = vshrl.u32 %v22579_v23, 16  ;;  %v20318_v14 = vld [vmem:[#allocation10 + $0x108] sm:$0xff]  }
 0x3c4   : > { %v6078_v24 = vcombine.low %v22742_v51, %v22745_v49  ;;  %v8995_v21 = vcombine.low %v8955_v3, %v8983_v19  ;;  %v8996_v63 = vcombine.high %v8955_v3, %v8983_v19  ;;  %v8991_v7 = vcombine.low %v8941_v53, %v8969_v44 }
 0x3c5   : > { %v8992_v15 = vcombine.high %v8941_v53, %v8969_v44  ;;  %v22759_v34 = vrot.slane %v5396_v13, %v26602_v60  ;;  %v18050_v22 = vcombine.low %v5748_v16, %v5762_v41  ;;  %v18052_v31 = vcombine.high %v5748_v16, %v5762_v41  ;;  %26613 = vst [vmem:[#allocation64_spill] sm:$0xff] %v22765_v18 }
 0x3c6   : > { %v22762_v27 = vrot.slane %v6078_v24, %v26602_v60  ;;  %13177 = vmatprep.mubr.bf16.mxu0 %v8995_v21  ;;  %13265 = vmatprep.mubr.bf16.mxu1 %v8996_v63  ;;  %v22768_v3 = vshll.u32 %v22579_v23, 16  ;;  %v22771_v53 = vrot.slane %v22579_v23, 1  ;;  %v22774_v30 = vrot.slane %v22544_v62, 2  ;;  %v20319_v24 = vld [vmem:[#allocation10 + $0x150] sm:$0xff]  }
 0x3c7   : > { %13178 = vmatmul.mubr.bf16.vlgmr.msra.gmra.mrb[56].mxu0 %v8991_v7  ;;  %13266 = vmatmul.mubr.bf16.vlgmr.msra.gmra.mrb[56].mxu1 %v8992_v15  ;;  %v18048_v43 = vcombine.low %v5446_v40, %v22759_v34  ;;  %v9348_v32 = vrot.slane %v18050_v22, %v26602_v60  ;;  %v22780_v37 = vshrl.u32 %v22582_v26, 16  ;;  %v9362_v33 = vrot.slane %v18052_v31, %v26602_v60 }
 0x3c8   : > { %26614 = vst [vmem:[#allocation65_spill] sm:$0xff] %v22768_v3  ;;  %v18054_v20 = vcombine.low %v5755_v2, %v22762_v27  ;;  %18720 = vmatpush3.bf16.msra.mxu0 %v20316_v10  ;;  %v4472_v19 = vrot.slane %v22768_v3, 1  ;;  %v4541_v44 = vrot.slane %v22765_v18, 1  ;;  %v4542_v13 = vrot.slane %v22768_v3, 2  ;;  %18778 = vmatpush3.bf16.msra.mxu1 %v20324_v5  ;;  %v20328_v10 = vld [vmem:[#allocation10 + $0x188] sm:$0xff]  }
 0x3c9   : > { %26615 = vst [vmem:[#allocation66_spill] sm:$0xff] %v22780_v37  ;;  %v9334_v16 = vrot.slane %v18048_v43, %v26602_v60  ;;  %18721 = vmatprep.subr.bf16.mxu0 %v20317_v0  ;;  %v5450_v2 = vcombine.high %v22544_v62, %v22690_v12  ;;  %v5452_v41 = vcombine.high %v22674_v52, %v22699_v17  ;;  %v20329_v43 = vld [vmem:[#allocation10 + $0x1d0] sm:$0xff]  }
 0x3ca   : > { %v9376_v40 = vrot.slane %v18054_v20, %v26602_v60  ;;  %v22793_v21 = vor.u32 %v4472_v19, %v22765_v18  ;;  %v22795_v63 = vor.u32 %v4542_v13, %v4541_v44  ;;  %v5453_v7 = vcombine.low %v22774_v30, %v22579_v23  ;;  %18779 = vmatprep.subr.bf16.mxu1 %v20327_v55  ;;  %v20320_v55 = vld [vmem:[#allocation10 + $0x110] sm:$0xff]   ;;  %v20321_v18 = vld [vmem:[#allocation10 + $0x158] sm:$0xff]  }
 0x3cb   : > { %v6079_v15 = vcombine.high %v22742_v51, %v22745_v49  ;;  %v9385_v5 = vcombine.high %v9334_v16, %v9348_v32  ;;  %v9384_v31 = vcombine.low %v9334_v16, %v9348_v32  ;;  %v22802_v20 = vrot.slane %v5450_v2, %v26602_v60 }
 0x3cc   : > { %26616 = vst [vmem:[#allocation67_spill] sm:$0xff] %v22793_v21  ;;  %26617 = vst [vmem:[#allocation37_spill] sm:$0xff] %v22795_v63  ;;  %v9389_v22 = vcombine.high %v9362_v33, %v9376_v40  ;;  %v9388_v0 = vcombine.low %v9362_v33, %v9376_v40  ;;  %18722 = vmatpush3.bf16.msra.mxu0 %v20318_v14  ;;  %v22805_v19 = vrot.slane %v5452_v41, %v26602_v60 }
 0x3cd   : > { %26618 = vst [vmem:[#allocation47_spill] sm:$0xff] %v22802_v20  ;;  %v22808_v44 = vrot.slane %v5453_v7, %v26602_v60  ;;  %v5791_v13 = vcombine.low %v22579_v23, %v22793_v21  ;;  %v9412_v3 = vrot.slane %v9385_v5, %v26602_v60  ;;  %v9398_v33 = vrot.slane %v9384_v31, %v26602_v60 }
 0x3ce   : > { %26619 = vst [vmem:[#allocation48_spill] sm:$0xff] %v22805_v19  ;;  %v9440_v32 = vrot.slane %v9389_v22, %v26602_v60  ;;  %v9426_v14 = vrot.slane %v9388_v0, %v26602_v60  ;;  %18723 = vmatprep.subr.bf16.mxu0 %v20319_v24  ;;  %v5793_v16 = vcombine.low %v22771_v53, %v22795_v63  ;;  %v20330_v24 = vld [vmem:[#allocation10 + $0x190] sm:$0xff]  }
 0x3cf   : > { %26620 = vst [vmem:[#allocation49_spill] sm:$0xff] %v22808_v44  ;;  %v22819_v40 = vrot.slane %v5791_v13, %v26602_v60  ;;  %v6062_v2 = vcombine.low %v22793_v21, %v22771_v53  ;;  %v6080_v41 = vcombine.low %v22802_v20, %v22805_v19  ;;  %18780 = vmatpush3.bf16.msra.mxu1 %v20328_v10  ;;  %v20322_v10 = vld [vmem:[#allocation10 + $0x118] sm:$0xff]  }
 0x3d0   : > { %v9452_v7 = vcombine.low %v9412_v3, %v9440_v32  ;;  %v9453_v5 = vcombine.high %v9412_v3, %v9440_v32  ;;  %v9448_v22 = vcombine.low %v9398_v33, %v9426_v14  ;;  %v9449_v31 = vcombine.high %v9398_v33, %v9426_v14  ;;  %18781 = vmatprep.subr.bf16.mxu1 %v20329_v43  ;;  %v20333_v19 = vld [vmem:[#allocation10 + $0x1d8] sm:$0xff]   ;;  %v20325_v14 = vld [vmem:[#allocation10 + $0x160] sm:$0xff]  }
 0x3d1   : > { %26621 = vst [vmem:[#allocation50_spill] sm:$0xff] %v22819_v40  ;;  %v22826_v0 = vrot.slane %v5793_v16, %v26602_v60  ;;  %v6070_v13 = vrot.slane %v6062_v2, %v26602_v60  ;;  %v22830_v48 = vrot.slane %v6080_v41, %v26602_v60  ;;  %v22833_v46 = vrot.slane %v6079_v15, %v26602_v60 }
 0x3d2   : > { %18724 = vmatpush3.bf16.msra.mxu0 %v20320_v55  ;;  %13185 = vmatprep.mubr.bf16.mxu0 %v9452_v7  ;;  %v22836_v3 = vshll.u32 %v22582_v26, 16  ;;  %v22839_v43 = vshrl.u32 %v22585_v25, 16  ;;  %v22842_v32 = vshll.u32 %v22585_v25, 16  ;;  %v22845_v33 = vrot.slane %v22582_v26, 1 }
 0x3d3   : > { %26622 = vst [vmem:[#allocation45_spill] sm:$0xff] %v22826_v0  ;;  %13273 = vmatprep.mubr.bf16.mxu1 %v9453_v5  ;;  %13186 = vmatmul.mubr.bf16.gmra.mrb[60].mxu0 %v9448_v22  ;;  %v6081_v15 = vcombine.low %v22808_v44, %v6070_v13  ;;  %v6082_v55 = vcombine.high %v22808_v44, %v6070_v13  ;;  %v22852_v2 = vrot.slane %v22585_v25, 1  ;;  %v4544_v22 = vrot.slane %v22780_v37, 1 }
 0x3d4   : > { %26623 = vst [vmem:[#allocation35_spill] sm:$0xff] %v22836_v3  ;;  %26624 = vst [vmem:[#allocation42_spill] sm:$0xff] %v22839_v43  ;;  %13274 = vmatmul.mubr.bf16.gmra.mrb[60].mxu1 %v9449_v31  ;;  %v6420_v16 = vcombine.low %v22819_v40, %v22826_v0  ;;  %v6421_v41 = vcombine.high %v22819_v40, %v22826_v0  ;;  %v4479_v7 = vrot.slane %v22836_v3, 1  ;;  %v4486_v5 = vrot.slane %v22842_v32, 1  ;;  %v20334_v31 = vld [vmem:[#allocation10 + $0x198] sm:$0xff]   ;;  %v20326_v0 = vld [vmem:[#allocation10 + $0x120] sm:$0xff]  }
 0x3d5   : > { %26625 = vst [vmem:[#allocation36_spill] sm:$0xff] %v22842_v32  ;;  %26626 = vst [vmem:[#allocation43_spill] sm:$0xff] %v22845_v33  ;;  %18725 = vmatprep.subr.bf16.mxu0 %v20321_v18  ;;  %18782 = vmatpush3.bf16.msra.mxu1 %v20330_v24  ;;  %v22860_v13 = vrot.slane %v6081_v15, %v26602_v60  ;;  %v22863_v39 = vrot.slane %v6082_v55, %v26602_v60  ;;  %v4545_v20 = vrot.slane %v22836_v3, 2  ;;  %v20331_v15 = vld [vmem:[#allocation10 + $0x168] sm:$0xff]  }
 0x3d6   : > { %26627 = vst [vmem:[#allocation38_spill] sm:$0xff] %v22852_v2  ;;  %v6432_v17 = vrot.slane %v6420_v16, %v26602_v60  ;;  %18726 = vmatpush3.bf16.msra.mxu0 %v20322_v10  ;;  %18783 = vmatprep.subr.bf16.mxu1 %v20333_v19  ;;  %v6446_v40 = vrot.slane %v6421_v41, %v26602_v60  ;;  %v4547_v24 = vrot.slane %v22839_v43, 1  ;;  %v4548_v19 = vrot.slane %v22842_v32, 2  ;;  %v20335_v41 = vld [vmem:[#allocation10 + $0x1e0] sm:$0xff]  }
 0x3d7   : > { %v22869_v51 = vor.u32 %v4479_v7, %v22780_v37  ;;  %v22872_v18 = vor.u32 %v4486_v5, %v22839_v43  ;;  %18727 = vmatprep.subr.bf16.mxu0 %v20325_v14  ;;  %v6127_v55 = vcombine.high %v22762_v27, %v22860_v13  ;;  %v6130_v10 = vcombine.high %v22833_v46, %v22863_v39  ;;  %v20337_v43 = vld [vmem:[#allocation10 + $0x1a0] sm:$0xff]  }
 0x3d8   : > { %v22879_v16 = vor.u32 %v4545_v20, %v4544_v22  ;;  %v18077_v7 = vcombine.low %v6432_v17, %v6446_v40  ;;  %v18079_v3 = vcombine.high %v6432_v17, %v6446_v40  ;;  %v22883_v5 = vrot.slane %v22582_v26, 2  ;;  %v20332_v22 = vld [vmem:[#allocation10 + $0x128] sm:$0xff]  }
 0x3d9   : > { %26628 = vst [vmem:[#allocation44_spill] sm:$0xff] %v22869_v51  ;;  %26629 = vst [vmem:[#allocation51_spill] sm:$0xff] %v22872_v18  ;;  %v5792_v14 = vcombine.high %v22579_v23, %v22793_v21  ;;  %18784 = vmatpush3.bf16.msra.mxu1 %v20334_v31  ;;  %v18073_v27 = vcombine.low %v22833_v46, %v6127_v55  ;;  %v18075_v49 = vcombine.low %v6130_v10, %v22830_v48  ;;  %v20336_v55 = vld [vmem:[#allocation10 + $0x170] sm:$0xff]  }
 0x3da   : > { %26630 = vst [vmem:[#allocation54_spill] sm:$0xff] %v22879_v16  ;;  %v22889_v44 = vor.u32 %v4548_v19, %v4547_v24  ;;  %v5794_v20 = vcombine.high %v22771_v53, %v22795_v63  ;;  %18728 = vmatpush3.bf16.msra.mxu0 %v20326_v0  ;;  %v9819_v17 = vrot.slane %v18077_v7, %v26602_v60 }
 0x3db   : > { %v9833_v40 = vrot.slane %v18079_v3, %v26602_v60  ;;  %v22896_v32 = vrot.slane %v5792_v14, %v26602_v60  ;;  %v6133_v31 = vcombine.low %v22582_v26, %v22869_v51  ;;  %18729 = vmatprep.subr.bf16.mxu0 %v20331_v15  ;;  %v9791_v24 = vrot.slane %v18073_v27, %v26602_v60  ;;  %v20339_v3 = vld [vmem:[#allocation10 + $0x1e8] sm:$0xff]  }
 0x3dc   : > { %26631 = vst [vmem:[#allocation55_spill] sm:$0xff] %v22889_v44  ;;  %v9805_v10 = vrot.slane %v18075_v49, %v26602_v60  ;;  %v22903_v19 = vrot.slane %v5794_v20, %v26602_v60  ;;  %v6134_v0 = vcombine.high %v22582_v26, %v22869_v51  ;;  %18785 = vmatprep.subr.bf16.mxu1 %v20335_v41  ;;  %v20340_v27 = vld [vmem:[#allocation10 + $0x1a8] sm:$0xff]   ;;  %v20338_v41 = vld [vmem:[#allocation10 + $0x130] sm:$0xff]  }
 0x3dd   : > { %26632 = vst [vmem:[#allocation39_spill] sm:$0xff] %v22896_v32  ;;  %v9846_v7 = vcombine.high %v9819_v17, %v9833_v40  ;;  %v9845_v14 = vcombine.low %v9819_v17, %v9833_v40  ;;  %v6135_v63 = vcombine.low %v22845_v33, %v22879_v16  ;;  %v6136_v15 = vcombine.high %v22845_v33, %v22879_v16 }
 0x3de   : > { %26633 = vst [vmem:[#allocation46_spill] sm:$0xff] %v22903_v19  ;;  %18786 = vmatpush3.bf16.msra.mxu1 %v20337_v43  ;;  %v9842_v6 = vcombine.high %v9791_v24, %v9805_v10  ;;  %v9841_v49 = vcombine.low %v9791_v24, %v9805_v10  ;;  %v6137_v20 = vcombine.low %v22883_v5, %v22585_v25  ;;  %v20341_v24 = vld [vmem:[#allocation10 + $0x178] sm:$0xff]  }
 0x3df   : > { %v22914_v37 = vrot.slane %v6133_v31, %v26602_v60  ;;  %18730 = vmatpush3.bf16.msra.mxu0 %v20332_v22  ;;  %v9897_v17 = vrot.slane %v9846_v7, %v26602_v60  ;;  %v9883_v40 = vrot.slane %v9845_v14, %v26602_v60  ;;  %v22919_v42 = vrot.slane %v6134_v0, %v26602_v60 }
 0x3e0   : > { %v22922_v43 = vrot.slane %v6135_v63, %v26602_v60  ;;  %18731 = vmatprep.subr.bf16.mxu0 %v20336_v55  ;;  %v9869_v10 = vrot.slane %v9842_v6, %v26602_v60  ;;  %v9855_v16 = vrot.slane %v9841_v49, %v26602_v60  ;;  %v22927_v31 = vrot.slane %v6136_v15, %v26602_v60 }
 0x3e1   : > { %26634 = vst [vmem:[#allocation68_spill] sm:$0xff] %v22914_v37  ;;  %26635 = vst [vmem:[#allocation40_spill] sm:$0xff] %v22919_v42  ;;  %v22930_v22 = vrot.slane %v6137_v20, %v26602_v60  ;;  %18787 = vmatprep.subr.bf16.mxu1 %v20339_v3  ;;  %v6422_v0 = vcombine.low %v22896_v32, %v22903_v19  ;;  %v6475_v63 = vcombine.low %v22585_v25, %v22872_v18  ;;  %v20342_v20 = vld [vmem:[#allocation10 + $0x1f0] sm:$0xff]  }
 0x3e2   : > { %26636 = vst [vmem:[#allocation58_spill] sm:$0xff] %v22922_v43  ;;  %26637 = vst [vmem:[#allocation59_spill] sm:$0xff] %v22927_v31  ;;  %v6477_v55 = vcombine.low %v22852_v2, %v22889_v44  ;;  %v6746_v6 = vcombine.low %v22872_v18, %v22852_v2  ;;  %18788 = vmatpush3.bf16.msra.mxu1 %v20340_v27  ;;  %v9909_v7 = vcombine.low %v9869_v10, %v9897_v17 }
 0x3e3   : > { %26638 = vst [vmem:[#allocation41_spill] sm:$0xff] %v22930_v22  ;;  %v9910_v14 = vcombine.high %v9869_v10, %v9897_v17  ;;  %v9905_v15 = vcombine.low %v9855_v16, %v9883_v40  ;;  %v9906_v49 = vcombine.high %v9855_v16, %v9883_v40  ;;  %18732 = vmatpush3.bf16.msra.mxu0 %v20338_v41  ;;  %v22955_v17 = vshrl.u32 %v22588_v35, 16  ;;  %v20345_v40 = vld [vmem:[#allocation10 + $0x1f8] sm:$0xff]   ;;  %v20347_v10 = vld [vmem:[#allocation10 + $0x240] sm:$0xff]  }
 0x3e4   : > { %v6439_v3 = vrot.slane %v6422_v0, %v26602_v60  ;;  %v22942_v19 = vrot.slane %v6475_v63, %v26602_v60  ;;  %v22945_v32 = vrot.slane %v6477_v55, %v26602_v60  ;;  %v6754_v54 = vrot.slane %v6746_v6, %v26602_v60  ;;  %18733 = vmatprep.subr.bf16.mxu0 %v20341_v24 }
 0x3e5   : > { %13193 = vmatprep.mubr.bf16.mxu0 %v9909_v7  ;;  %13281 = vmatprep.mubr.bf16.mxu1 %v9910_v14  ;;  %v6762_v16 = vcombine.low %v22914_v37, %v22922_v43  ;;  %v6763_v27 = vcombine.high %v22914_v37, %v22922_v43  ;;  %v6764_v41 = vcombine.low %v22919_v42, %v22927_v31  ;;  %v22962_v55 = vshll.u32 %v22588_v35, 16 }
 0x3e6   : > { %26639 = vst [vmem:[#allocation60_spill] sm:$0xff] %v22942_v19  ;;  %26640 = vst [vmem:[#allocation75_spill] sm:$0xff] %v22945_v32  ;;  %13194 = vmatmul.mubr.bf16.gmra.mrb[64].mxu0 %v9905_v15  ;;  %13282 = vmatmul.mubr.bf16.gmra.mrb[64].mxu1 %v9906_v49  ;;  %v6765_v24 = vcombine.low %v22930_v22, %v6754_v54  ;;  %v6766_v0 = vcombine.high %v22930_v22, %v6754_v54  ;;  %v23014_v22 = vrot.slane %v22588_v35, 2 }
 0x3e7   : > { %26641 = vst [vmem:[#allocation76_spill] sm:$0xff] %v22955_v17  ;;  %v7104_v63 = vcombine.low %v22942_v19, %v22945_v32  ;;  %26642 = vst [vmem:[#allocation77_spill] sm:$0xff] %v22962_v55  ;;  %v6774_v6 = vrot.slane %v6762_v16, %v26602_v60  ;;  %v22966_v7 = vrot.slane %v6764_v41, %v26602_v60  ;;  %18789 = vmatprep.subr.bf16.mxu1 %v20342_v20  ;;  %v20346_v41 = vld [vmem:[#allocation10 + $0x1b8] sm:$0xff]  }
 0x3e8   : > { %v22969_v14 = vrot.slane %v6763_v27, %v26602_v60  ;;  %v7105_v15 = vcombine.high %v22942_v19, %v22945_v32  ;;  %v22974_v54 = vrot.slane %v6765_v24, %v26602_v60  ;;  %v22977_v49 = vrot.slane %v6766_v0, %v26602_v60  ;;  %18734 = vmatpush3.bf16.msra.mxu0 %v20343_v11  ;;  %v20355_v0 = vld [vmem:[#allocation10 + $0x2c0] sm:$0xff]  }
 0x3e9   : > { %26643 = vst [vmem:[#allocation78_spill] sm:$0xff] %v22966_v7  ;;  %v22980_v31 = vrot.slane %v7104_v63, %v26602_v60  ;;  %v4493_v16 = vrot.slane %v22962_v55, 1  ;;  %18790 = vmatpush3.bf16.msra.mxu1 %v20344_v9  ;;  %v18098_v42 = vcombine.low %v6439_v3, %v6774_v6  ;;  %v22987_v20 = vshrl.u32 %v22632_v59, 16  ;;  %18835 = vmatprep.subr.bf16.mxu0 %v20347_v10 }
 0x3ea   : > { %26644 = vst [vmem:[#allocation79_spill] sm:$0xff] %v22969_v14  ;;  %26645 = vst [vmem:[#allocation80_spill] sm:$0xff] %v22974_v54  ;;  %v22984_v27 = vrot.slane %v7105_v15, %v26602_v60  ;;  %v4500_v24 = vrot.slane %v22640_v57, 1  ;;  %18791 = vmatprep.subr.bf16.mxu1 %v20345_v40  ;;  %v6811_v63 = vcombine.high %v6774_v6, %v22974_v54  ;;  %v22997_v11 = vrot.slane %v22588_v35, 1 }
 0x3eb   : > { %26646 = vst [vmem:[#allocation81_spill] sm:$0xff] %v22987_v20  ;;  %v6814_v32 = vcombine.high %v22969_v14, %v22977_v49  ;;  %v22994_v9 = vor.u32 %v4493_v16, %v22955_v17  ;;  %v10248_v15 = vrot.slane %v18098_v42, %v26602_v60  ;;  %v23006_v10 = vrot.slane %v22632_v59, 1  ;;  %26651 = vst [vmem:[#allocation86_spill] sm:$0xff] %v23014_v22 }
 0x3ec   : > { %26648 = vst [vmem:[#allocation83_spill] sm:$0xff] %v22997_v11  ;;  %v18104_v3 = vcombine.low %v22980_v31, %v22984_v27  ;;  %v23003_v40 = vor.u32 %v4500_v24, %v22987_v20  ;;  %v18100_v6 = vcombine.low %v22969_v14, %v6811_v63  ;;  %v4550_v16 = vrot.slane %v22955_v17, 1 }
 0x3ed   : > { %26647 = vst [vmem:[#allocation82_spill] sm:$0xff] %v22994_v9  ;;  %26650 = vst [vmem:[#allocation85_spill] sm:$0xff] %v23006_v10  ;;  %v18102_v19 = vcombine.low %v6814_v32, %v22966_v7  ;;  %v4551_v37 = vrot.slane %v22962_v55, 2  ;;  %18792 = vmatpush3.bf16.msra.mxu1 %v20346_v41  ;;  %v6476_v42 = vcombine.high %v22585_v25, %v22872_v18 }
 0x3ee   : > { %26649 = vst [vmem:[#allocation84_spill] sm:$0xff] %v23003_v40  ;;  %v10290_v43 = vrot.slane %v18104_v3, %v26602_v60  ;;  %v6478_v24 = vcombine.high %v22852_v2, %v22889_v44  ;;  %18893 = vmatprep.subr.bf16.mxu1 %v20355_v0  ;;  %v10262_v63 = vrot.slane %v18100_v6, %v26602_v60 }
 0x3ef   : > { %v10276_v32 = vrot.slane %v18102_v19, %v26602_v60  ;;  %v23022_v17 = vor.u32 %v4551_v37, %v4550_v16  ;;  %v6817_v41 = vcombine.low %v22588_v35, %v22994_v9  ;;  %v23027_v3 = vrot.slane %v6476_v42, %v26602_v60 }
 0x3f0   : > { %v23030_v55 = vrot.slane %v6478_v24, %v26602_v60  ;;  %v6818_v7 = vcombine.high %v22588_v35, %v22994_v9  ;;  %v6821_v0 = vcombine.low %v23014_v22, %v22632_v59  ;;  %v10299_v6 = vcombine.high %v10248_v15, %v10262_v63 }
 0x3f1   : > { %26652 = vst [vmem:[#allocation87_spill] sm:$0xff] %v23022_v17  ;;  %26653 = vst [vmem:[#allocation88_spill] sm:$0xff] %v23027_v3  ;;  %v10303_v44 = vcombine.high %v10276_v32, %v10290_v43  ;;  %v10298_v19 = vcombine.low %v10248_v15, %v10262_v63  ;;  %v10302_v37 = vcombine.low %v10276_v32, %v10290_v43 }
 0x3f2   : > { %26654 = vst [vmem:[#allocation89_spill] sm:$0xff] %v23030_v55  ;;  %v6819_v16 = vcombine.low %v22997_v11, %v23022_v17  ;;  %v6820_v42 = vcombine.high %v22997_v11, %v23022_v17  ;;  %v23041_v54 = vrot.slane %v6817_v41, %v26602_v60  ;;  %v23044_v24 = vrot.slane %v6818_v7, %v26602_v60 }
 0x3f3   : > { %v10326_v9 = vrot.slane %v10299_v6, %v26602_v60  ;;  %v10354_v22 = vrot.slane %v10303_v44, %v26602_v60  ;;  %v10312_v14 = vrot.slane %v10298_v19, %v26602_v60  ;;  %v10340_v43 = vrot.slane %v10302_v37, %v26602_v60 }
 0x3f4   : > { %26655 = vst [vmem:[#allocation90_spill] sm:$0xff] %v23041_v54  ;;  %26656 = vst [vmem:[#allocation91_spill] sm:$0xff] %v23044_v24  ;;  %v23051_v15 = vrot.slane %v6819_v16, %v26602_v60  ;;  %v23054_v63 = vrot.slane %v6820_v42, %v26602_v60  ;;  %v23057_v32 = vrot.slane %v6821_v0, %v26602_v60 }
 0x3f5   : > { %v7106_v7 = vcombine.low %v23027_v3, %v23030_v55  ;;  %v10366_v41 = vcombine.low %v10326_v9, %v10354_v22  ;;  %v10367_v6 = vcombine.high %v10326_v9, %v10354_v22  ;;  %v10362_v17 = vcombine.low %v10312_v14, %v10340_v43 }
 0x3f6   : > { %26657 = vst [vmem:[#allocation92_spill] sm:$0xff] %v23051_v15  ;;  %26658 = vst [vmem:[#allocation93_spill] sm:$0xff] %v23054_v63  ;;  %v10363_v44 = vcombine.high %v10312_v14, %v10340_v43  ;;  %v7430_v37 = vcombine.low %v23003_v40, %v23006_v10  ;;  %v7446_v16 = vcombine.low %v23041_v54, %v23051_v15  ;;  %v23073_v14 = vshrl.u32 %v22637_v50, 16 }
 0x3f7   : > { %26659 = vst [vmem:[#allocation94_spill] sm:$0xff] %v23057_v32  ;;  %v7123_v19 = vrot.slane %v7106_v7, %v26602_v60  ;;  %v7447_v42 = vcombine.high %v23041_v54, %v23051_v15  ;;  %13201 = vmatprep.mubr.bf16.mxu0 %v10366_v41  ;;  %13289 = vmatprep.mubr.bf16.mxu1 %v10367_v6  ;;  %v23076_v9 = vshll.u32 %v22637_v50, 16  ;;  %v23084_v6 = vrot.slane %v22637_v50, 1 }
 0x3f8   : > { %v7448_v0 = vcombine.low %v23044_v24, %v23054_v63  ;;  %v18122_v22 = vcombine.high %v22980_v31, %v22984_v27  ;;  %26660 = vst [vmem:[#allocation95_spill] sm:$0xff] %v23073_v14  ;;  %13202 = vmatmul.mubr.bf16.gmra.mrb[68].mxu0 %v10362_v17  ;;  %13290 = vmatmul.mubr.bf16.gmra.mrb[68].mxu1 %v10363_v44  ;;  %v4553_v17 = vrot.slane %v22987_v20, 1  ;;  %v4556_v24 = vrot.slane %v23073_v14, 1 }
 0x3f9   : > { %26661 = vst [vmem:[#allocation96_spill] sm:$0xff] %v23076_v9  ;;  %v7438_v43 = vrot.slane %v7430_v37, %v26602_v60  ;;  %v7458_v7 = vrot.slane %v7446_v16, %v26602_v60  ;;  %v23081_v41 = vrot.slane %v7447_v42, %v26602_v60  ;;  %26663 = vst [vmem:[#allocation98_spill] sm:$0xff] %v23084_v6  ;;  %v4507_v63 = vrot.slane %v23076_v9, 1 }
 0x3fa   : > { %v23087_v31 = vrot.slane %v7448_v0, %v26602_v60  ;;  %v10705_v27 = vrot.slane %v18122_v22, %v26602_v60  ;;  %v4554_v42 = vrot.slane %v22640_v57, 2  ;;  %v4557_v0 = vrot.slane %v23076_v9, 2 }
 0x3fb   : > { %26662 = vst [vmem:[#allocation97_spill] sm:$0xff] %v23081_v41  ;;  %v7449_v44 = vcombine.low %v23057_v32, %v7438_v43  ;;  %v7450_v37 = vcombine.high %v23057_v32, %v7438_v43  ;;  %v18124_v16 = vcombine.low %v7123_v19, %v7458_v7  ;;  %v23096_v55 = vor.u32 %v4507_v63, %v23073_v14 }
 0x3fc   : > { %26664 = vst [vmem:[#allocation99_spill] sm:$0xff] %v23087_v31  ;;  %v23101_v22 = vrot.slane %v22637_v50, 2  ;;  %v23110_v43 = vor.u32 %v4554_v42, %v4553_v17  ;;  %v23112_v57 = vor.u32 %v4557_v0, %v4556_v24  ;;  %v23115_v63 = vshrl.u32 %v22643_v58, 16 }
 0x3fd   : > { %26665 = vst [vmem:[#allocation100_spill] sm:$0xff] %v23096_v55  ;;  %v23104_v54 = vrot.slane %v7449_v44, %v26602_v60  ;;  %v23107_v20 = vrot.slane %v7450_v37, %v26602_v60  ;;  %v10719_v19 = vrot.slane %v18124_v16, %v26602_v60  ;;  %v23118_v9 = vshll.u32 %v22643_v58, 16 }
 0x3fe   : > { %26666 = vst [vmem:[#allocation101_spill] sm:$0xff] %v23101_v22  ;;  %26669 = vst [vmem:[#allocation104_spill] sm:$0xff] %v23110_v43  ;;  %v23121_v14 = vrot.slane %v22643_v58, 1  ;;  %v7159_v24 = vcombine.low %v22632_v59, %v23003_v40  ;;  %v7160_v42 = vcombine.high %v22632_v59, %v23003_v40  ;;  %v7161_v0 = vcombine.low %v23006_v10, %v23110_v43 }
 0x3ff   : > { %26667 = vst [vmem:[#allocation102_spill] sm:$0xff] %v23104_v54  ;;  %26668 = vst [vmem:[#allocation103_spill] sm:$0xff] %v23107_v20  ;;  %v7495_v44 = vcombine.high %v7458_v7, %v23104_v54  ;;  %v7498_v37 = vcombine.high %v23081_v41, %v23107_v20  ;;  %v10756_v15 = vcombine.high %v10705_v27, %v10719_v19  ;;  %v4574_v17 = vrot.slane %v23118_v9, 1 }
 0x400   : > { %26670 = vst [vmem:[#allocation105_spill] sm:$0xff] %v23112_v57  ;;  %26671 = vst [vmem:[#allocation106_spill] sm:$0xff] %v23115_v63  ;;  %v10755_v16 = vcombine.low %v10705_v27, %v10719_v19  ;;  %v7162_v19 = vcombine.high %v23006_v10, %v23110_v43  ;;  %v23143_v20 = vrot.slane %v7159_v24, %v26602_v60 }
 0x401   : > { %26672 = vst [vmem:[#allocation107_spill] sm:$0xff] %v23118_v9  ;;  %26673 = vst [vmem:[#allocation108_spill] sm:$0xff] %v23121_v14  ;;  %v18126_v32 = vcombine.low %v23081_v41, %v7495_v44  ;;  %v18128_v7 = vcombine.low %v7498_v37, %v23087_v31  ;;  %v10783_v3 = vrot.slane %v10756_v15, %v26602_v60 }
 0x402   : > { %v10769_v54 = vrot.slane %v10755_v16, %v26602_v60  ;;  %v23138_v27 = vor.u32 %v4574_v17, %v23115_v63  ;;  %26675 = vst [vmem:[#allocation110_spill] sm:$0xff] %v23143_v20  ;;  %v23146_v40 = vrot.slane %v7160_v42, %v26602_v60  ;;  %v23151_v15 = vrot.slane %v7161_v0, %v26602_v60 }
 0x403   : > { %v10733_v44 = vrot.slane %v18126_v32, %v26602_v60  ;;  %v10747_v37 = vrot.slane %v18128_v7, %v26602_v60  ;;  %v7501_v16 = vcombine.low %v22637_v50, %v23096_v55  ;;  %v23156_v17 = vrot.slane %v7162_v19, %v26602_v60 }
 0x404   : > { %26674 = vst [vmem:[#allocation109_spill] sm:$0xff] %v23138_v27  ;;  %26676 = vst [vmem:[#allocation111_spill] sm:$0xff] %v23146_v40  ;;  %v7503_v24 = vcombine.low %v23084_v6, %v23112_v57  ;;  %v7505_v42 = vcombine.low %v23101_v22, %v22643_v58  ;;  %v8114_v32 = vcombine.low %v23138_v27, %v23121_v14 }
 0x405   : > { %26677 = vst [vmem:[#allocation112_spill] sm:$0xff] %v23151_v15  ;;  %26678 = vst [vmem:[#allocation113_spill] sm:$0xff] %v23156_v17  ;;  %v10760_v43 = vcombine.high %v10733_v44, %v10747_v37  ;;  %v10759_v7 = vcombine.low %v10733_v44, %v10747_v37  ;;  %v23165_v0 = vrot.slane %v7501_v16, %v26602_v60 }
 0x406   : > { %v7788_v31 = vcombine.low %v23143_v20, %v23151_v15  ;;  %v23170_v19 = vrot.slane %v7503_v24, %v26602_v60  ;;  %v23173_v41 = vrot.slane %v7505_v42, %v26602_v60  ;;  %v7789_v22 = vcombine.high %v23143_v20, %v23151_v15 }
 0x407   : > { %26679 = vst [vmem:[#allocation114_spill] sm:$0xff] %v23165_v0  ;;  %v7790_v27 = vcombine.low %v23146_v40, %v23156_v17  ;;  %v10811_v44 = vrot.slane %v10760_v43, %v26602_v60  ;;  %v10797_v37 = vrot.slane %v10759_v7, %v26602_v60  ;;  %v8122_v14 = vrot.slane %v8114_v32, %v26602_v60 }
 0x408   : > { %26680 = vst [vmem:[#allocation115_spill] sm:$0xff] %v23170_v19  ;;  %26681 = vst [vmem:[#allocation116_spill] sm:$0xff] %v23173_v41  ;;  %v7800_v16 = vrot.slane %v7788_v31, %v26602_v60  ;;  %v7814_v10 = vrot.slane %v7789_v22, %v26602_v60  ;;  %v8130_v42 = vcombine.low %v23165_v0, %v23170_v19 }
 0x409   : > { %v7807_v24 = vrot.slane %v7790_v27, %v26602_v60  ;;  %v8131_v15 = vcombine.high %v23165_v0, %v23170_v19  ;;  %v10823_v20 = vcombine.low %v10783_v3, %v10811_v44  ;;  %v10824_v17 = vcombine.high %v10783_v3, %v10811_v44 }
 0x40a   : > { %v10819_v40 = vcombine.low %v10769_v54, %v10797_v37  ;;  %v10820_v43 = vcombine.high %v10769_v54, %v10797_v37  ;;  %v8133_v7 = vcombine.low %v23173_v41, %v8122_v14  ;;  %v8142_v31 = vrot.slane %v8130_v42, %v26602_v60 }
 0x40b   : > { %v23192_v32 = vrot.slane %v8131_v15, %v26602_v60  ;;  %v18147_v27 = vcombine.low %v7800_v16, %v7814_v10  ;;  %13209 = vmatprep.mubr.bf16.mxu0 %v10823_v20  ;;  %13297 = vmatprep.mubr.bf16.mxu1 %v10824_v17  ;;  %v18149_v22 = vcombine.high %v7800_v16, %v7814_v10  ;;  %v4559_v3 = vrot.slane %v22605_v36, 2 }
 0x40c   : > { %v7502_v11 = vcombine.high %v22637_v50, %v23096_v55  ;;  %v7504_v0 = vcombine.high %v23084_v6, %v23112_v57  ;;  %13210 = vmatmul.mubr.bf16.gmra.mrb[72].mxu0 %v10819_v40  ;;  %13298 = vmatmul.mubr.bf16.gmra.mrb[72].mxu1 %v10820_v43  ;;  %v23200_v54 = vrot.slane %v8133_v7, %v26602_v60  ;;  %v23204_v20 = vrot.slane %v22541_v29, 2 }
 0x40d   : > { %v18151_v44 = vcombine.low %v7807_v24, %v8142_v31  ;;  %v11162_v15 = vrot.slane %v18147_v27, %v26602_v60  ;;  %v11176_v10 = vrot.slane %v18149_v22, %v26602_v60  ;;  %v8134_v36 = vcombine.high %v23173_v41, %v8122_v14 }
 0x40e   : > { %v23208_v17 = vrot.slane %v7502_v11, %v26602_v60  ;;  %v23211_v37 = vrot.slane %v7504_v0, %v26602_v60  ;;  %v8179_v40 = vcombine.high %v8142_v31, %v23200_v54  ;;  %v4944_v24 = vcombine.low %v4559_v3, %v22538_v4 }
 0x40f   : > { %v11190_v16 = vrot.slane %v18151_v44, %v26602_v60  ;;  %v4945_v42 = vcombine.high %v4559_v3, %v22538_v4  ;;  %v11213_v43 = vcombine.high %v11162_v15, %v11176_v10  ;;  %v11212_v7 = vcombine.low %v11162_v15, %v11176_v10 }
 0x410   : > { %26682 = vst [vmem:[#allocation117_spill] sm:$0xff] %v23208_v17  ;;  %26683 = vst [vmem:[#allocation118_spill] sm:$0xff] %v23211_v37  ;;  %v8132_v27 = vcombine.low %v23208_v17, %v23211_v37  ;;  %v23221_v11 = vrot.slane %v8134_v36, %v26602_v60  ;;  %v18153_v0 = vcombine.low %v23192_v32, %v8179_v40 }
 0x411   : > { %v4946_v14 = vcombine.low %v22623_v61, %v22610_v45  ;;  %v4947_v31 = vcombine.high %v22623_v61, %v22610_v45  ;;  %v4982_v22 = vrot.slane %v4944_v24, %v26602_v60  ;;  %v11240_v4 = vrot.slane %v11213_v43, %v26602_v60 }
 0x412   : > { %v11226_v3 = vrot.slane %v11212_v7, %v26602_v60  ;;  %v23232_v44 = vrot.slane %v8132_v27, %v26602_v60  ;;  %v8182_v15 = vcombine.high %v23192_v32, %v23221_v11  ;;  %v11204_v10 = vrot.slane %v18153_v0, %v26602_v60 }
 0x413   : > { %v4989_v36 = vrot.slane %v4945_v42, %v26602_v60  ;;  %v4996_v40 = vrot.slane %v4946_v14, %v26602_v60  ;;  %v5003_v45 = vrot.slane %v4947_v31, %v26602_v60  ;;  %v5445_v24 = vcombine.low %v22688_v28, %v22739_v1 }
 0x414   : > { %v18172_v61 = vcombine.low %v8182_v15, %v23232_v44  ;;  %v5063_v43 = vcombine.low %v23204_v20, %v22544_v62  ;;  %v5064_v7 = vcombine.high %v23204_v20, %v22544_v62  ;;  %v11217_v27 = vcombine.high %v11190_v16, %v11204_v10 }
 0x415   : > { %v11216_v37 = vcombine.low %v11190_v16, %v11204_v10  ;;  %v5007_v0 = vcombine.low %v4982_v22, %v4996_v40  ;;  %v5008_v57 = vcombine.high %v4982_v22, %v4996_v40  ;;  %v5009_v14 = vcombine.low %v4989_v36, %v5003_v45 }
 0x416   : > { %v11613_v42 = vrot.slane %v18172_v61, %v26602_v60  ;;  %v18030_v31 = vcombine.high %v5445_v24, %v22682_v38  ;;  %v23250_v15 = vrot.slane %v5063_v43, %v26602_v60  ;;  %v11268_v28 = vrot.slane %v11217_v27, %v26602_v60 }
 0x417   : > { %v11254_v17 = vrot.slane %v11216_v37, %v26602_v60  ;;  %v5037_v19 = vrot.slane %v5007_v0, %v26602_v60  ;;  %v5051_v62 = vrot.slane %v5008_v57, %v26602_v60  ;;  %v5044_v22 = vrot.slane %v5009_v14, %v26602_v60 }
 0x418   : > { %v11621_v41 = vcombine.high %v11613_v42, %v11613_v42  ;;  %v11629_v16 = vrot.slane %v11613_v42, %v26602_v60  ;;  %v8926_v10 = vrot.slane %v18030_v31, %v26602_v60  ;;  %v11280_v36 = vcombine.low %v11240_v4, %v11268_v28 }
 0x419   : > { %v11281_v40 = vcombine.high %v11240_v4, %v11268_v28  ;;  %v11276_v45 = vcombine.low %v11226_v3, %v11254_v17  ;;  %v11277_v61 = vcombine.high %v11226_v3, %v11254_v17  ;;  %v18024_v27 = vcombine.low %v5037_v19, %v5051_v62 }
 0x41a   : > { %v11643_v24 = vrot.slane %v11621_v41, %v26602_v60  ;;  %v11651_v43 = vcombine.high %v11629_v16, %v11629_v16  ;;  %v18026_v37 = vcombine.high %v5037_v19, %v5051_v62  ;;  %13217 = vmatprep.mubr.bf16.mxu0 %v11280_v36  ;;  %v18028_v57 = vcombine.low %v5044_v22, %v22682_v38 }
 0x41b   : > { %13305 = vmatprep.mubr.bf16.mxu1 %v11281_v40  ;;  %v23262_v0 = vrot.slane %v5064_v7, %v26602_v60  ;;  %v5335_v42 = vcombine.high %v22649_v56, %v22541_v29  ;;  %v23267_v14 = vrot.slane %v22579_v23, 2  ;;  %13218 = vmatmul.mubr.bf16.gmra.mrb[76].mxu0 %v11276_v45  ;;  %v8884_v41 = vrot.slane %v18024_v27, %v26602_v60 }
 0x41c   : > { %13306 = vmatmul.mubr.bf16.gmra.mrb[76].mxu1 %v11277_v61  ;;  %v11653_v17 = vcombine.high %v11643_v24, %v11643_v24  ;;  %v8898_v19 = vrot.slane %v18026_v37, %v26602_v60  ;;  %v23272_v4 = vrot.slane %v22585_v25, 2  ;;  %13225 = vmatprep.mubr.bf16.mxu0 %v11643_v24  ;;  %v8912_v38 = vrot.slane %v18028_v57, %v26602_v60 }
 0x41d   : > { %v5337_v3 = vcombine.high %v22627_v8, %v22615_v47  ;;  %v5379_v29 = vrot.slane %v5335_v42, %v26602_v60  ;;  %v5720_v7 = vcombine.low %v22690_v12, %v22674_v52  ;;  %v5721_v62 = vcombine.high %v22690_v12, %v22674_v52 }
 0x41e   : > { %13313 = vmatprep.mubr.bf16.mxu1 %v11653_v17  ;;  %v8929_v31 = vcombine.low %v8884_v41, %v8898_v19  ;;  %v8930_v28 = vcombine.high %v8884_v41, %v8898_v19  ;;  %v5454_v22 = vcombine.high %v22774_v30, %v22579_v23  ;;  %v8933_v36 = vcombine.low %v8912_v38, %v8926_v10 }
 0x41f   : > { %v8934_v40 = vcombine.high %v8912_v38, %v8926_v10  ;;  %v5393_v45 = vrot.slane %v5337_v3, %v26602_v60  ;;  %v5728_v47 = vrot.slane %v5720_v7, %v26602_v60  ;;  %v5735_v24 = vrot.slane %v5721_v62, %v26602_v60 }
 0x420   : > { %v8962_v8 = vrot.slane %v8930_v28, %v26602_v60  ;;  %v8948_v61 = vrot.slane %v8929_v31, %v26602_v60  ;;  %v23290_v27 = vrot.slane %v5454_v22, %v26602_v60  ;;  %v8976_v57 = vrot.slane %v8933_v36, %v26602_v60 }
 0x421   : > { %v8990_v37 = vrot.slane %v8934_v40, %v26602_v60  ;;  %v5399_v23 = vcombine.low %v5379_v29, %v5393_v45  ;;  %v5739_v10 = vcombine.low %v23250_v15, %v5728_v47  ;;  %v5740_v42 = vcombine.high %v23250_v15, %v5728_v47 }
 0x422   : > { %v5741_v17 = vcombine.low %v23262_v0, %v5735_v24  ;;  %v5795_v41 = vcombine.low %v23267_v14, %v22582_v26  ;;  %v6063_v19 = vcombine.high %v22793_v21, %v22771_v53  ;;  %v8993_v7 = vcombine.low %v8948_v61, %v8976_v57 }
 0x423   : > { %v8997_v38 = vcombine.low %v8962_v8, %v8990_v37  ;;  %v8998_v3 = vcombine.high %v8962_v8, %v8990_v37  ;;  %v8994_v31 = vcombine.high %v8948_v61, %v8976_v57  ;;  %13226 = vmatmul.mubr.bf16.gmra.mrb[80].mxu0 %v11629_v16  ;;  %v5434_v29 = vrot.slane %v5399_v23, %v26602_v60 }
 0x424   : > { %13314 = vmatmul.mubr.bf16.gmra.mrb[80].mxu1 %v11651_v43  ;;  %v5769_v28 = vrot.slane %v5739_v10, %v26602_v60  ;;  %v5776_v62 = vrot.slane %v5741_v17, %v26602_v60  ;;  %v23305_v22 = vrot.slane %v22632_v59, 2  ;;  %v5783_v36 = vrot.slane %v5740_v42, %v26602_v60 }
 0x425   : > { %13353 = vmatprep.mubr.bf16.mxu0 %v8997_v38  ;;  %13441 = vmatprep.mubr.bf16.mxu1 %v8998_v3  ;;  %v23309_v40 = vrot.slane %v5795_v41, %v26602_v60  ;;  %v6077_v45 = vrot.slane %v6063_v19, %v26602_v60  ;;  %v5444_v43 = vcombine.low %v22759_v34, %v5434_v29  ;;  %v20348_v41 = vld [vmem:[#allocation10 + $0x200] sm:$0xff]   ;;  %v20349_v29 = vld [vmem:[#allocation10 + $0x248] sm:$0xff]  }
 0x426   : > { %v18055_v47 = vcombine.low %v5776_v62, %v22860_v13  ;;  %v6129_v8 = vcombine.low %v22833_v46, %v22863_v39  ;;  %v6404_v61 = vcombine.low %v22869_v51, %v22845_v33  ;;  %v18051_v24 = vcombine.low %v5769_v28, %v5783_v36 }
 0x427   : > { %v18053_v37 = vcombine.high %v5769_v28, %v5783_v36  ;;  %v6083_v57 = vcombine.low %v23290_v27, %v6077_v45  ;;  %v5796_v23 = vcombine.high %v23267_v14, %v22582_v26  ;;  %v18049_v10 = vcombine.high %v22739_v1, %v5444_v43 }
 0x428   : > { %v9383_v42 = vrot.slane %v18055_v47, %v26602_v60  ;;  %v6412_v34 = vrot.slane %v6404_v61, %v26602_v60  ;;  %v18074_v17 = vcombine.high %v6129_v8, %v22860_v13  ;;  %v9355_v46 = vrot.slane %v18051_v24, %v26602_v60  ;;  %v20356_v47 = vld [vmem:[#allocation10 + $0x280] sm:$0xff]  }
 0x429   : > { %v9369_v19 = vrot.slane %v18053_v37, %v26602_v60  ;;  %v6118_v38 = vrot.slane %v6083_v57, %v26602_v60  ;;  %v23330_v3 = vrot.slane %v5796_v23, %v26602_v60  ;;  %v9341_v26 = vrot.slane %v18049_v10, %v26602_v60  ;;  %v20359_v37 = vld [vmem:[#allocation10 + $0x2c8] sm:$0xff]  }
 0x42a   : > { %v6423_v1 = vcombine.low %v23309_v40, %v6412_v34  ;;  %v6424_v28 = vcombine.high %v23309_v40, %v6412_v34  ;;  %v9798_v62 = vrot.slane %v18074_v17, %v26602_v60  ;;  %v6138_v43 = vcombine.high %v22883_v5, %v22585_v25  ;;  %v20350_v10 = vld [vmem:[#allocation10 + $0x208] sm:$0xff]  }
 0x42b   : > { %v9391_v13 = vcombine.high %v9369_v19, %v9383_v42  ;;  %v9390_v36 = vcombine.low %v9369_v19, %v9383_v42  ;;  %v6128_v45 = vcombine.low %v22830_v48, %v6118_v38  ;;  %13354 = vmatmul.mubr.bf16.vlgmr.msra.gmra.mrb[84].mxu0 %v8993_v7  ;;  %v9387_v8 = vcombine.high %v9341_v26, %v9355_v46  ;;  %v20351_v38 = vld [vmem:[#allocation10 + $0x250] sm:$0xff]  }
 0x42c   : > { %13442 = vmatmul.mubr.bf16.vlgmr.msra.gmra.mrb[84].mxu1 %v8994_v31  ;;  %v9386_v61 = vcombine.low %v9341_v26, %v9355_v46  ;;  %v6453_v24 = vrot.slane %v6423_v1, %v26602_v60  ;;  %18836 = vmatpush3.bf16.msra.mxu0 %v20348_v41  ;;  %v6467_v48 = vrot.slane %v6424_v28, %v26602_v60 }
 0x42d   : > { %v9447_v23 = vrot.slane %v9391_v13, %v26602_v60  ;;  %v9433_v42 = vrot.slane %v9390_v36, %v26602_v60  ;;  %v18076_v25 = vcombine.high %v22863_v39, %v6128_v45  ;;  %v9419_v7 = vrot.slane %v9387_v8, %v26602_v60  ;;  %18837 = vmatprep.subr.bf16.mxu0 %v20349_v29 }
 0x42e   : > { %v9405_v31 = vrot.slane %v9386_v61, %v26602_v60  ;;  %v23348_v34 = vrot.slane %v6138_v43, %v26602_v60  ;;  %v6405_v17 = vcombine.high %v22869_v51, %v22845_v33  ;;  %v18078_v41 = vcombine.low %v6453_v24, %v6467_v48  ;;  %18894 = vmatpush3.bf16.msra.mxu1 %v20356_v47  ;;  %v20352_v43 = vld [vmem:[#allocation10 + $0x210] sm:$0xff]  }
 0x42f   : > { %v18080_v46 = vcombine.high %v6453_v24, %v6467_v48  ;;  %v9812_v19 = vrot.slane %v18076_v25, %v26602_v60  ;;  %v6479_v26 = vcombine.low %v23272_v4, %v22588_v35  ;;  %v9454_v39 = vcombine.low %v9419_v7, %v9447_v23  ;;  %18895 = vmatprep.subr.bf16.mxu1 %v20359_v37  ;;  %v20360_v25 = vld [vmem:[#allocation10 + $0x288] sm:$0xff]  }
 0x430   : > { %v9455_v1 = vcombine.high %v9419_v7, %v9447_v23  ;;  %v9450_v29 = vcombine.low %v9405_v31, %v9433_v42  ;;  %v9451_v28 = vcombine.high %v9405_v31, %v9433_v42  ;;  %18838 = vmatpush3.bf16.msra.mxu0 %v20350_v10  ;;  %v9826_v13 = vrot.slane %v18078_v41, %v26602_v60  ;;  %v20353_v23 = vld [vmem:[#allocation10 + $0x258] sm:$0xff]  }
 0x431   : > { %v9840_v36 = vrot.slane %v18080_v46, %v26602_v60  ;;  %v9844_v45 = vcombine.high %v9798_v62, %v9812_v19  ;;  %v9843_v8 = vcombine.low %v9798_v62, %v9812_v19  ;;  %13361 = vmatprep.mubr.bf16.mxu0 %v9454_v39  ;;  %v6419_v61 = vrot.slane %v6405_v17, %v26602_v60  ;;  %v26684_v17 = vld [vmem:[#allocation79_spill] sm:$0xff]  ;;  %v26685_v19 = vld [vmem:[#allocation61_spill] sm:$0xff] }
 0x432   : > { %13449 = vmatprep.mubr.bf16.mxu1 %v9455_v1  ;;  %v23359_v24 = vrot.slane %v6479_v26, %v26602_v60  ;;  %v6747_v47 = vcombine.high %v22872_v18, %v22852_v2  ;;  %v23364_v37 = vrot.slane %v22643_v58, 2  ;;  %18839 = vmatprep.subr.bf16.mxu0 %v20351_v38  ;;  %v6813_v41 = vcombine.low %v26684_v17, %v22977_v49  ;;  %v20361_v46 = vld [vmem:[#allocation10 + $0x2d0] sm:$0xff]   ;;  %v26690_v17 = vld [vmem:[#allocation86_spill] sm:$0xff] }
 0x433   : > { %v9848_v10 = vcombine.high %v9826_v13, %v9840_v36  ;;  %v9876_v42 = vrot.slane %v9844_v45, %v26602_v60  ;;  %v9847_v48 = vcombine.low %v9826_v13, %v9840_v36  ;;  %v9862_v62 = vrot.slane %v9843_v8, %v26602_v60  ;;  %13362 = vmatmul.mubr.bf16.gmra.mrb[88].mxu0 %v9450_v29  ;;  %v26687_v1 = vld [vmem:[#allocation83_spill] sm:$0xff]  ;;  %v26688_v13 = vld [vmem:[#allocation82_spill] sm:$0xff]  ;;  %v26689_v8 = vld [vmem:[#allocation80_spill] sm:$0xff] }
 0x434   : > { %13450 = vmatmul.mubr.bf16.gmra.mrb[88].mxu1 %v9451_v28  ;;  %v6425_v7 = vcombine.low %v23330_v3, %v6419_v61  ;;  %v6761_v31 = vrot.slane %v6747_v47, %v26602_v60  ;;  %v23373_v26 = vshrl.u32 %v26685_v19, 16  ;;  %18840 = vmatpush3.bf16.msra.mxu0 %v20352_v43  ;;  %v7088_v29 = vcombine.low %v26688_v13, %v26687_v1  ;;  %v20354_v47 = vld [vmem:[#allocation10 + $0x218] sm:$0xff]   ;;  %v20357_v2 = vld [vmem:[#allocation10 + $0x260] sm:$0xff]  }
 0x435   : > { %v9904_v39 = vrot.slane %v9848_v10, %v26602_v60  ;;  %v9890_v38 = vrot.slane %v9847_v48, %v26602_v60  ;;  %v6480_v28 = vcombine.high %v23272_v4, %v22588_v35  ;;  %v18101_v61 = vcombine.high %v6813_v41, %v26689_v8  ;;  %18841 = vmatprep.subr.bf16.mxu0 %v20353_v23  ;;  %v26692_v41 = vld [vmem:[#allocation78_spill] sm:$0xff] }
 0x436   : > { %26686 = vst [vmem:[#allocation79_spill] sm:$0xff] %v23373_v26  ;;  %v6460_v36 = vrot.slane %v6425_v7, %v26602_v60  ;;  %v6767_v45 = vcombine.low %v23348_v34, %v6761_v31  ;;  %v6822_v10 = vcombine.high %v26690_v17, %v22632_v59  ;;  %18896 = vmatpush3.bf16.msra.mxu1 %v20360_v25  ;;  %v23399_v25 = vshll.u32 %v26685_v19, 16 }
 0x437   : > { %v9911_v43 = vcombine.low %v9876_v42, %v9904_v39  ;;  %v9912_v57 = vcombine.high %v9876_v42, %v9904_v39  ;;  %v9907_v48 = vcombine.low %v9862_v62, %v9890_v38  ;;  %v9908_v16 = vcombine.high %v9862_v62, %v9890_v38  ;;  %18897 = vmatprep.subr.bf16.mxu1 %v20361_v46  ;;  %v20362_v62 = vld [vmem:[#allocation10 + $0x290] sm:$0xff]  }
 0x438   : > { %v6802_v18 = vrot.slane %v6767_v45, %v26602_v60  ;;  %v7096_v35 = vrot.slane %v7088_v29, %v26602_v60  ;;  %v18099_v7 = vcombine.low %v6460_v36, %v26689_v8  ;;  %v10269_v31 = vrot.slane %v18101_v61, %v26602_v60  ;;  %26691 = vst [vmem:[#allocation61_spill] sm:$0xff] %v23399_v25  ;;  %v20358_v29 = vld [vmem:[#allocation10 + $0x220] sm:$0xff]   ;;  %v26694_v45 = vld [vmem:[#allocation84_spill] sm:$0xff]  ;;  %v26695_v61 = vld [vmem:[#allocation103_spill] sm:$0xff] }
 0x439   : > { %13369 = vmatprep.mubr.bf16.mxu0 %v9911_v43  ;;  %13457 = vmatprep.mubr.bf16.mxu1 %v9912_v57  ;;  %v23391_v23 = vrot.slane %v6480_v28, %v26602_v60  ;;  %v23394_v59 = vrot.slane %v6822_v10, %v26602_v60  ;;  %v7089_v42 = vcombine.high %v26688_v13, %v26687_v1  ;;  %v26693_v36 = vld [vmem:[#allocation85_spill] sm:$0xff] }
 0x43a   : > { %v6812_v39 = vcombine.low %v26692_v41, %v6802_v18  ;;  %v7107_v38 = vcombine.low %v23359_v24, %v7096_v35  ;;  %v7108_v46 = vcombine.high %v23359_v24, %v7096_v35  ;;  %v10255_v57 = vrot.slane %v18099_v7, %v26602_v60  ;;  %18842 = vmatpush3.bf16.msra.mxu0 %v20354_v47  ;;  %v26696_v10 = vld [vmem:[#allocation97_spill] sm:$0xff]  ;;  %v20363_v41 = vld [vmem:[#allocation10 + $0x268] sm:$0xff]  }
 0x43b   : > { %v7103_v28 = vrot.slane %v7089_v42, %v26602_v60  ;;  %v7431_v8 = vcombine.high %v26694_v45, %v26693_v36  ;;  %v7497_v43 = vcombine.low %v26696_v10, %v26695_v61  ;;  %18843 = vmatprep.subr.bf16.mxu0 %v20357_v2  ;;  %v7163_v18 = vcombine.low %v23305_v22, %v22637_v50  ;;  %v20365_v42 = vld [vmem:[#allocation10 + $0x2d8] sm:$0xff]  }
 0x43c   : > { %13370 = vmatmul.mubr.bf16.gmra.mrb[92].mxu0 %v9907_v48  ;;  %13458 = vmatmul.mubr.bf16.gmra.mrb[92].mxu1 %v9908_v16  ;;  %v7137_v35 = vrot.slane %v7107_v38, %v26602_v60  ;;  %v7151_v47 = vrot.slane %v7108_v46, %v26602_v60  ;;  %v18103_v7 = vcombine.high %v22977_v49, %v6812_v39  ;;  %v20366_v13 = vld [vmem:[#allocation10 + $0x298] sm:$0xff]   ;;  %v26697_v38 = vld [vmem:[#allocation102_spill] sm:$0xff] }
 0x43d   : > { %v10301_v36 = vcombine.high %v10255_v57, %v10269_v31  ;;  %v10300_v45 = vcombine.low %v10255_v57, %v10269_v31  ;;  %v7109_v10 = vcombine.low %v23391_v23, %v7103_v28  ;;  %v7445_v2 = vrot.slane %v7431_v8, %v26602_v60  ;;  %18898 = vmatpush3.bf16.msra.mxu1 %v20362_v62  ;;  %v20364_v46 = vld [vmem:[#allocation10 + $0x228] sm:$0xff]   ;;  %v20367_v28 = vld [vmem:[#allocation10 + $0x2e0] sm:$0xff]  }
 0x43e   : > { %v18105_v33 = vcombine.low %v7137_v35, %v7151_v47  ;;  %v10283_v16 = vrot.slane %v18103_v7, %v26602_v60  ;;  %v18123_v48 = vcombine.high %v7137_v35, %v7151_v47  ;;  %v18127_v51 = vcombine.high %v7497_v43, %v26697_v38  ;;  %18844 = vmatpush3.bf16.msra.mxu0 %v20358_v29 }
 0x43f   : > { %v10333_v49 = vrot.slane %v10301_v36, %v26602_v60  ;;  %v10319_v39 = vrot.slane %v10300_v45, %v26602_v60  ;;  %v7144_v31 = vrot.slane %v7109_v10, %v26602_v60  ;;  %v7451_v57 = vcombine.low %v23394_v59, %v7445_v2  ;;  %18845 = vmatprep.subr.bf16.mxu0 %v20363_v41  ;;  %v20368_v36 = vld [vmem:[#allocation10 + $0x270] sm:$0xff]   ;;  %v20369_v41 = vld [vmem:[#allocation10 + $0x2a0] sm:$0xff]  }
 0x440   : > { %v10297_v62 = vrot.slane %v18105_v33, %v26602_v60  ;;  %v10712_v8 = vrot.slane %v18123_v48, %v26602_v60  ;;  %v23427_v35 = vrot.slane %v18127_v51, %v26602_v60  ;;  %v7164_v29 = vcombine.high %v23305_v22, %v22637_v50  ;;  %18899 = vmatprep.subr.bf16.mxu1 %v20365_v42  ;;  %v20370_v42 = vld [vmem:[#allocation10 + $0x230] sm:$0xff]  }
 0x441   : > { %v7486_v45 = vrot.slane %v7451_v57, %v26602_v60  ;;  %v18125_v43 = vcombine.low %v7144_v31, %v26697_v38  ;;  %v23434_v47 = vrot.slane %v7163_v18, %v26602_v60  ;;  %v7772_v33 = vcombine.low %v23096_v55, %v23084_v6  ;;  %18900 = vmatpush3.bf16.msra.mxu1 %v20366_v13  ;;  %v26700_v2 = vld [vmem:[#allocation99_spill] sm:$0xff] }
 0x442   : > { %v10305_v7 = vcombine.high %v10283_v16, %v10297_v62  ;;  %v10304_v51 = vcombine.low %v10283_v16, %v10297_v62  ;;  %v23439_v10 = vrot.slane %v7164_v29, %v26602_v60  ;;  %v7773_v50 = vcombine.high %v23096_v55, %v23084_v6  ;;  %18846 = vmatpush3.bf16.msra.mxu0 %v20364_v46  ;;  %v20371_v31 = vld [vmem:[#allocation10 + $0x2e8] sm:$0xff]   ;;  %v26701_v46 = vld [vmem:[#allocation101_spill] sm:$0xff] }
 0x443   : > { %26698 = vst [vmem:[#allocation80_spill] sm:$0xff] %v23434_v47  ;;  %v7496_v48 = vcombine.low %v26700_v2, %v7486_v45  ;;  %v10726_v18 = vrot.slane %v18125_v43, %v26602_v60  ;;  %v7780_v38 = vrot.slane %v7772_v33, %v26602_v60  ;;  %v8181_v13 = vcombine.low %v23192_v32, %v23221_v11 }
 0x444   : > { %26699 = vst [vmem:[#allocation86_spill] sm:$0xff] %v23439_v10  ;;  %18901 = vmatprep.subr.bf16.mxu1 %v20367_v28  ;;  %v10361_v16 = vrot.slane %v10305_v7, %v26602_v60  ;;  %v10347_v57 = vrot.slane %v10304_v51, %v26602_v60  ;;  %v7787_v62 = vrot.slane %v7773_v50, %v26602_v60  ;;  %v20372_v7 = vld [vmem:[#allocation10 + $0x2a8] sm:$0xff]  }
 0x445   : > { %v7506_v29 = vcombine.high %v26701_v46, %v22643_v58  ;;  %18847 = vmatprep.subr.bf16.mxu0 %v20368_v36  ;;  %v18129_v45 = vcombine.high %v26695_v61, %v7496_v48  ;;  %v10758_v43 = vcombine.high %v10712_v8, %v10726_v18  ;;  %v10757_v2 = vcombine.low %v10712_v8, %v10726_v18  ;;  %v20373_v61 = vld [vmem:[#allocation10 + $0x278] sm:$0xff]  }
 0x446   : > { %v7791_v33 = vcombine.low %v23434_v47, %v7780_v38  ;;  %18902 = vmatpush3.bf16.msra.mxu1 %v20369_v41  ;;  %v10368_v32 = vcombine.low %v10333_v49, %v10361_v16  ;;  %v10369_v28 = vcombine.high %v10333_v49, %v10361_v16  ;;  %v10364_v1 = vcombine.low %v10319_v39, %v10347_v57  ;;  %v20374_v41 = vld [vmem:[#allocation10 + $0x2f0] sm:$0xff]   ;;  %v20379_v16 = vld [vmem:[#allocation10 + $0x340] sm:$0xff]  }
 0x447   : > { %v10365_v6 = vcombine.high %v10319_v39, %v10347_v57  ;;  %18848 = vmatpush3.bf16.msra.mxu0 %v20370_v42  ;;  %v10754_v51 = vrot.slane %v18129_v45, %v26602_v60  ;;  %v10790_v50 = vrot.slane %v10758_v43, %v26602_v60  ;;  %v10776_v55 = vrot.slane %v10757_v2, %v26602_v60  ;;  %v20375_v42 = vld [vmem:[#allocation10 + $0x238] sm:$0xff]  }
 0x448   : > { %v7792_v36 = vcombine.high %v23434_v47, %v7780_v38  ;;  %18903 = vmatprep.subr.bf16.mxu1 %v20371_v31  ;;  %13377 = vmatprep.mubr.bf16.mxu0 %v10368_v32  ;;  %v7793_v8 = vcombine.low %v23439_v10, %v7787_v62  ;;  %v7821_v49 = vrot.slane %v7791_v33, %v26602_v60  ;;  %v23463_v48 = vrot.slane %v26685_v19, 1  ;;  %v26703_v43 = vld [vmem:[#allocation108_spill] sm:$0xff]  ;;  %v26704_v2 = vld [vmem:[#allocation109_spill] sm:$0xff]  ;;  %v20396_v47 = vld [vmem:[#allocation10 + $0x328] sm:$0xff]  }
 0x449   : > { %13465 = vmatprep.mubr.bf16.mxu1 %v10369_v28  ;;  %v18154_v39 = vcombine.high %v8181_v13, %v23200_v54  ;;  %13378 = vmatmul.mubr.bf16.gmra.mrb[96].mxu0 %v10364_v1  ;;  %v10762_v18 = vcombine.high %v23427_v35, %v10754_v51  ;;  %v10761_v38 = vcombine.low %v23427_v35, %v10754_v51 }
 0x44a   : > { %13466 = vmatmul.mubr.bf16.gmra.mrb[96].mxu1 %v10365_v6  ;;  %v7835_v31 = vrot.slane %v7792_v36, %v26602_v60  ;;  %v7828_v62 = vrot.slane %v7793_v8, %v26602_v60  ;;  %v23472_v45 = vrot.slane %v7506_v29, %v26602_v60  ;;  %v8115_v1 = vcombine.high %v26704_v2, %v26703_v43  ;;  %v20376_v6 = vld [vmem:[#allocation10 + $0x2b0] sm:$0xff]   ;;  %v26705_v29 = vld [vmem:[#allocation62_spill] sm:$0xff] }
 0x44b   : > { %v11211_v13 = vrot.slane %v18154_v39, %v26602_v60  ;;  %18904 = vmatpush3.bf16.msra.mxu1 %v20372_v7  ;;  %v10818_v33 = vrot.slane %v10762_v18, %v26602_v60  ;;  %v10804_v35 = vrot.slane %v10761_v38, %v26602_v60  ;;  %18849 = vmatprep.subr.bf16.mxu0 %v20373_v61  ;;  %v20377_v39 = vld [vmem:[#allocation10 + $0x2f8] sm:$0xff]  }
 0x44c   : > { %26702 = vst [vmem:[#allocation78_spill] sm:$0xff] %v23472_v45  ;;  %v18148_v32 = vcombine.low %v7821_v49, %v7835_v31  ;;  %v18150_v28 = vcombine.high %v7821_v49, %v7835_v31  ;;  %v18152_v51 = vcombine.low %v7828_v62, %v23200_v54  ;;  %v8129_v36 = vrot.slane %v8115_v1, %v26602_v60  ;;  %v26721_v62 = vld [vmem:[#allocation68_spill] sm:$0xff] }
 0x44d   : > { %18905 = vmatprep.subr.bf16.mxu1 %v20374_v41  ;;  %18850 = vmatpush3.bf16.msra.mxu0 %v20375_v42  ;;  %v5057_v8 = vcombine.low %v26705_v29, %v22649_v56  ;;  %v10825_v57 = vcombine.low %v10790_v50, %v10818_v33  ;;  %v10826_v43 = vcombine.high %v10790_v50, %v10818_v33  ;;  %v20378_v42 = vld [vmem:[#allocation10 + $0x2b8] sm:$0xff]  }
 0x44e   : > { %v10821_v18 = vcombine.low %v10776_v55, %v10804_v35  ;;  %v10822_v10 = vcombine.high %v10776_v55, %v10804_v35  ;;  %18951 = vmatprep.subr.bf16.mxu0 %v20379_v16  ;;  %v11169_v49 = vrot.slane %v18148_v32, %v26602_v60  ;;  %v11183_v61 = vrot.slane %v18150_v28, %v26602_v60  ;;  %v26706_v55 = vld [vmem:[#allocation53_spill] sm:$0xff]  ;;  %v26722_v28 = vld [vmem:[#allocation40_spill] sm:$0xff] }
 0x44f   : > { %v11197_v54 = vrot.slane %v18152_v51, %v26602_v60  ;;  %v8135_v41 = vcombine.low %v23472_v45, %v8129_v36  ;;  %18906 = vmatpush3.bf16.msra.mxu1 %v20376_v6  ;;  %13385 = vmatprep.mubr.bf16.mxu0 %v10825_v57  ;;  %v5058_v38 = vcombine.high %v26705_v29, %v22649_v56  ;;  %v20387_v16 = vld [vmem:[#allocation10 + $0x3c0] sm:$0xff]   ;;  %v26707_v56 = vld [vmem:[#allocation56_spill] sm:$0xff]  ;;  %v26720_v51 = vld [vmem:[#allocation39_spill] sm:$0xff] }
 0x450   : > { %13473 = vmatprep.mubr.bf16.mxu1 %v10826_v43  ;;  %v5071_v50 = vrot.slane %v5057_v8, %v26602_v60  ;;  %v5447_v31 = vcombine.low %v26706_v55, %v23204_v20  ;;  %v11215_v1 = vcombine.high %v11169_v49, %v11183_v61  ;;  %v11214_v35 = vcombine.low %v11169_v49, %v11183_v61 }
 0x451   : > { %v11219_v33 = vcombine.high %v11197_v54, %v11211_v13  ;;  %v11218_v32 = vcombine.low %v11197_v54, %v11211_v13  ;;  %18907 = vmatprep.subr.bf16.mxu1 %v20377_v39  ;;  %13386 = vmatmul.mubr.bf16.gmra.mrb[100].mxu0 %v10821_v18  ;;  %v8170_v57 = vrot.slane %v8135_v41, %v26602_v60  ;;  %v26709_v39 = vld [vmem:[#allocation57_spill] sm:$0xff] }
 0x452   : > { %13474 = vmatmul.mubr.bf16.gmra.mrb[100].mxu1 %v10822_v10  ;;  %v5078_v43 = vrot.slane %v5058_v38, %v26602_v60  ;;  %v5121_v6 = vcombine.low %v5071_v50, %v26707_v56  ;;  %v11247_v36 = vrot.slane %v11215_v1, %v26602_v60  ;;  %v11233_v8 = vrot.slane %v11214_v35, %v26602_v60 }
 0x453   : > { %v11275_v29 = vrot.slane %v11219_v33, %v26602_v60  ;;  %v11261_v49 = vrot.slane %v11218_v32, %v26602_v60  ;;  %18908 = vmatpush3.bf16.msra.mxu1 %v20378_v42  ;;  %v8180_v13 = vcombine.low %v23232_v44, %v8170_v57  ;;  %v5122_v10 = vcombine.high %v5071_v50, %v26707_v56  ;;  %v26710_v44 = vld [vmem:[#allocation49_spill] sm:$0xff] }
 0x454   : > { %v5123_v18 = vcombine.low %v5078_v43, %v26709_v39  ;;  %v5133_v61 = vrot.slane %v5121_v6, %v26602_v60  ;;  %19009 = vmatprep.subr.bf16.mxu1 %v20387_v16  ;;  %v5461_v42 = vrot.slane %v5447_v31, %v26602_v60  ;;  %v26711_v50 = vld [vmem:[#allocation73_spill] sm:$0xff]  ;;  %v5448_v16 = vcombine.high %v26706_v55, %v23204_v20  ;;  %v26712_v6 = vld [vmem:[#allocation72_spill] sm:$0xff] }
 0x455   : > { %v11282_v54 = vcombine.low %v11247_v36, %v11275_v29  ;;  %v11283_v41 = vcombine.high %v11247_v36, %v11275_v29  ;;  %v11278_v38 = vcombine.low %v11233_v8, %v11261_v49  ;;  %v11279_v1 = vcombine.high %v11233_v8, %v11261_v49 }
 0x456   : > { %v18173_v33 = vcombine.high %v23221_v11, %v8180_v13  ;;  %v5140_v35 = vrot.slane %v5123_v18, %v26602_v60  ;;  %v5147_v32 = vrot.slane %v5122_v10, %v26602_v60  ;;  %v5514_v57 = vcombine.low %v26711_v50, %v26710_v44 }
 0x457   : > { %13393 = vmatprep.mubr.bf16.mxu0 %v11282_v54  ;;  %13481 = vmatprep.mubr.bf16.mxu1 %v11283_v41  ;;  %v5515_v43 = vcombine.high %v26711_v50, %v26710_v44  ;;  %v5511_v36 = vcombine.low %v5461_v42, %v26712_v6  ;;  %v5512_v29 = vcombine.high %v5461_v42, %v26712_v6  ;;  %v4642_v18 = vshll.u32 %v22690_v12, 16 }
 0x458   : > { %v11620_v11 = vrot.slane %v18173_v33, %v26602_v60  ;;  %v18031_v31 = vcombine.low %v5133_v61, %v5147_v32  ;;  %v23520_v8 = vrot.slane %v5514_v57, %v26602_v60  ;;  %v18033_v49 = vcombine.high %v5133_v61, %v5147_v32  ;;  %v26713_v33 = vld [vmem:[#allocation47_spill] sm:$0xff] }
 0x459   : > { %v5468_v13 = vrot.slane %v5448_v16, %v26602_v60  ;;  %v23524_v20 = vrot.slane %v5515_v43, %v26602_v60  ;;  %13394 = vmatmul.mubr.bf16.gmra.mrb[104].mxu0 %v11278_v38  ;;  %v5523_v39 = vrot.slane %v5511_v36, %v26602_v60  ;;  %v23530_v54 = vrot.slane %v5512_v29, %v26602_v60  ;;  %v26714_v29 = vld [vmem:[#allocation74_spill] sm:$0xff] }
 0x45a   : > { %13482 = vmatmul.mubr.bf16.gmra.mrb[104].mxu1 %v11279_v1  ;;  %v11622_v55 = vcombine.high %v11620_v11, %v11620_v11  ;;  %v11636_v10 = vrot.slane %v11620_v11, %v26602_v60  ;;  %v9013_v41 = vrot.slane %v18031_v31, %v26602_v60  ;;  %v9027_v61 = vrot.slane %v18033_v49, %v26602_v60 }
 0x45b   : > { %v5513_v32 = vcombine.low %v5468_v13, %v26713_v33  ;;  %v5560_v1 = vcombine.high %v5523_v39, %v23520_v8  ;;  %v18035_v44 = vcombine.low %v5140_v35, %v5523_v39  ;;  %v5563_v43 = vcombine.high %v23530_v54, %v23524_v20 }
 0x45c   : > { %v11650_v42 = vrot.slane %v11622_v55, %v26602_v60  ;;  %v11652_v38 = vcombine.high %v11636_v10, %v11636_v10  ;;  %v9063_v50 = vcombine.low %v9013_v41, %v9027_v61  ;;  %v9064_v57 = vcombine.high %v9013_v41, %v9027_v61  ;;  %v26715_v55 = vld [vmem:[#allocation37_spill] sm:$0xff] }
 0x45d   : > { %v23538_v16 = vrot.slane %v5513_v32, %v26602_v60  ;;  %v18037_v6 = vcombine.low %v23530_v54, %v5560_v1  ;;  %v9041_v36 = vrot.slane %v18035_v44, %v26602_v60  ;;  %v5789_v31 = vcombine.low %v26714_v29, %v22774_v30  ;;  %v26716_v44 = vld [vmem:[#allocation41_spill] sm:$0xff] }
 0x45e   : > { %13401 = vmatprep.mubr.bf16.mxu0 %v11650_v42  ;;  %v11654_v11 = vcombine.high %v11650_v42, %v11650_v42  ;;  %v9091_v49 = vrot.slane %v9064_v57, %v26602_v60  ;;  %v9077_v35 = vrot.slane %v9063_v50, %v26602_v60  ;;  %v5790_v13 = vcombine.high %v26714_v29, %v22774_v30  ;;  %v26717_v50 = vld [vmem:[#allocation58_spill] sm:$0xff] }
 0x45f   : > { %v6131_v39 = vcombine.low %v26715_v55, %v23267_v14  ;;  %v9055_v41 = vrot.slane %v18037_v6, %v26602_v60  ;;  %v5803_v61 = vrot.slane %v5789_v31, %v26602_v60  ;;  %v18056_v33 = vcombine.low %v5563_v43, %v23538_v16  ;;  %v26718_v31 = vld [vmem:[#allocation50_spill] sm:$0xff] }
 0x460   : > { %13489 = vmatprep.mubr.bf16.mxu1 %v11654_v11  ;;  %v6132_v32 = vcombine.high %v26715_v55, %v23267_v14  ;;  %v5810_v42 = vrot.slane %v5790_v13, %v26602_v60  ;;  %v6198_v30 = vcombine.low %v26717_v50, %v26716_v44  ;;  %v6199_v57 = vcombine.high %v26717_v50, %v26716_v44 }
 0x461   : > { %v6145_v1 = vrot.slane %v6131_v39, %v26602_v60  ;;  %13402 = vmatmul.mubr.bf16.gmra.mrb[108].mxu0 %v11636_v10  ;;  %v9067_v11 = vcombine.low %v9041_v36, %v9055_v41  ;;  %v9068_v6 = vcombine.high %v9041_v36, %v9055_v41  ;;  %v5853_v56 = vcombine.low %v5803_v61, %v26718_v31 }
 0x462   : > { %13490 = vmatmul.mubr.bf16.gmra.mrb[108].mxu1 %v11652_v38  ;;  %v23564_v43 = vrot.slane %v4642_v18, 1  ;;  %v5854_v14 = vcombine.high %v5803_v61, %v26718_v31  ;;  %v5855_v13 = vcombine.low %v5810_v42, %v26720_v51  ;;  %v9470_v7 = vrot.slane %v18056_v33, %v26602_v60  ;;  %v20380_v31 = vld [vmem:[#allocation10 + $0x300] sm:$0xff]  }
 0x463   : > { %v6195_v39 = vcombine.low %v6145_v1, %v26721_v62  ;;  %v9119_v12 = vrot.slane %v9068_v6, %v26602_v60  ;;  %v9105_v44 = vrot.slane %v9067_v11, %v26602_v60  ;;  %v5865_v10 = vrot.slane %v5853_v56, %v26602_v60 }
 0x464   : > { %26719 = vst [vmem:[#allocation103_spill] sm:$0xff] %v23564_v43  ;;  %v6152_v38 = vrot.slane %v6132_v32, %v26602_v60  ;;  %v5872_v36 = vrot.slane %v5855_v13, %v26602_v60  ;;  %v5879_v18 = vrot.slane %v5854_v14, %v26602_v60  ;;  %v6196_v51 = vcombine.high %v6145_v1, %v26721_v62  ;;  %v20381_v32 = vld [vmem:[#allocation10 + $0x348] sm:$0xff]  }
 0x465   : > { %v6207_v41 = vrot.slane %v6195_v39, %v26602_v60  ;;  %v9131_v61 = vcombine.low %v9091_v49, %v9119_v12  ;;  %v9132_v42 = vcombine.high %v9091_v49, %v9119_v12  ;;  %v9127_v50 = vcombine.low %v9077_v35, %v9105_v44  ;;  %v20388_v39 = vld [vmem:[#allocation10 + $0x380] sm:$0xff]  }
 0x466   : > { %v9128_v33 = vcombine.high %v9077_v35, %v9105_v44  ;;  %v18058_v6 = vcombine.low %v5865_v10, %v5879_v18  ;;  %v18060_v43 = vcombine.high %v5865_v10, %v5879_v18  ;;  %v6197_v56 = vcombine.low %v6152_v38, %v26722_v28  ;;  %v26723_v44 = vld [vmem:[#allocation54_spill] sm:$0xff] }
 0x467   : > { %v18062_v11 = vcombine.low %v5872_v36, %v6207_v41  ;;  %13529 = vmatprep.mubr.bf16.mxu0 %v9131_v61  ;;  %13617 = vmatprep.mubr.bf16.mxu1 %v9132_v42  ;;  %v23580_v13 = vrot.slane %v6196_v51, %v26602_v60  ;;  %v23583_v14 = vrot.slane %v6198_v30, %v26602_v60  ;;  %v20391_v38 = vld [vmem:[#allocation10 + $0x3c8] sm:$0xff]   ;;  %v4649_v36 = vshll.u32 %v22674_v52, 16 }
 0x468   : > { %v23586_v62 = vrot.slane %v6199_v57, %v26602_v60  ;;  %v9484_v49 = vrot.slane %v18058_v6, %v26602_v60  ;;  %v9498_v35 = vrot.slane %v18060_v43, %v26602_v60  ;;  %v23593_v1 = vrot.slane %v6197_v56, %v26602_v60  ;;  %v20382_v51 = vld [vmem:[#allocation10 + $0x308] sm:$0xff]   ;;  %v20383_v6 = vld [vmem:[#allocation10 + $0x350] sm:$0xff]  }
 0x469   : > { %v9512_v28 = vrot.slane %v18062_v11, %v26602_v60  ;;  %13530 = vmatmul.mubr.bf16.vlgmr.msra.gmra.mrb[112].mxu0 %v9127_v50  ;;  %v6244_v30 = vcombine.high %v6207_v41, %v23583_v14  ;;  %v6473_v10 = vcombine.low %v26723_v44, %v22883_v5  ;;  %v6474_v11 = vcombine.high %v26723_v44, %v22883_v5  ;;  %v20385_v44 = vld [vmem:[#allocation10 + $0x358] sm:$0xff]  }
 0x46a   : > { %13618 = vmatmul.mubr.bf16.vlgmr.msra.gmra.mrb[112].mxu1 %v9128_v33  ;;  %v6247_v57 = vcombine.high %v23580_v13, %v23586_v62  ;;  %18952 = vmatpush3.bf16.msra.mxu0 %v20380_v31  ;;  %v9521_v43 = vcombine.high %v9470_v7, %v9484_v49  ;;  %v9520_v61 = vcombine.low %v9470_v7, %v9484_v49 }
 0x46b   : > { %v9525_v18 = vcombine.high %v9498_v35, %v9512_v28  ;;  %v9524_v42 = vcombine.low %v9498_v35, %v9512_v28  ;;  %18953 = vmatprep.subr.bf16.mxu0 %v20381_v32  ;;  %v6487_v50 = vrot.slane %v6473_v10, %v26602_v60  ;;  %v18081_v41 = vcombine.low %v23580_v13, %v6244_v30  ;;  %v26724_v32 = vld [vmem:[#allocation60_spill] sm:$0xff] }
 0x46c   : > { %v18083_v33 = vcombine.low %v6247_v57, %v23593_v1  ;;  %v9548_v56 = vrot.slane %v9521_v43, %v26602_v60  ;;  %v9534_v12 = vrot.slane %v9520_v61, %v26602_v60  ;;  %19010 = vmatpush3.bf16.msra.mxu1 %v20388_v39 }
 0x46d   : > { %v9576_v31 = vrot.slane %v9525_v18, %v26602_v60  ;;  %v9562_v7 = vrot.slane %v9524_v42, %v26602_v60  ;;  %v6537_v49 = vcombine.low %v6487_v50, %v26724_v32  ;;  %v6538_v35 = vcombine.high %v6487_v50, %v26724_v32  ;;  %19011 = vmatprep.subr.bf16.mxu1 %v20391_v38  ;;  %v20384_v18 = vld [vmem:[#allocation10 + $0x310] sm:$0xff]  }
 0x46e   : > { %v9927_v28 = vrot.slane %v18081_v41, %v26602_v60  ;;  %v9941_v30 = vrot.slane %v18083_v33, %v26602_v60  ;;  %18954 = vmatpush3.bf16.msra.mxu0 %v20382_v51  ;;  %v6494_v50 = vrot.slane %v6474_v11, %v26602_v60  ;;  %v26725_v38 = vld [vmem:[#allocation55_spill] sm:$0xff]  ;;  %v23621_v33 = vrot.slane %v4649_v36, 1  ;;  %v20386_v36 = vld [vmem:[#allocation10 + $0x318] sm:$0xff]  }
 0x46f   : > { %v9588_v57 = vcombine.low %v9548_v56, %v9576_v31  ;;  %v9589_v5 = vcombine.high %v9548_v56, %v9576_v31  ;;  %v9584_v10 = vcombine.low %v9534_v12, %v9562_v7  ;;  %v9585_v43 = vcombine.high %v9534_v12, %v9562_v7  ;;  %18955 = vmatprep.subr.bf16.mxu0 %v20383_v6  ;;  %v20392_v12 = vld [vmem:[#allocation10 + $0x388] sm:$0xff]   ;;  %v20393_v7 = vld [vmem:[#allocation10 + $0x3d0] sm:$0xff]  }
 0x470   : > { %v6549_v61 = vrot.slane %v6537_v49, %v26602_v60  ;;  %v6563_v42 = vrot.slane %v6538_v35, %v26602_v60  ;;  %v9978_v39 = vcombine.high %v9927_v28, %v9941_v30  ;;  %v9977_v52 = vcombine.low %v9927_v28, %v9941_v30  ;;  %26726 = vst [vmem:[#allocation97_spill] sm:$0xff] %v23621_v33  ;;  %v26727_v49 = vld [vmem:[#allocation88_spill] sm:$0xff]  ;;  %v20395_v33 = vld [vmem:[#allocation10 + $0x368] sm:$0xff]  }
 0x471   : > { %13537 = vmatprep.mubr.bf16.mxu0 %v9588_v57  ;;  %13625 = vmatprep.mubr.bf16.mxu1 %v9589_v5  ;;  %v6815_v41 = vcombine.low %v26725_v38, %v23272_v4  ;;  %v6816_v51 = vcombine.high %v26725_v38, %v23272_v4  ;;  %v6539_v35 = vcombine.low %v6494_v50, %v26727_v49  ;;  %v26728_v5 = vld [vmem:[#allocation94_spill] sm:$0xff] }
 0x472   : > { %13538 = vmatmul.mubr.bf16.gmra.mrb[116].mxu0 %v9584_v10  ;;  %13626 = vmatmul.mubr.bf16.gmra.mrb[116].mxu1 %v9585_v43  ;;  %v18085_v56 = vcombine.low %v6549_v61, %v6563_v42  ;;  %v18087_v31 = vcombine.high %v6549_v61, %v6563_v42  ;;  %v10005_v6 = vrot.slane %v9978_v39, %v26602_v60  ;;  %v26729_v10 = vld [vmem:[#allocation92_spill] sm:$0xff]  ;;  %v26730_v42 = vld [vmem:[#allocation90_spill] sm:$0xff] }
 0x473   : > { %18956 = vmatpush3.bf16.msra.mxu0 %v20384_v18  ;;  %v9991_v11 = vrot.slane %v9977_v52, %v26602_v60  ;;  %v6829_v28 = vrot.slane %v6815_v41, %v26602_v60  ;;  %v6836_v4 = vrot.slane %v6816_v51, %v26602_v60  ;;  %v6882_v43 = vcombine.low %v26729_v10, %v26728_v5  ;;  %v20389_v18 = vld [vmem:[#allocation10 + $0x360] sm:$0xff]   ;;  %v26731_v41 = vld [vmem:[#allocation91_spill] sm:$0xff] }
 0x474   : > { %v9955_v30 = vrot.slane %v18085_v56, %v26602_v60  ;;  %v9969_v57 = vrot.slane %v18087_v31, %v26602_v60  ;;  %v6883_v61 = vcombine.high %v26729_v10, %v26728_v5  ;;  %18957 = vmatprep.subr.bf16.mxu0 %v20385_v44  ;;  %v6556_v52 = vrot.slane %v6539_v35, %v26602_v60  ;;  %v20394_v56 = vld [vmem:[#allocation10 + $0x390] sm:$0xff]   ;;  %v20397_v44 = vld [vmem:[#allocation10 + $0x3d8] sm:$0xff]  }
 0x475   : > { %v6879_v39 = vcombine.low %v6829_v28, %v26730_v42  ;;  %v6880_v50 = vcombine.high %v6829_v28, %v26730_v42  ;;  %v6881_v51 = vcombine.low %v6836_v4, %v26731_v41  ;;  %19012 = vmatpush3.bf16.msra.mxu1 %v20392_v12  ;;  %v23640_v32 = vrot.slane %v6882_v43, %v26602_v60  ;;  %v26736_v12 = vld [vmem:[#allocation87_spill] sm:$0xff]  ;;  %v26737_v43 = vld [vmem:[#allocation104_spill] sm:$0xff] }
 0x476   : > { %v9982_v49 = vcombine.high %v9955_v30, %v9969_v57  ;;  %v9981_v31 = vcombine.low %v9955_v30, %v9969_v57  ;;  %v23643_v38 = vrot.slane %v6883_v61, %v26602_v60  ;;  %19013 = vmatprep.subr.bf16.mxu1 %v20393_v7  ;;  %v7157_v4 = vcombine.low %v26736_v12, %v26690_v17  ;;  %v20390_v30 = vld [vmem:[#allocation10 + $0x320] sm:$0xff]  }
 0x477   : > { %26732 = vst [vmem:[#allocation102_spill] sm:$0xff] %v23640_v32  ;;  %v6891_v35 = vrot.slane %v6879_v39, %v26602_v60  ;;  %v23647_v5 = vrot.slane %v6881_v51, %v26602_v60  ;;  %v23650_v28 = vrot.slane %v6880_v50, %v26602_v60  ;;  %18958 = vmatpush3.bf16.msra.mxu0 %v20386_v36 }
 0x478   : > { %26733 = vst [vmem:[#allocation99_spill] sm:$0xff] %v23643_v38  ;;  %v10033_v57 = vrot.slane %v9982_v49, %v26602_v60  ;;  %v10019_v10 = vrot.slane %v9981_v31, %v26602_v60  ;;  %v7158_v7 = vcombine.high %v26736_v12, %v26690_v17  ;;  %v7499_v61 = vcombine.low %v26737_v43, %v23305_v22  ;;  %v26738_v17 = vld [vmem:[#allocation110_spill] sm:$0xff] }
 0x479   : > { %26734 = vst [vmem:[#allocation101_spill] sm:$0xff] %v23647_v5  ;;  %26735 = vst [vmem:[#allocation62_spill] sm:$0xff] %v23650_v28  ;;  %18959 = vmatprep.subr.bf16.mxu0 %v20389_v18  ;;  %v6928_v42 = vcombine.high %v6891_v35, %v23640_v32  ;;  %v6931_v39 = vcombine.high %v23650_v28, %v23643_v38  ;;  %v7171_v50 = vrot.slane %v7157_v4, %v26602_v60  ;;  %v20403_v38 = vld [vmem:[#allocation10 + $0x3e8] sm:$0xff]  }
 0x47a   : > { %v18106_v36 = vcombine.low %v6556_v52, %v6891_v35  ;;  %19014 = vmatpush3.bf16.msra.mxu1 %v20394_v56  ;;  %v10045_v41 = vcombine.low %v10005_v6, %v10033_v57  ;;  %v10046_v51 = vcombine.high %v10005_v6, %v10033_v57  ;;  %v10041_v49 = vcombine.low %v9991_v11, %v10019_v10  ;;  %v20398_v56 = vld [vmem:[#allocation10 + $0x398] sm:$0xff]   ;;  %v20399_v57 = vld [vmem:[#allocation10 + $0x3e0] sm:$0xff]  }
 0x47b   : > { %v10042_v31 = vcombine.high %v9991_v11, %v10019_v10  ;;  %19015 = vmatprep.subr.bf16.mxu1 %v20397_v44  ;;  %v7221_v12 = vcombine.low %v7171_v50, %v26738_v17  ;;  %v7222_v45 = vcombine.high %v7171_v50, %v26738_v17  ;;  %v18108_v18 = vcombine.low %v23650_v28, %v6928_v42  ;;  %v20402_v17 = vld [vmem:[#allocation10 + $0x330] sm:$0xff]   ;;  %v26742_v10 = vld [vmem:[#allocation114_spill] sm:$0xff] }
 0x47c   : > { %v18110_v32 = vcombine.low %v6931_v39, %v23647_v5  ;;  %18960 = vmatpush3.bf16.msra.mxu0 %v20390_v30  ;;  %13545 = vmatprep.mubr.bf16.mxu0 %v10045_v41  ;;  %v10384_v52 = vrot.slane %v18106_v36, %v26602_v60  ;;  %v7178_v6 = vrot.slane %v7158_v7, %v26602_v60  ;;  %v26739_v7 = vld [vmem:[#allocation111_spill] sm:$0xff]  ;;  %v4394_v28 = vld [vmem:[#allocation2 + $0x198] sm:$0x3f] }
 0x47d   : > { %13633 = vmatprep.mubr.bf16.mxu1 %v10046_v51  ;;  %v7500_v11 = vcombine.high %v26737_v43, %v23305_v22  ;;  %13546 = vmatmul.mubr.bf16.gmra.mrb[120].mxu0 %v10041_v49  ;;  %v7233_v35 = vrot.slane %v7221_v12, %v26602_v60  ;;  %v7247_v4 = vrot.slane %v7222_v45, %v26602_v60  ;;  %v20400_v36 = vld [vmem:[#allocation10 + $0x370] sm:$0xff]  }
 0x47e   : > { %13634 = vmatmul.mubr.bf16.gmra.mrb[120].mxu1 %v10042_v31  ;;  %v10398_v30 = vrot.slane %v18108_v18, %v26602_v60  ;;  %v10412_v42 = vrot.slane %v18110_v32, %v26602_v60  ;;  %v7223_v39 = vcombine.low %v7178_v6, %v26739_v7  ;;  %v7513_v22 = vrot.slane %v7499_v61, %v26602_v60  ;;  %v26740_v49 = vld [vmem:[#allocation116_spill] sm:$0xff]  ;;  %v26741_v45 = vld [vmem:[#allocation115_spill] sm:$0xff]  ;;  %v26743_v7 = vld [vmem:[#allocation117_spill] sm:$0xff] }
 0x47f   : > { %v7520_v50 = vrot.slane %v7500_v11, %v26602_v60  ;;  %18961 = vmatprep.subr.bf16.mxu0 %v20395_v33  ;;  %v18112_v41 = vcombine.low %v7233_v35, %v7247_v4  ;;  %v7566_v31 = vcombine.low %v26741_v45, %v26740_v49  ;;  %v4364_v44 = vld [vmem:[#allocation2 + $0x180] sm:$0xff]  ;;  %v4393_v11 = vld [vmem:[#allocation2 + $0x190] sm:$0xff]  ;;  %19016 = vmatpush3.bf16.msra.mxu1 %v20398_v56 }
 0x480   : > { %v10435_v51 = vcombine.high %v10384_v52, %v10398_v30  ;;  %v10434_v12 = vcombine.low %v10384_v52, %v10398_v30  ;;  %18962 = vmatpush3.bf16.msra.mxu0 %v20396_v47  ;;  %v7240_v18 = vrot.slane %v7223_v39, %v26602_v60  ;;  %v7563_v32 = vcombine.low %v7513_v22, %v26742_v10  ;;  %v20401_v33 = vld [vmem:[#allocation10 + $0x3a0] sm:$0xff]   ;;  %v4365_v39 = vld [vmem:[#allocation2 + $0x188] sm:$0x3f] }
 0x481   : > { %v7564_v6 = vcombine.high %v7513_v22, %v26742_v10  ;;  %v7565_v61 = vcombine.low %v7520_v50, %v26743_v7  ;;  %v10426_v43 = vrot.slane %v18112_v41, %v26602_v60  ;;  %v7567_v47 = vcombine.high %v26741_v45, %v26740_v49  ;;  %19017 = vmatprep.subr.bf16.mxu1 %v20399_v57  ;;  %v20405_v41 = vld [vmem:[#allocation10 + $0x378] sm:$0xff]  }
 0x482   : > { %v10462_v52 = vrot.slane %v10435_v51, %v26602_v60  ;;  %v10448_v30 = vrot.slane %v10434_v12, %v26602_v60  ;;  %v7575_v10 = vrot.slane %v7563_v32, %v26602_v60  ;;  %v23700_v50 = vrot.slane %v7566_v31, %v26602_v60  ;;  %18963 = vmatprep.subr.bf16.mxu0 %v20400_v36  ;;  %v20407_v45 = vld [vmem:[#allocation10 + $0x338] sm:$0xff]  }
 0x483   : > { %v23694_v22 = vrot.slane %v7565_v61, %v26602_v60  ;;  %v23697_v56 = vrot.slane %v7564_v6, %v26602_v60  ;;  %v10439_v51 = vcombine.high %v10412_v42, %v10426_v43  ;;  %v10438_v12 = vcombine.low %v10412_v42, %v10426_v43  ;;  %19018 = vmatpush3.bf16.msra.mxu1 %v20401_v33  ;;  %v20404_v6 = vld [vmem:[#allocation10 + $0x3a8] sm:$0xff]  }
 0x484   : > { %v23703_v49 = vrot.slane %v7567_v47, %v26602_v60  ;;  %v18130_v57 = vcombine.high %v7233_v35, %v7247_v4  ;;  %18964 = vmatpush3.bf16.msra.mxu0 %v20402_v17  ;;  %v7612_v32 = vcombine.high %v7575_v10, %v23700_v50  ;;  %v18132_v7 = vcombine.low %v7240_v18, %v7575_v10  ;;  %v20406_v10 = vld [vmem:[#allocation10 + $0x3f0] sm:$0xff]  }
 0x485   : > { %v4421_v61 = vmax.f32 %v4364_v44, %v4393_v11  ;;  %v4422_v5 = vmax.f32 %v4365_v39, %v4394_v28  ;;  %v10490_v31 = vrot.slane %v10439_v51, %v26602_v60  ;;  %v10476_v36 = vrot.slane %v10438_v12, %v26602_v60  ;;  %19019 = vmatprep.subr.bf16.mxu1 %v20403_v38 }
 0x486   : > { %v7615_v43 = vcombine.high %v23697_v56, %v23703_v49  ;;  %v10841_v42 = vrot.slane %v18130_v57, %v26602_v60  ;;  %v18134_v35 = vcombine.low %v23697_v56, %v7612_v32  ;;  %v10855_v4 = vrot.slane %v18132_v7, %v26602_v60  ;;  %18965 = vmatprep.subr.bf16.mxu0 %v20405_v41  ;;  %v20408_v57 = vld [vmem:[#allocation10 + $0x3b0] sm:$0xff]   ;;  %v26752_v7 = vld [vmem:[#allocation105_spill] sm:$0xff] }
 0x487   : > { %v23713_v17 = vpack.c.bf16 %v4422_v5, %v4421_v61  ;;  %v26744_v28 = vrot.slane %v23115_v63, 1  ;;  %v26745_v44 = vrot.slane %v23118_v9, 2  ;;  %v10502_v11 = vcombine.low %v10462_v52, %v10490_v31  ;;  %19020 = vmatpush3.bf16.msra.mxu1 %v20404_v6 }
 0x488   : > { %v10503_v33 = vcombine.high %v10462_v52, %v10490_v31  ;;  %v10498_v47 = vcombine.low %v10448_v30, %v10476_v36  ;;  %v10499_v39 = vcombine.high %v10448_v30, %v10476_v36  ;;  %18966 = vmatpush3.bf16.msra.mxu0 %v20407_v45  ;;  %v18136_v38 = vcombine.low %v7615_v43, %v23694_v22  ;;  %v20409_v31 = vld [vmem:[#allocation10 + $0x3f8] sm:$0xff]  }
 0x489   : > { %v23719_v18 = vor.u32 %v26745_v44, %v26744_v28  ;;  %v10869_v51 = vrot.slane %v18134_v35, %v26602_v60  ;;  %v10892_v12 = vcombine.high %v10841_v42, %v10855_v4  ;;  %v10891_v5 = vcombine.low %v10841_v42, %v10855_v4  ;;  %13553 = vmatprep.mubr.bf16.mxu0 %v10502_v11  ;;  %v20411_v4 = vld [vmem:[#allocation10 + $0x440] sm:$0xff]  }
 0x48a   : > { %13641 = vmatprep.mubr.bf16.mxu1 %v10503_v33  ;;  %v26747_v32 = vrot.slane %v23399_v25, 1  ;;  %v26749_v52 = vrot.slane %v23373_v26, 1  ;;  %v26750_v30 = vrot.slane %v23399_v25, 2  ;;  %v7841_v61 = vcombine.low %v26752_v7, %v26701_v46  ;;  %13554 = vmatmul.mubr.bf16.gmra.mrb[124].mxu0 %v10498_v47 }
 0x48b   : > { %26746 = vst [vmem:[#allocation53_spill] sm:$0xff] %v23719_v18  ;;  %v26753_v6 = vshll.u32 %v26714_v29, 16  ;;  %13642 = vmatmul.mubr.bf16.gmra.mrb[124].mxu1 %v10499_v39  ;;  %v10883_v43 = vrot.slane %v18136_v38, %v26602_v60  ;;  %v10919_v42 = vrot.slane %v10892_v12, %v26602_v60  ;;  %v10905_v35 = vrot.slane %v10891_v5, %v26602_v60 }
 0x48c   : > { %v23726_v41 = vor.u32 %v26747_v32, %v23373_v26  ;;  %v23732_v45 = vor.u32 %v26750_v30, %v26749_v52  ;;  %v4670_v28 = vshll.u32 %v22793_v21, 16  ;;  %v7842_v44 = vcombine.high %v26752_v7, %v26701_v46  ;;  %19021 = vmatprep.subr.bf16.mxu1 %v20406_v10  ;;  %v20410_v32 = vld [vmem:[#allocation10 + $0x3b8] sm:$0xff]   ;;  %v20419_v10 = vld [vmem:[#allocation10 + $0x4c0] sm:$0xff]   ;;  %19067 = vmatprep.subr.bf16.mxu0 %v20411_v4 }
 0x48d   : > { %v23738_v36 = vrot.slane %v26753_v6, 1  ;;  %v7843_v11 = vcombine.low %v22643_v58, %v26704_v2  ;;  %v7844_v33 = vcombine.high %v22643_v58, %v26704_v2  ;;  %v7855_v47 = vrot.slane %v7841_v61, %v26602_v60  ;;  %19022 = vmatpush3.bf16.msra.mxu1 %v20408_v57 }
 0x48e   : > { %26748 = vst [vmem:[#allocation56_spill] sm:$0xff] %v23726_v41  ;;  %26751 = vst [vmem:[#allocation57_spill] sm:$0xff] %v23732_v45  ;;  %v10896_v39 = vcombine.high %v10869_v51, %v10883_v43  ;;  %v10895_v38 = vcombine.low %v10869_v51, %v10883_v43  ;;  %v8183_v12 = vcombine.low %v23719_v18, %v23364_v37  ;;  %19023 = vmatprep.subr.bf16.mxu1 %v20409_v31 }
 0x48f   : > { %v8185_v5 = vcombine.low %v26685_v19, %v23726_v41  ;;  %v7862_v46 = vrot.slane %v7842_v44, %v26602_v60  ;;  %v7869_v52 = vrot.slane %v7843_v11, %v26602_v60  ;;  %v7876_v30 = vrot.slane %v7844_v33, %v26602_v60 }
 0x490   : > { %v8187_v58 = vcombine.low %v23463_v48, %v23732_v45  ;;  %v10947_v51 = vrot.slane %v10896_v39, %v26602_v60  ;;  %v10933_v61 = vrot.slane %v10895_v38, %v26602_v60  ;;  %v26754_v6 = vrot.slane %v26685_v19, 2 }
 0x491   : > { %v8197_v43 = vrot.slane %v8183_v12, %v26602_v60  ;;  %v7905_v44 = vcombine.low %v7855_v47, %v7869_v52  ;;  %v7906_v11 = vcombine.high %v7855_v47, %v7869_v52  ;;  %v7907_v9 = vcombine.low %v7862_v46, %v7876_v30  ;;  %19024 = vmatpush3.bf16.msra.mxu1 %v20410_v32 }
 0x492   : > { %v8189_v57 = vcombine.low %v26754_v6, %v23713_v17  ;;  %v8211_v33 = vrot.slane %v8185_v5, %v26602_v60  ;;  %v10959_v63 = vcombine.low %v10919_v42, %v10947_v51  ;;  %v10960_v25 = vcombine.high %v10919_v42, %v10947_v51  ;;  %19125 = vmatprep.subr.bf16.mxu1 %v20419_v10 }
 0x493   : > { %v10955_v31 = vcombine.low %v10905_v35, %v10933_v61  ;;  %v10956_v2 = vcombine.high %v10905_v35, %v10933_v61  ;;  %v7917_v39 = vrot.slane %v7905_v44, %v26602_v60  ;;  %v7924_v38 = vrot.slane %v7907_v9, %v26602_v60  ;;  %v26755_v61 = vld [vmem:[#allocation70_spill] sm:$0xff] }
 0x494   : > { %v7931_v26 = vrot.slane %v7906_v11, %v26602_v60  ;;  %v8225_v6 = vrot.slane %v8187_v58, %v26602_v60  ;;  %13561 = vmatprep.mubr.bf16.mxu0 %v10959_v63  ;;  %13649 = vmatprep.mubr.bf16.mxu1 %v10960_v25  ;;  %v8239_v4 = vrot.slane %v8189_v57, %v26602_v60  ;;  %v23772_v5 = vrot.slane %v4670_v28, 1 }
 0x495   : > { %v8247_v47 = vcombine.low %v8197_v43, %v8211_v33  ;;  %v8248_v12 = vcombine.high %v8197_v43, %v8211_v33  ;;  %13562 = vmatmul.mubr.bf16.gmra.mrb[128].mxu0 %v10955_v31  ;;  %13650 = vmatmul.mubr.bf16.gmra.mrb[128].mxu1 %v10956_v2  ;;  %v8184_v9 = vcombine.high %v23719_v18, %v23364_v37 }
 0x496   : > { %v18155_v42 = vcombine.low %v7917_v39, %v7931_v26  ;;  %v18157_v35 = vcombine.high %v7917_v39, %v7931_v26  ;;  %v8250_v46 = vcombine.low %v8225_v6, %v8239_v4  ;;  %v8186_v25 = vcombine.high %v26685_v19, %v23726_v41  ;;  %v26771_v41 = vld [vmem:[#allocation101_spill] sm:$0xff] }
 0x497   : > { %v8259_v52 = vrot.slane %v8247_v47, %v26602_v60  ;;  %v23779_v63 = vrot.slane %v8248_v12, %v26602_v60  ;;  %v8204_v26 = vrot.slane %v8184_v9, %v26602_v60  ;;  %v8251_v30 = vcombine.high %v8225_v6, %v8239_v4 }
 0x498   : > { %v11298_v28 = vrot.slane %v18155_v42, %v26602_v60  ;;  %v11312_v2 = vrot.slane %v18157_v35, %v26602_v60  ;;  %v23787_v58 = vrot.slane %v8250_v46, %v26602_v60  ;;  %v8218_v51 = vrot.slane %v8186_v25, %v26602_v60  ;;  %v26757_v25 = vld [vmem:[#allocation48_spill] sm:$0xff] }
 0x499   : > { %v18159_v10 = vcombine.low %v7924_v38, %v8259_v52  ;;  %v5124_v57 = vcombine.low %v26755_v61, %v23250_v15  ;;  %v23793_v11 = vrot.slane %v8251_v30, %v26602_v60  ;;  %v5125_v33 = vcombine.high %v26755_v61, %v23250_v15  ;;  %v26756_v38 = vld [vmem:[#allocation71_spill] sm:$0xff] }
 0x49a   : > { %v11349_v43 = vcombine.high %v11298_v28, %v11312_v2  ;;  %v11348_v44 = vcombine.low %v11298_v28, %v11312_v2  ;;  %v8296_v31 = vcombine.high %v8259_v52, %v23787_v58  ;;  %v8249_v6 = vcombine.low %v8204_v26, %v8218_v51  ;;  %v26758_v2 = vld [vmem:[#allocation45_spill] sm:$0xff] }
 0x49b   : > { %v11326_v39 = vrot.slane %v18159_v10, %v26602_v60  ;;  %v5126_v4 = vcombine.low %v26756_v38, %v23262_v0  ;;  %v8299_v42 = vcombine.high %v23779_v63, %v23793_v11  ;;  %v5154_v35 = vrot.slane %v5124_v57, %v26602_v60 }
 0x49c   : > { %v11376_v47 = vrot.slane %v11349_v43, %v26602_v60  ;;  %v11362_v12 = vrot.slane %v11348_v44, %v26602_v60  ;;  %v18161_v9 = vcombine.low %v23779_v63, %v8296_v31  ;;  %v23808_v15 = vrot.slane %v8249_v6, %v26602_v60 }
 0x49d   : > { %v5161_v46 = vrot.slane %v5126_v4, %v26602_v60  ;;  %v5168_v52 = vrot.slane %v5125_v33, %v26602_v60  ;;  %v5562_v0 = vcombine.low %v23530_v54, %v23524_v20  ;;  %v5516_v28 = vcombine.low %v26757_v25, %v23290_v27  ;;  %v26759_v27 = vld [vmem:[#allocation46_spill] sm:$0xff] }
 0x49e   : > { %v5856_v26 = vcombine.low %v26758_v2, %v23309_v40  ;;  %v5857_v30 = vcombine.high %v26758_v2, %v23309_v40  ;;  %v11340_v10 = vrot.slane %v18161_v9, %v26602_v60  ;;  %v18174_v51 = vcombine.low %v8299_v42, %v23808_v15  ;;  %v23838_v2 = vpop.f32.mrb[56].mxu0 }
 0x49f   : > { %v18032_v61 = vcombine.low %v5154_v35, %v5168_v52  ;;  %v18034_v57 = vcombine.high %v5154_v35, %v5168_v52  ;;  %v18036_v43 = vcombine.low %v5161_v46, %v23520_v8  ;;  %v18038_v44 = vcombine.high %v5562_v0, %v23520_v8 }
 0x4a0   : > { %v5551_v54 = vrot.slane %v5516_v28, %v26602_v60  ;;  %v5858_v33 = vcombine.low %v26759_v27, %v23330_v3  ;;  %v11353_v31 = vcombine.high %v11326_v39, %v11340_v10  ;;  %v11352_v6 = vcombine.low %v11326_v39, %v11340_v10  ;;  %v23840_v10 = vpop.f32.mrb[56].mxu1 }
 0x4a1   : > { %v11663_v38 = vrot.slane %v18174_v51, %v26602_v60  ;;  %v9020_v40 = vrot.slane %v18032_v61, %v26602_v60  ;;  %v9034_v4 = vrot.slane %v18034_v57, %v26602_v60  ;;  %v9048_v42 = vrot.slane %v18036_v43, %v26602_v60  ;;  %v23842_v43 = vpop.f32.mrb[57].mxu0 }
 0x4a2   : > { %v9062_v35 = vrot.slane %v18038_v44, %v26602_v60  ;;  %v5561_v9 = vcombine.low %v23538_v16, %v5551_v54  ;;  %v11404_v8 = vrot.slane %v11353_v31, %v26602_v60  ;;  %v11390_v46 = vrot.slane %v11352_v6, %v26602_v60  ;;  %v23844_v44 = vpop.f32.mrb[57].mxu1 }
 0x4a3   : > { %v11671_v52 = vcombine.high %v11663_v38, %v11663_v38  ;;  %v23836_v3 = vrot.slane %v11663_v38, %v26602_v60  ;;  %v9065_v39 = vcombine.low %v9020_v40, %v9034_v4  ;;  %v9066_v0 = vcombine.high %v9020_v40, %v9034_v4  ;;  %v23851_v38 = vpop.f32.mrb[58].mxu0  ;;  %v23853_v40 = vpop.f32.mrb[58].mxu1 }
 0x4a4   : > { %v9069_v25 = vcombine.low %v9048_v42, %v9062_v35  ;;  %v9070_v28 = vcombine.high %v9048_v42, %v9062_v35  ;;  %v11416_v51 = vcombine.low %v11376_v47, %v11404_v8  ;;  %v11417_v61 = vcombine.high %v11376_v47, %v11404_v8  ;;  %v23862_v42 = vpop.f32.mrb[59].mxu0  ;;  %v23864_v35 = vpop.f32.mrb[59].mxu1 }
 0x4a5   : > { %v11412_v57 = vcombine.low %v11362_v12, %v11390_v46  ;;  %v11413_v16 = vcombine.high %v11362_v12, %v11390_v46  ;;  %v11693_v54 = vrot.slane %v11671_v52, %v26602_v60  ;;  %v11701_v27 = vcombine.high %v23836_v3, %v23836_v3 }
 0x4a6   : > { %v9098_v31 = vrot.slane %v9066_v0, %v26602_v60  ;;  %v9126_v6 = vrot.slane %v9070_v28, %v26602_v60  ;;  %13569 = vmatprep.mubr.bf16.mxu0 %v11416_v51  ;;  %13657 = vmatprep.mubr.bf16.mxu1 %v11417_v61  ;;  %v23856_v47 = vrot.slane %v9065_v39, %v26602_v60  ;;  %v4677_v8 = vshll.u32 %v22771_v53, 16  ;;  %v23898_v39 = vpop.f32.mrb[60].mxu0 }
 0x4a7   : > { %v23859_v12 = vrot.slane %v9069_v25, %v26602_v60  ;;  %v5886_v4 = vrot.slane %v5856_v26, %v26602_v60  ;;  %13570 = vmatmul.mubr.bf16.gmra.mrb[132].mxu0 %v11412_v57  ;;  %13658 = vmatmul.mubr.bf16.gmra.mrb[132].mxu1 %v11413_v16  ;;  %v11703_v46 = vcombine.high %v11693_v54, %v11693_v54  ;;  %v26760_v57 = vld [vmem:[#allocation59_spill] sm:$0xff] }
 0x4a8   : > { %v9133_v52 = vcombine.low %v9098_v31, %v9126_v6  ;;  %v9134_v0 = vcombine.high %v9098_v31, %v9126_v6  ;;  %13577 = vmatprep.mubr.bf16.mxu0 %v11693_v54  ;;  %v5893_v25 = vrot.slane %v5858_v33, %v26602_v60  ;;  %v5900_v51 = vrot.slane %v5857_v30, %v26602_v60  ;;  %v26761_v54 = vld [vmem:[#allocation75_spill] sm:$0xff] }
 0x4a9   : > { %13665 = vmatprep.mubr.bf16.mxu1 %v11703_v46  ;;  %v18057_v61 = vcombine.high %v23524_v20, %v5561_v9  ;;  %v6200_v16 = vcombine.low %v26760_v57, %v23348_v34  ;;  %v6246_v31 = vcombine.low %v23580_v13, %v23586_v62  ;;  %v6540_v6 = vcombine.low %v26761_v54, %v23359_v24 }
 0x4aa   : > { %v18059_v28 = vcombine.low %v5886_v4, %v5900_v51  ;;  %v18061_v32 = vcombine.high %v5886_v4, %v5900_v51  ;;  %v18063_v26 = vcombine.low %v5893_v25, %v23583_v14  ;;  %v6541_v33 = vcombine.high %v26761_v54, %v23359_v24  ;;  %v26762_v51 = vld [vmem:[#allocation89_spill] sm:$0xff] }
 0x4ab   : > { %v9477_v30 = vrot.slane %v18057_v61, %v26602_v60  ;;  %v6235_v20 = vrot.slane %v6200_v16, %v26602_v60  ;;  %v6570_v9 = vrot.slane %v6540_v6, %v26602_v60  ;;  %v18082_v34 = vcombine.high %v6246_v31, %v23583_v14  ;;  %v26763_v16 = vld [vmem:[#allocation93_spill] sm:$0xff] }
 0x4ac   : > { %v9491_v13 = vrot.slane %v18059_v28, %v26602_v60  ;;  %v9505_v46 = vrot.slane %v18061_v32, %v26602_v60  ;;  %v9519_v57 = vrot.slane %v18063_v26, %v26602_v60  ;;  %v6584_v4 = vrot.slane %v6541_v33, %v26602_v60  ;;  %v23900_v32 = vpop.f32.mrb[60].mxu1 }
 0x4ad   : > { %v6245_v25 = vcombine.low %v23593_v1, %v6235_v20  ;;  %v9934_v24 = vrot.slane %v18082_v34, %v26602_v60  ;;  %v6542_v61 = vcombine.low %v26762_v51, %v23391_v23  ;;  %v6884_v54 = vcombine.low %v26763_v16, %v23394_v59  ;;  %26764 = vst [vmem:[#allocation49_spill] sm:$0xff] %v23900_v32  ;;  %v23906_v23 = vpop.f32.mrb[61].mxu0  ;;  %v23908_v59 = vpop.f32.mrb[61].mxu1  ;;  %v26783_v32 = vld [vmem:[#allocation118_spill] sm:$0xff] }
 0x4ae   : > { %v9523_v6 = vcombine.high %v9477_v30, %v9491_v13  ;;  %v9527_v14 = vcombine.high %v9505_v46, %v9519_v57  ;;  %v9522_v31 = vcombine.low %v9477_v30, %v9491_v13  ;;  %v9526_v28 = vcombine.low %v9505_v46, %v9519_v57  ;;  %26765 = vst [vmem:[#allocation73_spill] sm:$0xff] %v23906_v23 }
 0x4af   : > { %13578 = vmatmul.mubr.bf16.gmra.mrb[136].mxu0 %v23836_v3  ;;  %13666 = vmatmul.mubr.bf16.gmra.mrb[136].mxu1 %v11701_v27  ;;  %v18084_v1 = vcombine.high %v23586_v62, %v6245_v25  ;;  %v18086_v26 = vcombine.low %v6570_v9, %v6584_v4  ;;  %v18088_v33 = vcombine.high %v6570_v9, %v6584_v4  ;;  %v23904_v20 = vrot.slane %v4677_v8, 1  ;;  %v23916_v62 = vpop.f32.mrb[62].mxu0  ;;  %v23918_v27 = vpop.f32.mrb[62].mxu1 }
 0x4b0   : > { %26766 = vst [vmem:[#allocation72_spill] sm:$0xff] %v23908_v59  ;;  %13705 = vmatprep.mubr.bf16.mxu0 %v9133_v52  ;;  %13793 = vmatprep.mubr.bf16.mxu1 %v9134_v0  ;;  %v9555_v30 = vrot.slane %v9523_v6, %v26602_v60  ;;  %v9583_v34 = vrot.slane %v9527_v14, %v26602_v60  ;;  %v4684_v3 = vshll.u32 %v26715_v55, 16  ;;  %26767 = vst [vmem:[#allocation47_spill] sm:$0xff] %v23916_v62  ;;  %v23926_v46 = vpop.f32.mrb[63].mxu0  ;;  %v23928_v57 = vpop.f32.mrb[63].mxu1  ;;  %v26774_v6 = vld [vmem:[#allocation80_spill] sm:$0xff] }
 0x4b1   : > { %v23913_v13 = vrot.slane %v9522_v31, %v26602_v60  ;;  %26768 = vst [vmem:[#allocation74_spill] sm:$0xff] %v23918_v27  ;;  %v23921_v8 = vrot.slane %v9526_v28, %v26602_v60  ;;  %v9948_v9 = vrot.slane %v18084_v1, %v26602_v60  ;;  %v9962_v52 = vrot.slane %v18086_v26, %v26602_v60  ;;  %v20412_v1 = vld [vmem:[#allocation10 + $0x400] sm:$0xff]  }
 0x4b2   : > { %v9976_v0 = vrot.slane %v18088_v33, %v26602_v60  ;;  %26769 = vst [vmem:[#allocation37_spill] sm:$0xff] %v23926_v46  ;;  %26770 = vst [vmem:[#allocation41_spill] sm:$0xff] %v23928_v57  ;;  %v9590_v4 = vcombine.low %v9555_v30, %v9583_v34  ;;  %v9591_v25 = vcombine.high %v9555_v30, %v9583_v34  ;;  %v26772_v57 = vld [vmem:[#allocation99_spill] sm:$0xff]  ;;  %v26773_v27 = vld [vmem:[#allocation62_spill] sm:$0xff] }
 0x4b3   : > { %v6577_v51 = vrot.slane %v6542_v61, %v26602_v60  ;;  %v6919_v16 = vrot.slane %v6884_v54, %v26602_v60  ;;  %v9980_v31 = vcombine.high %v9934_v24, %v9948_v9  ;;  %v9979_v26 = vcombine.low %v9934_v24, %v9948_v9  ;;  %v20413_v34 = vld [vmem:[#allocation10 + $0x448] sm:$0xff]   ;;  %v26775_v46 = vld [vmem:[#allocation112_spill] sm:$0xff] }
 0x4b4   : > { %v9984_v28 = vcombine.high %v9962_v52, %v9976_v0  ;;  %v9983_v33 = vcombine.low %v9962_v52, %v9976_v0  ;;  %v6930_v30 = vcombine.low %v26773_v27, %v26772_v57  ;;  %v7224_v14 = vcombine.low %v26775_v46, %v26774_v6  ;;  %v26776_v27 = vld [vmem:[#allocation102_spill] sm:$0xff] }
 0x4b5   : > { %v6929_v7 = vcombine.low %v26771_v41, %v6919_v16  ;;  %v23940_v61 = vrot.slane %v9980_v31, %v26602_v60  ;;  %v7225_v62 = vcombine.high %v26775_v46, %v26774_v6  ;;  %v23950_v24 = vrot.slane %v9979_v26, %v26602_v60  ;;  %v20420_v0 = vld [vmem:[#allocation10 + $0x480] sm:$0xff]  }
 0x4b6   : > { %v23943_v54 = vrot.slane %v9984_v28, %v26602_v60  ;;  %v23953_v41 = vrot.slane %v9983_v33, %v26602_v60  ;;  %v18107_v9 = vcombine.low %v6577_v51, %v26776_v27  ;;  %v18109_v52 = vcombine.high %v6930_v30, %v26776_v27  ;;  %v20423_v51 = vld [vmem:[#allocation10 + $0x4c8] sm:$0xff]   ;;  %v26779_v27 = vld [vmem:[#allocation44_spill] sm:$0xff]  ;;  %v26781_v30 = vld [vmem:[#allocation113_spill] sm:$0xff] }
 0x4b7   : > { %v26777_v16 = vcombine.low %v23856_v47, %v23859_v12  ;;  %v26778_v31 = vcombine.high %v23856_v47, %v23859_v12  ;;  %v7254_v28 = vrot.slane %v7224_v14, %v26602_v60  ;;  %v23968_v26 = vrot.slane %v4684_v3, 1  ;;  %v20414_v33 = vld [vmem:[#allocation10 + $0x408] sm:$0xff]  }
 0x4b8   : > { %v10047_v46 = vcombine.low %v23940_v61, %v23943_v54  ;;  %v10048_v6 = vcombine.high %v23940_v61, %v23943_v54  ;;  %v7268_v12 = vrot.slane %v7225_v62, %v26602_v60  ;;  %v20415_v61 = vld [vmem:[#allocation10 + $0x450] sm:$0xff]   ;;  %v18111_v14 = vcombine.high %v26772_v57, %v6929_v7  ;;  %v26782_v47 = vld [vmem:[#allocation78_spill] sm:$0xff] }
 0x4b9   : > { %13706 = vmatmul.mubr.bf16.vlgmr.msra.gmra.mrb[140].mxu0 %v26777_v16  ;;  %13794 = vmatmul.mubr.bf16.vlgmr.msra.gmra.mrb[140].mxu1 %v26778_v31  ;;  %v10391_v3 = vrot.slane %v18107_v9, %v26602_v60  ;;  %v26780_v31 = vld [vmem:[#allocation86_spill] sm:$0xff]  ;;  %v7568_v62 = vcombine.low %v26783_v32, %v26782_v47  ;;  %v20416_v47 = vld [vmem:[#allocation10 + $0x410] sm:$0xff]  }
 0x4ba   : > { %19068 = vmatpush3.bf16.msra.mxu0 %v20412_v1  ;;  %13713 = vmatprep.mubr.bf16.mxu0 %v9590_v4  ;;  %v10405_v4 = vrot.slane %v18109_v52, %v26602_v60  ;;  %v4698_v1 = vshll.u32 %v26779_v27, 16  ;;  %v18113_v54 = vcombine.low %v7254_v28, %v7268_v12  ;;  %v7226_v59 = vcombine.low %v26781_v30, %v26780_v31 }
 0x4bb   : > { %13801 = vmatprep.mubr.bf16.mxu1 %v9591_v25  ;;  %19069 = vmatprep.subr.bf16.mxu0 %v20413_v34  ;;  %v7614_v25 = vcombine.low %v23697_v56, %v23703_v49  ;;  %v20424_v34 = vld [vmem:[#allocation10 + $0x488] sm:$0xff]   ;;  %v10419_v7 = vrot.slane %v18111_v14, %v26602_v60  ;;  %v18131_v16 = vcombine.high %v7254_v28, %v7268_v12 }
 0x4bc   : > { %19126 = vmatpush3.bf16.msra.mxu1 %v20420_v0  ;;  %v10437_v57 = vcombine.high %v10391_v3, %v10405_v4  ;;  %v10436_v9 = vcombine.low %v10391_v3, %v10405_v4  ;;  %v10433_v52 = vrot.slane %v18113_v54, %v26602_v60  ;;  %v7261_v23 = vrot.slane %v7226_v59, %v26602_v60  ;;  %v20417_v59 = vld [vmem:[#allocation10 + $0x458] sm:$0xff]  }
 0x4bd   : > { %19127 = vmatprep.subr.bf16.mxu1 %v20423_v51  ;;  %v7603_v30 = vrot.slane %v7568_v62, %v26602_v60  ;;  %v18135_v32 = vcombine.high %v7614_v25, %v23700_v50  ;;  %v10848_v28 = vrot.slane %v18131_v16, %v26602_v60  ;;  %v20425_v51 = vld [vmem:[#allocation10 + $0x4d0] sm:$0xff]   ;;  %v26785_v54 = vcombine.low %v23913_v13, %v23921_v8 }
 0x4be   : > { %19070 = vmatpush3.bf16.msra.mxu0 %v20414_v33  ;;  %v23992_v56 = vrot.slane %v10437_v57, %v26602_v60  ;;  %v23995_v0 = vrot.slane %v10436_v9, %v26602_v60  ;;  %v26784_v33 = vld [vmem:[#allocation108_spill] sm:$0xff]  ;;  %v10441_v14 = vcombine.high %v10419_v7, %v10433_v52  ;;  %v10440_v3 = vcombine.low %v10419_v7, %v10433_v52  ;;  %v26787_v9 = vld [vmem:[#allocation43_spill] sm:$0xff] }
 0x4bf   : > { %19071 = vmatprep.subr.bf16.mxu0 %v20415_v61  ;;  %v7845_v12 = vcombine.low %v26784_v33, %v23719_v18  ;;  %v7613_v4 = vcombine.low %v23694_v22, %v7603_v30  ;;  %v18133_v61 = vcombine.low %v7261_v23, %v23700_v50  ;;  %v26786_v31 = vcombine.high %v23913_v13, %v23921_v8  ;;  %v20426_v22 = vld [vmem:[#allocation10 + $0x490] sm:$0xff]   ;;  %v24015_v50 = vpop.f32.mrb[64].mxu0  ;;  %v24017_v23 = vpop.f32.mrb[64].mxu1  ;;  %v20429_v57 = vld [vmem:[#allocation10 + $0x4d8] sm:$0xff]  }
 0x4c0   : > { %19128 = vmatpush3.bf16.msra.mxu1 %v20424_v34  ;;  %v10876_v16 = vrot.slane %v18135_v32, %v26602_v60  ;;  %v7846_v62 = vcombine.high %v26784_v33, %v23719_v18  ;;  %v7847_v25 = vcombine.low %v23364_v37, %v26685_v19  ;;  %v24013_v7 = vrot.slane %v4698_v1, 1  ;;  %v24025_v30 = vpop.f32.mrb[65].mxu0  ;;  %v24027_v1 = vpop.f32.mrb[65].mxu1  ;;  %v20418_v32 = vld [vmem:[#allocation10 + $0x418] sm:$0xff]  }
 0x4c1   : > { %13714 = vmatmul.mubr.bf16.gmra.mrb[144].mxu0 %v26785_v54  ;;  %13802 = vmatmul.mubr.bf16.gmra.mrb[144].mxu1 %v26786_v31  ;;  %v10497_v13 = vrot.slane %v10441_v14, %v26602_v60  ;;  %v24021_v8 = vrot.slane %v10440_v3, %v26602_v60  ;;  %v18137_v34 = vcombine.high %v23703_v49, %v7613_v4  ;;  %v4705_v14 = vshll.u32 %v26787_v9, 16  ;;  %v24034_v49 = vpop.f32.mrb[66].mxu0  ;;  %v24036_v3 = vpop.f32.mrb[66].mxu1 }
 0x4c2   : > { %13721 = vmatprep.mubr.bf16.mxu0 %v10047_v46  ;;  %13809 = vmatprep.mubr.bf16.mxu1 %v10048_v6  ;;  %v10862_v54 = vrot.slane %v18133_v61, %v26602_v60  ;;  %v7848_v46 = vcombine.high %v23364_v37, %v26685_v19  ;;  %v7883_v6 = vrot.slane %v7845_v12, %v26602_v60  ;;  %v20421_v37 = vld [vmem:[#allocation10 + $0x460] sm:$0xff]   ;;  %v24044_v61 = vpop.f32.mrb[67].mxu0  ;;  %v24046_v12 = vpop.f32.mrb[67].mxu1 }
 0x4c3   : > { %19072 = vmatpush3.bf16.msra.mxu0 %v20416_v47  ;;  %19129 = vmatprep.subr.bf16.mxu1 %v20425_v51  ;;  %26788 = vst [vmem:[#allocation58_spill] sm:$0xff] %v24036_v3  ;;  %v10504_v4 = vcombine.low %v23992_v56, %v10497_v13  ;;  %v10505_v31 = vcombine.high %v23992_v56, %v10497_v13 }
 0x4c4   : > { %19073 = vmatprep.subr.bf16.mxu0 %v20417_v59  ;;  %v10890_v52 = vrot.slane %v18137_v34, %v26602_v60  ;;  %v10894_v18 = vcombine.high %v10848_v28, %v10862_v54  ;;  %v10893_v33 = vcombine.low %v10848_v28, %v10862_v54  ;;  %v7890_v3 = vrot.slane %v7846_v62, %v26602_v60  ;;  %v20422_v28 = vld [vmem:[#allocation10 + $0x420] sm:$0xff]  }
 0x4c5   : > { %19130 = vmatpush3.bf16.msra.mxu1 %v20426_v22  ;;  %v7897_v56 = vrot.slane %v7847_v25, %v26602_v60  ;;  %v7904_v59 = vrot.slane %v7848_v46, %v26602_v60  ;;  %v8298_v13 = vcombine.low %v23779_v63, %v23793_v11  ;;  %v8188_v51 = vcombine.high %v23463_v48, %v23732_v45 }
 0x4c6   : > { %19131 = vmatprep.subr.bf16.mxu1 %v20429_v57  ;;  %v10898_v47 = vcombine.high %v10876_v16, %v10890_v52  ;;  %v24057_v34 = vrot.slane %v10894_v18, %v26602_v60  ;;  %v10897_v54 = vcombine.low %v10876_v16, %v10890_v52  ;;  %v24060_v62 = vrot.slane %v10893_v33, %v26602_v60  ;;  %v20427_v57 = vld [vmem:[#allocation10 + $0x468] sm:$0xff]   ;;  %v20430_v52 = vld [vmem:[#allocation10 + $0x498] sm:$0xff]  }
 0x4c7   : > { %19074 = vmatpush3.bf16.msra.mxu0 %v20418_v32  ;;  %v7908_v25 = vcombine.low %v7883_v6, %v7897_v56  ;;  %v7909_v22 = vcombine.high %v7883_v6, %v7897_v56  ;;  %v7910_v46 = vcombine.low %v7890_v3, %v7904_v59  ;;  %v18162_v63 = vcombine.high %v8298_v13, %v23787_v58  ;;  %v20435_v56 = vld [vmem:[#allocation10 + $0x4e8] sm:$0xff]  }
 0x4c8   : > { %19075 = vmatprep.subr.bf16.mxu0 %v20421_v37  ;;  %v26789_v45 = vcombine.low %v23950_v24, %v23953_v41  ;;  %v26790_v18 = vcombine.high %v23950_v24, %v23953_v41  ;;  %v10954_v16 = vrot.slane %v10898_v47, %v26602_v60  ;;  %v24071_v33 = vrot.slane %v10897_v54, %v26602_v60  ;;  %v20431_v41 = vld [vmem:[#allocation10 + $0x4e0] sm:$0xff]  }
 0x4c9   : > { %v26791_v32 = vrot.slane %v26685_v19, 2  ;;  %v24076_v3 = vrot.slane %v4705_v14, 1  ;;  %v7945_v37 = vrot.slane %v7910_v46, %v26602_v60  ;;  %v7952_v24 = vrot.slane %v7909_v22, %v26602_v60  ;;  %v26792_v47 = vld [vmem:[#allocation54_spill] sm:$0xff]  ;;  %v20432_v46 = vld [vmem:[#allocation10 + $0x470] sm:$0xff]   ;;  %19132 = vmatpush3.bf16.msra.mxu1 %v20430_v52 }
 0x4ca   : > { %13722 = vmatmul.mubr.bf16.gmra.mrb[148].mxu0 %v26789_v45  ;;  %13810 = vmatmul.mubr.bf16.gmra.mrb[148].mxu1 %v26790_v18  ;;  %v7938_v45 = vrot.slane %v7908_v25, %v26602_v60  ;;  %v10961_v59 = vcombine.low %v24057_v34, %v10954_v16  ;;  %v10962_v13 = vcombine.high %v24057_v34, %v10954_v16  ;;  %v24090_v18 = vld [vmem:[#allocation11] ss:$0 sm:$0xff] }
 0x4cb   : > { %v8190_v6 = vcombine.high %v26791_v32, %v23713_v17  ;;  %13729 = vmatprep.mubr.bf16.mxu0 %v10504_v4  ;;  %13817 = vmatprep.mubr.bf16.mxu1 %v10505_v31  ;;  %v10957_v19 = vcombine.low %v24060_v62, %v24071_v33  ;;  %v10958_v14 = vcombine.high %v24060_v62, %v24071_v33  ;;  %v20428_v4 = vld [vmem:[#allocation10 + $0x428] sm:$0xff]   ;;  %v20433_v52 = vld [vmem:[#allocation10 + $0x4a0] sm:$0xff]  }
 0x4cc   : > { %19076 = vmatpush3.bf16.msra.mxu0 %v20422_v28  ;;  %v18156_v31 = vcombine.low %v7938_v45, %v7952_v24  ;;  %v18158_v54 = vcombine.high %v7938_v45, %v7952_v24  ;;  %v18160_v25 = vcombine.low %v7945_v37, %v23787_v58  ;;  %v11347_v22 = vrot.slane %v18162_v63, %v26602_v60 }
 0x4cd   : > { %19077 = vmatprep.subr.bf16.mxu0 %v20427_v57  ;;  %v8232_v34 = vrot.slane %v8188_v51, %v26602_v60  ;;  %v8246_v28 = vrot.slane %v8190_v6, %v26602_v60  ;;  %v18621_v16 = vadd.f32 %v23842_v43, %v23838_v2  ;;  %v18679_v32 = vadd.f32 %v23844_v44, %v23840_v10  ;;  %v20434_v6 = vld [vmem:[#allocation10 + $0x430] sm:$0xff]   ;;  %v26794_v43 = vld [vmem:[#allocation66_spill] sm:$0xff] }
 0x4ce   : > { %v11305_v45 = vrot.slane %v18156_v31, %v26602_v60  ;;  %v11319_v58 = vrot.slane %v18158_v54, %v26602_v60  ;;  %v11333_v63 = vrot.slane %v18160_v25, %v26602_v60  ;;  %19133 = vmatprep.subr.bf16.mxu1 %v20431_v41  ;;  %v18624_v57 = vadd.f32 %v23862_v42, %v23851_v38  ;;  %v26793_v10 = vld [vmem:[#allocation35_spill] sm:$0xff]  ;;  %v20437_v38 = vld [vmem:[#allocation10 + $0x478] sm:$0xff]  }
 0x4cf   : > { %v8252_v51 = vcombine.low %v8232_v34, %v8246_v28  ;;  %v13180_v37 = vadd.f32 %v18621_v16, %v24090_v18  ;;  %v18682_v2 = vadd.f32 %v23864_v35, %v23853_v40  ;;  %v26795_v44 = vrot.slane %v26794_v43, 7  ;;  %19134 = vmatpush3.bf16.msra.mxu1 %v20433_v52 }
 0x4d0   : > { %19078 = vmatpush3.bf16.msra.mxu0 %v20428_v4  ;;  %v11351_v31 = vcombine.high %v11305_v45, %v11319_v58  ;;  %v11355_v54 = vcombine.high %v11333_v63, %v11347_v22  ;;  %v11350_v25 = vcombine.low %v11305_v45, %v11319_v58  ;;  %v11354_v41 = vcombine.low %v11333_v63, %v11347_v22  ;;  %v24124_v58 = vpop.f32.mrb[68].mxu0  ;;  %v20439_v63 = vld [vmem:[#allocation10 + $0x438] sm:$0xff]  }
 0x4d1   : > { %v4610_v24 = vor.u32 %v26795_v44, %v26793_v10  ;;  %19079 = vmatprep.subr.bf16.mxu0 %v20432_v46  ;;  %v26796_v42 = vcombine.low %v23995_v0, %v24021_v8  ;;  %v26797_v4 = vcombine.high %v23995_v0, %v24021_v8  ;;  %v8287_v40 = vrot.slane %v8252_v51, %v26602_v60  ;;  %v24126_v0 = vpop.f32.mrb[68].mxu1  ;;  %v24135_v51 = vpop.f32.mrb[69].mxu0  ;;  %v20438_v44 = vld [vmem:[#allocation10 + $0x4f0] sm:$0xff]  }
 0x4d2   : > { %v24116_v35 = vadd.f32 %v18679_v32, %v13180_v37  ;;  %v13183_v34 = vadd.f32 %v18624_v57, %v24090_v18  ;;  %v11383_v22 = vrot.slane %v11351_v31, %v26602_v60  ;;  %v11411_v46 = vrot.slane %v11355_v54, %v26602_v60  ;;  %v24137_v37 = vpop.f32.mrb[69].mxu1  ;;  %19135 = vmatprep.subr.bf16.mxu1 %v20435_v56  ;;  %v24142_v54 = vpop.f32.mrb[70].mxu0  ;;  %v26803_v56 = vld [vmem:[#allocation63_spill] sm:$0xff] }
 0x4d3   : > { %13730 = vmatmul.mubr.bf16.gmra.mrb[152].mxu0 %v26796_v42  ;;  %13818 = vmatmul.mubr.bf16.gmra.mrb[152].mxu1 %v26797_v4  ;;  %v4689_v28 = vshrl.u32 %v4610_v24, 16  ;;  %v24122_v16 = vrot.slane %v11350_v25, %v26602_v60  ;;  %v4691_v45 = vshll.u32 %v4610_v24, 16  ;;  %v24129_v8 = vrot.slane %v11354_v41, %v26602_v60  ;;  %v26800_v24 = vld [vmem:[#allocation52_spill] sm:$0xff]  ;;  %v26805_v4 = vld [vmem:[#allocation97_spill] sm:$0xff] }
 0x4d4   : > { %26798 = vst [vmem:[#allocation50_spill] sm:$0xff] %v24116_v35  ;;  %13737 = vmatprep.mubr.bf16.mxu0 %v10961_v59  ;;  %13825 = vmatprep.mubr.bf16.mxu1 %v10962_v13  ;;  %v8297_v32 = vcombine.low %v23808_v15, %v8287_v40  ;;  %v20436_v59 = vld [vmem:[#allocation10 + $0x4a8] sm:$0xff]   ;;  %v24132_v13 = vadd.f32 %v18682_v2, %v13183_v34  ;;  %v4712_v57 = vshll.u32 %v26792_v47, 16  ;;  %v26801_v31 = vshrl.u32 %v26800_v24, 16  ;;  %v24144_v2 = vpop.f32.mrb[70].mxu1  ;;  %v24154_v34 = vpop.f32.mrb[71].mxu0 }
 0x4d5   : > { %19080 = vmatpush3.bf16.msra.mxu0 %v20434_v6  ;;  %v11418_v10 = vcombine.low %v11383_v22, %v11411_v46  ;;  %v11419_v43 = vcombine.high %v11383_v22, %v11411_v46  ;;  %v26802_v15 = vld [vmem:[#allocation103_spill] sm:$0xff]  ;;  %v4693_v6 = vrot.slane %v4691_v45, 1  ;;  %v11414_v25 = vcombine.low %v24122_v16, %v24129_v8  ;;  %v24156_v22 = vpop.f32.mrb[71].mxu1  ;;  %19136 = vmatpush3.bf16.msra.mxu1 %v20436_v59 }
 0x4d6   : > { %26799 = vst [vmem:[#allocation39_spill] sm:$0xff] %v24132_v13  ;;  %19081 = vmatprep.subr.bf16.mxu0 %v20437_v38  ;;  %v4645_v52 = vor.u32 %v26802_v15, %v26801_v31  ;;  %v18175_v42 = vcombine.high %v23793_v11, %v8297_v32  ;;  %v26804_v38 = vshrl.u32 %v26803_v56, 16  ;;  %v26806_v46 = vshrl.u32 %v26714_v29, 16  ;;  %19137 = vmatprep.subr.bf16.mxu1 %v20438_v44  ;;  %v26818_v44 = vld [vmem:[#allocation51_spill] sm:$0xff] }
 0x4d7   : > { %v26807_v31 = vshrl.u32 %v22793_v21, 16  ;;  %v26809_v41 = vshrl.u32 %v22771_v53, 16  ;;  %v26811_v32 = vshrl.u32 %v26715_v55, 16  ;;  %v24177_v29 = vor.u32 %v4693_v6, %v4689_v28  ;;  %v20440_v53 = vld [vmem:[#allocation10 + $0x4b0] sm:$0xff]  }
 0x4d8   : > { %v4652_v40 = vor.u32 %v26805_v4, %v26804_v38  ;;  %v4659_v45 = vor.u32 %v23738_v36, %v26806_v46  ;;  %v11670_v38 = vrot.slane %v18175_v42, %v26602_v60  ;;  %v26814_v36 = vshrl.u32 %v26779_v27, 16 }
 0x4d9   : > { %v24164_v15 = vor.u32 %v23772_v5, %v26807_v31  ;;  %v24169_v11 = vor.u32 %v23904_v20, %v26809_v41  ;;  %v24174_v56 = vor.u32 %v23968_v26, %v26811_v32  ;;  %19082 = vmatpush3.bf16.msra.mxu0 %v20439_v63  ;;  %26813 = vst [vmem:[#allocation88_spill] sm:$0xff] %v24177_v29  ;;  %v24184_v4 = vrot.slane %v4712_v57, 1  ;;  %v20441_v63 = vld [vmem:[#allocation10 + $0x4f8] sm:$0xff]   ;;  %v20443_v57 = vld [vmem:[#allocation10 + $0x540] sm:$0xff]  }
 0x4da   : > { %v24182_v5 = vor.u32 %v24013_v7, %v26814_v36  ;;  %v26816_v55 = vshrl.u32 %v26787_v9, 16  ;;  %v5174_v26 = vcombine.low %v26800_v24, %v4645_v52  ;;  %v5175_v59 = vcombine.high %v26800_v24, %v4645_v52  ;;  %19138 = vmatpush3.bf16.msra.mxu1 %v20440_v53  ;;  %v20451_v31 = vld [vmem:[#allocation10 + $0x5c0] sm:$0xff]   ;;  %19183 = vmatprep.subr.bf16.mxu0 %v20443_v57 }
 0x4db   : > { %26808 = vst [vmem:[#allocation68_spill] sm:$0xff] %v24164_v15  ;;  %26810 = vst [vmem:[#allocation40_spill] sm:$0xff] %v24169_v11  ;;  %v5176_v28 = vcombine.low %v4652_v40, %v4659_v45  ;;  %13738 = vmatmul.mubr.bf16.gmra.mrb[156].mxu0 %v10957_v19  ;;  %13826 = vmatmul.mubr.bf16.gmra.mrb[156].mxu1 %v10958_v14  ;;  %v11672_v7 = vcombine.high %v11670_v38, %v11670_v38  ;;  %v4724_v6 = vshrl.u32 %v26818_v44, 16 }
 0x4dc   : > { %26812 = vst [vmem:[#allocation60_spill] sm:$0xff] %v24174_v56  ;;  %26815 = vst [vmem:[#allocation94_spill] sm:$0xff] %v24182_v5  ;;  %v24189_v20 = vor.u32 %v24076_v3, %v26816_v55  ;;  %v24200_v9 = vrot.slane %v11670_v38, %v26602_v60  ;;  %v5177_v3 = vcombine.high %v4652_v40, %v4659_v45  ;;  %13745 = vmatprep.mubr.bf16.mxu0 %v11418_v10  ;;  %v20442_v10 = vld [vmem:[#allocation10 + $0x4b8] sm:$0xff]  }
 0x4dd   : > { %13833 = vmatprep.mubr.bf16.mxu1 %v11419_v43  ;;  %v5188_v24 = vrot.slane %v5174_v26, %v26602_v60  ;;  %v5195_v52 = vrot.slane %v5175_v59, %v26602_v60  ;;  %v5202_v19 = vrot.slane %v5176_v28, %v26602_v60  ;;  %v4726_v41 = vshll.u32 %v26818_v44, 16  ;;  %19139 = vmatprep.subr.bf16.mxu1 %v20441_v63 }
 0x4de   : > { %26817 = vst [vmem:[#allocation92_spill] sm:$0xff] %v24189_v20  ;;  %v11700_v62 = vrot.slane %v11672_v7, %v26602_v60  ;;  %v11702_v33 = vcombine.high %v24200_v9, %v24200_v9  ;;  %v5209_v14 = vrot.slane %v5177_v3, %v26602_v60  ;;  %v5564_v42 = vcombine.low %v22793_v21, %v24164_v15  ;;  %v26819_v3 = vld [vmem:[#allocation73_spill] sm:$0xff] }
 0x4df   : > { %v5238_v43 = vcombine.low %v5188_v24, %v5202_v19  ;;  %v5239_v40 = vcombine.high %v5188_v24, %v5202_v19  ;;  %v5566_v46 = vcombine.low %v24169_v11, %v24174_v56  ;;  %v5568_v45 = vcombine.low %v24177_v29, %v26779_v27  ;;  %v26821_v19 = vld [vmem:[#allocation72_spill] sm:$0xff]  ;;  %19140 = vmatpush3.bf16.msra.mxu1 %v20442_v10  ;;  %v26824_v10 = vld [vmem:[#allocation37_spill] sm:$0xff] }
 0x4e0   : > { %v11704_v32 = vcombine.high %v11700_v62, %v11700_v62  ;;  %v5240_v38 = vcombine.low %v5195_v52, %v5209_v14  ;;  %v5570_v36 = vcombine.low %v24182_v5, %v24189_v20  ;;  %v5578_v55 = vrot.slane %v5564_v42, %v26602_v60  ;;  %v26820_v52 = vld [vmem:[#allocation49_spill] sm:$0xff]  ;;  %19241 = vmatprep.subr.bf16.mxu1 %v20451_v31 }
 0x4e1   : > { %v5250_v53 = vrot.slane %v5238_v43, %v26602_v60  ;;  %v5264_v26 = vrot.slane %v5239_v40, %v26602_v60  ;;  %v5592_v59 = vrot.slane %v5566_v46, %v26602_v60  ;;  %v24224_v28 = vrot.slane %v5568_v45, %v26602_v60 }
 0x4e2   : > { %v5257_v63 = vrot.slane %v5240_v38, %v26602_v60  ;;  %v24228_v7 = vrot.slane %v5570_v36, %v26602_v60  ;;  %v18627_v24 = vadd.f32 %v26819_v3, %v23898_v39  ;;  %v18685_v57 = vadd.f32 %v26821_v19, %v26820_v52  ;;  %v26823_v38 = vld [vmem:[#allocation47_spill] sm:$0xff] }
 0x4e3   : > { %v5628_v14 = vcombine.low %v5578_v55, %v5592_v59  ;;  %v5629_v42 = vcombine.high %v5578_v55, %v5592_v59  ;;  %v18039_v43 = vcombine.low %v5250_v53, %v5264_v26  ;;  %v18041_v40 = vcombine.high %v5250_v53, %v5264_v26  ;;  %13746 = vmatmul.mubr.bf16.gmra.mrb[160].mxu0 %v11414_v25 }
 0x4e4   : > { %v26822_v46 = vcombine.high %v24122_v16, %v24129_v8  ;;  %v5631_v39 = vcombine.low %v24224_v28, %v24228_v7  ;;  %v13188_v45 = vadd.f32 %v18627_v24, %v24090_v18  ;;  %v18630_v36 = vadd.f32 %v26824_v10, %v26823_v38  ;;  %13753 = vmatprep.mubr.bf16.mxu0 %v11700_v62  ;;  %v26826_v16 = vld [vmem:[#allocation38_spill] sm:$0xff]  ;;  %v26830_v24 = vld [vmem:[#allocation41_spill] sm:$0xff] }
 0x4e5   : > { %v4728_v55 = vrot.slane %v4726_v41, 1  ;;  %v5640_v31 = vrot.slane %v5628_v14, %v26602_v60  ;;  %v24247_v53 = vrot.slane %v5629_v42, %v26602_v60  ;;  %v9149_v25 = vrot.slane %v18039_v43, %v26602_v60 }
 0x4e6   : > { %13834 = vmatmul.mubr.bf16.gmra.mrb[160].mxu1 %v26822_v46  ;;  %v4731_v8 = vshrl.u32 %v26826_v16, 16  ;;  %v24252_v26 = vrot.slane %v5631_v39, %v26602_v60  ;;  %v9163_v59 = vrot.slane %v18041_v40, %v26602_v60  ;;  %v24255_v3 = vadd.f32 %v18685_v57, %v13188_v45  ;;  %v24269_v40 = vpop.f32.mrb[72].mxu0  ;;  %v24271_v45 = vpop.f32.mrb[72].mxu1 }
 0x4e7   : > { %13841 = vmatprep.mubr.bf16.mxu1 %v11704_v32  ;;  %26825 = vst [vmem:[#allocation90_spill] sm:$0xff] %v24247_v53  ;;  %v13191_v41 = vadd.f32 %v18630_v36, %v24090_v18  ;;  %v18043_v62 = vcombine.low %v5257_v63, %v5640_v31  ;;  %v26829_v32 = vld [vmem:[#allocation74_spill] sm:$0xff]  ;;  %v26831_v19 = vshrl.u32 %v26792_v47, 16  ;;  %v24265_v42 = vor.u32 %v4728_v55, %v4724_v6  ;;  %v26835_v47 = vld [vmem:[#allocation55_spill] sm:$0xff]  ;;  %v24278_v6 = vpop.f32.mrb[73].mxu0  ;;  %v24280_v36 = vpop.f32.mrb[73].mxu1 }
 0x4e8   : > { %26827 = vst [vmem:[#allocation91_spill] sm:$0xff] %v24252_v26  ;;  %26828 = vst [vmem:[#allocation110_spill] sm:$0xff] %v24255_v3  ;;  %v18688_v52 = vadd.f32 %v26830_v24, %v26829_v32  ;;  %v5677_v43 = vcombine.high %v5640_v31, %v24252_v26  ;;  %v9199_v46 = vcombine.low %v9149_v25, %v9163_v59  ;;  %v4733_v57 = vshll.u32 %v26826_v16, 16  ;;  %v26845_v3 = vld [vmem:[#allocation83_spill] sm:$0xff] }
 0x4e9   : > { %v24263_v14 = vor.u32 %v24184_v4, %v26831_v19  ;;  %26833 = vst [vmem:[#allocation116_spill] sm:$0xff] %v24265_v42  ;;  %v9200_v39 = vcombine.high %v9149_v25, %v9163_v59  ;;  %v9177_v63 = vrot.slane %v18043_v62, %v26602_v60  ;;  %v4738_v10 = vshrl.u32 %v26835_v47, 16  ;;  %v24285_v59 = vpop.f32.mrb[74].mxu0  ;;  %v24287_v62 = vpop.f32.mrb[74].mxu1 }
 0x4ea   : > { %v24274_v38 = vadd.f32 %v18688_v52, %v13191_v41  ;;  %v4740_v4 = vshll.u32 %v26835_v47, 16  ;;  %v18045_v55 = vcombine.low %v24247_v53, %v5677_v43  ;;  %v9213_v25 = vrot.slane %v9199_v46, %v26602_v60  ;;  %v24295_v19 = vpop.f32.mrb[75].mxu0  ;;  %v24297_v43 = vpop.f32.mrb[75].mxu1  ;;  %v26837_v47 = vld [vmem:[#allocation76_spill] sm:$0xff] }
 0x4eb   : > { %26832 = vst [vmem:[#allocation111_spill] sm:$0xff] %v24263_v14  ;;  %v9227_v31 = vrot.slane %v9200_v39, %v26602_v60  ;;  %v4735_v16 = vrot.slane %v4733_v57, 1  ;;  %v5565_v32 = vcombine.high %v22793_v21, %v24164_v15  ;;  %v5567_v24 = vcombine.high %v24169_v11, %v24174_v56  ;;  %13754 = vmatmul.mubr.bf16.gmra.mrb[164].mxu0 %v24200_v9  ;;  %v20449_v15 = vld [vmem:[#allocation10 + $0x558] sm:$0xff]   ;;  %v26848_v11 = vld [vmem:[#allocation87_spill] sm:$0xff] }
 0x4ec   : > { %26834 = vst [vmem:[#allocation115_spill] sm:$0xff] %v24274_v38  ;;  %v4742_v41 = vrot.slane %v4740_v4, 1  ;;  %v5632_v52 = vcombine.high %v24224_v28, %v24228_v7  ;;  %v9191_v46 = vrot.slane %v18045_v55, %v26602_v60  ;;  %v5906_v57 = vcombine.low %v26779_v27, %v24182_v5 }
 0x4ed   : > { %v24304_v39 = vor.u32 %v4735_v16, %v4731_v8  ;;  %v4613_v4 = vrot.slane %v26837_v47, 7  ;;  %v5585_v7 = vrot.slane %v5565_v32, %v26602_v60  ;;  %v5599_v56 = vrot.slane %v5567_v24, %v26602_v60 }
 0x4ee   : > { %13842 = vmatmul.mubr.bf16.gmra.mrb[164].mxu1 %v11702_v33  ;;  %v24309_v28 = vor.u32 %v4742_v41, %v4738_v10  ;;  %v24314_v38 = vrot.slane %v5632_v52, %v26602_v60  ;;  %v9203_v9 = vcombine.low %v9177_v63, %v9191_v46  ;;  %v9204_v33 = vcombine.high %v9177_v63, %v9191_v46 }
 0x4ef   : > { %26836 = vst [vmem:[#allocation114_spill] sm:$0xff] %v24304_v39  ;;  %v5907_v8 = vcombine.high %v26779_v27, %v24182_v5  ;;  %v5908_v55 = vcombine.low %v24189_v20, %v24263_v14  ;;  %v5630_v16 = vcombine.low %v5585_v7, %v5599_v56  ;;  %v5909_v41 = vcombine.high %v24189_v20, %v24263_v14 }
 0x4f0   : > { %26838 = vst [vmem:[#allocation117_spill] sm:$0xff] %v24309_v28  ;;  %26839 = vst [vmem:[#allocation70_spill] sm:$0xff] %v24314_v38  ;;  %v5680_v10 = vcombine.high %v24247_v53, %v24314_v38  ;;  %v5920_v32 = vrot.slane %v5906_v57, %v26602_v60  ;;  %v9255_v24 = vrot.slane %v9204_v33, %v26602_v60  ;;  %v4761_v38 = vshll.u32 %v26845_v3, 16 }
 0x4f1   : > { %v9241_v52 = vrot.slane %v9203_v9, %v26602_v60  ;;  %v5927_v63 = vrot.slane %v5907_v8, %v26602_v60  ;;  %v5934_v46 = vrot.slane %v5908_v55, %v26602_v60  ;;  %v24330_v47 = vrot.slane %v5630_v16, %v26602_v60  ;;  %v20444_v9 = vld [vmem:[#allocation10 + $0x500] sm:$0xff]   ;;  %v20445_v16 = vld [vmem:[#allocation10 + $0x548] sm:$0xff]  }
 0x4f2   : > { %v5941_v56 = vrot.slane %v5909_v41, %v26602_v60  ;;  %v6248_v7 = vcombine.low %v26818_v44, %v24265_v42  ;;  %v6250_v14 = vcombine.low %v24304_v39, %v24309_v28  ;;  %v9267_v57 = vcombine.low %v9227_v31, %v9255_v24 }
 0x4f3   : > { %26840 = vst [vmem:[#allocation71_spill] sm:$0xff] %v24330_v47  ;;  %v9268_v5 = vcombine.high %v9227_v31, %v9255_v24  ;;  %v9263_v33 = vcombine.low %v9213_v25, %v9241_v52  ;;  %v9264_v20 = vcombine.high %v9213_v25, %v9241_v52  ;;  %v5970_v21 = vcombine.low %v5920_v32, %v5934_v46  ;;  %v26841_v24 = vld [vmem:[#allocation82_spill] sm:$0xff] }
 0x4f4   : > { %v5971_v8 = vcombine.high %v5920_v32, %v5934_v46  ;;  %v5972_v29 = vcombine.low %v5927_v63, %v5941_v56  ;;  %v24338_v55 = vrot.slane %v6248_v7, %v26602_v60  ;;  %13881 = vmatprep.mubr.bf16.mxu0 %v9267_v57  ;;  %v24341_v41 = vrot.slane %v6250_v14, %v26602_v60  ;;  %v20452_v52 = vld [vmem:[#allocation10 + $0x580] sm:$0xff]   ;;  %v20455_v14 = vld [vmem:[#allocation10 + $0x5c8] sm:$0xff]  }
 0x4f5   : > { %13969 = vmatprep.mubr.bf16.mxu1 %v9268_v5  ;;  %v18064_v27 = vcombine.low %v5680_v10, %v24330_v47  ;;  %v18633_v31 = vadd.f32 %v24025_v30, %v24015_v50  ;;  %v4752_v25 = vshrl.u32 %v26841_v24, 16  ;;  %13882 = vmatmul.mubr.bf16.vlgmr.msra.gmra.mrb[168].mxu0 %v9263_v33  ;;  %v5982_v32 = vrot.slane %v5970_v21, %v26602_v60  ;;  %v20446_v56 = vld [vmem:[#allocation10 + $0x508] sm:$0xff]   ;;  %v24363_v47 = vpop.f32.mrb[76].mxu1 }
 0x4f6   : > { %13970 = vmatmul.mubr.bf16.vlgmr.msra.gmra.mrb[168].mxu1 %v9264_v20  ;;  %v5989_v63 = vrot.slane %v5972_v29, %v26602_v60  ;;  %v5996_v46 = vrot.slane %v5971_v8, %v26602_v60  ;;  %v4754_v5 = vshll.u32 %v26841_v24, 16  ;;  %19184 = vmatpush3.bf16.msra.mxu0 %v20444_v9  ;;  %v6312_v10 = vcombine.low %v24338_v55, %v24341_v41  ;;  %v26842_v57 = vld [vmem:[#allocation58_spill] sm:$0xff]  ;;  %v20447_v9 = vld [vmem:[#allocation10 + $0x550] sm:$0xff]   ;;  %v24361_v8 = vpop.f32.mrb[76].mxu0 }
 0x4f7   : > { %v9606_v50 = vrot.slane %v18064_v27, %v26602_v60  ;;  %v13196_v30 = vadd.f32 %v18633_v31, %v24090_v18  ;;  %v18691_v20 = vadd.f32 %v24027_v1, %v24017_v23  ;;  %v18636_v29 = vadd.f32 %v24044_v61, %v24034_v49  ;;  %19185 = vmatprep.subr.bf16.mxu0 %v20445_v16  ;;  %v26844_v23 = vld [vmem:[#allocation77_spill] sm:$0xff]  ;;  %v24373_v49 = vpop.f32.mrb[77].mxu1  ;;  %v20456_v61 = vld [vmem:[#allocation10 + $0x588] sm:$0xff]  }
 0x4f8   : > { %v18066_v21 = vcombine.low %v5982_v32, %v5996_v46  ;;  %v18068_v7 = vcombine.high %v5982_v32, %v5996_v46  ;;  %v18694_v33 = vadd.f32 %v24046_v12, %v26842_v57  ;;  %v24366_v27 = vrot.slane %v6312_v10, %v26602_v60  ;;  %19242 = vmatpush3.bf16.msra.mxu1 %v20452_v52  ;;  %v24371_v46 = vpop.f32.mrb[77].mxu0 }
 0x4f9   : > { %v24368_v31 = vadd.f32 %v18691_v20, %v13196_v30  ;;  %v4614_v1 = vor.u32 %v4613_v4, %v26844_v23  ;;  %v4756_v32 = vrot.slane %v4754_v5, 1  ;;  %v13199_v57 = vadd.f32 %v18636_v29, %v24090_v18  ;;  %19243 = vmatprep.subr.bf16.mxu1 %v20455_v14  ;;  %v24379_v30 = vpop.f32.mrb[78].mxu0  ;;  %v24381_v20 = vpop.f32.mrb[78].mxu1  ;;  %v20457_v4 = vld [vmem:[#allocation10 + $0x5d0] sm:$0xff]  }
 0x4fa   : > { %v9620_v12 = vrot.slane %v18066_v21, %v26602_v60  ;;  %v9634_v16 = vrot.slane %v18068_v7, %v26602_v60  ;;  %v4759_v10 = vshrl.u32 %v26845_v3, 16  ;;  %v18070_v52 = vcombine.low %v5989_v63, %v24366_v27  ;;  %19186 = vmatpush3.bf16.msra.mxu0 %v20446_v56  ;;  %v20448_v21 = vld [vmem:[#allocation10 + $0x510] sm:$0xff]   ;;  %v24386_v26 = vpop.f32.mrb[79].mxu0  ;;  %v24388_v7 = vpop.f32.mrb[79].mxu1  ;;  %v20461_v3 = vld [vmem:[#allocation10 + $0x5d8] sm:$0xff]  }
 0x4fb   : > { %26843 = vst [vmem:[#allocation48_spill] sm:$0xff] %v24368_v31  ;;  %v4745_v5 = vshrl.u32 %v4614_v1, 16  ;;  %v4747_v23 = vshll.u32 %v4614_v1, 16  ;;  %v24384_v31 = vor.u32 %v4756_v32, %v4752_v25  ;;  %v24390_v53 = vadd.f32 %v18694_v33, %v13199_v57  ;;  %19187 = vmatprep.subr.bf16.mxu0 %v20447_v9  ;;  %v20458_v32 = vld [vmem:[#allocation10 + $0x590] sm:$0xff]  }
 0x4fc   : > { %v9657_v29 = vcombine.high %v9606_v50, %v9620_v12  ;;  %v9656_v14 = vcombine.low %v9606_v50, %v9620_v12  ;;  %v9648_v63 = vrot.slane %v18070_v52, %v26602_v60  ;;  %v4766_v1 = vshrl.u32 %v26848_v11, 16  ;;  %19244 = vmatpush3.bf16.msra.mxu1 %v20456_v61 }
 0x4fd   : > { %26846 = vst [vmem:[#allocation45_spill] sm:$0xff] %v24384_v31  ;;  %26847 = vst [vmem:[#allocation46_spill] sm:$0xff] %v24390_v53  ;;  %v4749_v56 = vrot.slane %v4747_v23, 1  ;;  %v4768_v25 = vshll.u32 %v26848_v11, 16  ;;  %v4763_v33 = vrot.slane %v4761_v38, 1  ;;  %v6249_v50 = vcombine.high %v26818_v44, %v24265_v42  ;;  %19245 = vmatprep.subr.bf16.mxu1 %v20457_v4  ;;  %v20450_v23 = vld [vmem:[#allocation10 + $0x518] sm:$0xff]  }
 0x4fe   : > { %v9684_v13 = vrot.slane %v9657_v29, %v26602_v60  ;;  %v9670_v35 = vrot.slane %v9656_v14, %v26602_v60  ;;  %v9661_v9 = vcombine.high %v9634_v16, %v9648_v63  ;;  %v9660_v12 = vcombine.low %v9634_v16, %v9648_v63  ;;  %19188 = vmatpush3.bf16.msra.mxu0 %v20448_v21  ;;  %v20453_v4 = vld [vmem:[#allocation10 + $0x560] sm:$0xff]   ;;  %v24409_v14 = vpop.f32.mrb[80].mxu0  ;;  %v24411_v16 = vpop.f32.mrb[80].mxu1 }
 0x4ff   : > { %v24400_v57 = vor.u32 %v4749_v56, %v4745_v5  ;;  %v4770_v52 = vrot.slane %v4768_v25, 1  ;;  %v24402_v11 = vor.u32 %v4763_v33, %v4759_v10  ;;  %v6251_v61 = vcombine.high %v24304_v39, %v24309_v28  ;;  %19189 = vmatprep.subr.bf16.mxu0 %v20449_v15  ;;  %v24419_v56 = vpop.f32.mrb[81].mxu0  ;;  %v24421_v25 = vpop.f32.mrb[81].mxu1  ;;  %v20454_v28 = vld [vmem:[#allocation10 + $0x520] sm:$0xff]   ;;  %v20470_v39 = vld [vmem:[#allocation10 + $0x5f0] sm:$0xff]  }
 0x500   : > { %v6269_v29 = vrot.slane %v6249_v50, %v26602_v60  ;;  %v6313_v38 = vcombine.high %v24338_v55, %v24341_v41  ;;  %v9712_v5 = vrot.slane %v9661_v9, %v26602_v60  ;;  %v9698_v21 = vrot.slane %v9660_v12, %v26602_v60  ;;  %19246 = vmatpush3.bf16.msra.mxu1 %v20458_v32  ;;  %v18658_v33 = vpop.f32.mrb[82].mxu0  ;;  %v18716_v50 = vpop.f32.mrb[82].mxu1 }
 0x501   : > { %26849 = vst [vmem:[#allocation59_spill] sm:$0xff] %v24400_v57  ;;  %26850 = vst [vmem:[#allocation75_spill] sm:$0xff] %v24402_v11  ;;  %v24415_v10 = vor.u32 %v4770_v52, %v4766_v1  ;;  %v6252_v63 = vcombine.low %v24400_v57, %v26841_v24  ;;  %v6254_v15 = vcombine.low %v24384_v31, %v24402_v11  ;;  %19247 = vmatprep.subr.bf16.mxu1 %v20461_v3  ;;  %v18659_v57 = vpop.f32.mrb[83].mxu0  ;;  %v18717_v53 = vpop.f32.mrb[83].mxu1  ;;  %v20459_v3 = vld [vmem:[#allocation10 + $0x568] sm:$0xff]   ;;  %v20462_v33 = vld [vmem:[#allocation10 + $0x598] sm:$0xff]  }
 0x502   : > { %v6283_v55 = vrot.slane %v6251_v61, %v26602_v60  ;;  %v24427_v41 = vrot.slane %v6313_v38, %v26602_v60  ;;  %v6590_v1 = vcombine.low %v26841_v24, %v24384_v31  ;;  %v9724_v9 = vcombine.low %v9684_v13, %v9712_v5  ;;  %19190 = vmatpush3.bf16.msra.mxu0 %v20450_v23  ;;  %v26853_v57 = vld [vmem:[#allocation95_spill] sm:$0xff]  ;;  %v26858_v50 = vld [vmem:[#allocation96_spill] sm:$0xff] }
 0x503   : > { %26851 = vst [vmem:[#allocation89_spill] sm:$0xff] %v24415_v10  ;;  %v9725_v32 = vcombine.high %v9684_v13, %v9712_v5  ;;  %v9720_v12 = vcombine.low %v9670_v35, %v9698_v21  ;;  %v9721_v52 = vcombine.high %v9670_v35, %v9698_v21  ;;  %v6290_v44 = vrot.slane %v6252_v63, %v26602_v60  ;;  %v20463_v5 = vld [vmem:[#allocation10 + $0x5e0] sm:$0xff]   ;;  %v26855_v63 = vld [vmem:[#allocation84_spill] sm:$0xff] }
 0x504   : > { %26852 = vst [vmem:[#allocation93_spill] sm:$0xff] %v24427_v41  ;;  %v6304_v61 = vrot.slane %v6254_v15, %v26602_v60  ;;  %v6314_v38 = vcombine.low %v6269_v29, %v6283_v55  ;;  %v6592_v42 = vcombine.low %v24402_v11, %v24415_v10  ;;  %19191 = vmatprep.subr.bf16.mxu0 %v20453_v4  ;;  %v4617_v23 = vrot.slane %v26853_v57, 7 }
 0x505   : > { %13889 = vmatprep.mubr.bf16.mxu0 %v9724_v9  ;;  %13977 = vmatprep.mubr.bf16.mxu1 %v9725_v32  ;;  %v6604_v13 = vrot.slane %v6590_v1, %v26602_v60  ;;  %v18639_v35 = vadd.f32 %v24135_v51, %v24124_v58  ;;  %v18697_v53 = vadd.f32 %v24137_v37, %v24126_v0  ;;  %v4780_v15 = vshrl.u32 %v26855_v63, 16  ;;  %v20460_v51 = vld [vmem:[#allocation10 + $0x528] sm:$0xff]   ;;  %v20464_v32 = vld [vmem:[#allocation10 + $0x570] sm:$0xff]  }
 0x506   : > { %13890 = vmatmul.mubr.bf16.gmra.mrb[172].mxu0 %v9720_v12  ;;  %13978 = vmatmul.mubr.bf16.gmra.mrb[172].mxu1 %v9721_v52  ;;  %v6315_v29 = vcombine.low %v6290_v44, %v6304_v61  ;;  %v6316_v21 = vcombine.high %v6290_v44, %v6304_v61  ;;  %v24442_v4 = vrot.slane %v6314_v38, %v26602_v60 }
 0x507   : > { %v6618_v55 = vrot.slane %v6592_v42, %v26602_v60  ;;  %v13204_v1 = vadd.f32 %v18639_v35, %v24090_v18  ;;  %v18642_v58 = vadd.f32 %v24154_v34, %v24142_v54  ;;  %v18700_v0 = vadd.f32 %v24156_v22, %v24144_v2  ;;  %19192 = vmatpush3.bf16.msra.mxu0 %v20454_v28  ;;  %v20465_v54 = vld [vmem:[#allocation10 + $0x5a0] sm:$0xff]   ;;  %v24461_v34 = vpop.f32.mrb[84].mxu0  ;;  %v24463_v2 = vpop.f32.mrb[84].mxu1  ;;  %v20467_v35 = vld [vmem:[#allocation10 + $0x5e8] sm:$0xff]  }
 0x508   : > { %26854 = vst [vmem:[#allocation101_spill] sm:$0xff] %v24442_v4  ;;  %v24452_v37 = vrot.slane %v6315_v29, %v26602_v60  ;;  %v24455_v44 = vrot.slane %v6316_v21, %v26602_v60  ;;  %v24458_v9 = vor.u32 %v4617_v23, %v26858_v50  ;;  %v4782_v42 = vshll.u32 %v26855_v63, 16  ;;  %19193 = vmatprep.subr.bf16.mxu0 %v20459_v3  ;;  %v24468_v61 = vpop.f32.mrb[85].mxu0  ;;  %v24470_v38 = vpop.f32.mrb[85].mxu1  ;;  %v26860_v23 = vld [vmem:[#allocation85_spill] sm:$0xff] }
 0x509   : > { %19248 = vmatpush3.bf16.msra.mxu1 %v20462_v33  ;;  %v6654_v22 = vcombine.low %v6604_v13, %v6618_v55  ;;  %v6655_v28 = vcombine.high %v6604_v13, %v6618_v55  ;;  %v24465_v12 = vadd.f32 %v18697_v53, %v13204_v1  ;;  %v13207_v52 = vadd.f32 %v18642_v58, %v24090_v18  ;;  %v24477_v13 = vpop.f32.mrb[86].mxu0  ;;  %v24479_v53 = vpop.f32.mrb[86].mxu1 }
 0x50a   : > { %26856 = vst [vmem:[#allocation99_spill] sm:$0xff] %v24452_v37  ;;  %26857 = vst [vmem:[#allocation62_spill] sm:$0xff] %v24455_v44  ;;  %19249 = vmatprep.subr.bf16.mxu1 %v20463_v5  ;;  %v6361_v3 = vcombine.high %v24366_v27, %v24452_v37  ;;  %v6364_v33 = vcombine.high %v24427_v41, %v24455_v44  ;;  %v4784_v57 = vrot.slane %v4782_v42, 1  ;;  %v4787_v29 = vshrl.u32 %v26860_v23, 16  ;;  %v20466_v27 = vld [vmem:[#allocation10 + $0x530] sm:$0xff]   ;;  %v24486_v58 = vpop.f32.mrb[87].mxu0 }
 0x50b   : > { %26859 = vst [vmem:[#allocation80_spill] sm:$0xff] %v24465_v12  ;;  %26861 = vst [vmem:[#allocation112_spill] sm:$0xff] %v24479_v53  ;;  %v6666_v5 = vrot.slane %v6654_v22, %v26602_v60  ;;  %v6680_v21 = vrot.slane %v6655_v28, %v26602_v60  ;;  %v24483_v55 = vadd.f32 %v18700_v0, %v13207_v52  ;;  %v4789_v1 = vshll.u32 %v26860_v23, 16  ;;  %v24488_v50 = vpop.f32.mrb[87].mxu1  ;;  %v26865_v37 = vld [vmem:[#allocation104_spill] sm:$0xff]  ;;  %v20468_v0 = vld [vmem:[#allocation10 + $0x5a8] sm:$0xff]  }
 0x50c   : > { %19194 = vmatpush3.bf16.msra.mxu0 %v20460_v51  ;;  %26863 = vst [vmem:[#allocation86_spill] sm:$0xff] %v24488_v50  ;;  %v18089_v42 = vcombine.low %v24427_v41, %v6361_v3  ;;  %v18091_v12 = vcombine.low %v6364_v33, %v24442_v4  ;;  %v24492_v44 = vor.u32 %v4784_v57, %v4780_v15  ;;  %v4794_v22 = vshrl.u32 %v26865_v37, 16  ;;  %v20469_v28 = vld [vmem:[#allocation10 + $0x578] sm:$0xff]   ;;  %v24505_v41 = vpop.f32.mrb[88].mxu0 }
 0x50d   : > { %26862 = vst [vmem:[#allocation102_spill] sm:$0xff] %v24483_v55  ;;  %19195 = vmatprep.subr.bf16.mxu0 %v20464_v32  ;;  %19250 = vmatpush3.bf16.msra.mxu1 %v20465_v54  ;;  %v18093_v52 = vcombine.low %v6666_v5, %v6680_v21  ;;  %v18095_v23 = vcombine.high %v6666_v5, %v6680_v21  ;;  %v4791_v51 = vrot.slane %v4789_v1, 1  ;;  %v4796_v55 = vshll.u32 %v26865_v37, 16  ;;  %v20471_v21 = vld [vmem:[#allocation10 + $0x538] sm:$0xff]  }
 0x50e   : > { %26864 = vst [vmem:[#allocation113_spill] sm:$0xff] %v24492_v44  ;;  %19251 = vmatprep.subr.bf16.mxu1 %v20467_v35  ;;  %v10063_v50 = vrot.slane %v18089_v42, %v26602_v60  ;;  %v10077_v3 = vrot.slane %v18091_v12, %v26602_v60  ;;  %v4801_v15 = vshrl.u32 %v24458_v9, 16  ;;  %v4803_v33 = vshll.u32 %v24458_v9, 16  ;;  %v26867_v4 = vld [vmem:[#allocation100_spill] sm:$0xff]  ;;  %26868 = vst [vmem:[#allocation118_spill] sm:$0xff] %v24505_v41  ;;  %v24507_v9 = vpop.f32.mrb[88].mxu1 }
 0x50f   : > { %v10091_v32 = vrot.slane %v18093_v52, %v26602_v60  ;;  %v10105_v54 = vrot.slane %v18095_v23, %v26602_v60  ;;  %v24502_v57 = vor.u32 %v4791_v51, %v4787_v29  ;;  %v4798_v5 = vrot.slane %v4796_v55, 1  ;;  %v20472_v12 = vld [vmem:[#allocation10 + $0x5b0] sm:$0xff]   ;;  %26869 = vst [vmem:[#allocation43_spill] sm:$0xff] %v24507_v9  ;;  %v24512_v55 = vpop.f32.mrb[89].mxu0 }
 0x510   : > { %19196 = vmatpush3.bf16.msra.mxu0 %v20466_v27  ;;  %v10114_v37 = vcombine.high %v10063_v50, %v10077_v3  ;;  %v10113_v35 = vcombine.low %v10063_v50, %v10077_v3  ;;  %v4805_v1 = vrot.slane %v4803_v33, 1  ;;  %v4808_v42 = vshrl.u32 %v26867_v4, 16  ;;  %26871 = vst [vmem:[#allocation35_spill] sm:$0xff] %v24512_v55  ;;  %v24514_v27 = vpop.f32.mrb[89].mxu1  ;;  %v20473_v50 = vld [vmem:[#allocation10 + $0x5f8] sm:$0xff]   ;;  %v26874_v3 = vld [vmem:[#allocation98_spill] sm:$0xff] }
 0x511   : > { %26866 = vst [vmem:[#allocation78_spill] sm:$0xff] %v24502_v57  ;;  %19252 = vmatpush3.bf16.msra.mxu1 %v20468_v0  ;;  %19197 = vmatprep.subr.bf16.mxu0 %v20469_v28  ;;  %v10118_v52 = vcombine.high %v10091_v32, %v10105_v54  ;;  %v10117_v53 = vcombine.low %v10091_v32, %v10105_v54  ;;  %v4810_v29 = vshll.u32 %v26867_v4, 16  ;;  %26872 = vst [vmem:[#allocation66_spill] sm:$0xff] %v24514_v27  ;;  %v24521_v9 = vpop.f32.mrb[90].mxu0 }
 0x512   : > { %v24509_v23 = vor.u32 %v4798_v5, %v4794_v22  ;;  %19253 = vmatprep.subr.bf16.mxu1 %v20470_v39  ;;  %v10141_v0 = vrot.slane %v10114_v37, %v26602_v60  ;;  %v10127_v28 = vrot.slane %v10113_v35, %v26602_v60  ;;  %v24518_v51 = vor.u32 %v4805_v1, %v4801_v15  ;;  %v24523_v22 = vpop.f32.mrb[90].mxu1  ;;  %v24528_v27 = vpop.f32.mrb[91].mxu0  ;;  %v26879_v15 = vld [vmem:[#allocation105_spill] sm:$0xff] }
 0x513   : > { %v4815_v33 = vshrl.u32 %v26874_v3, 16  ;;  %26875 = vst [vmem:[#allocation103_spill] sm:$0xff] %v24521_v9  ;;  %26876 = vst [vmem:[#allocation63_spill] sm:$0xff] %v24523_v22  ;;  %v10169_v32 = vrot.slane %v10118_v52, %v26602_v60  ;;  %v10155_v39 = vrot.slane %v10117_v53, %v26602_v60  ;;  %v4812_v54 = vrot.slane %v4810_v29, 1  ;;  %v24530_v37 = vpop.f32.mrb[91].mxu1 }
 0x514   : > { %26870 = vst [vmem:[#allocation54_spill] sm:$0xff] %v24509_v23  ;;  %26873 = vst [vmem:[#allocation52_spill] sm:$0xff] %v24518_v51  ;;  %v4817_v5 = vshll.u32 %v26874_v3, 16  ;;  %19198 = vmatpush3.bf16.msra.mxu0 %v20471_v21  ;;  %v4822_v35 = vshrl.u32 %v26879_v15, 16  ;;  %v4824_v1 = vshll.u32 %v26879_v15, 16  ;;  %v6591_v9 = vcombine.high %v26841_v24, %v24384_v31 }
 0x515   : > { %26877 = vst [vmem:[#allocation97_spill] sm:$0xff] %v24528_v27  ;;  %26878 = vst [vmem:[#allocation73_spill] sm:$0xff] %v24530_v37  ;;  %v6593_v52 = vcombine.high %v24402_v11, %v24415_v10  ;;  %19254 = vmatpush3.bf16.msra.mxu1 %v20472_v12  ;;  %v26880_v53 = vmov 0.0   ;;  %v10181_v29 = vcombine.low %v10141_v0, %v10169_v32  ;;  %v10182_v3 = vcombine.high %v10141_v0, %v10169_v32  ;;  %v20474_v27 = vld [vmem:[#allocation10 + $0x5b8] sm:$0xff]   ;;  %v26881_v32 = vld [vmem:[#allocation79_spill] sm:$0xff] }
 0x516   : > { %19605 = vmatprep.subr.bf16.mxu0 %v26880_v53  ;;  %v10177_v21 = vcombine.low %v10127_v28, %v10155_v39  ;;  %v10178_v22 = vcombine.high %v10127_v28, %v10155_v39  ;;  %19255 = vmatprep.subr.bf16.mxu1 %v20473_v50  ;;  %v24539_v37 = vor.u32 %v4812_v54, %v4808_v42  ;;  %v4819_v55 = vrot.slane %v4817_v5, 1  ;;  %v26883_v39 = vld [vmem:[#allocation109_spill] sm:$0xff]  ;;  %v24555_v5 = vpop.f32.mrb[92].mxu0 }
 0x517   : > { %v4826_v41 = vrot.slane %v4824_v1, 1  ;;  %v6611_v15 = vrot.slane %v6591_v9, %v26602_v60  ;;  %13897 = vmatprep.mubr.bf16.mxu0 %v10181_v29  ;;  %13985 = vmatprep.mubr.bf16.mxu1 %v10182_v3  ;;  %v6625_v31 = vrot.slane %v6593_v52, %v26602_v60  ;;  %v6932_v12 = vcombine.low %v26855_v63, %v24492_v44  ;;  %v24557_v1 = vpop.f32.mrb[92].mxu1 }
 0x518   : > { %v6933_v0 = vcombine.high %v26855_v63, %v24492_v44  ;;  %v4621_v28 = vrot.slane %v26881_v32, 7  ;;  %13898 = vmatmul.mubr.bf16.gmra.mrb[176].mxu0 %v10177_v21  ;;  %13986 = vmatmul.mubr.bf16.gmra.mrb[176].mxu1 %v10178_v22  ;;  %v24548_v42 = vor.u32 %v4819_v55, %v4815_v33  ;;  %v6934_v9 = vcombine.low %v24502_v57, %v24509_v23  ;;  %v24566_v33 = vpop.f32.mrb[93].mxu1 }
 0x519   : > { %v24550_v50 = vor.u32 %v4826_v41, %v4822_v35  ;;  %v6656_v52 = vcombine.low %v6611_v15, %v6625_v31  ;;  %v6935_v29 = vcombine.high %v24502_v57, %v24509_v23  ;;  %v6936_v22 = vcombine.low %v24518_v51, %v26867_v4  ;;  %19256 = vmatpush3.bf16.msra.mxu1 %v20474_v27  ;;  %v24564_v41 = vpop.f32.mrb[93].mxu0  ;;  %v24576_v32 = vpop.f32.mrb[94].mxu1 }
 0x51a   : > { %v6946_v55 = vrot.slane %v6932_v12, %v26602_v60  ;;  %v6938_v35 = vcombine.low %v24539_v37, %v24548_v42  ;;  %v6953_v3 = vrot.slane %v6933_v0, %v26602_v60  ;;  %v6960_v31 = vrot.slane %v6934_v9, %v26602_v60  ;;  %v24574_v15 = vpop.f32.mrb[94].mxu0  ;;  %v24585_v0 = vpop.f32.mrb[95].mxu1 }
 0x51b   : > { %26882 = vst [vmem:[#allocation49_spill] sm:$0xff] %v24550_v50  ;;  %v7274_v21 = vcombine.low %v26867_v4, %v24539_v37  ;;  %v6673_v27 = vrot.slane %v6656_v52, %v26602_v60  ;;  %v6967_v12 = vrot.slane %v6935_v29, %v26602_v60  ;;  %v6974_v54 = vrot.slane %v6936_v22, %v26602_v60  ;;  %v24583_v10 = vpop.f32.mrb[95].mxu0 }
 0x51c   : > { %v7276_v23 = vcombine.low %v24548_v42, %v24550_v50  ;;  %26884 = vst [vmem:[#allocation72_spill] sm:$0xff] %v24585_v0  ;;  %v6988_v9 = vrot.slane %v6938_v35, %v26602_v60  ;;  %v6996_v51 = vcombine.low %v6946_v55, %v6960_v31  ;;  %v6997_v63 = vcombine.high %v6946_v55, %v6960_v31 }
 0x51d   : > { %v7288_v53 = vrot.slane %v7274_v21, %v26602_v60  ;;  %v6998_v44 = vcombine.low %v6953_v3, %v6967_v12  ;;  %v18645_v29 = vadd.f32 %v24278_v6, %v24269_v40  ;;  %v18703_v22 = vadd.f32 %v24280_v36, %v24271_v45  ;;  %v26891_v12 = vld [vmem:[#allocation108_spill] sm:$0xff] }
 0x51e   : > { %v7302_v52 = vrot.slane %v7276_v23, %v26602_v60  ;;  %v6999_v57 = vcombine.low %v6974_v54, %v6988_v9  ;;  %v7000_v11 = vcombine.high %v6974_v54, %v6988_v9  ;;  %v7008_v24 = vrot.slane %v6996_v51, %v26602_v60  ;;  %v26890_v54 = vld [vmem:[#allocation61_spill] sm:$0xff] }
 0x51f   : > { %v24596_v0 = vrot.slane %v6997_v63, %v26602_v60  ;;  %v24599_v55 = vrot.slane %v6998_v44, %v26602_v60  ;;  %v13212_v23 = vadd.f32 %v18645_v29, %v24090_v18  ;;  %v18648_v6 = vadd.f32 %v24295_v19, %v24285_v59 }
 0x520   : > { %v7338_v35 = vcombine.low %v7288_v53, %v7302_v52  ;;  %v7339_v3 = vcombine.high %v7288_v53, %v7302_v52  ;;  %v24603_v31 = vrot.slane %v6999_v57, %v26602_v60  ;;  %v24606_v40 = vrot.slane %v7000_v11, %v26602_v60 }
 0x521   : > { %26885 = vst [vmem:[#allocation47_spill] sm:$0xff] %v24596_v0  ;;  %26886 = vst [vmem:[#allocation37_spill] sm:$0xff] %v24599_v55  ;;  %v18114_v45 = vcombine.low %v6673_v27, %v7008_v24  ;;  %v24616_v44 = vadd.f32 %v18703_v22, %v13212_v23  ;;  %v18706_v51 = vadd.f32 %v24297_v43, %v24287_v62  ;;  %v4838_v27 = vshll.u32 %v26883_v39, 16  ;;  %v26893_v22 = vld [vmem:[#allocation53_spill] sm:$0xff]  ;;  %v24640_v23 = vpop.f32.mrb[96].mxu1 }
 0x522   : > { %26887 = vst [vmem:[#allocation38_spill] sm:$0xff] %v24603_v31  ;;  %26888 = vst [vmem:[#allocation74_spill] sm:$0xff] %v24606_v40  ;;  %v24611_v36 = vrot.slane %v7338_v35, %v26602_v60  ;;  %v24614_v63 = vrot.slane %v7339_v3, %v26602_v60  ;;  %v7045_v57 = vcombine.high %v7008_v24, %v24603_v31  ;;  %v4843_v9 = vshrl.u32 %v26891_v12, 16 }
 0x523   : > { %26889 = vst [vmem:[#allocation41_spill] sm:$0xff] %v24616_v44  ;;  %v7048_v11 = vcombine.high %v24596_v0, %v24606_v40  ;;  %v10520_v53 = vrot.slane %v18114_v45, %v26602_v60  ;;  %v13215_v59 = vadd.f32 %v18648_v6, %v24090_v18  ;;  %v4622_v21 = vor.u32 %v4621_v28, %v26890_v54  ;;  %v24638_v28 = vpop.f32.mrb[96].mxu0 }
 0x524   : > { %v18120_v19 = vcombine.low %v24611_v36, %v24614_v63  ;;  %v18116_v62 = vcombine.low %v24596_v0, %v7045_v57  ;;  %v4845_v52 = vshll.u32 %v26891_v12, 16  ;;  %v4840_v18 = vrot.slane %v4838_v27, 1 }
 0x525   : > { %v18118_v43 = vcombine.low %v7048_v11, %v24599_v55  ;;  %v24632_v24 = vadd.f32 %v18706_v51, %v13215_v59  ;;  %v4850_v35 = vshrl.u32 %v26893_v22, 16  ;;  %v4852_v3 = vshll.u32 %v26893_v22, 16  ;;  %v24644_v11 = vpop.f32.mrb[97].mxu0  ;;  %v24646_v59 = vpop.f32.mrb[97].mxu1  ;;  %v26896_v22 = vld [vmem:[#allocation56_spill] sm:$0xff] }
 0x526   : > { %v10562_v29 = vrot.slane %v18120_v19, %v26602_v60  ;;  %v10534_v45 = vrot.slane %v18116_v62, %v26602_v60  ;;  %v4847_v57 = vrot.slane %v4845_v52, 1  ;;  %v4857_v51 = vshrl.u32 %v4622_v21, 16  ;;  %26894 = vst [vmem:[#allocation76_spill] sm:$0xff] %v24646_v59  ;;  %v24653_v55 = vpop.f32.mrb[98].mxu0  ;;  %v24655_v44 = vpop.f32.mrb[98].mxu1 }
 0x527   : > { %26892 = vst [vmem:[#allocation55_spill] sm:$0xff] %v24632_v24  ;;  %v10548_v6 = vrot.slane %v18118_v43, %v26602_v60  ;;  %v26895_v19 = vshrl.u32 %v26883_v39, 16  ;;  %v4854_v27 = vrot.slane %v4852_v3, 1  ;;  %v4859_v12 = vshll.u32 %v4622_v21, 16  ;;  %26897 = vst [vmem:[#allocation58_spill] sm:$0xff] %v24653_v55  ;;  %v24657_v0 = vpop.f32.mrb[99].mxu0 }
 0x528   : > { %v4864_v24 = vshrl.u32 %v26896_v22, 16  ;;  %26898 = vst [vmem:[#allocation77_spill] sm:$0xff] %v24655_v44  ;;  %v10571_v62 = vcombine.high %v10520_v53, %v10534_v45  ;;  %v10570_v52 = vcombine.low %v10520_v53, %v10534_v45  ;;  %v24659_v40 = vpop.f32.mrb[99].mxu1  ;;  %v24661_v59 = vor.u32 %v4847_v57, %v4843_v9 }
 0x529   : > { %v24650_v54 = vor.u32 %v4840_v18, %v26895_v19  ;;  %v10575_v43 = vcombine.high %v10548_v6, %v10562_v29  ;;  %v10574_v31 = vcombine.low %v10548_v6, %v10562_v29  ;;  %26899 = vst [vmem:[#allocation83_spill] sm:$0xff] %v24659_v40  ;;  %v24663_v18 = vor.u32 %v4854_v27, %v4850_v35 }
 0x52a   : > { %v4861_v3 = vrot.slane %v4859_v12, 1  ;;  %v4866_v21 = vshll.u32 %v26896_v22, 16  ;;  %v10598_v19 = vrot.slane %v10571_v62, %v26602_v60  ;;  %v10584_v44 = vrot.slane %v10570_v52, %v26602_v60  ;;  %v24682_v52 = vpop.f32.mrb[100].mxu1 }
 0x52b   : > { %26900 = vst [vmem:[#allocation87_spill] sm:$0xff] %v24663_v18  ;;  %v10626_v55 = vrot.slane %v10575_v43, %v26602_v60  ;;  %v10612_v53 = vrot.slane %v10574_v31, %v26602_v60  ;;  %v4871_v6 = vshrl.u32 %v23463_v48, 16  ;;  %v4873_v9 = vshll.u32 %v23463_v48, 16  ;;  %26903 = vst [vmem:[#allocation85_spill] sm:$0xff] %v24682_v52 }
 0x52c   : > { %v24670_v29 = vor.u32 %v4861_v3, %v4857_v51  ;;  %v4868_v45 = vrot.slane %v4866_v21, 1  ;;  %v7275_v43 = vcombine.high %v26867_v4, %v24539_v37  ;;  %v7277_v31 = vcombine.high %v24548_v42, %v24550_v50  ;;  %v24680_v51 = vpop.f32.mrb[100].mxu0  ;;  %v24695_v21 = vpop.f32.mrb[101].mxu1 }
 0x52d   : > { %v10638_v35 = vcombine.low %v10598_v19, %v10626_v55  ;;  %v10639_v57 = vcombine.high %v10598_v19, %v10626_v55  ;;  %v10634_v27 = vcombine.low %v10584_v44, %v10612_v53  ;;  %v10635_v12 = vcombine.high %v10584_v44, %v10612_v53  ;;  %26902 = vst [vmem:[#allocation96_spill] sm:$0xff] %v24680_v51  ;;  %v24693_v3 = vpop.f32.mrb[101].mxu0 }
 0x52e   : > { %26901 = vst [vmem:[#allocation95_spill] sm:$0xff] %v24670_v29  ;;  %v24674_v40 = vor.u32 %v4868_v45, %v4864_v24  ;;  %v4875_v62 = vrot.slane %v4873_v9, 1  ;;  %v7616_v48 = vcombine.low %v26883_v39, %v24650_v54  ;;  %v7617_v55 = vcombine.high %v26883_v39, %v24650_v54  ;;  %26905 = vst [vmem:[#allocation100_spill] sm:$0xff] %v24693_v3 }
 0x52f   : > { %13905 = vmatprep.mubr.bf16.mxu0 %v10638_v35  ;;  %13993 = vmatprep.mubr.bf16.mxu1 %v10639_v57  ;;  %v7618_v44 = vcombine.low %v24661_v59, %v24663_v18  ;;  %v24691_v24 = vshrl.u32 %v23713_v17, 16  ;;  %26906 = vst [vmem:[#allocation98_spill] sm:$0xff] %v24695_v21  ;;  %v7295_v53 = vrot.slane %v7275_v43, %v26602_v60  ;;  %v24702_v9 = vshll.u32 %v23713_v17, 16  ;;  %v24704_v35 = vpop.f32.mrb[102].mxu0  ;;  %v24706_v57 = vpop.f32.mrb[102].mxu1 }
 0x530   : > { %13906 = vmatmul.mubr.bf16.gmra.mrb[180].mxu0 %v10634_v27  ;;  %13994 = vmatmul.mubr.bf16.gmra.mrb[180].mxu1 %v10635_v12  ;;  %v24697_v19 = vor.u32 %v4875_v62, %v4871_v6  ;;  %v7309_v45 = vrot.slane %v7277_v31, %v26602_v60  ;;  %26908 = vst [vmem:[#allocation79_spill] sm:$0xff] %v24704_v35  ;;  %26909 = vst [vmem:[#allocation109_spill] sm:$0xff] %v24706_v57  ;;  %v24714_v62 = vpop.f32.mrb[103].mxu0  ;;  %v24716_v43 = vpop.f32.mrb[103].mxu1 }
 0x531   : > { %26904 = vst [vmem:[#allocation104_spill] sm:$0xff] %v24691_v24  ;;  %26907 = vst [vmem:[#allocation105_spill] sm:$0xff] %v24702_v9  ;;  %v7619_v50 = vcombine.high %v24661_v59, %v24663_v18  ;;  %v7620_v27 = vcombine.low %v24670_v29, %v26896_v22  ;;  %v7630_v6 = vrot.slane %v7616_v48, %v26602_v60 }
 0x532   : > { %v7637_v12 = vrot.slane %v7617_v55, %v26602_v60  ;;  %26910 = vst [vmem:[#allocation61_spill] sm:$0xff] %v24714_v62  ;;  %26911 = vst [vmem:[#allocation108_spill] sm:$0xff] %v24716_v43  ;;  %v7340_v31 = vcombine.low %v7295_v53, %v7309_v45  ;;  %v7622_v35 = vcombine.low %v24674_v40, %v24697_v19 }
 0x533   : > { %v7644_v57 = vrot.slane %v7618_v44, %v26602_v60  ;;  %v18138_v18 = vcombine.high %v24611_v36, %v24614_v63  ;;  %v7651_v21 = vrot.slane %v7619_v50, %v26602_v60  ;;  %v7658_v29 = vrot.slane %v7620_v27, %v26602_v60  ;;  %v24732_v36 = vld [vmem:[#allocation11] ss:$0 sm:$0xff] }
 0x534   : > { %v18651_v48 = vadd.f32 %v24371_v46, %v24361_v8  ;;  %v18709_v55 = vadd.f32 %v24373_v49, %v24363_v47  ;;  %v7357_v53 = vrot.slane %v7340_v31, %v26602_v60  ;;  %v7672_v45 = vrot.slane %v7622_v35, %v26602_v60  ;;  %v4366_v8 = vld [vmem:[#allocation2 + $0x1a0] sm:$0xff]  ;;  %v4395_v46 = vld [vmem:[#allocation2 + $0x1b0] sm:$0xff] }
 0x535   : > { %v7680_v43 = vcombine.low %v7630_v6, %v7644_v57  ;;  %v7681_v62 = vcombine.high %v7630_v6, %v7644_v57  ;;  %v7682_v44 = vcombine.low %v7637_v12, %v7651_v21  ;;  %v10977_v52 = vrot.slane %v18138_v18, %v26602_v60  ;;  %v4367_v57 = vld [vmem:[#allocation2 + $0x1a8] sm:$0x3f]  ;;  %v4396_v21 = vld [vmem:[#allocation2 + $0x1b8] sm:$0x3f]  ;;  %v24741_v6 = vpop.f32.mrb[104].mxu0  ;;  %v24743_v18 = vpop.f32.mrb[104].mxu1 }
 0x536   : > { %v13220_v50 = vadd.f32 %v24732_v36, %v18651_v48  ;;  %v18654_v63 = vadd.f32 %v24386_v26, %v24379_v30  ;;  %v7683_v27 = vcombine.low %v7658_v29, %v7672_v45  ;;  %v7684_v47 = vcombine.high %v7658_v29, %v7672_v45  ;;  %26913 = vst [vmem:[#allocation56_spill] sm:$0xff] %v24741_v6  ;;  %v24753_v29 = vpop.f32.mrb[105].mxu0 }
 0x537   : > { %v7692_v49 = vrot.slane %v7680_v43, %v26602_v60  ;;  %v24739_v35 = vrot.slane %v7681_v62, %v26602_v60  ;;  %26914 = vst [vmem:[#allocation119_spill] sm:$0xff] %v24743_v18  ;;  %v24746_v12 = vrot.slane %v7682_v44, %v26602_v60  ;;  %v18712_v30 = vadd.f32 %v24388_v7, %v24381_v20  ;;  %v24755_v62 = vpop.f32.mrb[105].mxu1  ;;  %v24763_v18 = vpop.f32.mrb[106].mxu0 }
 0x538   : > { %v24748_v31 = vadd.f32 %v18709_v55, %v13220_v50  ;;  %v13223_v26 = vadd.f32 %v24732_v36, %v18654_v63  ;;  %26917 = vst [vmem:[#allocation122_spill] sm:$0xff] %v24753_v29  ;;  %26918 = vst [vmem:[#allocation123_spill] sm:$0xff] %v24755_v62  ;;  %v24758_v43 = vrot.slane %v7683_v27, %v26602_v60  ;;  %v24765_v55 = vpop.f32.mrb[106].mxu1  ;;  %v4600_v20 = vrot.slane %v24702_v9, 1  ;;  %v24771_v62 = vpop.f32.mrb[107].mxu0 }
 0x539   : > { %26912 = vst [vmem:[#allocation53_spill] sm:$0xff] %v24739_v35  ;;  %26915 = vst [vmem:[#allocation120_spill] sm:$0xff] %v24746_v12  ;;  %v24761_v48 = vrot.slane %v7684_v47, %v26602_v60  ;;  %v18140_v45 = vcombine.low %v7357_v53, %v7692_v49  ;;  %v4423_v44 = vmax.f32 %v4366_v8, %v4395_v46  ;;  %v4603_v7 = vrot.slane %v23713_v17, 1  ;;  %v24773_v27 = vpop.f32.mrb[107].mxu1  ;;  %v26927_v17 = vld [vmem:[#allocation57_spill] sm:$0xff] }
 0x53a   : > { %26916 = vst [vmem:[#allocation121_spill] sm:$0xff] %v24748_v31  ;;  %26919 = vst [vmem:[#allocation124_spill] sm:$0xff] %v24758_v43  ;;  %v24767_v50 = vadd.f32 %v18712_v30, %v13223_v26  ;;  %v4424_v63 = vmax.f32 %v4367_v57, %v4396_v21  ;;  %v7729_v47 = vcombine.high %v7692_v49, %v24758_v43  ;;  %v4604_v46 = vrot.slane %v24691_v24, 1  ;;  %v24795_v43 = vpop.f32.mrb[108].mxu0 }
 0x53b   : > { %26920 = vst [vmem:[#allocation125_spill] sm:$0xff] %v24761_v48  ;;  %26921 = vst [vmem:[#allocation126_spill] sm:$0xff] %v24763_v18  ;;  %v7732_v53 = vcombine.high %v24739_v35, %v24761_v48  ;;  %v10991_v8 = vrot.slane %v18140_v45, %v26602_v60  ;;  %v24781_v57 = vor.u32 %v4600_v20, %v24691_v24  ;;  %v4605_v21 = vrot.slane %v24702_v9, 2 }
 0x53c   : > { %26922 = vst [vmem:[#allocation127_spill] sm:$0xff] %v24765_v55  ;;  %26923 = vst [vmem:[#allocation128_spill] sm:$0xff] %v24767_v50  ;;  %v4438_v26 = vpack.c.bf16 %v4424_v63, %v4423_v44  ;;  %v4878_v30 = vshrl.u32 %v26927_v17, 16  ;;  %v18142_v50 = vcombine.low %v24739_v35, %v7729_v47  ;;  %v24797_v47 = vpop.f32.mrb[108].mxu1 }
 0x53d   : > { %26924 = vst [vmem:[#allocation129_spill] sm:$0xff] %v24771_v62  ;;  %26925 = vst [vmem:[#allocation130_spill] sm:$0xff] %v24773_v27  ;;  %v18144_v27 = vcombine.low %v7732_v53, %v24746_v12  ;;  %v11028_v49 = vcombine.high %v10977_v52, %v10991_v8  ;;  %v11027_v55 = vcombine.low %v10977_v52, %v10991_v8  ;;  %v4880_v8 = vshll.u32 %v26927_v17, 16 }
 0x53e   : > { %26926 = vst [vmem:[#allocation131_spill] sm:$0xff] %v24781_v57  ;;  %v4606_v62 = vor.u32 %v4605_v21, %v4604_v46  ;;  %v24787_v18 = vshrl.u32 %v4438_v26, 16  ;;  %v24789_v45 = vshll.u32 %v4438_v26, 16  ;;  %v4635_v31 = vrot.slane %v4438_v26, 1  ;;  %26930 = vst [vmem:[#allocation133_spill] sm:$0xff] %v24795_v43  ;;  %v24803_v26 = vpop.f32.mrb[109].mxu0 }
 0x53f   : > { %v11005_v44 = vrot.slane %v18142_v50, %v26602_v60  ;;  %v11019_v63 = vrot.slane %v18144_v27, %v26602_v60  ;;  %v11055_v20 = vrot.slane %v11028_v49, %v26602_v60  ;;  %v11041_v9 = vrot.slane %v11027_v55, %v26602_v60  ;;  %26931 = vst [vmem:[#allocation134_spill] sm:$0xff] %v24797_v47  ;;  %v24805_v50 = vpop.f32.mrb[109].mxu1  ;;  %v18774_v43 = vpop.f32.mrb[110].mxu0 }
 0x540   : > { %26928 = vst [vmem:[#allocation57_spill] sm:$0xff] %v24787_v18  ;;  %26929 = vst [vmem:[#allocation132_spill] sm:$0xff] %v24789_v45  ;;  %v4628_v52 = vrot.slane %v24787_v18, 7  ;;  %v4632_v53 = vrot.slane %v24789_v45, 1  ;;  %v4892_v46 = vshrl.u32 %v24781_v57, 16  ;;  %v4894_v55 = vshll.u32 %v24781_v57, 16 }
 0x541   : > { %26932 = vst [vmem:[#allocation135_spill] sm:$0xff] %v24803_v26  ;;  %26933 = vst [vmem:[#allocation136_spill] sm:$0xff] %v24805_v50  ;;  %v11032_v27 = vcombine.high %v11005_v44, %v11019_v63  ;;  %v11031_v21 = vcombine.low %v11005_v44, %v11019_v63  ;;  %v4899_v49 = vshrl.u32 %v4603_v7, 16  ;;  %v18832_v12 = vpop.f32.mrb[110].mxu1  ;;  %v4882_v6 = vrot.slane %v4880_v8, 1  ;;  %v18775_v35 = vpop.f32.mrb[111].mxu0 }
 0x542   : > { %v4631_v47 = vor.u32 %v24789_v45, %v4628_v52  ;;  %v24810_v29 = vor.u32 %v4632_v53, %v24787_v18  ;;  %v4901_v17 = vshll.u32 %v4603_v7, 16  ;;  %v18833_v48 = vpop.f32.mrb[111].mxu1  ;;  %v4896_v24 = vrot.slane %v4894_v55, 1 }
 0x543   : > { %v11083_v26 = vrot.slane %v11032_v27, %v26602_v60  ;;  %v11069_v50 = vrot.slane %v11031_v21, %v26602_v60  ;;  %v4906_v44 = vshrl.u32 %v4606_v62, 16  ;;  %v24814_v63 = vor.u32 %v4882_v6, %v4878_v30  ;;  %v24824_v21 = vpop.f32.mrb[112].mxu1 }
 0x544   : > { %v4903_v3 = vrot.slane %v4901_v17, 1  ;;  %v4908_v43 = vshll.u32 %v4606_v62, 16  ;;  %v4913_v12 = vshrl.u32 %v4631_v47, 16  ;;  %v24816_v18 = vor.u32 %v4896_v24, %v4892_v46  ;;  %v24822_v62 = vpop.f32.mrb[112].mxu0  ;;  %26935 = vst [vmem:[#allocation138_spill] sm:$0xff] %v24824_v21 }
 0x545   : > { %26934 = vst [vmem:[#allocation137_spill] sm:$0xff] %v24814_v63  ;;  %v11095_v51 = vcombine.low %v11055_v20, %v11083_v26  ;;  %v11096_v52 = vcombine.high %v11055_v20, %v11083_v26  ;;  %v11091_v45 = vcombine.low %v11041_v9, %v11069_v50  ;;  %v11092_v53 = vcombine.high %v11041_v9, %v11069_v50  ;;  %v24832_v20 = vpop.f32.mrb[113].mxu0 }
 0x546   : > { %v24818_v7 = vor.u32 %v4903_v3, %v4899_v49  ;;  %v4910_v35 = vrot.slane %v4908_v43, 1  ;;  %v4915_v48 = vshll.u32 %v4631_v47, 16  ;;  %v4920_v8 = vshrl.u32 %v24810_v29, 16  ;;  %v24834_v47 = vpop.f32.mrb[113].mxu1  ;;  %v24840_v50 = vpop.f32.mrb[114].mxu0 }
 0x547   : > { %13913 = vmatprep.mubr.bf16.mxu0 %v11095_v51  ;;  %14001 = vmatprep.mubr.bf16.mxu1 %v11096_v52  ;;  %v4922_v6 = vshll.u32 %v24810_v29, 16  ;;  %v4927_v30 = vshrl.u32 %v4635_v31, 16  ;;  %v4929_v27 = vshll.u32 %v4635_v31, 16  ;;  %v7958_v9 = vcombine.low %v26896_v22, %v24674_v40  ;;  %26937 = vst [vmem:[#allocation140_spill] sm:$0xff] %v24834_v47  ;;  %26938 = vst [vmem:[#allocation141_spill] sm:$0xff] %v24840_v50  ;;  %v24842_v55 = vpop.f32.mrb[114].mxu1 }
 0x548   : > { %13914 = vmatmul.mubr.bf16.gmra.mrb[184].mxu0 %v11091_v45  ;;  %14002 = vmatmul.mubr.bf16.gmra.mrb[184].mxu1 %v11092_v53  ;;  %v24826_v24 = vor.u32 %v4910_v35, %v4906_v44  ;;  %v4917_v3 = vrot.slane %v4915_v48, 1  ;;  %v7959_v51 = vcombine.high %v26896_v22, %v24674_v40  ;;  %v7960_v26 = vcombine.low %v24697_v19, %v24814_v63  ;;  %v24850_v52 = vpop.f32.mrb[115].mxu0  ;;  %v24852_v53 = vpop.f32.mrb[115].mxu1 }
 0x549   : > { %v4924_v31 = vrot.slane %v4922_v6, 1  ;;  %v4931_v46 = vrot.slane %v4929_v27, 1  ;;  %v7961_v45 = vcombine.high %v24697_v19, %v24814_v63  ;;  %26939 = vst [vmem:[#allocation142_spill] sm:$0xff] %v24842_v55  ;;  %v7972_v17 = vrot.slane %v7958_v9, %v26602_v60  ;;  %26940 = vst [vmem:[#allocation143_spill] sm:$0xff] %v24850_v52 }
 0x54a   : > { %26936 = vst [vmem:[#allocation139_spill] sm:$0xff] %v24826_v24  ;;  %v24844_v49 = vor.u32 %v4917_v3, %v4913_v12  ;;  %v7979_v44 = vrot.slane %v7959_v51, %v26602_v60  ;;  %v8300_v43 = vcombine.low %v24781_v57, %v24816_v18  ;;  %26941 = vst [vmem:[#allocation144_spill] sm:$0xff] %v24852_v53 }
 0x54b   : > { %v24854_v35 = vor.u32 %v4924_v31, %v4920_v8  ;;  %v24856_v48 = vor.u32 %v4931_v46, %v4927_v30  ;;  %v7986_v6 = vrot.slane %v7960_v26, %v26602_v60  ;;  %v7993_v12 = vrot.slane %v7961_v45, %v26602_v60 }
 0x54c   : > { %v8302_v27 = vcombine.low %v24818_v7, %v24826_v24  ;;  %v8304_v3 = vcombine.low %v24844_v49, %v24810_v29  ;;  %v8314_v9 = vrot.slane %v8300_v43, %v26602_v60  ;;  %v18657_v51 = vadd.f32 %v24419_v56, %v24409_v14 }
 0x54d   : > { %v8022_v63 = vcombine.low %v7972_v17, %v7986_v6  ;;  %v8023_v8 = vcombine.high %v7972_v17, %v7986_v6  ;;  %v8024_v31 = vcombine.low %v7979_v44, %v7993_v12  ;;  %v8306_v30 = vcombine.low %v24854_v35, %v24856_v48  ;;  %v24878_v17 = vpop.f32.mrb[116].mxu0  ;;  %v24880_v44 = vpop.f32.mrb[116].mxu1 }
 0x54e   : > { %v8328_v46 = vrot.slane %v8302_v27, %v26602_v60  ;;  %v8342_v26 = vrot.slane %v8304_v3, %v26602_v60  ;;  %v13228_v45 = vadd.f32 %v24732_v36, %v18657_v51  ;;  %v18715_v53 = vadd.f32 %v24421_v25, %v24411_v16  ;;  %26942 = vst [vmem:[#allocation145_spill] sm:$0xff] %v24878_v17  ;;  %v24886_v16 = vpop.f32.mrb[117].mxu0  ;;  %v24888_v25 = vpop.f32.mrb[117].mxu1 }
 0x54f   : > { %v8034_v43 = vrot.slane %v8022_v63, %v26602_v60  ;;  %v8041_v55 = vrot.slane %v8024_v31, %v26602_v60  ;;  %v8048_v14 = vrot.slane %v8023_v8, %v26602_v60  ;;  %v8356_v56 = vrot.slane %v8306_v30, %v26602_v60  ;;  %26943 = vst [vmem:[#allocation146_spill] sm:$0xff] %v24880_v44  ;;  %v24892_v31 = vpop.f32.mrb[118].mxu0  ;;  %v24894_v30 = vpop.f32.mrb[118].mxu1 }
 0x550   : > { %v8364_v6 = vcombine.low %v8314_v9, %v8328_v46  ;;  %v8365_v12 = vcombine.high %v8314_v9, %v8328_v46  ;;  %v24882_v27 = vadd.f32 %v18715_v53, %v13228_v45  ;;  %v8301_v36 = vcombine.high %v24781_v57, %v24816_v18  ;;  %26944 = vst [vmem:[#allocation147_spill] sm:$0xff] %v24886_v16  ;;  %v24901_v44 = vpop.f32.mrb[119].mxu0  ;;  %v26984_v57 = vld [vmem:[#allocation67_spill] sm:$0xff] }
 0x551   : > { %26945 = vst [vmem:[#allocation148_spill] sm:$0xff] %v24888_v25  ;;  %v8367_v63 = vcombine.low %v8342_v26, %v8356_v56  ;;  %v18163_v3 = vcombine.low %v8034_v43, %v8048_v14  ;;  %v18165_v51 = vcombine.high %v8034_v43, %v8048_v14  ;;  %v8303_v8 = vcombine.high %v24818_v7, %v24826_v24  ;;  %v24903_v25 = vpop.f32.mrb[119].mxu1  ;;  %v24950_v17 = vpop.f32.mrb[120].mxu0 }
 0x552   : > { %26946 = vst [vmem:[#allocation149_spill] sm:$0xff] %v24892_v31  ;;  %26947 = vst [vmem:[#allocation150_spill] sm:$0xff] %v24894_v30  ;;  %v8376_v53 = vrot.slane %v8364_v6, %v26602_v60  ;;  %v24898_v9 = vrot.slane %v8365_v12, %v26602_v60  ;;  %v8321_v46 = vrot.slane %v8301_v36, %v26602_v60 }
 0x553   : > { %v8368_v45 = vcombine.high %v8342_v26, %v8356_v56  ;;  %26948 = vst [vmem:[#allocation151_spill] sm:$0xff] %v24901_v44  ;;  %26949 = vst [vmem:[#allocation152_spill] sm:$0xff] %v24903_v25  ;;  %v24906_v43 = vrot.slane %v8367_v63, %v26602_v60  ;;  %v11434_v14 = vrot.slane %v18163_v3, %v26602_v60 }
 0x554   : > { %v11448_v24 = vrot.slane %v18165_v51, %v26602_v60  ;;  %v8335_v30 = vrot.slane %v8303_v8, %v26602_v60  ;;  %v18167_v6 = vcombine.low %v8041_v55, %v8376_v53  ;;  %v18737_v26 = vadd.f32 %v24468_v61, %v24461_v34  ;;  %v26950_v55 = vld [vmem:[#allocation50_spill] sm:$0xff] }
 0x555   : > { %v24912_v12 = vrot.slane %v8368_v45, %v26602_v60  ;;  %v18795_v56 = vadd.f32 %v24470_v38, %v24463_v2  ;;  %v8413_v36 = vcombine.high %v8376_v53, %v24906_v43  ;;  %v18740_v45 = vadd.f32 %v24486_v58, %v24477_v13 }
 0x556   : > { %v11485_v63 = vcombine.high %v11434_v14, %v11448_v24  ;;  %v11484_v25 = vcombine.low %v11434_v14, %v11448_v24  ;;  %v8366_v44 = vcombine.low %v8321_v46, %v8335_v30  ;;  %v11462_v3 = vrot.slane %v18167_v6, %v26602_v60  ;;  %v26953_v30 = vld [vmem:[#allocation39_spill] sm:$0xff]  ;;  %v26954_v46 = vld [vmem:[#allocation112_spill] sm:$0xff]  ;;  %v26955_v14 = vld [vmem:[#allocation86_spill] sm:$0xff] }
 0x557   : > { %v8416_v51 = vcombine.high %v24898_v9, %v24912_v12  ;;  %v13356_v8 = vadd.f32 %v18737_v26, %v26950_v55  ;;  %v18169_v34 = vcombine.low %v24898_v9, %v8413_v36  ;;  %v13359_v53 = vadd.f32 %v18740_v45, %v26953_v30  ;;  %v26956_v26 = vld [vmem:[#allocation64_spill] sm:$0xff]  ;;  %v26961_v45 = vld [vmem:[#allocation70_spill] sm:$0xff]  ;;  %26965 = vst [vmem:[#allocation112_spill] sm:$0xff] %v24950_v17  ;;  %v26975_v17 = vld [vmem:[#allocation43_spill] sm:$0xff] }
 0x558   : > { %v11512_v61 = vrot.slane %v11485_v63, %v26602_v60  ;;  %v11498_v2 = vrot.slane %v11484_v25, %v26602_v60  ;;  %v24929_v38 = vrot.slane %v8366_v44, %v26602_v60  ;;  %v18798_v6 = vadd.f32 %v26955_v14, %v26954_v46  ;;  %v26957_v36 = vld [vmem:[#allocation40_spill] sm:$0xff]  ;;  %v26962_v30 = vld [vmem:[#allocation90_spill] sm:$0xff]  ;;  %v26964_v14 = vld [vmem:[#allocation35_spill] sm:$0xff] }
 0x559   : > { %v24931_v24 = vadd.f32 %v18795_v56, %v13356_v8  ;;  %v4607_v55 = vrot.slane %v26956_v26, 7  ;;  %v11476_v13 = vrot.slane %v18169_v34, %v26602_v60  ;;  %v26958_v63 = vld [vmem:[#allocation68_spill] sm:$0xff]  ;;  %v26960_v56 = vld [vmem:[#allocation65_spill] sm:$0xff]  ;;  %v5679_v16 = vcombine.low %v26962_v30, %v26961_v45  ;;  %v26963_v46 = vld [vmem:[#allocation118_spill] sm:$0xff]  ;;  %v24952_v34 = vpop.f32.mrb[120].mxu1 }
 0x55a   : > { %26951 = vst [vmem:[#allocation50_spill] sm:$0xff] %v24929_v38  ;;  %v18176_v58 = vcombine.low %v8416_v51, %v24929_v38  ;;  %v5180_v31 = vcombine.low %v26958_v63, %v26957_v36  ;;  %v5181_v44 = vcombine.high %v26958_v63, %v26957_v36  ;;  %v24943_v25 = vadd.f32 %v18798_v6, %v13359_v53  ;;  %v24958_v53 = vpop.f32.mrb[121].mxu0  ;;  %v24960_v6 = vpop.f32.mrb[121].mxu1  ;;  %v26969_v30 = vld [vmem:[#allocation91_spill] sm:$0xff] }
 0x55b   : > { %26952 = vst [vmem:[#allocation153_spill] sm:$0xff] %v24931_v24  ;;  %v4608_v8 = vor.u32 %v4607_v55, %v26960_v56  ;;  %v18743_v26 = vadd.f32 %v26964_v14, %v26963_v46  ;;  %26966 = vst [vmem:[#allocation86_spill] sm:$0xff] %v24952_v34  ;;  %v11489_v51 = vcombine.high %v11462_v3, %v11476_v13  ;;  %v24964_v14 = vpop.f32.mrb[122].mxu0  ;;  %v24966_v34 = vpop.f32.mrb[122].mxu1  ;;  %v26980_v24 = vld [vmem:[#allocation73_spill] sm:$0xff] }
 0x55c   : > { %26959 = vst [vmem:[#allocation39_spill] sm:$0xff] %v24943_v25  ;;  %v11488_v38 = vcombine.low %v11462_v3, %v11476_v13  ;;  %v11713_v52 = vrot.slane %v18176_v58, %v26602_v60  ;;  %v24956_v36 = vrot.slane %v5180_v31, %v26602_v60  ;;  %26967 = vst [vmem:[#allocation64_spill] sm:$0xff] %v24958_v53  ;;  %v24973_v53 = vpop.f32.mrb[123].mxu0 }
 0x55d   : > { %26968 = vst [vmem:[#allocation40_spill] sm:$0xff] %v24960_v6  ;;  %v4661_v55 = vshrl.u32 %v4608_v8, 16  ;;  %v4663_v63 = vshll.u32 %v4608_v8, 16  ;;  %v5237_v56 = vrot.slane %v5181_v44, %v26602_v60  ;;  %v18046_v46 = vcombine.high %v5679_v16, %v26969_v30  ;;  %26970 = vst [vmem:[#allocation68_spill] sm:$0xff] %v24964_v14  ;;  %v24975_v6 = vpop.f32.mrb[123].mxu1  ;;  %v26974_v16 = vld [vmem:[#allocation110_spill] sm:$0xff] }
 0x55e   : > { %26971 = vst [vmem:[#allocation65_spill] sm:$0xff] %v24966_v34  ;;  %v11540_v3 = vrot.slane %v11489_v51, %v26602_v60  ;;  %v11526_v13 = vrot.slane %v11488_v38, %v26602_v60  ;;  %v11721_v31 = vcombine.high %v11713_v52, %v11713_v52  ;;  %v24971_v58 = vrot.slane %v11713_v52, %v26602_v60  ;;  %v26976_v34 = vld [vmem:[#allocation66_spill] sm:$0xff] }
 0x55f   : > { %26972 = vst [vmem:[#allocation70_spill] sm:$0xff] %v24973_v53  ;;  %26973 = vst [vmem:[#allocation90_spill] sm:$0xff] %v24975_v6  ;;  %v4665_v8 = vrot.slane %v4663_v63, 1  ;;  %v24978_v44 = vrot.slane %v18046_v46, %v26602_v60  ;;  %v13364_v14 = vadd.f32 %v18743_v26, %v26974_v16  ;;  %v18801_v25 = vadd.f32 %v26976_v34, %v26975_v17  ;;  %v26977_v63 = vld [vmem:[#allocation103_spill] sm:$0xff]  ;;  %v26978_v46 = vld [vmem:[#allocation97_spill] sm:$0xff] }
 0x560   : > { %v11552_v51 = vcombine.low %v11512_v61, %v11540_v3  ;;  %v11553_v50 = vcombine.high %v11512_v61, %v11540_v3  ;;  %v11548_v38 = vcombine.low %v11498_v2, %v11526_v13  ;;  %v11549_v47 = vcombine.high %v11498_v2, %v11526_v13  ;;  %v26979_v16 = vld [vmem:[#allocation63_spill] sm:$0xff]  ;;  %v26981_v34 = vld [vmem:[#allocation42_spill] sm:$0xff]  ;;  %v26982_v3 = vld [vmem:[#allocation44_spill] sm:$0xff] }
 0x561   : > { %v11743_v52 = vrot.slane %v11721_v31, %v26602_v60  ;;  %v11751_v53 = vcombine.high %v24971_v58, %v24971_v58  ;;  %v4666_v21 = vor.u32 %v4665_v8, %v4661_v55  ;;  %v24986_v6 = vadd.f32 %v18801_v25, %v13364_v14  ;;  %v26983_v2 = vld [vmem:[#allocation88_spill] sm:$0xff] }
 0x562   : > { %13921 = vmatprep.mubr.bf16.mxu0 %v11552_v51  ;;  %14009 = vmatprep.mubr.bf16.mxu1 %v11553_v50  ;;  %v18746_v26 = vadd.f32 %v26978_v46, %v26977_v63  ;;  %v18804_v17 = vadd.f32 %v26980_v24, %v26979_v16  ;;  %v4611_v61 = vrot.slane %v26981_v34, 7  ;;  %v5569_v13 = vcombine.high %v26983_v2, %v26982_v3  ;;  %v26985_v50 = vld [vmem:[#allocation115_spill] sm:$0xff]  ;;  %v26986_v8 = vld [vmem:[#allocation36_spill] sm:$0xff]  ;;  %v26988_v46 = vld [vmem:[#allocation94_spill] sm:$0xff] }
 0x563   : > { %13922 = vmatmul.mubr.bf16.gmra.mrb[188].mxu0 %v11548_v38  ;;  %14010 = vmatmul.mubr.bf16.gmra.mrb[188].mxu1 %v11549_v47  ;;  %v11753_v31 = vcombine.high %v11743_v52, %v11743_v52  ;;  %v5178_v55 = vcombine.low %v4666_v21, %v26984_v57  ;;  %v5179_v25 = vcombine.high %v4666_v21, %v26984_v57  ;;  %v26987_v63 = vld [vmem:[#allocation92_spill] sm:$0xff]  ;;  %v26989_v38 = vld [vmem:[#allocation114_spill] sm:$0xff] }
 0x564   : > { %13929 = vmatprep.mubr.bf16.mxu0 %v11743_v52  ;;  %v13367_v14 = vadd.f32 %v18746_v26, %v26985_v50  ;;  %v4612_v51 = vor.u32 %v4611_v61, %v26986_v8  ;;  %v5571_v24 = vcombine.high %v26988_v46, %v26987_v63  ;;  %v5613_v16 = vrot.slane %v5569_v13, %v26602_v60  ;;  %v26990_v3 = vld [vmem:[#allocation116_spill] sm:$0xff] }
 0x565   : > { %14017 = vmatprep.mubr.bf16.mxu1 %v11753_v31  ;;  %v5216_v34 = vrot.slane %v5178_v55, %v26602_v60  ;;  %v5223_v47 = vrot.slane %v5179_v25, %v26602_v60  ;;  %v5912_v2 = vcombine.low %v26990_v3, %v26989_v38  ;;  %v5913_v57 = vcombine.high %v26990_v3, %v26989_v38 }
 0x566   : > { %v25008_v21 = vadd.f32 %v18804_v17, %v13367_v14  ;;  %v4717_v52 = vshrl.u32 %v4612_v51, 16  ;;  %v4719_v26 = vshll.u32 %v4612_v51, 16  ;;  %v5627_v61 = vrot.slane %v5571_v24, %v26602_v60  ;;  %v25017_v17 = vpop.f32.mrb[124].mxu0  ;;  %v25019_v14 = vpop.f32.mrb[124].mxu1 }
 0x567   : > { %v5241_v50 = vcombine.low %v5216_v34, %v24956_v36  ;;  %v5242_v13 = vcombine.high %v5216_v34, %v24956_v36  ;;  %v5243_v31 = vcombine.low %v5223_v47, %v5237_v56  ;;  %v5962_v55 = vrot.slane %v5912_v2, %v26602_v60  ;;  %v25026_v34 = vpop.f32.mrb[125].mxu0 }
 0x568   : > { %v4721_v25 = vrot.slane %v4719_v26, 1  ;;  %v5633_v8 = vcombine.low %v5613_v16, %v5627_v61  ;;  %v5969_v63 = vrot.slane %v5913_v57, %v26602_v60  ;;  %v18749_v46 = vadd.f32 %v24564_v41, %v24555_v5  ;;  %v25028_v16 = vpop.f32.mrb[125].mxu1  ;;  %v26992_v41 = vld [vmem:[#allocation48_spill] sm:$0xff]  ;;  %v25034_v2 = vpop.f32.mrb[126].mxu0  ;;  %v26995_v61 = vld [vmem:[#allocation81_spill] sm:$0xff] }
 0x569   : > { %v5271_v51 = vrot.slane %v5241_v50, %v26602_v60  ;;  %v5278_v24 = vrot.slane %v5243_v31, %v26602_v60  ;;  %v5285_v36 = vrot.slane %v5242_v13, %v26602_v60  ;;  %v18807_v56 = vadd.f32 %v24566_v33, %v24557_v1  ;;  %26991 = vst [vmem:[#allocation118_spill] sm:$0xff] %v25028_v16  ;;  %v25036_v57 = vpop.f32.mrb[126].mxu1  ;;  %v25041_v50 = vpop.f32.mrb[127].mxu0  ;;  %v26998_v31 = vld [vmem:[#allocation71_spill] sm:$0xff] }
 0x56a   : > { %v4722_v47 = vor.u32 %v4721_v25, %v4717_v52  ;;  %v5668_v5 = vrot.slane %v5633_v8, %v26602_v60  ;;  %v13372_v38 = vadd.f32 %v18749_v46, %v26992_v41  ;;  %v18752_v3 = vadd.f32 %v24583_v10, %v24574_v15  ;;  %26993 = vst [vmem:[#allocation35_spill] sm:$0xff] %v25034_v2  ;;  %v25043_v13 = vpop.f32.mrb[127].mxu1  ;;  %v26999_v10 = vld [vmem:[#allocation51_spill] sm:$0xff] }
 0x56b   : > { %26994 = vst [vmem:[#allocation91_spill] sm:$0xff] %v25036_v57  ;;  %13930 = vmatmul.mubr.bf16.gmra.mrb[192].mxu0 %v24971_v58  ;;  %14018 = vmatmul.mubr.bf16.gmra.mrb[192].mxu1 %v11751_v53  ;;  %v18040_v1 = vcombine.low %v5271_v51, %v5285_v36  ;;  %v18042_v33 = vcombine.high %v5271_v51, %v5285_v36  ;;  %v4615_v52 = vrot.slane %v26995_v61, 7  ;;  %26996 = vst [vmem:[#allocation110_spill] sm:$0xff] %v25041_v50  ;;  %v27000_v51 = vld [vmem:[#allocation46_spill] sm:$0xff]  ;;  %v27001_v61 = vld [vmem:[#allocation72_spill] sm:$0xff] }
 0x56c   : > { %v18044_v26 = vcombine.low %v5278_v24, %v26969_v30  ;;  %26997 = vst [vmem:[#allocation43_spill] sm:$0xff] %v25043_v13  ;;  %v5678_v25 = vcombine.low %v26998_v31, %v5668_v5  ;;  %v5910_v15 = vcombine.low %v4722_v47, %v26999_v10  ;;  %v5911_v8 = vcombine.high %v4722_v47, %v26999_v10 }
 0x56d   : > { %v25048_v46 = vadd.f32 %v18807_v56, %v13372_v38  ;;  %v9156_v53 = vrot.slane %v18040_v1, %v26602_v60  ;;  %v9170_v58 = vrot.slane %v18042_v33, %v26602_v60  ;;  %v13375_v24 = vadd.f32 %v18752_v3, %v27000_v51 }
 0x56e   : > { %v9184_v30 = vrot.slane %v18044_v26, %v26602_v60  ;;  %v5948_v36 = vrot.slane %v5910_v15, %v26602_v60  ;;  %v5955_v41 = vrot.slane %v5911_v8, %v26602_v60  ;;  %v18065_v5 = vcombine.high %v26961_v45, %v5678_v25 }
 0x56f   : > { %v18810_v31 = vadd.f32 %v27001_v61, %v24576_v32  ;;  %v9201_v47 = vcombine.low %v9156_v53, %v9170_v58  ;;  %v9202_v56 = vcombine.high %v9156_v53, %v9170_v58  ;;  %v25066_v32 = vpop.f32.mrb[128].mxu0  ;;  %v25068_v53 = vpop.f32.mrb[128].mxu1 }
 0x570   : > { %v9205_v38 = vcombine.low %v9184_v30, %v24978_v44  ;;  %v9206_v1 = vcombine.high %v9184_v30, %v24978_v44  ;;  %v5973_v33 = vcombine.low %v5948_v36, %v5962_v55  ;;  %v5974_v10 = vcombine.high %v5948_v36, %v5962_v55  ;;  %27002 = vst [vmem:[#allocation66_spill] sm:$0xff] %v25066_v32  ;;  %v25075_v30 = vpop.f32.mrb[129].mxu0  ;;  %v25077_v51 = vpop.f32.mrb[129].mxu1  ;;  %v27016_v32 = vld [vmem:[#allocation62_spill] sm:$0xff] }
 0x571   : > { %v5975_v26 = vcombine.low %v5955_v41, %v5969_v63  ;;  %v9613_v3 = vrot.slane %v18065_v5, %v26602_v60  ;;  %v9234_v15 = vrot.slane %v9202_v56, %v26602_v60  ;;  %v9220_v45 = vrot.slane %v9201_v47, %v26602_v60  ;;  %27003 = vst [vmem:[#allocation103_spill] sm:$0xff] %v25068_v53  ;;  %v20475_v47 = vld [vmem:[#allocation10 + $0x600] sm:$0xff]   ;;  %v25079_v56 = vpop.f32.mrb[130].mxu0 }
 0x572   : > { %v9262_v8 = vrot.slane %v9206_v1, %v26602_v60  ;;  %v9248_v25 = vrot.slane %v9205_v38, %v26602_v60  ;;  %v6003_v58 = vrot.slane %v5973_v33, %v26602_v60  ;;  %v6017_v55 = vrot.slane %v5974_v10, %v26602_v60  ;;  %27004 = vst [vmem:[#allocation97_spill] sm:$0xff] %v25075_v30  ;;  %v25081_v38 = vpop.f32.mrb[130].mxu1  ;;  %v27009_v10 = vld [vmem:[#allocation69_spill] sm:$0xff] }
 0x573   : > { %v6010_v44 = vrot.slane %v5975_v26, %v26602_v60  ;;  %v25073_v63 = vadd.f32 %v18810_v31, %v13375_v24  ;;  %27005 = vst [vmem:[#allocation63_spill] sm:$0xff] %v25077_v51  ;;  %27006 = vst [vmem:[#allocation73_spill] sm:$0xff] %v25079_v56  ;;  %v27008_v26 = vld [vmem:[#allocation99_spill] sm:$0xff]  ;;  %v4616_v24 = vor.u32 %v4615_v52, %v27009_v10  ;;  %v25085_v31 = vpop.f32.mrb[131].mxu0  ;;  %v25087_v30 = vpop.f32.mrb[131].mxu1  ;;  %v27015_v51 = vld [vmem:[#allocation45_spill] sm:$0xff] }
 0x574   : > { %v9269_v36 = vcombine.low %v9234_v15, %v9262_v8  ;;  %v9270_v41 = vcombine.high %v9234_v15, %v9262_v8  ;;  %v9265_v5 = vcombine.low %v9220_v45, %v9248_v25  ;;  %v9266_v61 = vcombine.high %v9220_v45, %v9248_v25  ;;  %27007 = vst [vmem:[#allocation42_spill] sm:$0xff] %v25081_v38  ;;  %v27012_v15 = vld [vmem:[#allocation82_spill] sm:$0xff]  ;;  %v27013_v8 = vld [vmem:[#allocation59_spill] sm:$0xff]  ;;  %v27017_v38 = vld [vmem:[#allocation93_spill] sm:$0xff] }
 0x575   : > { %v18067_v1 = vcombine.low %v6003_v58, %v6017_v55  ;;  %v18069_v33 = vcombine.high %v6003_v58, %v6017_v55  ;;  %v18071_v53 = vcombine.low %v6010_v44, %v27008_v26  ;;  %27010 = vst [vmem:[#allocation44_spill] sm:$0xff] %v25085_v31  ;;  %27011 = vst [vmem:[#allocation88_spill] sm:$0xff] %v25087_v30  ;;  %v27014_v25 = vld [vmem:[#allocation75_spill] sm:$0xff]  ;;  %v27018_v58 = vld [vmem:[#allocation106_spill] sm:$0xff] }
 0x576   : > { %14057 = vmatprep.mubr.bf16.mxu0 %v9269_v36  ;;  %14145 = vmatprep.mubr.bf16.mxu1 %v9270_v41  ;;  %v6253_v45 = vcombine.high %v27013_v8, %v27012_v15  ;;  %v6255_v56 = vcombine.high %v27015_v51, %v27014_v25  ;;  %v6363_v13 = vcombine.low %v27017_v38, %v27016_v32  ;;  %v4619_v55 = vrot.slane %v27018_v58, 7  ;;  %v20476_v10 = vld [vmem:[#allocation10 + $0x608] sm:$0xff]   ;;  %v27020_v38 = vld [vmem:[#allocation113_spill] sm:$0xff] }
 0x577   : > { %14058 = vmatmul.mubr.bf16.vlgmr.msra.gmra.mrb[196].mxu0 %v9265_v5  ;;  %14146 = vmatmul.mubr.bf16.vlgmr.msra.gmra.mrb[196].mxu1 %v9266_v61  ;;  %v9627_v52 = vrot.slane %v18067_v1, %v26602_v60  ;;  %v9641_v44 = vrot.slane %v18069_v33, %v26602_v60  ;;  %v9655_v36 = vrot.slane %v18071_v53, %v26602_v60  ;;  %v4773_v41 = vshrl.u32 %v4616_v24, 16  ;;  %v27019_v25 = vld [vmem:[#allocation78_spill] sm:$0xff] }
 0x578   : > { %19606 = vmatpush3.bf16.msra.mxu0 %v20475_v47  ;;  %v4775_v15 = vshll.u32 %v4616_v24, 16  ;;  %v6297_v8 = vrot.slane %v6253_v45, %v26602_v60  ;;  %v6311_v51 = vrot.slane %v6255_v56, %v26602_v60  ;;  %v6596_v30 = vcombine.low %v27020_v38, %v27019_v25 }
 0x579   : > { %v9659_v58 = vcombine.high %v9613_v3, %v9627_v52  ;;  %v9663_v5 = vcombine.high %v9641_v44, %v9655_v36  ;;  %v27021_v61 = vmov 0.0   ;;  %v9658_v1 = vcombine.low %v9613_v3, %v9627_v52 }
 0x57a   : > { %19607 = vmatprep.subr.bf16.mxu0 %v27021_v61  ;;  %v9662_v31 = vcombine.low %v9641_v44, %v9655_v36  ;;  %v4777_v33 = vrot.slane %v4775_v15, 1  ;;  %v6317_v57 = vcombine.low %v6297_v8, %v6311_v51  ;;  %v6646_v53 = vrot.slane %v6596_v30, %v26602_v60  ;;  %v20477_v36 = vld [vmem:[#allocation10 + $0x610] sm:$0xff]   ;;  %v27022_v15 = vld [vmem:[#allocation101_spill] sm:$0xff] }
 0x57b   : > { %v18090_v47 = vcombine.high %v6363_v13, %v27008_v26  ;;  %v9691_v24 = vrot.slane %v9659_v58, %v26602_v60  ;;  %v9719_v45 = vrot.slane %v9663_v5, %v26602_v60  ;;  %v9677_v56 = vrot.slane %v9658_v1, %v26602_v60  ;;  %v27023_v51 = vld [vmem:[#allocation84_spill] sm:$0xff]  ;;  %v27026_v5 = vld [vmem:[#allocation58_spill] sm:$0xff]  ;;  %v27028_v1 = vld [vmem:[#allocation83_spill] sm:$0xff] }
 0x57c   : > { %v9705_v50 = vrot.slane %v9662_v31, %v26602_v60  ;;  %19608 = vmatpush3.bf16.msra.mxu0 %v20476_v10  ;;  %v4778_v2 = vor.u32 %v4777_v33, %v4773_v41  ;;  %v6352_v16 = vrot.slane %v6317_v57, %v26602_v60  ;;  %v18755_v52 = vadd.f32 %v24644_v11, %v24638_v28  ;;  %v27024_v10 = vld [vmem:[#allocation80_spill] sm:$0xff]  ;;  %v27027_v11 = vld [vmem:[#allocation77_spill] sm:$0xff]  ;;  %v27029_v33 = vld [vmem:[#allocation107_spill] sm:$0xff] }
 0x57d   : > { %v10070_v3 = vrot.slane %v18090_v47, %v26602_v60  ;;  %v9726_v30 = vcombine.low %v9691_v24, %v9719_v45  ;;  %v9727_v44 = vcombine.high %v9691_v24, %v9719_v45  ;;  %19609 = vmatprep.subr.bf16.mxu0 %v27021_v61  ;;  %v27025_v57 = vld [vmem:[#allocation76_spill] sm:$0xff]  ;;  %v18758_v28 = vadd.f32 %v24657_v0, %v27026_v5 }
 0x57e   : > { %v9722_v13 = vcombine.low %v9677_v56, %v9705_v50  ;;  %v9723_v26 = vcombine.high %v9677_v56, %v9705_v50  ;;  %v6362_v8 = vcombine.low %v27022_v15, %v6352_v16  ;;  %v6594_v31 = vcombine.low %v4778_v2, %v27023_v51  ;;  %v27030_v56 = vld [vmem:[#allocation102_spill] sm:$0xff] }
 0x57f   : > { %v13380_v41 = vadd.f32 %v18755_v52, %v27024_v10  ;;  %v18813_v58 = vadd.f32 %v27025_v57, %v24640_v23  ;;  %14065 = vmatprep.mubr.bf16.mxu0 %v9726_v30  ;;  %14153 = vmatprep.mubr.bf16.mxu1 %v9727_v44  ;;  %v18816_v50 = vadd.f32 %v27028_v1, %v27027_v11  ;;  %v20478_v44 = vld [vmem:[#allocation10 + $0x618] sm:$0xff]   ;;  %v25142_v57 = vpop.f32.mrb[132].mxu0 }
 0x580   : > { %v4620_v47 = vor.u32 %v4619_v55, %v27029_v33  ;;  %14066 = vmatmul.mubr.bf16.gmra.mrb[200].mxu0 %v9722_v13  ;;  %14154 = vmatmul.mubr.bf16.gmra.mrb[200].mxu1 %v9723_v26  ;;  %v6632_v16 = vrot.slane %v6594_v31, %v26602_v60  ;;  %v18092_v24 = vcombine.high %v27016_v32, %v6362_v8  ;;  %v25152_v11 = vpop.f32.mrb[133].mxu0 }
 0x581   : > { %v25127_v45 = vadd.f32 %v18813_v58, %v13380_v41  ;;  %v13383_v23 = vadd.f32 %v18758_v28, %v27030_v56  ;;  %19610 = vmatpush3.bf16.msra.mxu0 %v20477_v36  ;;  %v6595_v0 = vcombine.high %v4778_v2, %v27023_v51  ;;  %v6597_v13 = vcombine.high %v27020_v38, %v27019_v25  ;;  %v27031_v36 = vld [vmem:[#allocation52_spill] sm:$0xff]  ;;  %v25144_v58 = vpop.f32.mrb[132].mxu1  ;;  %v27033_v56 = vld [vmem:[#allocation74_spill] sm:$0xff] }
 0x582   : > { %v4829_v52 = vshrl.u32 %v4620_v47, 16  ;;  %v4831_v30 = vshll.u32 %v4620_v47, 16  ;;  %v6657_v15 = vcombine.low %v6632_v16, %v6646_v53  ;;  %v6658_v10 = vcombine.high %v6632_v16, %v6646_v53  ;;  %19611 = vmatprep.subr.bf16.mxu0 %v27021_v61  ;;  %v25154_v1 = vpop.f32.mrb[133].mxu1  ;;  %v25159_v16 = vpop.f32.mrb[134].mxu0 }
 0x583   : > { %v10084_v55 = vrot.slane %v18092_v24, %v26602_v60  ;;  %v25135_v32 = vadd.f32 %v18816_v50, %v13383_v23  ;;  %v6639_v8 = vrot.slane %v6595_v0, %v26602_v60  ;;  %v6937_v31 = vcombine.high %v27031_v36, %v26867_v4  ;;  %v20479_v4 = vld [vmem:[#allocation10 + $0x620] sm:$0xff]   ;;  %v25161_v24 = vpop.f32.mrb[134].mxu1  ;;  %v27034_v23 = vld [vmem:[#allocation47_spill] sm:$0xff]  ;;  %v25168_v0 = vpop.f32.mrb[135].mxu0 }
 0x584   : > { %v4833_v26 = vrot.slane %v4831_v30, 1  ;;  %v6687_v2 = vrot.slane %v6657_v15, %v26602_v60  ;;  %v6701_v51 = vrot.slane %v6658_v10, %v26602_v60  ;;  %v6653_v38 = vrot.slane %v6597_v13, %v26602_v60  ;;  %27032 = vst [vmem:[#allocation67_spill] sm:$0xff] %v25161_v24  ;;  %v27036_v13 = vld [vmem:[#allocation96_spill] sm:$0xff] }
 0x585   : > { %v10116_v53 = vcombine.high %v10070_v3, %v10084_v55  ;;  %v10115_v41 = vcombine.low %v10070_v3, %v10084_v55  ;;  %v6939_v5 = vcombine.high %v24539_v37, %v24548_v42  ;;  %v6981_v28 = vrot.slane %v6937_v31, %v26602_v60  ;;  %19612 = vmatpush3.bf16.msra.mxu0 %v20478_v44  ;;  %v25170_v44 = vpop.f32.mrb[135].mxu1 }
 0x586   : > { %v25146_v25 = vor.u32 %v4833_v26, %v4829_v52  ;;  %v18094_v3 = vcombine.low %v6687_v2, %v6701_v51  ;;  %v18096_v50 = vcombine.high %v6687_v2, %v6701_v51  ;;  %19613 = vmatprep.subr.bf16.mxu0 %v27021_v61  ;;  %v6659_v37 = vcombine.low %v6639_v8, %v6653_v38  ;;  %v27037_v26 = vld [vmem:[#allocation100_spill] sm:$0xff]  ;;  %v27038_v51 = vld [vmem:[#allocation38_spill] sm:$0xff] }
 0x587   : > { %v10148_v33 = vrot.slane %v10116_v53, %v26602_v60  ;;  %v10134_v47 = vrot.slane %v10115_v41, %v26602_v60  ;;  %v6995_v42 = vrot.slane %v6939_v5, %v26602_v60  ;;  %v7047_v52 = vcombine.low %v27034_v23, %v27033_v56  ;;  %27035 = vst [vmem:[#allocation115_spill] sm:$0xff] %v25170_v44  ;;  %v20480_v41 = vld [vmem:[#allocation10 + $0x628] sm:$0xff]  }
 0x588   : > { %v7278_v30 = vcombine.low %v25146_v25, %v26883_v39  ;;  %v10098_v15 = vrot.slane %v18094_v3, %v26602_v60  ;;  %v10112_v10 = vrot.slane %v18096_v50, %v26602_v60  ;;  %v7280_v55 = vcombine.low %v24650_v54, %v24661_v59  ;;  %v27039_v50 = vld [vmem:[#allocation41_spill] sm:$0xff] }
 0x589   : > { %v18761_v8 = vadd.f32 %v27037_v26, %v27036_v13  ;;  %v6694_v36 = vrot.slane %v6659_v37, %v26602_v60  ;;  %v7001_v31 = vcombine.low %v6981_v28, %v6995_v42  ;;  %v18117_v53 = vcombine.high %v7047_v52, %v27038_v51  ;;  %19614 = vmatpush3.bf16.msra.mxu0 %v20479_v4  ;;  %v27040_v37 = vld [vmem:[#allocation85_spill] sm:$0xff]  ;;  %v27041_v42 = vld [vmem:[#allocation98_spill] sm:$0xff]  ;;  %v25193_v26 = vpop.f32.mrb[136].mxu1 }
 0x58a   : > { %v7316_v2 = vrot.slane %v7278_v30, %v26602_v60  ;;  %v10120_v38 = vcombine.high %v10098_v15, %v10112_v10  ;;  %v10119_v5 = vcombine.low %v10098_v15, %v10112_v10  ;;  %v7330_v3 = vrot.slane %v7280_v55, %v26602_v60  ;;  %19615 = vmatprep.subr.bf16.mxu0 %v27021_v61  ;;  %v25191_v55 = vpop.f32.mrb[136].mxu0 }
 0x58b   : > { %v13388_v23 = vadd.f32 %v18761_v8, %v27039_v50  ;;  %v7036_v44 = vrot.slane %v7001_v31, %v26602_v60  ;;  %v18115_v13 = vcombine.low %v6694_v36, %v27038_v51  ;;  %v10541_v28 = vrot.slane %v18117_v53, %v26602_v60  ;;  %27042 = vst [vmem:[#allocation36_spill] sm:$0xff] %v25193_v26  ;;  %v27043_v8 = vld [vmem:[#allocation37_spill] sm:$0xff]  ;;  %v27044_v51 = vld [vmem:[#allocation79_spill] sm:$0xff] }
 0x58c   : > { %v18819_v30 = vadd.f32 %v27041_v42, %v27040_v37  ;;  %v10176_v4 = vrot.slane %v10120_v38, %v26602_v60  ;;  %v10162_v52 = vrot.slane %v10119_v5, %v26602_v60  ;;  %v7341_v15 = vcombine.low %v7316_v2, %v7330_v3  ;;  %v27045_v53 = vld [vmem:[#allocation61_spill] sm:$0xff]  ;;  %v25201_v37 = vpop.f32.mrb[137].mxu0  ;;  %v25203_v38 = vpop.f32.mrb[137].mxu1  ;;  %v20481_v26 = vld [vmem:[#allocation10 + $0x630] sm:$0xff]  }
 0x58d   : > { %v7342_v10 = vcombine.high %v7316_v2, %v7330_v3  ;;  %v7046_v50 = vcombine.low %v27043_v8, %v7036_v44  ;;  %v10527_v31 = vrot.slane %v18115_v13, %v26602_v60  ;;  %v18764_v24 = vadd.f32 %v27045_v53, %v27044_v51  ;;  %19616 = vmatpush3.bf16.msra.mxu0 %v20480_v41  ;;  %v18890_v44 = vpop.f32.mrb[138].mxu0  ;;  %v18948_v8 = vpop.f32.mrb[138].mxu1 }
 0x58e   : > { %v25197_v36 = vadd.f32 %v18819_v30, %v13388_v23  ;;  %27046 = vst [vmem:[#allocation92_spill] sm:$0xff] %v25201_v37  ;;  %27047 = vst [vmem:[#allocation94_spill] sm:$0xff] %v25203_v38  ;;  %v10183_v5 = vcombine.low %v10148_v33, %v10176_v4  ;;  %v10184_v2 = vcombine.high %v10148_v33, %v10176_v4  ;;  %19617 = vmatprep.subr.bf16.mxu0 %v27021_v61  ;;  %v18891_v51 = vpop.f32.mrb[139].mxu0  ;;  %v18949_v53 = vpop.f32.mrb[139].mxu1  ;;  %v27048_v38 = vld [vmem:[#allocation55_spill] sm:$0xff]  ;;  %v27049_v4 = vld [vmem:[#allocation109_spill] sm:$0xff] }
 0x58f   : > { %v10179_v3 = vcombine.low %v10134_v47, %v10162_v52  ;;  %v10180_v42 = vcombine.high %v10134_v47, %v10162_v52  ;;  %v7371_v23 = vrot.slane %v7341_v15, %v26602_v60  ;;  %v7385_v13 = vrot.slane %v7342_v10, %v26602_v60  ;;  %v27050_v47 = vld [vmem:[#allocation108_spill] sm:$0xff]  ;;  %v25234_v53 = vpop.f32.mrb[140].mxu0 }
 0x590   : > { %v18119_v30 = vcombine.high %v27033_v56, %v7046_v50  ;;  %v10573_v41 = vcombine.high %v10527_v31, %v10541_v28  ;;  %14073 = vmatprep.mubr.bf16.mxu0 %v10183_v5  ;;  %14161 = vmatprep.mubr.bf16.mxu1 %v10184_v2  ;;  %v13391_v33 = vadd.f32 %v18764_v24, %v27048_v38  ;;  %v27051_v8 = vld [vmem:[#allocation104_spill] sm:$0xff]  ;;  %v27052_v2 = vld [vmem:[#allocation95_spill] sm:$0xff] }
 0x591   : > { %v18822_v52 = vadd.f32 %v27050_v47, %v27049_v4  ;;  %v10572_v37 = vcombine.low %v10527_v31, %v10541_v28  ;;  %14074 = vmatmul.mubr.bf16.gmra.mrb[204].mxu0 %v10179_v3  ;;  %14162 = vmatmul.mubr.bf16.gmra.mrb[204].mxu1 %v10180_v42  ;;  %v18121_v44 = vcombine.low %v7371_v23, %v7385_v13  ;;  %v4623_v56 = vrot.slane %v27051_v8, 7  ;;  %v20482_v28 = vld [vmem:[#allocation10 + $0x638] sm:$0xff]   ;;  %v25240_v47 = vpop.f32.mrb[141].mxu0 }
 0x592   : > { %v10555_v15 = vrot.slane %v18119_v30, %v26602_v60  ;;  %v10605_v10 = vrot.slane %v10573_v41, %v26602_v60  ;;  %v7279_v24 = vcombine.high %v25146_v25, %v26883_v39  ;;  %v7281_v38 = vcombine.high %v24650_v54, %v24661_v59  ;;  %19618 = vmatpush3.bf16.msra.mxu0 %v20481_v26  ;;  %v27053_v30 = vld [vmem:[#allocation125_spill] sm:$0xff]  ;;  %v27055_v54 = vld [vmem:[#allocation56_spill] sm:$0xff]  ;;  %v27056_v26 = vld [vmem:[#allocation122_spill] sm:$0xff] }
 0x593   : > { %v25215_v50 = vadd.f32 %v18822_v52, %v13391_v33  ;;  %v10591_v5 = vrot.slane %v10572_v37, %v26602_v60  ;;  %v10569_v31 = vrot.slane %v18121_v44, %v26602_v60  ;;  %v7621_v3 = vcombine.high %v27052_v2, %v26896_v22  ;;  %v27054_v41 = vld [vmem:[#allocation53_spill] sm:$0xff]  ;;  %19619 = vmatprep.subr.bf16.mxu0 %v27021_v61  ;;  %v25236_v33 = vpop.f32.mrb[140].mxu1  ;;  %v27059_v8 = vld [vmem:[#allocation124_spill] sm:$0xff]  ;;  %v25247_v2 = vpop.f32.mrb[142].mxu0 }
 0x594   : > { %v7623_v42 = vcombine.high %v24674_v40, %v24697_v19  ;;  %v7731_v51 = vcombine.low %v27054_v41, %v27053_v30  ;;  %v7323_v39 = vrot.slane %v7279_v24, %v26602_v60  ;;  %v7337_v25 = vrot.slane %v7281_v38, %v26602_v60  ;;  %27057 = vst [vmem:[#allocation114_spill] sm:$0xff] %v25236_v33  ;;  %v25242_v52 = vpop.f32.mrb[141].mxu1  ;;  %v27060_v24 = vld [vmem:[#allocation121_spill] sm:$0xff] }
 0x595   : > { %v18139_v59 = vcombine.high %v7371_v23, %v7385_v13  ;;  %v18767_v37 = vadd.f32 %v27056_v26, %v27055_v54  ;;  %v10577_v22 = vcombine.high %v10555_v15, %v10569_v31  ;;  %v10576_v4 = vcombine.low %v10555_v15, %v10569_v31  ;;  %27058 = vst [vmem:[#allocation116_spill] sm:$0xff] %v25242_v52  ;;  %v25249_v41 = vpop.f32.mrb[142].mxu1  ;;  %v27064_v54 = vld [vmem:[#allocation123_spill] sm:$0xff] }
 0x596   : > { %v7665_v40 = vrot.slane %v7621_v3, %v26602_v60  ;;  %v7679_v19 = vrot.slane %v7623_v42, %v26602_v60  ;;  %v7343_v44 = vcombine.low %v7323_v39, %v7337_v25  ;;  %v18143_v23 = vcombine.high %v7731_v51, %v27059_v8  ;;  %19620 = vmatpush3.bf16.msra.mxu0 %v20482_v28  ;;  %v27063_v42 = vld [vmem:[#allocation119_spill] sm:$0xff]  ;;  %v25255_v39 = vpop.f32.mrb[143].mxu0  ;;  %v25257_v51 = vpop.f32.mrb[143].mxu1 }
 0x597   : > { %v10984_v13 = vrot.slane %v18139_v59, %v26602_v60  ;;  %v13396_v38 = vadd.f32 %v18767_v37, %v27060_v24  ;;  %27061 = vst [vmem:[#allocation48_spill] sm:$0xff] %v25247_v2  ;;  %27062 = vst [vmem:[#allocation81_spill] sm:$0xff] %v25249_v41  ;;  %v10633_v15 = vrot.slane %v10577_v22, %v26602_v60  ;;  %v27067_v59 = vld [vmem:[#allocation126_spill] sm:$0xff]  ;;  %v27068_v37 = vld [vmem:[#allocation129_spill] sm:$0xff] }
 0x598   : > { %v10619_v31 = vrot.slane %v10576_v4, %v26602_v60  ;;  %v7685_v3 = vcombine.low %v7665_v40, %v7679_v19  ;;  %v18825_v26 = vadd.f32 %v27064_v54, %v27063_v42  ;;  %27065 = vst [vmem:[#allocation71_spill] sm:$0xff] %v25255_v39  ;;  %27066 = vst [vmem:[#allocation51_spill] sm:$0xff] %v25257_v51  ;;  %v27069_v41 = vld [vmem:[#allocation127_spill] sm:$0xff]  ;;  %v27070_v2 = vld [vmem:[#allocation130_spill] sm:$0xff] }
 0x599   : > { %v7378_v25 = vrot.slane %v7343_v44, %v26602_v60  ;;  %v11012_v28 = vrot.slane %v18143_v23, %v26602_v60  ;;  %v18770_v24 = vadd.f32 %v27068_v37, %v27067_v59  ;;  %v18828_v22 = vadd.f32 %v27070_v2, %v27069_v41  ;;  %v27071_v51 = vld [vmem:[#allocation128_spill] sm:$0xff]  ;;  %v27072_v23 = vld [vmem:[#allocation105_spill] sm:$0xff]  ;;  %v25279_v41 = vpop.f32.mrb[144].mxu0 }
 0x59a   : > { %v10640_v52 = vcombine.low %v10605_v10, %v10633_v15  ;;  %v10641_v4 = vcombine.high %v10605_v10, %v10633_v15  ;;  %v10636_v40 = vcombine.low %v10591_v5, %v10619_v31  ;;  %v10637_v19 = vcombine.high %v10591_v5, %v10619_v31  ;;  %v27073_v5 = vld [vmem:[#allocation120_spill] sm:$0xff] }
 0x59b   : > { %v7720_v42 = vrot.slane %v7685_v3, %v26602_v60  ;;  %v18141_v54 = vcombine.low %v7378_v25, %v27059_v8  ;;  %v25267_v39 = vadd.f32 %v18825_v26, %v13396_v38  ;;  %v13399_v44 = vadd.f32 %v18770_v24, %v27071_v51 }
 0x59c   : > { %14081 = vmatprep.mubr.bf16.mxu0 %v10640_v52  ;;  %14169 = vmatprep.mubr.bf16.mxu1 %v10641_v4  ;;  %v4624_v33 = vor.u32 %v4623_v56, %v27072_v23  ;;  %v7964_v59 = vcombine.low %v24816_v18, %v24818_v7  ;;  %v7965_v10 = vcombine.high %v24816_v18, %v24818_v7  ;;  %v25281_v52 = vpop.f32.mrb[144].mxu1  ;;  %v25289_v18 = vpop.f32.mrb[145].mxu0  ;;  %v27074_v4 = vld [vmem:[#allocation133_spill] sm:$0xff] }
 0x59d   : > { %14082 = vmatmul.mubr.bf16.gmra.mrb[208].mxu0 %v10636_v40  ;;  %14170 = vmatmul.mubr.bf16.gmra.mrb[208].mxu1 %v10637_v19  ;;  %v7730_v2 = vcombine.low %v27073_v5, %v7720_v42  ;;  %v10998_v8 = vrot.slane %v18141_v54, %v26602_v60  ;;  %v25277_v38 = vadd.f32 %v18828_v22, %v13399_v44  ;;  %v25291_v7 = vpop.f32.mrb[145].mxu1  ;;  %v25296_v24 = vpop.f32.mrb[146].mxu0  ;;  %v27075_v40 = vld [vmem:[#allocation135_spill] sm:$0xff]  ;;  %v27076_v42 = vld [vmem:[#allocation134_spill] sm:$0xff]  ;;  %v27077_v54 = vld [vmem:[#allocation136_spill] sm:$0xff] }
 0x59e   : > { %v4885_v15 = vshrl.u32 %v4624_v33, 16  ;;  %v4887_v56 = vshll.u32 %v4624_v33, 16  ;;  %v25284_v31 = vrot.slane %v7964_v59, %v26602_v60  ;;  %v25287_v3 = vrot.slane %v7965_v10, %v26602_v60  ;;  %v25298_v33 = vpop.f32.mrb[146].mxu1 }
 0x59f   : > { %v18145_v26 = vcombine.high %v27053_v30, %v7730_v2  ;;  %v11030_v51 = vcombine.high %v10984_v13, %v10998_v8  ;;  %v11029_v25 = vcombine.low %v10984_v13, %v10998_v8  ;;  %v8415_v37 = vcombine.low %v24898_v9, %v24912_v12  ;;  %v25306_v30 = vpop.f32.mrb[147].mxu0  ;;  %v25308_v13 = vpop.f32.mrb[147].mxu1 }
 0x5a0   : > { %v4889_v22 = vrot.slane %v4887_v56, 1  ;;  %v18773_v19 = vadd.f32 %v27075_v40, %v27074_v4  ;;  %v18831_v44 = vadd.f32 %v27077_v54, %v27076_v42  ;;  %v8305_v23 = vcombine.high %v24844_v49, %v24810_v29  ;;  %v27081_v42 = vld [vmem:[#allocation140_spill] sm:$0xff] }
 0x5a1   : > { %v11026_v9 = vrot.slane %v18145_v26, %v26602_v60  ;;  %v11062_v59 = vrot.slane %v11030_v51, %v26602_v60  ;;  %v11048_v10 = vrot.slane %v11029_v25, %v26602_v60  ;;  %v18170_v5 = vcombine.high %v8415_v37, %v24906_v43  ;;  %v27078_v51 = vld [vmem:[#allocation131_spill] sm:$0xff] }
 0x5a2   : > { %v4890_v2 = vor.u32 %v4889_v22, %v4885_v15  ;;  %v13404_v8 = vadd.f32 %v18773_v19, %v24882_v27  ;;  %v8307_v56 = vcombine.high %v24854_v35, %v24856_v48  ;;  %v8349_v29 = vrot.slane %v8305_v23, %v26602_v60  ;;  %v27079_v22 = vld [vmem:[#allocation153_spill] sm:$0xff]  ;;  %v27080_v19 = vld [vmem:[#allocation138_spill] sm:$0xff]  ;;  %v25333_v23 = vpop.f32.mrb[148].mxu0 }
 0x5a3   : > { %v11034_v49 = vcombine.high %v11012_v28, %v11026_v9  ;;  %v11033_v4 = vcombine.low %v11012_v28, %v11026_v9  ;;  %v25319_v40 = vrot.slane %v18170_v5, %v26602_v60  ;;  %v18853_v26 = vadd.f32 %v24832_v20, %v24822_v62  ;;  %v25335_v62 = vpop.f32.mrb[148].mxu1  ;;  %v27083_v5 = vld [vmem:[#allocation141_spill] sm:$0xff] }
 0x5a4   : > { %v7962_v25 = vcombine.low %v4890_v2, %v27078_v51  ;;  %v7963_v37 = vcombine.high %v4890_v2, %v27078_v51  ;;  %v25325_v15 = vadd.f32 %v18831_v44, %v13404_v8  ;;  %v8363_v27 = vrot.slane %v8307_v56, %v26602_v60  ;;  %27082 = vst [vmem:[#allocation46_spill] sm:$0xff] %v25335_v62  ;;  %v27084_v2 = vld [vmem:[#allocation143_spill] sm:$0xff]  ;;  %v25341_v56 = vpop.f32.mrb[149].mxu0 }
 0x5a5   : > { %v11090_v35 = vrot.slane %v11034_v49, %v26602_v60  ;;  %v11076_v48 = vrot.slane %v11033_v4, %v26602_v60  ;;  %v13532_v28 = vadd.f32 %v18853_v26, %v27079_v22  ;;  %v18911_v54 = vadd.f32 %v27081_v42, %v27080_v19  ;;  %27085 = vst [vmem:[#allocation72_spill] sm:$0xff] %v25341_v56  ;;  %v25343_v49 = vpop.f32.mrb[149].mxu1  ;;  %v25345_v19 = vpop.f32.mrb[150].mxu0 }
 0x5a6   : > { %v8000_v20 = vrot.slane %v7962_v25, %v26602_v60  ;;  %v8007_v44 = vrot.slane %v7963_v37, %v26602_v60  ;;  %v8369_v9 = vcombine.low %v8349_v29, %v8363_v27  ;;  %v18856_v8 = vadd.f32 %v27084_v2, %v27083_v5  ;;  %27086 = vst [vmem:[#allocation99_spill] sm:$0xff] %v25343_v49  ;;  %v25347_v42 = vpop.f32.mrb[150].mxu1  ;;  %v25353_v5 = vpop.f32.mrb[151].mxu0 }
 0x5a7   : > { %v11097_v4 = vcombine.low %v11062_v59, %v11090_v35  ;;  %v11098_v26 = vcombine.high %v11062_v59, %v11090_v35  ;;  %v11093_v51 = vcombine.low %v11048_v10, %v11076_v48  ;;  %v11094_v22 = vcombine.high %v11048_v10, %v11076_v48  ;;  %27087 = vst [vmem:[#allocation69_spill] sm:$0xff] %v25345_v19  ;;  %v25355_v2 = vpop.f32.mrb[151].mxu1  ;;  %v27091_v10 = vld [vmem:[#allocation39_spill] sm:$0xff]  ;;  %v27092_v48 = vld [vmem:[#allocation142_spill] sm:$0xff] }
 0x5a8   : > { %27088 = vst [vmem:[#allocation82_spill] sm:$0xff] %v25347_v42  ;;  %v8025_v25 = vcombine.low %v8000_v20, %v25284_v31  ;;  %v8026_v37 = vcombine.high %v8000_v20, %v25284_v31  ;;  %v8027_v29 = vcombine.low %v8007_v44, %v25287_v3  ;;  %v8404_v27 = vrot.slane %v8369_v9, %v26602_v60  ;;  %v27093_v42 = vld [vmem:[#allocation144_spill] sm:$0xff]  ;;  %v27094_v44 = vld [vmem:[#allocation50_spill] sm:$0xff] }
 0x5a9   : > { %27089 = vst [vmem:[#allocation59_spill] sm:$0xff] %v25353_v5  ;;  %27090 = vst [vmem:[#allocation75_spill] sm:$0xff] %v25355_v2  ;;  %14089 = vmatprep.mubr.bf16.mxu0 %v11097_v4  ;;  %14177 = vmatprep.mubr.bf16.mxu1 %v11098_v26  ;;  %v25357_v59 = vadd.f32 %v18911_v54, %v13532_v28  ;;  %v13535_v35 = vadd.f32 %v18856_v8, %v27091_v10  ;;  %v27095_v4 = vld [vmem:[#allocation145_spill] sm:$0xff]  ;;  %v27096_v28 = vld [vmem:[#allocation147_spill] sm:$0xff] }
 0x5aa   : > { %v18914_v19 = vadd.f32 %v27093_v42, %v27092_v48  ;;  %14090 = vmatmul.mubr.bf16.gmra.mrb[212].mxu0 %v11093_v51  ;;  %14178 = vmatmul.mubr.bf16.gmra.mrb[212].mxu1 %v11094_v22  ;;  %v8055_v31 = vrot.slane %v8025_v25, %v26602_v60  ;;  %v8062_v3 = vrot.slane %v8027_v29, %v26602_v60  ;;  %v27097_v26 = vld [vmem:[#allocation146_spill] sm:$0xff]  ;;  %v27098_v8 = vld [vmem:[#allocation148_spill] sm:$0xff]  ;;  %v27099_v22 = vld [vmem:[#allocation149_spill] sm:$0xff] }
 0x5ab   : > { %v8069_v20 = vrot.slane %v8026_v37, %v26602_v60  ;;  %v8414_v9 = vcombine.low %v27094_v44, %v8404_v27  ;;  %v18859_v54 = vadd.f32 %v27096_v28, %v27095_v4  ;;  %v18917_v10 = vadd.f32 %v27098_v8, %v27097_v26  ;;  %v27100_v25 = vld [vmem:[#allocation151_spill] sm:$0xff]  ;;  %v27101_v27 = vld [vmem:[#allocation150_spill] sm:$0xff]  ;;  %v27103_v44 = vld [vmem:[#allocation60_spill] sm:$0xff]  ;;  %v25381_v28 = vpop.f32.mrb[152].mxu0  ;;  %v25383_v26 = vpop.f32.mrb[152].mxu1 }
 0x5ac   : > { %v25366_v2 = vadd.f32 %v18914_v19, %v13535_v35  ;;  %v18168_v51 = vcombine.low %v8062_v3, %v24906_v43  ;;  %v18862_v48 = vadd.f32 %v27100_v25, %v27099_v22  ;;  %v27102_v19 = vld [vmem:[#allocation152_spill] sm:$0xff]  ;;  %v5291_v4 = vcombine.high %v27103_v44, %v27103_v44  ;;  %27104 = vst [vmem:[#allocation45_spill] sm:$0xff] %v25381_v28  ;;  %v27120_v28 = vld [vmem:[#allocation65_spill] sm:$0xff] }
 0x5ad   : > { %v18164_v5 = vcombine.low %v8055_v31, %v8069_v20  ;;  %v18166_v42 = vcombine.high %v8055_v31, %v8069_v20  ;;  %v18177_v29 = vcombine.high %v24912_v12, %v8414_v9  ;;  %v13540_v37 = vadd.f32 %v18859_v54, %v24986_v6  ;;  %27105 = vst [vmem:[#allocation62_spill] sm:$0xff] %v25383_v26  ;;  %v25389_v20 = vpop.f32.mrb[153].mxu0  ;;  %v25391_v6 = vpop.f32.mrb[153].mxu1  ;;  %v27114_v26 = vld [vmem:[#allocation64_spill] sm:$0xff] }
 0x5ae   : > { %v18920_v35 = vadd.f32 %v27102_v19, %v27101_v27  ;;  %v11469_v3 = vrot.slane %v18168_v51, %v26602_v60  ;;  %v13543_v12 = vadd.f32 %v18862_v48, %v25008_v21  ;;  %27106 = vst [vmem:[#allocation93_spill] sm:$0xff] %v25389_v20  ;;  %27107 = vst [vmem:[#allocation106_spill] sm:$0xff] %v25391_v6 }
 0x5af   : > { %v11441_v31 = vrot.slane %v18164_v5, %v26602_v60  ;;  %v11455_v43 = vrot.slane %v18166_v42, %v26602_v60  ;;  %v11720_v9 = vrot.slane %v18177_v29, %v26602_v60  ;;  %v25394_v54 = vadd.f32 %v18917_v10, %v13540_v37  ;;  %v25399_v5 = vpop.f32.mrb[154].mxu0  ;;  %v25401_v42 = vpop.f32.mrb[154].mxu1 }
 0x5b0   : > { %v5298_v8 = vrot.slane %v27103_v44, %v26602_v60  ;;  %v5305_v22 = vrot.slane %v5291_v4, %v26602_v60  ;;  %27108 = vst [vmem:[#allocation78_spill] sm:$0xff] %v25399_v5  ;;  %27109 = vst [vmem:[#allocation113_spill] sm:$0xff] %v25401_v42  ;;  %v11491_v21 = vcombine.high %v11469_v3, %v25319_v40  ;;  %v25405_v27 = vpop.f32.mrb[155].mxu0  ;;  %v25407_v29 = vpop.f32.mrb[155].mxu1 }
 0x5b1   : > { %v11487_v51 = vcombine.high %v11441_v31, %v11455_v43  ;;  %v11486_v25 = vcombine.low %v11441_v31, %v11455_v43  ;;  %v11490_v48 = vcombine.low %v11469_v3, %v25319_v40  ;;  %27110 = vst [vmem:[#allocation101_spill] sm:$0xff] %v25405_v27  ;;  %27111 = vst [vmem:[#allocation84_spill] sm:$0xff] %v25407_v29  ;;  %v25428_v20 = vpop.f32.mrb[156].mxu0  ;;  %v25430_v43 = vpop.f32.mrb[156].mxu1 }
 0x5b2   : > { %v11722_v10 = vcombine.high %v11720_v9, %v11720_v9  ;;  %v25410_v37 = vrot.slane %v11720_v9, %v26602_v60  ;;  %v25412_v19 = vadd.f32 %v18920_v35, %v13543_v12  ;;  %v5306_v44 = vcombine.high %v5298_v8, %v5298_v8  ;;  %27115 = vst [vmem:[#allocation80_spill] sm:$0xff] %v25430_v43  ;;  %v25438_v62 = vpop.f32.mrb[157].mxu0  ;;  %v25440_v56 = vpop.f32.mrb[157].mxu1 }
 0x5b3   : > { %v11519_v4 = vrot.slane %v11487_v51, %v26602_v60  ;;  %v11547_v42 = vrot.slane %v11491_v21, %v26602_v60  ;;  %v11505_v5 = vrot.slane %v11486_v25, %v26602_v60  ;;  %v11533_v31 = vrot.slane %v11490_v48, %v26602_v60  ;;  %v27112_v25 = vld [vmem:[#allocation111_spill] sm:$0xff]  ;;  %v27113_v48 = vld [vmem:[#allocation112_spill] sm:$0xff]  ;;  %27122 = vst [vmem:[#allocation76_spill] sm:$0xff] %v25440_v56  ;;  %v25445_v43 = vpop.f32.mrb[158].mxu1 }
 0x5b4   : > { %v11750_v40 = vrot.slane %v11722_v10, %v26602_v60  ;;  %v5313_v3 = vrot.slane %v5298_v8, %v26602_v60  ;;  %v5320_v9 = vrot.slane %v5305_v22, %v26602_v60  ;;  %v5327_v21 = vrot.slane %v5306_v44, %v26602_v60  ;;  %v27116_v8 = vld [vmem:[#allocation86_spill] sm:$0xff]  ;;  %v27117_v22 = vld [vmem:[#allocation40_spill] sm:$0xff]  ;;  %27124 = vst [vmem:[#allocation77_spill] sm:$0xff] %v25445_v43 }
 0x5b5   : > { %v11554_v35 = vcombine.low %v11519_v4, %v11547_v42  ;;  %v11555_v12 = vcombine.high %v11519_v4, %v11547_v42  ;;  %v11550_v29 = vcombine.low %v11505_v5, %v11533_v31  ;;  %v11551_v27 = vcombine.high %v11505_v5, %v11533_v31  ;;  %v27118_v4 = vld [vmem:[#allocation68_spill] sm:$0xff]  ;;  %v27119_v5 = vld [vmem:[#allocation70_spill] sm:$0xff] }
 0x5b6   : > { %v11754_v51 = vcombine.high %v11750_v40, %v11750_v40  ;;  %v5688_v6 = vrot.slane %v27112_v25, %v26602_v60  ;;  %v18865_v10 = vadd.f32 %v27114_v26, %v27113_v48  ;;  %v18923_v42 = vadd.f32 %v27117_v22, %v27116_v8  ;;  %v27121_v44 = vld [vmem:[#allocation90_spill] sm:$0xff] }
 0x5b7   : > { %14097 = vmatprep.mubr.bf16.mxu0 %v11554_v35  ;;  %14185 = vmatprep.mubr.bf16.mxu1 %v11555_v12  ;;  %v18868_v31 = vadd.f32 %v27119_v5, %v27118_v4  ;;  %v18926_v49 = vadd.f32 %v27121_v44, %v27120_v28  ;;  %v9271_v35 = vcombine.low %v5313_v3, %v5327_v21  ;;  %v25443_v12 = vpop.f32.mrb[158].mxu0  ;;  %v27125_v4 = vld [vmem:[#allocation57_spill] sm:$0xff] }
 0x5b8   : > { %14098 = vmatmul.mubr.bf16.gmra.mrb[216].mxu0 %v11550_v29  ;;  %14186 = vmatmul.mubr.bf16.gmra.mrb[216].mxu1 %v11551_v27  ;;  %v5696_v26 = vcombine.high %v5688_v6, %v5688_v6  ;;  %v5703_v48 = vrot.slane %v5688_v6, %v26602_v60  ;;  %27123 = vst [vmem:[#allocation58_spill] sm:$0xff] %v25443_v12  ;;  %v25450_v44 = vpop.f32.mrb[159].mxu0  ;;  %v25452_v27 = vpop.f32.mrb[159].mxu1 }
 0x5b9   : > { %14105 = vmatprep.mubr.bf16.mxu0 %v11750_v40  ;;  %14193 = vmatprep.mubr.bf16.mxu1 %v11754_v51  ;;  %v18047_v8 = vcombine.high %v5313_v3, %v5327_v21  ;;  %v13548_v22 = vadd.f32 %v18865_v10, %v25048_v46  ;;  %v13551_v28 = vadd.f32 %v18868_v31, %v25073_v63  ;;  %v27127_v31 = vld [vmem:[#allocation117_spill] sm:$0xff] }
 0x5ba   : > { %27126 = vst [vmem:[#allocation83_spill] sm:$0xff] %v25452_v27  ;;  %v5717_v6 = vrot.slane %v5696_v26, %v26602_v60  ;;  %v5718_v29 = vcombine.high %v5703_v48, %v5703_v48  ;;  %v9273_v56 = vcombine.low %v5320_v9, %v5703_v48  ;;  %v9281_v12 = vrot.slane %v9271_v35, %v26602_v60 }
 0x5bb   : > { %v9288_v40 = vrot.slane %v18047_v8, %v26602_v60  ;;  %v25457_v51 = vadd.f32 %v18923_v42, %v13548_v22  ;;  %v25459_v3 = vadd.f32 %v18926_v49, %v13551_v28  ;;  %v5681_v46 = vcombine.high %v27112_v25, %v27112_v25  ;;  %v27128_v42 = vld [vmem:[#allocation89_spill] sm:$0xff]  ;;  %v27129_v8 = vld [vmem:[#allocation118_spill] sm:$0xff]  ;;  %v25477_v28 = vpop.f32.mrb[160].mxu0 }
 0x5bc   : > { %v9274_v63 = vcombine.low %v5717_v6, %v5718_v29  ;;  %v9295_v21 = vrot.slane %v9273_v56, %v26602_v60  ;;  %v5719_v10 = vcombine.high %v5717_v6, %v5717_v6  ;;  %v6023_v26 = vcombine.high %v27127_v31, %v27127_v31  ;;  %27130 = vst [vmem:[#allocation107_spill] sm:$0xff] %v25477_v28  ;;  %v27142_v28 = vld [vmem:[#allocation43_spill] sm:$0xff] }
 0x5bd   : > { %v9303_v5 = vcombine.low %v9281_v12, %v9288_v40  ;;  %v5695_v9 = vrot.slane %v5681_v46, %v26602_v60  ;;  %v6030_v48 = vrot.slane %v27127_v31, %v26602_v60  ;;  %v6372_v49 = vrot.slane %v27128_v42, %v26602_v60  ;;  %v25479_v12 = vpop.f32.mrb[160].mxu1 }
 0x5be   : > { %v9302_v35 = vrot.slane %v9274_v63, %v26602_v60  ;;  %v6037_v25 = vrot.slane %v6023_v26, %v26602_v60  ;;  %v18871_v56 = vadd.f32 %v25026_v34, %v25017_v17  ;;  %v18929_v22 = vadd.f32 %v27129_v8, %v25019_v14  ;;  %27131 = vst [vmem:[#allocation102_spill] sm:$0xff] %v25479_v12  ;;  %v25484_v63 = vpop.f32.mrb[161].mxu0  ;;  %v25486_v31 = vpop.f32.mrb[161].mxu1  ;;  %v27135_v26 = vld [vmem:[#allocation132_spill] sm:$0xff] }
 0x5bf   : > { %v9311_v6 = vrot.slane %v9303_v5, %v26602_v60  ;;  %v5710_v29 = vrot.slane %v5695_v9, %v26602_v60  ;;  %v6038_v40 = vcombine.high %v6030_v48, %v6030_v48  ;;  %v6045_v46 = vrot.slane %v6030_v48, %v26602_v60  ;;  %27132 = vst [vmem:[#allocation52_spill] sm:$0xff] %v25484_v63  ;;  %v25495_v8 = vpop.f32.mrb[162].mxu0  ;;  %v25497_v48 = vpop.f32.mrb[162].mxu1 }
 0x5c0   : > { %27133 = vst [vmem:[#allocation74_spill] sm:$0xff] %v25486_v31  ;;  %14106 = vmatmul.mubr.bf16.gmra.mrb[220].mxu0 %v25410_v37  ;;  %v27134_v17 = vcombine.high %v25410_v37, %v25410_v37  ;;  %v9304_v14 = vcombine.low %v9295_v21, %v9302_v35  ;;  %v6052_v34 = vrot.slane %v6037_v25, %v26602_v60  ;;  %27136 = vst [vmem:[#allocation47_spill] sm:$0xff] %v25495_v8  ;;  %v27138_v21 = vld [vmem:[#allocation35_spill] sm:$0xff]  ;;  %v27139_v35 = vld [vmem:[#allocation110_spill] sm:$0xff]  ;;  %v25507_v63 = vpop.f32.mrb[163].mxu1 }
 0x5c1   : > { %v6387_v5 = vrot.slane %v6372_v49, %v26602_v60  ;;  %27137 = vst [vmem:[#allocation96_spill] sm:$0xff] %v25497_v48  ;;  %19621 = vmatprep.mubr.msk.bf16.mxu0 %vm21089_vm7, %v27021_v61  ;;  %v6059_v31 = vrot.slane %v6038_v40, %v26602_v60  ;;  %v9728_v12 = vcombine.low %v5719_v10, %v5710_v29  ;;  %27140 = vst [vmem:[#allocation100_spill] sm:$0xff] %v25507_v63  ;;  %v27141_v48 = vld [vmem:[#allocation91_spill] sm:$0xff] }
 0x5c2   : > { %14194 = vmatmul.mubr.bf16.gmra.mrb[220].mxu1 %v27134_v17  ;;  %v13556_v37 = vadd.f32 %v18871_v56, %v25127_v45  ;;  %v18874_v25 = vadd.f32 %v27139_v35, %v27138_v21  ;;  %v25505_v17 = vpop.f32.mrb[163].mxu0  ;;  %v9318_v9 = vrot.slane %v9304_v14, %v26602_v60  ;;  %v18932_v27 = vadd.f32 %v27142_v28, %v27141_v48 }
 0x5c3   : > { %v9731_v8 = vcombine.low %v6052_v34, %v6387_v5  ;;  %v6365_v43 = vcombine.high %v27128_v42, %v27128_v42  ;;  %v9729_v40 = vcombine.low %v6045_v46, %v6059_v31  ;;  %v18072_v10 = vcombine.high %v6045_v46, %v6059_v31  ;;  %v27145_v31 = vld [vmem:[#allocation97_spill] sm:$0xff] }
 0x5c4   : > { %v9738_v45 = vrot.slane %v9728_v12, %v26602_v60  ;;  %v25515_v56 = vadd.f32 %v18929_v22, %v13556_v37  ;;  %v9319_v29 = vcombine.low %v9311_v6, %v9318_v9  ;;  %v13559_v35 = vadd.f32 %v18874_v25, %v25135_v32  ;;  %v27143_v22 = vld [vmem:[#allocation54_spill] sm:$0xff]  ;;  %v25531_v32 = vpop.f32.mrb[164].mxu1 }
 0x5c5   : > { %v9759_v21 = vrot.slane %v9731_v8, %v26602_v60  ;;  %v6379_v14 = vrot.slane %v6365_v43, %v26602_v60  ;;  %v9745_v34 = vrot.slane %v9729_v40, %v26602_v60  ;;  %v9752_v28 = vrot.slane %v18072_v10, %v26602_v60  ;;  %v27144_v6 = vld [vmem:[#allocation66_spill] sm:$0xff]  ;;  %v25529_v8 = vpop.f32.mrb[164].mxu0  ;;  %27147 = vst [vmem:[#allocation41_spill] sm:$0xff] %v25531_v32  ;;  %v25538_v10 = vpop.f32.mrb[165].mxu1 }
 0x5c6   : > { %v6380_v48 = vcombine.high %v6372_v49, %v6372_v49  ;;  %v6402_v63 = vcombine.high %v6387_v5, %v6387_v5  ;;  %v25522_v42 = vadd.f32 %v18932_v27, %v13559_v35  ;;  %v6714_v12 = vrot.slane %v27143_v22, %v26602_v60  ;;  %27146 = vst [vmem:[#allocation38_spill] sm:$0xff] %v25529_v8  ;;  %v27148_v49 = vld [vmem:[#allocation103_spill] sm:$0xff]  ;;  %v25536_v40 = vpop.f32.mrb[165].mxu0  ;;  %v27153_v8 = vld [vmem:[#allocation44_spill] sm:$0xff] }
 0x5c7   : > { %v6394_v46 = vrot.slane %v6379_v14, %v26602_v60  ;;  %v18877_v9 = vadd.f32 %v27145_v31, %v27144_v6  ;;  %v9760_v43 = vcombine.low %v9738_v45, %v9745_v34  ;;  %v9761_v37 = vcombine.low %v9752_v28, %v9759_v21  ;;  %v27149_v5 = vld [vmem:[#allocation63_spill] sm:$0xff]  ;;  %27150 = vst [vmem:[#allocation85_spill] sm:$0xff] %v25536_v40  ;;  %v27152_v31 = vld [vmem:[#allocation73_spill] sm:$0xff]  ;;  %v19006_v45 = vpop.f32.mrb[166].mxu0  ;;  %v19064_v21 = vpop.f32.mrb[166].mxu1 }
 0x5c8   : > { %v6401_v25 = vrot.slane %v6380_v48, %v26602_v60  ;;  %v18935_v27 = vadd.f32 %v27149_v5, %v27148_v49  ;;  %27151 = vst [vmem:[#allocation98_spill] sm:$0xff] %v25538_v10  ;;  %19622 = vmatmul.mubr.bf16.vlgmr.msra.gmra.mrb[224].mxu0 %v9319_v29  ;;  %v6722_v35 = vcombine.high %v6714_v12, %v6714_v12  ;;  %v19007_v29 = vpop.f32.mrb[167].mxu0  ;;  %v19065_v5 = vpop.f32.mrb[167].mxu1 }
 0x5c9   : > { %v6729_v14 = vrot.slane %v6714_v12, %v26602_v60  ;;  %v13564_v6 = vadd.f32 %v18877_v9, %v25197_v36  ;;  %v18880_v32 = vadd.f32 %v27153_v8, %v27152_v31  ;;  %19625 = vmatprep.mubr.msk.bf16.mxu0 %vm21089_vm7, %v27021_v61  ;;  %v9768_v34 = vrot.slane %v9760_v43, %v26602_v60  ;;  %v27154_v9 = vld [vmem:[#allocation42_spill] sm:$0xff]  ;;  %v27155_v8 = vld [vmem:[#allocation88_spill] sm:$0xff]  ;;  %v27156_v29 = vld [vmem:[#allocation49_spill] sm:$0xff] }
 0x5ca   : > { %v9775_v28 = vrot.slane %v9761_v37, %v26602_v60  ;;  %v6403_v48 = vcombine.high %v6401_v25, %v6401_v25  ;;  %v10185_v49 = vcombine.low %v6401_v25, %v6402_v63  ;;  %v6743_v12 = vrot.slane %v6722_v35, %v26602_v60 }
 0x5cb   : > { %v25549_v10 = vadd.f32 %v18935_v27, %v13564_v6  ;;  %v13567_v36 = vadd.f32 %v18880_v32, %v25215_v50  ;;  %v18938_v31 = vadd.f32 %v27155_v8, %v27154_v9  ;;  %v6707_v43 = vcombine.high %v27143_v22, %v27143_v22  ;;  %v25576_v9 = vpop.f32.mrb[168].mxu1 }
 0x5cc   : > { %v9776_v45 = vcombine.low %v9768_v34, %v9775_v28  ;;  %v10186_v21 = vcombine.low %v6403_v48, %v6394_v46  ;;  %v10195_v40 = vrot.slane %v10185_v49, %v26602_v60  ;;  %v10187_v37 = vcombine.low %v6729_v14, %v6743_v12  ;;  %v27157_v46 = vld [vmem:[#allocation87_spill] sm:$0xff] }
 0x5cd   : > { %v18097_v63 = vcombine.high %v6729_v14, %v6743_v12  ;;  %v25557_v25 = vadd.f32 %v18938_v31, %v13567_v36  ;;  %v7049_v27 = vcombine.high %v27156_v29, %v27156_v29  ;;  %v6721_v50 = vrot.slane %v6707_v43, %v26602_v60  ;;  %v25574_v36 = vpop.f32.mrb[168].mxu0 }
 0x5ce   : > { %v10202_v35 = vrot.slane %v10186_v21, %v26602_v60  ;;  %v7056_v32 = vrot.slane %v27156_v29, %v26602_v60  ;;  %v7398_v6 = vrot.slane %v27157_v46, %v26602_v60  ;;  %v10209_v34 = vrot.slane %v10187_v37, %v26602_v60  ;;  %v25580_v37 = vpop.f32.mrb[169].mxu0 }
 0x5cf   : > { %v10216_v22 = vrot.slane %v18097_v63, %v26602_v60  ;;  %v7063_v14 = vrot.slane %v7049_v27, %v26602_v60  ;;  %v18883_v28 = vadd.f32 %v25152_v11, %v25142_v57  ;;  %v6736_v49 = vrot.slane %v6721_v50, %v26602_v60  ;;  %v25582_v57 = vpop.f32.mrb[169].mxu1 }
 0x5d0   : > { %v10217_v48 = vcombine.low %v10195_v40, %v10202_v35  ;;  %v7064_v5 = vcombine.high %v7056_v32, %v7056_v32  ;;  %v7071_v12 = vrot.slane %v7056_v32, %v26602_v60  ;;  %19626 = vmatmul.mubr.bf16.gmra.mrb[228].mxu0 %v9776_v45  ;;  %v7406_v21 = vcombine.high %v7398_v6, %v7398_v6  ;;  %v25588_v45 = vpop.f32.mrb[170].mxu0  ;;  %v25590_v27 = vpop.f32.mrb[170].mxu1 }
 0x5d1   : > { %v10218_v8 = vcombine.low %v10209_v34, %v10216_v22  ;;  %v7078_v31 = vrot.slane %v7063_v14, %v26602_v60  ;;  %v7413_v43 = vrot.slane %v7398_v6, %v26602_v60  ;;  %19629 = vmatprep.mubr.msk.bf16.mxu0 %vm21089_vm7, %v27021_v61  ;;  %27158 = vst [vmem:[#allocation37_spill] sm:$0xff] %v25588_v45  ;;  %27159 = vst [vmem:[#allocation79_spill] sm:$0xff] %v25590_v27  ;;  %v25597_v34 = vpop.f32.mrb[171].mxu0  ;;  %v25599_v22 = vpop.f32.mrb[171].mxu1 }
 0x5d2   : > { %v10225_v11 = vrot.slane %v10217_v48, %v26602_v60  ;;  %v7085_v40 = vrot.slane %v7064_v5, %v26602_v60  ;;  %v7086_v63 = vcombine.high %v7071_v12, %v7071_v12  ;;  %v10642_v29 = vcombine.low %v6736_v49, %v7071_v12 }
 0x5d3   : > { %v10232_v35 = vrot.slane %v10218_v8, %v26602_v60  ;;  %v7427_v50 = vrot.slane %v7406_v21, %v26602_v60  ;;  %v13572_v32 = vadd.f32 %v18883_v28, %v25267_v39  ;;  %v18941_v6 = vadd.f32 %v25154_v1, %v25144_v58  ;;  %v27160_v21 = vld [vmem:[#allocation67_spill] sm:$0xff] }
 0x5d4   : > { %v7087_v14 = vcombine.high %v7085_v40, %v7085_v40  ;;  %v10643_v48 = vcombine.low %v7085_v40, %v7086_v63  ;;  %v10652_v49 = vrot.slane %v10642_v29, %v26602_v60  ;;  %v18886_v5 = vadd.f32 %v25168_v0, %v25159_v16  ;;  %v27161_v39 = vld [vmem:[#allocation115_spill] sm:$0xff]  ;;  %v27162_v29 = vld [vmem:[#allocation137_spill] sm:$0xff] }
 0x5d5   : > { %v10233_v12 = vcombine.low %v10225_v11, %v10232_v35  ;;  %v10645_v8 = vcombine.low %v7413_v43, %v7427_v50  ;;  %v25604_v27 = vadd.f32 %v18941_v6, %v13572_v32  ;;  %v18944_v28 = vadd.f32 %v27161_v39, %v27160_v21  ;;  %v27164_v39 = vld [vmem:[#allocation36_spill] sm:$0xff] }
 0x5d6   : > { %v10644_v45 = vcombine.low %v7087_v14, %v7078_v31  ;;  %v10659_v58 = vrot.slane %v10643_v48, %v26602_v60  ;;  %v13575_v1 = vadd.f32 %v18886_v5, %v25277_v38  ;;  %v7391_v40 = vcombine.high %v27157_v46, %v27157_v46 }
 0x5d7   : > { %v10673_v63 = vrot.slane %v10645_v8, %v26602_v60  ;;  %v7733_v16 = vcombine.high %v27162_v29, %v27162_v29  ;;  %v7740_v0 = vrot.slane %v27162_v29, %v26602_v60  ;;  %v18146_v11 = vcombine.high %v7413_v43, %v7427_v50  ;;  %v27163_v50 = vld [vmem:[#allocation92_spill] sm:$0xff] }
 0x5d8   : > { %v10666_v35 = vrot.slane %v10644_v45, %v26602_v60  ;;  %v10674_v32 = vcombine.low %v10652_v49, %v10659_v58  ;;  %v25618_v31 = vadd.f32 %v18944_v28, %v13575_v1  ;;  %v7405_v6 = vrot.slane %v7391_v40, %v26602_v60  ;;  %19630 = vmatmul.mubr.bf16.gmra.mrb[232].mxu0 %v10233_v12  ;;  %v27165_v28 = vld [vmem:[#allocation94_spill] sm:$0xff] }
 0x5d9   : > { %v7747_v38 = vrot.slane %v7733_v16, %v26602_v60  ;;  %v7748_v46 = vcombine.high %v7740_v0, %v7740_v0  ;;  %v7755_v14 = vrot.slane %v7740_v0, %v26602_v60  ;;  %v11109_v48 = vrot.slane %v18146_v11, %v26602_v60  ;;  %19633 = vmatprep.mubr.msk.bf16.mxu0 %vm21089_vm7, %v27021_v61 }
 0x5da   : > { %v10675_v5 = vcombine.low %v10666_v35, %v10673_v63  ;;  %v10682_v43 = vrot.slane %v10674_v32, %v26602_v60  ;;  %v7420_v45 = vrot.slane %v7405_v6, %v26602_v60  ;;  %v18889_v49 = vadd.f32 %v27163_v50, %v25191_v55  ;;  %v27168_v35 = vld [vmem:[#allocation139_spill] sm:$0xff] }
 0x5db   : > { %v7762_v12 = vrot.slane %v7747_v38, %v26602_v60  ;;  %v7769_v8 = vrot.slane %v7748_v46, %v26602_v60  ;;  %v7770_v21 = vcombine.high %v7755_v14, %v7755_v14  ;;  %v18947_v58 = vadd.f32 %v27165_v28, %v27164_v39  ;;  %v25652_v39 = vpop.f32.mrb[172].mxu0 }
 0x5dc   : > { %v10689_v1 = vrot.slane %v10675_v5, %v26602_v60  ;;  %v11100_v40 = vcombine.low %v7420_v45, %v7755_v14  ;;  %v13580_v63 = vadd.f32 %v18889_v49, %v25325_v15  ;;  %v27166_v29 = vrot.slane %v27125_v4, 1 }
 0x5dd   : > { %v27167_v16 = vrot.slane %v27135_v26, 2  ;;  %v7771_v11 = vcombine.high %v7769_v8, %v7769_v8  ;;  %v11101_v55 = vcombine.low %v7769_v8, %v7770_v21  ;;  %v8075_v32 = vcombine.high %v27168_v35, %v27168_v35 }
 0x5de   : > { %v8082_v6 = vrot.slane %v27168_v35, %v26602_v60  ;;  %v10690_v38 = vcombine.low %v10682_v43, %v10689_v1  ;;  %v11116_v46 = vrot.slane %v11100_v40, %v26602_v60  ;;  %v25645_v5 = vadd.f32 %v18947_v58, %v13580_v63  ;;  %v25654_v43 = vpop.f32.mrb[172].mxu1  ;;  %v27169_v1 = vld [vmem:[#allocation114_spill] sm:$0xff]  ;;  %v27170_v40 = vld [vmem:[#allocation116_spill] sm:$0xff] }
 0x5df   : > { %v4638_v0 = vor.u32 %v27167_v16, %v27166_v29  ;;  %v11102_v15 = vcombine.low %v7771_v11, %v7762_v12  ;;  %v11123_v4 = vrot.slane %v11101_v55, %v26602_v60  ;;  %v8089_v26 = vrot.slane %v8075_v32, %v26602_v60  ;;  %v25662_v29 = vpop.f32.mrb[173].mxu1  ;;  %v27172_v11 = vld [vmem:[#allocation71_spill] sm:$0xff] }
 0x5e0   : > { %v11131_v50 = vcombine.low %v11109_v48, %v11116_v46  ;;  %v8090_v49 = vcombine.high %v8082_v6, %v8082_v6  ;;  %v8097_v8 = vrot.slane %v8082_v6, %v26602_v60  ;;  %v18969_v21 = vadd.f32 %v25240_v47, %v25234_v53  ;;  %19634 = vmatmul.mubr.bf16.gmra.mrb[236].mxu0 %v10690_v38  ;;  %v25660_v48 = vpop.f32.mrb[173].mxu0  ;;  %v25673_v32 = vpop.f32.mrb[174].mxu1  ;;  %v27173_v46 = vld [vmem:[#allocation81_spill] sm:$0xff] }
 0x5e1   : > { %v4934_v14 = vshrl.u32 %v4638_v0, 16  ;;  %v4936_v45 = vshll.u32 %v4638_v0, 16  ;;  %v11130_v28 = vrot.slane %v11102_v15, %v26602_v60  ;;  %v8104_v58 = vrot.slane %v8089_v26, %v26602_v60  ;;  %19637 = vmatprep.mubr.msk.bf16.mxu0 %vm21089_vm7, %v27021_v61  ;;  %v27171_v0 = vld [vmem:[#allocation48_spill] sm:$0xff]  ;;  %v25671_v35 = vpop.f32.mrb[174].mxu0  ;;  %v27174_v15 = vld [vmem:[#allocation51_spill] sm:$0xff] }
 0x5e2   : > { %v19027_v63 = vadd.f32 %v27170_v40, %v27169_v1  ;;  %v11139_v53 = vrot.slane %v11131_v50, %v26602_v60  ;;  %v8111_v47 = vrot.slane %v8090_v49, %v26602_v60  ;;  %v13708_v16 = vadd.f32 %v18969_v21, %v25357_v59  ;;  %v25679_v50 = vpop.f32.mrb[175].mxu0  ;;  %v25681_v49 = vpop.f32.mrb[175].mxu1 }
 0x5e3   : > { %v4938_v12 = vrot.slane %v4936_v45, 1  ;;  %v18972_v55 = vadd.f32 %v27172_v11, %v27171_v0  ;;  %v11132_v6 = vcombine.low %v11123_v4, %v11130_v28  ;;  %v19030_v45 = vadd.f32 %v27174_v15, %v27173_v46  ;;  %v27175_v15 = vld [vmem:[#allocation72_spill] sm:$0xff] }
 0x5e4   : > { %v18975_v26 = vadd.f32 %v25289_v18, %v25279_v41  ;;  %v11556_v59 = vcombine.low %v8097_v8, %v8111_v47  ;;  %v18171_v21 = vcombine.high %v8097_v8, %v8111_v47  ;;  %v25683_v1 = vadd.f32 %v19027_v63, %v13708_v16 }
 0x5e5   : > { %v4939_v38 = vor.u32 %v4938_v12, %v4934_v14  ;;  %v13711_v40 = vadd.f32 %v18972_v55, %v25366_v2  ;;  %v11146_v0 = vrot.slane %v11132_v6, %v26602_v60  ;;  %v19033_v8 = vadd.f32 %v25291_v7, %v25281_v52 }
 0x5e6   : > { %v13716_v28 = vadd.f32 %v18975_v26, %v25394_v54  ;;  %v11566_v12 = vrot.slane %v11556_v59, %v26602_v60  ;;  %v11573_v41 = vrot.slane %v18171_v21, %v26602_v60  ;;  %v18978_v54 = vadd.f32 %v25306_v30, %v25296_v24  ;;  %v27176_v24 = vld [vmem:[#allocation46_spill] sm:$0xff]  ;;  %v27177_v30 = vld [vmem:[#allocation99_spill] sm:$0xff]  ;;  %v27178_v21 = vld [vmem:[#allocation69_spill] sm:$0xff] }
 0x5e7   : > { %v8424_v14 = vrot.slane %v4939_v38, %v26602_v60  ;;  %v8417_v4 = vcombine.high %v4939_v38, %v4939_v38  ;;  %v25691_v18 = vadd.f32 %v19030_v45, %v13711_v40  ;;  %v11147_v63 = vcombine.low %v11139_v53, %v11146_v0 }
 0x5e8   : > { %v25697_v11 = vadd.f32 %v19033_v8, %v13716_v28  ;;  %v19036_v55 = vadd.f32 %v25308_v13, %v25298_v33  ;;  %v11588_v52 = vcombine.low %v11566_v12, %v11573_v41  ;;  %v13719_v53 = vadd.f32 %v18978_v54, %v25412_v19  ;;  %v27181_v28 = vld [vmem:[#allocation75_spill] sm:$0xff]  ;;  %v27182_v12 = vld [vmem:[#allocation45_spill] sm:$0xff] }
 0x5e9   : > { %v8432_v47 = vcombine.high %v8424_v14, %v8424_v14  ;;  %v8439_v2 = vrot.slane %v8424_v14, %v26602_v60  ;;  %v8431_v16 = vrot.slane %v8417_v4, %v26602_v60  ;;  %19638 = vmatmul.mubr.bf16.gmra.mrb[240].mxu0 %v11147_v63  ;;  %v18981_v45 = vadd.f32 %v27175_v15, %v25333_v23  ;;  %v27180_v4 = vld [vmem:[#allocation82_spill] sm:$0xff]  ;;  %v27183_v41 = vld [vmem:[#allocation93_spill] sm:$0xff]  ;;  %v27189_v15 = vld [vmem:[#allocation84_spill] sm:$0xff] }
 0x5ea   : > { %19641 = vmatprep.mubr.msk.bf16.mxu0 %vm21089_vm7, %v27021_v61  ;;  %v19039_v26 = vadd.f32 %v27177_v30, %v27176_v24  ;;  %v25715_v0 = vadd.f32 %v19036_v55, %v13719_v53  ;;  %v19042_v19 = vadd.f32 %v27181_v28, %v27180_v4  ;;  %v18987_v23 = vadd.f32 %v27183_v41, %v27182_v12  ;;  %v27188_v53 = vld [vmem:[#allocation113_spill] sm:$0xff]  ;;  %v27194_v28 = vld [vmem:[#allocation83_spill] sm:$0xff]  ;;  %v27196_v12 = vld [vmem:[#allocation52_spill] sm:$0xff] }
 0x5eb   : > { %v8453_v6 = vrot.slane %v8432_v47, %v26602_v60  ;;  %v8454_v38 = vcombine.high %v8439_v2, %v8439_v2  ;;  %v11558_v46 = vcombine.low %v8104_v58, %v8439_v2  ;;  %v8446_v7 = vrot.slane %v8431_v16, %v26602_v60  ;;  %v27179_v58 = vld [vmem:[#allocation59_spill] sm:$0xff]  ;;  %v27184_v2 = vld [vmem:[#allocation62_spill] sm:$0xff]  ;;  %v27193_v4 = vld [vmem:[#allocation77_spill] sm:$0xff] }
 0x5ec   : > { %v18984_v40 = vadd.f32 %v27179_v58, %v27178_v21  ;;  %v13724_v14 = vadd.f32 %v18981_v45, %v25457_v51  ;;  %v27185_v16 = vld [vmem:[#allocation106_spill] sm:$0xff]  ;;  %v13732_v55 = vadd.f32 %v18987_v23, %v25515_v56  ;;  %v19048_v45 = vadd.f32 %v27189_v15, %v27188_v53  ;;  %v27191_v21 = vld [vmem:[#allocation76_spill] sm:$0xff] }
 0x5ed   : > { %v11559_v33 = vcombine.low %v8453_v6, %v8454_v38  ;;  %v11580_v13 = vrot.slane %v11558_v46, %v26602_v60  ;;  %v8455_v59 = vcombine.high %v8453_v6, %v8453_v6  ;;  %v19045_v54 = vadd.f32 %v27185_v16, %v27184_v2  ;;  %v27186_v51 = vld [vmem:[#allocation78_spill] sm:$0xff]  ;;  %v27187_v38 = vld [vmem:[#allocation101_spill] sm:$0xff]  ;;  %v19153_v2 = vpop.f32.mrb[176].mxu1 }
 0x5ee   : > { %v13727_v47 = vadd.f32 %v18984_v40, %v25459_v3  ;;  %v25728_v6 = vadd.f32 %v19039_v26, %v13724_v14  ;;  %v18990_v46 = vadd.f32 %v27187_v38, %v27186_v51  ;;  %v11596_v30 = vrot.slane %v11588_v52, %v26602_v60  ;;  %v27192_v58 = vld [vmem:[#allocation58_spill] sm:$0xff]  ;;  %v27201_v51 = vld [vmem:[#allocation100_spill] sm:$0xff]  ;;  %v19154_v53 = vpop.f32.mrb[177].mxu1 }
 0x5ef   : > { %v11587_v8 = vrot.slane %v11559_v33, %v26602_v60  ;;  %v25723_v63 = vcombine.low %v8455_v59, %v8446_v7  ;;  %v18993_v3 = vadd.f32 %v25438_v62, %v25428_v20  ;;  %v25738_v33 = vadd.f32 %v19045_v54, %v13732_v55  ;;  %v27190_v59 = vld [vmem:[#allocation80_spill] sm:$0xff]  ;;  %v27197_v23 = vld [vmem:[#allocation102_spill] sm:$0xff] }
 0x5f0   : > { %v13815_v7 = vadd.f32 %v19042_v19, %v13727_v47  ;;  %v13735_v26 = vadd.f32 %v18990_v46, %v25522_v42  ;;  %v19051_v56 = vadd.f32 %v27191_v21, %v27190_v59  ;;  %v18996_v40 = vadd.f32 %v25450_v44, %v27192_v58  ;;  %v27195_v19 = vld [vmem:[#allocation107_spill] sm:$0xff]  ;;  %v19095_v47 = vpop.f32.mrb[176].mxu0  ;;  %v27200_v55 = vld [vmem:[#allocation96_spill] sm:$0xff]  ;;  %v27205_v59 = vld [vmem:[#allocation98_spill] sm:$0xff] }
 0x5f1   : > { %v11589_v24 = vcombine.low %v11580_v13, %v11587_v8  ;;  %v11762_v13 = vrot.slane %v25723_v63, %v26602_v60  ;;  %v13740_v52 = vadd.f32 %v18993_v3, %v25549_v10  ;;  %v19054_v62 = vadd.f32 %v27194_v28, %v27193_v4  ;;  %v27198_v8 = vld [vmem:[#allocation74_spill] sm:$0xff]  ;;  %v27199_v63 = vld [vmem:[#allocation47_spill] sm:$0xff]  ;;  %v19096_v46 = vpop.f32.mrb[177].mxu0 }
 0x5f2   : > { %v25751_v20 = vadd.f32 %v19048_v45, %v13735_v26  ;;  %v13743_v42 = vadd.f32 %v18996_v40, %v25557_v25  ;;  %v18999_v41 = vadd.f32 %v27196_v12, %v27195_v19  ;;  %v19057_v44 = vadd.f32 %v27198_v8, %v27197_v23  ;;  %v27202_v45 = vld [vmem:[#allocation38_spill] sm:$0xff]  ;;  %v27204_v26 = vld [vmem:[#allocation41_spill] sm:$0xff]  ;;  %v19098_v21 = vpop.f32.mrb[178].mxu0 }
 0x5f3   : > { %v11603_v14 = vrot.slane %v11589_v24, %v26602_v60  ;;  %v25758_v54 = vadd.f32 %v19051_v56, %v13740_v52  ;;  %v19002_v10 = vadd.f32 %v25505_v17, %v27199_v63  ;;  %v19060_v38 = vadd.f32 %v27201_v51, %v27200_v55  ;;  %v27203_v24 = vld [vmem:[#allocation85_spill] sm:$0xff]  ;;  %v19156_v56 = vpop.f32.mrb[178].mxu1  ;;  %v19099_v52 = vpop.f32.mrb[179].mxu0 }
 0x5f4   : > { %v25764_v25 = vadd.f32 %v19054_v62, %v13743_v42  ;;  %v13748_v15 = vadd.f32 %v18999_v41, %v25604_v27  ;;  %v19005_v3 = vadd.f32 %v27203_v24, %v27202_v45  ;;  %v19085_v58 = vadd.f32 %v25580_v37, %v25574_v36  ;;  %v19157_v4 = vpop.f32.mrb[179].mxu1  ;;  %v27207_v42 = vld [vmem:[#allocation79_spill] sm:$0xff]  ;;  %v20483_v45 = vld [vmem:[#allocation13 + $0x40] sm:$0xff]  }
 0x5f5   : > { %v11604_v16 = vcombine.low %v11596_v30, %v11603_v14  ;;  %v19063_v30 = vadd.f32 %v27205_v59, %v27204_v26  ;;  %v13751_v17 = vadd.f32 %v19002_v10, %v25618_v31  ;;  %v19143_v40 = vadd.f32 %v25582_v57, %v25576_v9  ;;  %v27206_v14 = vld [vmem:[#allocation37_spill] sm:$0xff]  ;;  %v20484_v24 = vld [vmem:[#allocation13] sm:$0xff]   ;;  %19314 = vmatprep.subr.bf16.mxu1 %v20483_v45 }
 0x5f6   : > { %v19088_v27 = vadd.f32 %v25597_v34, %v27206_v14  ;;  %v25780_v28 = vadd.f32 %v19057_v44, %v13748_v15  ;;  %v13756_v62 = vadd.f32 %v19005_v3, %v25645_v5  ;;  %v19146_v31 = vadd.f32 %v25599_v22, %v27207_v42  ;;  %19315 = vmatpush3.bf16.msra.mxu1 %v20484_v24  ;;  %v20485_v42 = vld [vmem:[#allocation13 + $0x48] sm:$0xff]  }
 0x5f7   : > { %19642 = vmatmul.mubr.bf16.gmra.mrb[244].mxu0 %v11604_v16  ;;  %v19091_v36 = vadd.f32 %v25660_v48, %v25652_v39  ;;  %v25787_v37 = vadd.f32 %v19060_v38, %v13751_v17  ;;  %v13884_v9 = vadd.f32 %v19085_v58, %v25683_v1  ;;  %v19149_v34 = vadd.f32 %v25662_v29, %v25654_v43 }
 0x5f8   : > { %19645 = vmatprep.mubr.msk.bf16.mxu0 %vm21089_vm7, %v27021_v61  ;;  %v13887_v57 = vadd.f32 %v19088_v27, %v25691_v18  ;;  %v25793_v19 = vadd.f32 %v19063_v30, %v13756_v62  ;;  %v19094_v5 = vadd.f32 %v25679_v50, %v25671_v35  ;;  %v19152_v22 = vadd.f32 %v25681_v49, %v25673_v32 }
 0x5f9   : > { %v13892_v12 = vadd.f32 %v19091_v36, %v25697_v11  ;;  %v25800_v39 = vadd.f32 %v19143_v40, %v13884_v9  ;;  %v19097_v1 = vadd.f32 %v19096_v46, %v19095_v47  ;;  %v19155_v41 = vadd.f32 %v19154_v53, %v19153_v2  ;;  %19316 = vmatprep.subr.bf16.mxu1 %v20485_v42  ;;  %v20494_v42 = vld [vmem:[#allocation13 + $0x100] sm:$0xff]  }
 0x5fa   : > { %v25802_v48 = vadd.f32 %v19146_v31, %v13887_v57  ;;  %v13895_v43 = vadd.f32 %v19094_v5, %v25715_v0  ;;  %v19100_v29 = vadd.f32 %v19099_v52, %v19098_v21  ;;  %v19158_v23 = vadd.f32 %v19157_v4, %v19156_v56  ;;  %v20486_v31 = vld [vmem:[#allocation13 + $0x8] sm:$0xff]  }
 0x5fb   : > { %v25804_v18 = vadd.f32 %v19149_v34, %v13892_v12  ;;  %v11769_v11 = vrot.slane %v11762_v13, %v26602_v60  ;;  %v13900_v8 = vadd.f32 %v19097_v1, %v25728_v6  ;;  %19317 = vmatpush3.bf16.msra.mxu1 %v20486_v31 }
 0x5fc   : > { %v25809_v35 = vadd.f32 %v19152_v22, %v13895_v43  ;;  %v13903_v50 = vadd.f32 %v19100_v29, %v13815_v7 }
 0x5fd   : > { %v25811_v32 = vadd.f32 %v19155_v41, %v13900_v8 }
 0x5fe   : > { %v25813_v49 = vadd.f32 %v19158_v23, %v13903_v50 }
 0x5ff   : > { %19646 = vmatmul.mubr.bf16.gmra.mrb[248].mxu0 %v11769_v11 }
 0x603   : > { %v19101_v44 = vpop.f32.mrb[180].mxu0  ;;  %v19159_v47 = vpop.f32.mrb[180].mxu1 }
 0x604   : > { %v19102_v2 = vpop.f32.mrb[181].mxu0  ;;  %v19160_v16 = vpop.f32.mrb[181].mxu1 }
 0x605   : > { %v19103_v63 = vadd.f32 %v19102_v2, %v19101_v44  ;;  %v19161_v0 = vadd.f32 %v19160_v16, %v19159_v47  ;;  %v19104_v10 = vpop.f32.mrb[182].mxu0  ;;  %v19162_v55 = vpop.f32.mrb[182].mxu1  ;;  %v20487_v47 = vld [vmem:[#allocation13 + $0x50] sm:$0xff]  }
 0x606   : > { %v19105_v51 = vpop.f32.mrb[183].mxu0  ;;  %v19163_v13 = vpop.f32.mrb[183].mxu1  ;;  %v20488_v2 = vld [vmem:[#allocation13 + $0x10] sm:$0xff]   ;;  %19318 = vmatprep.subr.bf16.mxu1 %v20487_v47 }
 0x607   : > { %v13908_v6 = vadd.f32 %v19103_v63, %v25738_v33  ;;  %v19106_v38 = vadd.f32 %v19105_v51, %v19104_v10  ;;  %v19164_v46 = vadd.f32 %v19163_v13, %v19162_v55  ;;  %19319 = vmatpush3.bf16.msra.mxu1 %v20488_v2  ;;  %v20498_v2 = vld [vmem:[#allocation13 + $0x108] sm:$0xff]  }
 0x609   : > { %v25816_v7 = vadd.f32 %v19161_v0, %v13908_v6  ;;  %v13911_v53 = vadd.f32 %v19106_v38, %v25751_v20 }
 0x60b   : > { %v25819_v15 = vadd.f32 %v19164_v46, %v13911_v53  ;;  %v20490_v46 = vld [vmem:[#allocation13 + $0x18] sm:$0xff]   ;;  %v20491_v53 = vld [vmem:[#allocation13 + $0x60] sm:$0xff]  }
 0x61b   : > { %v19107_v3 = vpop.f32.mrb[184].mxu0  ;;  %v19165_v26 = vpop.f32.mrb[184].mxu1 }
 0x61c   : > { %v19108_v59 = vpop.f32.mrb[185].mxu0  ;;  %v19166_v30 = vpop.f32.mrb[185].mxu1 }
 0x61d   : > { %v19109_v21 = vadd.f32 %v19108_v59, %v19107_v3  ;;  %v19167_v56 = vadd.f32 %v19166_v30, %v19165_v26  ;;  %v19110_v17 = vpop.f32.mrb[186].mxu0  ;;  %v19168_v33 = vpop.f32.mrb[186].mxu1 }
 0x61e   : > { %v19111_v58 = vpop.f32.mrb[187].mxu0  ;;  %v19169_v40 = vpop.f32.mrb[187].mxu1 }
 0x61f   : > { %v13916_v14 = vadd.f32 %v19109_v21, %v25758_v54  ;;  %v19112_v27 = vadd.f32 %v19111_v58, %v19110_v17  ;;  %v19170_v20 = vadd.f32 %v19169_v40, %v19168_v33 }
 0x621   : > { %v25822_v52 = vadd.f32 %v19167_v56, %v13916_v14  ;;  %v13919_v4 = vadd.f32 %v19112_v27, %v25764_v25 }
 0x623   : > { %v25825_v62 = vadd.f32 %v19170_v20, %v13919_v4  ;;  %v20492_v20 = vld [vmem:[#allocation13 + $0x20] sm:$0xff]  }
 0x624   : > { %v20493_v4 = vld [vmem:[#allocation13 + $0x140] sm:$0xff]  }
 0x625   : > { %19358 = vmatprep.subr.bf16.mxu0 %v20493_v4 }
 0x626   : > { %19359 = vmatpush3.bf16.msra.mxu0 %v20494_v42  ;;  %v20514_v42 = vld [vmem:[#allocation13 + $0x130] sm:$0xff]  }
 0x636   : > { %v19113_v36 = vpop.f32.mrb[188].mxu0  ;;  %v19171_v9 = vpop.f32.mrb[188].mxu1 }
 0x637   : > { %v19114_v57 = vpop.f32.mrb[189].mxu0  ;;  %v19172_v34 = vpop.f32.mrb[189].mxu1 }
 0x638   : > { %v19115_v12 = vadd.f32 %v19114_v57, %v19113_v36  ;;  %v19173_v5 = vadd.f32 %v19172_v34, %v19171_v9  ;;  %v19116_v22 = vpop.f32.mrb[190].mxu0  ;;  %v19174_v1 = vpop.f32.mrb[190].mxu1  ;;  %v20495_v36 = vld [vmem:[#allocation13 + $0x68] sm:$0xff]  }
 0x639   : > { %v19117_v54 = vpop.f32.mrb[191].mxu0  ;;  %v19175_v41 = vpop.f32.mrb[191].mxu1  ;;  %v20497_v9 = vld [vmem:[#allocation13 + $0x148] sm:$0xff]  }
 0x63a   : > { %v13924_v43 = vadd.f32 %v19115_v12, %v25780_v28  ;;  %v19118_v29 = vadd.f32 %v19117_v54, %v19116_v22  ;;  %v19176_v25 = vadd.f32 %v19175_v41, %v19174_v1  ;;  %v20496_v12 = vld [vmem:[#allocation13 + $0x28] sm:$0xff]   ;;  %19360 = vmatprep.subr.bf16.mxu0 %v20497_v9 }
 0x63b   : > { %19361 = vmatpush3.bf16.msra.mxu0 %v20498_v2 }
 0x63c   : > { %v25828_v23 = vadd.f32 %v19173_v5, %v13924_v43  ;;  %v13927_v11 = vadd.f32 %v19118_v29, %v25787_v37  ;;  %v20489_v37 = vld [vmem:[#allocation13 + $0x58] sm:$0xff]  }
 0x63d   : > { %19320 = vmatprep.subr.bf16.mxu1 %v20489_v37 }
 0x63e   : > { %v25831_v8 = vadd.f32 %v19176_v25, %v13927_v11  ;;  %v19119_v50 = vpop.f32.mrb[192].mxu0  ;;  %v19177_v44 = vpop.f32.mrb[192].mxu1  ;;  %19321 = vmatpush3.bf16.msra.mxu1 %v20490_v46 }
 0x63f   : > { %v19120_v16 = vpop.f32.mrb[193].mxu0  ;;  %v19178_v63 = vpop.f32.mrb[193].mxu1  ;;  %19322 = vmatprep.subr.bf16.mxu1 %v20491_v53 }
 0x640   : > { %v19121_v0 = vadd.f32 %v19120_v16, %v19119_v50  ;;  %v19179_v10 = vadd.f32 %v19178_v63, %v19177_v44  ;;  %v19122_v55 = vpop.f32.mrb[194].mxu0  ;;  %v19180_v51 = vpop.f32.mrb[194].mxu1  ;;  %v20499_v16 = vld [vmem:[#allocation13 + $0x150] sm:$0xff]  }
 0x641   : > { %v19123_v28 = vpop.f32.mrb[195].mxu0  ;;  %v19181_v13 = vpop.f32.mrb[195].mxu1  ;;  %v20501_v63 = vld [vmem:[#allocation13 + $0x70] sm:$0xff]   ;;  %19362 = vmatprep.subr.bf16.mxu0 %v20499_v16  ;;  %v20503_v55 = vld [vmem:[#allocation13 + $0x158] sm:$0xff]  }
 0x642   : > { %v13932_v6 = vadd.f32 %v19121_v0, %v25793_v19  ;;  %19323 = vmatpush3.bf16.msra.mxu1 %v20492_v20  ;;  %v20502_v0 = vld [vmem:[#allocation13 + $0x30] sm:$0xff]   ;;  %v20504_v51 = vld [vmem:[#allocation13 + $0x118] sm:$0xff]  }
 0x643   : > { %19324 = vmatprep.subr.bf16.mxu1 %v20495_v36  ;;  %v20508_v28 = vld [vmem:[#allocation13 + $0x38] sm:$0xff]   ;;  %v20512_v20 = vld [vmem:[#allocation13 + $0x170] sm:$0xff]  }
 0x644   : > { %v25834_v38 = vadd.f32 %v19179_v10, %v13932_v6  ;;  %v20500_v10 = vld [vmem:[#allocation13 + $0x110] sm:$0xff]  }
 0x645   : > { %19363 = vmatpush3.bf16.msra.mxu0 %v20500_v10 }
 0x646   : > { %19325 = vmatpush3.bf16.msra.mxu1 %v20496_v12  ;;  %19364 = vmatprep.subr.bf16.mxu0 %v20503_v55 }
 0x647   : > { %19326 = vmatprep.subr.bf16.mxu1 %v20501_v63 }
 0x649   : > { %19365 = vmatpush3.bf16.msra.mxu0 %v20504_v51 }
 0x64a   : > { %v19199_v45 = vpop.f32.mrb[196].mxu0  ;;  %v19257_v24 = vpop.f32.mrb[196].mxu1  ;;  %19327 = vmatpush3.bf16.msra.mxu1 %v20502_v0 }
 0x64b   : > { %v19200_v3 = vpop.f32.mrb[197].mxu0  ;;  %v19258_v26 = vpop.f32.mrb[197].mxu1 }
 0x64c   : > { %v19201_v59 = vadd.f32 %v19200_v3, %v19199_v45  ;;  %v19259_v30 = vadd.f32 %v19258_v26, %v19257_v24  ;;  %v19202_v21 = vpop.f32.mrb[198].mxu0  ;;  %v19260_v56 = vpop.f32.mrb[198].mxu1  ;;  %v20507_v26 = vld [vmem:[#allocation13 + $0x120] sm:$0xff]  }
 0x64d   : > { %v19203_v17 = vpop.f32.mrb[199].mxu0  ;;  %v19261_v33 = vpop.f32.mrb[199].mxu1 }
 0x64e   : > { %v14060_v19 = vadd.f32 %v19201_v59, %v25800_v39  ;;  %v19204_v58 = vadd.f32 %v19203_v17, %v19202_v21  ;;  %v19262_v40 = vadd.f32 %v19261_v33, %v19260_v56  ;;  %v20511_v59 = vld [vmem:[#allocation13 + $0xc0] sm:$0xff]   ;;  %v20509_v56 = vld [vmem:[#allocation13 + $0x168] sm:$0xff]  }
 0x650   : > { %v14063_v14 = vadd.f32 %v19204_v58, %v25802_v48  ;;  %v25838_v27 = vadd.f32 %v19259_v30, %v14060_v19 }
 0x652   : > { %v25840_v31 = vadd.f32 %v19262_v40, %v14063_v14  ;;  %v20510_v14 = vld [vmem:[#allocation13 + $0x128] sm:$0xff]  }
 0x653   : > { %v19205_v57 = vpop.f32.mrb[200].mxu0  ;;  %v19263_v34 = vpop.f32.mrb[200].mxu1 }
 0x654   : > { %v19206_v5 = vpop.f32.mrb[201].mxu0  ;;  %v19264_v39 = vpop.f32.mrb[201].mxu1 }
 0x655   : > { %v19207_v22 = vadd.f32 %v19206_v5, %v19205_v57  ;;  %v19265_v48 = vadd.f32 %v19264_v39, %v19263_v34  ;;  %v19208_v1 = vpop.f32.mrb[202].mxu0  ;;  %v19266_v54 = vpop.f32.mrb[202].mxu1  ;;  %v20516_v57 = vld [vmem:[#allocation13 + $0x178] sm:$0xff]  }
 0x656   : > { %v19209_v41 = vpop.f32.mrb[203].mxu0  ;;  %v19267_v43 = vpop.f32.mrb[203].mxu1 }
 0x657   : > { %v14068_v29 = vadd.f32 %v19207_v22, %v25804_v18  ;;  %v19210_v25 = vadd.f32 %v19209_v41, %v19208_v1  ;;  %v19268_v11 = vadd.f32 %v19267_v43, %v19266_v54  ;;  %v20506_v18 = vld [vmem:[#allocation13 + $0x78] sm:$0xff]  }
 0x658   : > { %19328 = vmatprep.subr.bf16.mxu1 %v20506_v18  ;;  %v20518_v1 = vld [vmem:[#allocation13 + $0x138] sm:$0xff]  }
 0x659   : > { %v14071_v50 = vadd.f32 %v19210_v25, %v25809_v35  ;;  %v25844_v44 = vadd.f32 %v19265_v48, %v14068_v29  ;;  %v20505_v35 = vld [vmem:[#allocation13 + $0x160] sm:$0xff]   ;;  %19329 = vmatpush3.bf16.msra.mxu1 %v20508_v28 }
 0x65a   : > { %19366 = vmatprep.subr.bf16.mxu0 %v20505_v35  ;;  %19336 = vmatprep.subr.bf16.mxu1 %v20511_v59  ;;  %v20520_v29 = vld [vmem:[#allocation13 + $0x240] sm:$0xff]  }
 0x65b   : > { %v25846_v47 = vadd.f32 %v19268_v11, %v14071_v50  ;;  %19367 = vmatpush3.bf16.msra.mxu0 %v20507_v26 }
 0x65c   : > { %19368 = vmatprep.subr.bf16.mxu0 %v20509_v56 }
 0x65f   : > { %19369 = vmatpush3.bf16.msra.mxu0 %v20510_v14 }
 0x660   : > { %19370 = vmatprep.subr.bf16.mxu0 %v20512_v20 }
 0x663   : > { %19371 = vmatpush3.bf16.msra.mxu0 %v20514_v42 }
 0x664   : > { %v19211_v13 = vpop.f32.mrb[204].mxu0  ;;  %v19269_v6 = vpop.f32.mrb[204].mxu1  ;;  %19372 = vmatprep.subr.bf16.mxu0 %v20516_v57 }
 0x665   : > { %v19212_v37 = vpop.f32.mrb[205].mxu0  ;;  %v19270_v46 = vpop.f32.mrb[205].mxu1 }
 0x666   : > { %v19213_v53 = vadd.f32 %v19212_v37, %v19211_v13  ;;  %v19271_v45 = vadd.f32 %v19270_v46, %v19269_v6  ;;  %v19214_v24 = vpop.f32.mrb[206].mxu0  ;;  %v19272_v3 = vpop.f32.mrb[206].mxu1 }
 0x667   : > { %v19215_v30 = vpop.f32.mrb[207].mxu0  ;;  %v19273_v21 = vpop.f32.mrb[207].mxu1  ;;  %19373 = vmatpush3.bf16.msra.mxu0 %v20518_v1 }
 0x668   : > { %v14076_v17 = vadd.f32 %v19213_v53, %v25811_v32  ;;  %v19216_v33 = vadd.f32 %v19215_v30, %v19214_v24  ;;  %v19274_v19 = vadd.f32 %v19273_v21, %v19272_v3  ;;  %19402 = vmatprep.subr.bf16.mxu0 %v20520_v29 }
 0x66a   : > { %v14079_v58 = vadd.f32 %v19216_v33, %v25813_v49  ;;  %v25850_v40 = vadd.f32 %v19271_v45, %v14076_v17 }
 0x66c   : > { %v25852_v4 = vadd.f32 %v19274_v19, %v14079_v58 }
 0x670   : > { %v19217_v36 = vpop.f32.mrb[208].mxu0  ;;  %v19275_v9 = vpop.f32.mrb[208].mxu1 }
 0x671   : > { %v19218_v32 = vpop.f32.mrb[209].mxu0  ;;  %v19276_v34 = vpop.f32.mrb[209].mxu1 }
 0x672   : > { %v19219_v12 = vadd.f32 %v19218_v32, %v19217_v36  ;;  %v19277_v5 = vadd.f32 %v19276_v34, %v19275_v9  ;;  %v19220_v39 = vpop.f32.mrb[210].mxu0  ;;  %v19278_v49 = vpop.f32.mrb[210].mxu1 }
 0x673   : > { %v19221_v22 = vpop.f32.mrb[211].mxu0  ;;  %v19279_v48 = vpop.f32.mrb[211].mxu1 }
 0x674   : > { %v14084_v54 = vadd.f32 %v19219_v12, %v25816_v7  ;;  %v19222_v41 = vadd.f32 %v19221_v22, %v19220_v39  ;;  %v19280_v43 = vadd.f32 %v19279_v48, %v19278_v49 }
 0x676   : > { %v14087_v25 = vadd.f32 %v19222_v41, %v25819_v15  ;;  %v25856_v11 = vadd.f32 %v19277_v5, %v14084_v54 }
 0x678   : > { %v25858_v50 = vadd.f32 %v19280_v43, %v14087_v25 }
 0x67d   : > { %v19223_v2 = vpop.f32.mrb[212].mxu0  ;;  %v19281_v16 = vpop.f32.mrb[212].mxu1 }
 0x67e   : > { %v19224_v63 = vpop.f32.mrb[213].mxu0  ;;  %v19282_v0 = vpop.f32.mrb[213].mxu1 }
 0x67f   : > { %v19225_v10 = vadd.f32 %v19224_v63, %v19223_v2  ;;  %v19283_v55 = vadd.f32 %v19282_v0, %v19281_v16  ;;  %v19226_v18 = vpop.f32.mrb[214].mxu0  ;;  %v19284_v7 = vpop.f32.mrb[214].mxu1 }
 0x680   : > { %v19227_v51 = vpop.f32.mrb[215].mxu0  ;;  %v19285_v28 = vpop.f32.mrb[215].mxu1 }
 0x681   : > { %v14092_v35 = vadd.f32 %v19225_v10, %v25822_v52  ;;  %v19228_v13 = vadd.f32 %v19227_v51, %v19226_v18  ;;  %v19286_v15 = vadd.f32 %v19285_v28, %v19284_v7 }
 0x683   : > { %v14095_v6 = vadd.f32 %v19228_v13, %v25825_v62  ;;  %v25862_v37 = vadd.f32 %v19283_v55, %v14092_v35 }
 0x685   : > { %v25864_v46 = vadd.f32 %v19286_v15, %v14095_v6 }
 0x68b   : > { %v19229_v53 = vpop.f32.mrb[216].mxu0  ;;  %v19287_v45 = vpop.f32.mrb[216].mxu1 }
 0x68c   : > { %v19230_v24 = vpop.f32.mrb[217].mxu0  ;;  %v19288_v3 = vpop.f32.mrb[217].mxu1 }
 0x68d   : > { %v19231_v26 = vadd.f32 %v19230_v24, %v19229_v53  ;;  %v19289_v59 = vadd.f32 %v19288_v3, %v19287_v45  ;;  %v19232_v30 = vpop.f32.mrb[218].mxu0  ;;  %v19290_v21 = vpop.f32.mrb[218].mxu1 }
 0x68e   : > { %v19233_v56 = vpop.f32.mrb[219].mxu0  ;;  %v19291_v17 = vpop.f32.mrb[219].mxu1 }
 0x68f   : > { %v14100_v52 = vadd.f32 %v19231_v26, %v25828_v23  ;;  %v19234_v33 = vadd.f32 %v19233_v56, %v19232_v30  ;;  %v19292_v19 = vadd.f32 %v19291_v17, %v19290_v21 }
 0x691   : > { %v14103_v62 = vadd.f32 %v19234_v33, %v25831_v8  ;;  %v25868_v58 = vadd.f32 %v19289_v59, %v14100_v52 }
 0x693   : > { %v19235_v14 = vpop.f32.mrb[220].mxu0  ;;  %v25870_v42 = vadd.f32 %v19292_v19, %v14103_v62 }
 0x694   : > { %v19236_v36 = vpop.f32.mrb[221].mxu0 }
 0x695   : > { %v19293_v20 = vpop.f32.mrb[220].mxu1  ;;  %v19237_v57 = vadd.f32 %v19236_v36, %v19235_v14  ;;  %v19238_v34 = vpop.f32.mrb[222].mxu0 }
 0x696   : > { %v19294_v9 = vpop.f32.mrb[221].mxu1  ;;  %v19239_v5 = vpop.f32.mrb[223].mxu0 }
 0x697   : > { %v19295_v32 = vadd.f32 %v19294_v9, %v19293_v20  ;;  %v19296_v12 = vpop.f32.mrb[222].mxu1  ;;  %v14108_v23 = vadd.f32 %v19237_v57, %v25834_v38 }
 0x698   : > { %v19297_v39 = vpop.f32.mrb[223].mxu1 }
 0x699   : > { %v25873_v49 = vadd.f32 %v19295_v32, %v14108_v23 }
 0x69b   : > { %v14235_v22 = vpop.f32.mrb[224].mxu0 }
 0x69c   : > { %v14236_v8 = vadd.f32 %v14235_v22, %v25838_v27  ;;  %v19623_v48 = vpop.f32.mrb[225].mxu0 }
 0x69d   : > { %v14238_v1 = vpop.f32.mrb[226].mxu0 }
 0x69e   : > { %v14289_v54 = vmax.f32 %v14236_v8, 0.0  ;;  %v14239_v41 = vadd.f32 %v14238_v1, %v25840_v31  ;;  %v19624_v43 = vpop.f32.mrb[227].mxu0 }
 0x6a0   : > { %14302 = vst [vmem:[#allocation3] sm:$0xff] %v14289_v54  ;;  %v14290_v29 = vmax.f32 %v14239_v41, 0.0 }
 0x6a2   : > { %14303 = vst [vmem:[#allocation3 + $0x8] sm:$0xff] %v14290_v29 }
 0x6a3   : > { %v14243_v25 = vpop.f32.mrb[228].mxu0 }
 0x6a4   : > { %v14244_v2 = vadd.f32 %v14243_v25, %v25844_v44  ;;  %v19627_v16 = vpop.f32.mrb[229].mxu0 }
 0x6a5   : > { %v14246_v63 = vpop.f32.mrb[230].mxu0 }
 0x6a6   : > { %v14291_v38 = vmax.f32 %v14244_v2, 0.0  ;;  %v14247_v0 = vadd.f32 %v14246_v63, %v25846_v47  ;;  %v19628_v10 = vpop.f32.mrb[231].mxu0 }
 0x6a8   : > { %14304 = vst [vmem:[#allocation3 + $0x10] sm:$0xff] %v14291_v38  ;;  %v14292_v27 = vmax.f32 %v14247_v0, 0.0 }
 0x6a9   : > { %v14315_v55 = vld [vmem:[#allocation3] ss:$2 sm:$0xff]  ;;  %v14329_v18 = vld [vmem:[#allocation3 + $0x1] ss:$2 sm:$0xff] }
 0x6aa   : > { %v14342_v7 = vmax.f32 %v14315_v55, %v14329_v18  ;;  %14305 = vst [vmem:[#allocation3 + $0x18] sm:$0xff] %v14292_v27 }
 0x6ab   : > { %v14251_v31 = vpop.f32.mrb[232].mxu0 }
 0x6ac   : > { %v14356_v51 = vcombine.high %v14342_v7, %v14342_v7  ;;  %v14363_v28 = vrot.slane %v14342_v7, %v26602_v60  ;;  %v14252_v35 = vadd.f32 %v14251_v31, %v25850_v40  ;;  %v19631_v13 = vpop.f32.mrb[233].mxu0 }
 0x6ad   : > { %v14254_v44 = vpop.f32.mrb[234].mxu0 }
 0x6ae   : > { %v14370_v15 = vrot.slane %v14356_v51, %v26602_v60  ;;  %v14371_v6 = vcombine.high %v14363_v28, %v14363_v28  ;;  %v14293_v53 = vmax.f32 %v14252_v35, 0.0  ;;  %v19632_v47 = vpop.f32.mrb[235].mxu0  ;;  %v14255_v45 = vadd.f32 %v14254_v44, %v25852_v4 }
 0x6af   : > { %v14379_v3 = vrot.slane %v14363_v28, %v26602_v60 }
 0x6b0   : > { %v14372_v24 = vcombine.high %v14370_v15, %v14370_v15  ;;  %v14386_v26 = vrot.slane %v14370_v15, %v26602_v60  ;;  %v14393_v59 = vrot.slane %v14371_v6, %v26602_v60  ;;  %14306 = vst [vmem:[#allocation3 + $0x20] sm:$0xff] %v14293_v53  ;;  %v14294_v40 = vmax.f32 %v14255_v45, 0.0 }
 0x6b1   : > { %v14317_v30 = vld [vmem:[#allocation3 + $0x10] ss:$2 sm:$0xff]  ;;  %v14331_v21 = vld [vmem:[#allocation3 + $0x11] ss:$2 sm:$0xff] }
 0x6b2   : > { %v14400_v56 = vrot.slane %v14372_v24, %v26602_v60  ;;  %v14402_v17 = vcombine.high %v14386_v26, %v14386_v26  ;;  %v14672_v52 = vcombine.low %v14379_v3, %v14393_v59  ;;  %v18378_v33 = vcombine.high %v14379_v3, %v14393_v59  ;;  %14307 = vst [vmem:[#allocation3 + $0x28] sm:$0xff] %v14294_v40 }
 0x6b3   : > { %v14343_v19 = vmax.f32 %v14317_v30, %v14331_v21  ;;  %v14259_v62 = vpop.f32.mrb[236].mxu0  ;;  %v14694_v20 = vrot.slane %v14386_v26, %v26602_v60 }
 0x6b4   : > { %v14680_v4 = vrot.slane %v14672_v52, %v26602_v60  ;;  %v14687_v14 = vrot.slane %v18378_v33, %v26602_v60  ;;  %v19635_v36 = vpop.f32.mrb[237].mxu0  ;;  %v14260_v32 = vadd.f32 %v14259_v62, %v25856_v11  ;;  %v14711_v5 = vcombine.low %v14400_v56, %v14402_v17 }
 0x6b5   : > { %v14405_v9 = vcombine.high %v14343_v19, %v14343_v19  ;;  %v14412_v57 = vrot.slane %v14343_v19, %v26602_v60  ;;  %v14262_v34 = vpop.f32.mrb[238].mxu0  ;;  %v14404_v39 = vcombine.high %v14400_v56, %v14400_v56  ;;  %v14709_v43 = vrot.slane %v14694_v20, %v26602_v60 }
 0x6b6   : > { %v14695_v12 = vcombine.low %v14680_v4, %v14687_v14  ;;  %v14263_v23 = vadd.f32 %v14262_v34, %v25858_v50  ;;  %v19636_v22 = vpop.f32.mrb[239].mxu0  ;;  %v14295_v54 = vmax.f32 %v14260_v32, 0.0  ;;  %v14719_v50 = vrot.slane %v14711_v5, %v26602_v60 }
 0x6b7   : > { %v14419_v8 = vrot.slane %v14405_v9, %v26602_v60  ;;  %v14420_v48 = vcombine.high %v14412_v57, %v14412_v57  ;;  %v14428_v1 = vrot.slane %v14412_v57, %v26602_v60 }
 0x6b8   : > { %v14702_v41 = vrot.slane %v14695_v12, %v26602_v60  ;;  %v14296_v29 = vmax.f32 %v14263_v23, 0.0  ;;  %14308 = vst [vmem:[#allocation3 + $0x30] sm:$0xff] %v14295_v54 }
 0x6b9   : > { %v14421_v25 = vcombine.high %v14419_v8, %v14419_v8  ;;  %v14435_v11 = vrot.slane %v14419_v8, %v26602_v60  ;;  %v14442_v2 = vrot.slane %v14420_v48, %v26602_v60  ;;  %v14712_v16 = vcombine.low %v14404_v39, %v14428_v1  ;;  %v14319_v63 = vld [vmem:[#allocation3 + $0x20] ss:$2 sm:$0xff]  ;;  %v14333_v38 = vld [vmem:[#allocation3 + $0x21] ss:$2 sm:$0xff] }
 0x6ba   : > { %14309 = vst [vmem:[#allocation3 + $0x38] sm:$0xff] %v14296_v29  ;;  %v14710_v0 = vcombine.low %v14702_v41, %v14709_v43  ;;  %v14344_v51 = vmax.f32 %v14319_v63, %v14333_v38 }
 0x6bb   : > { %v14449_v10 = vrot.slane %v14421_v25, %v26602_v60  ;;  %v14451_v27 = vcombine.high %v14435_v11, %v14435_v11  ;;  %v14726_v55 = vrot.slane %v14712_v16, %v26602_v60  ;;  %v14733_v18 = vrot.slane %v14442_v2, %v26602_v60 }
 0x6bc   : > { %v14267_v7 = vpop.f32.mrb[240].mxu0  ;;  %v18379_v31 = vcombine.high %v14428_v1, %v14442_v2  ;;  %15072 = vst [vmem:[#allocation4] sm:$0x1f] %v14710_v0  ;;  %v14454_v45 = vcombine.high %v14344_v51, %v14344_v51  ;;  %v14461_v24 = vrot.slane %v14344_v51, %v26602_v60 }
 0x6bd   : > { %v14268_v28 = vadd.f32 %v14267_v7, %v25862_v37  ;;  %v19639_v35 = vpop.f32.mrb[241].mxu0  ;;  %v14734_v13 = vcombine.low %v14719_v50, %v14726_v55  ;;  %v14748_v44 = vrot.slane %v14733_v18, %v26602_v60  ;;  %v14751_v15 = vcombine.low %v14435_v11, %v14449_v10 }
 0x6be   : > { %v14270_v6 = vpop.f32.mrb[242].mxu0  ;;  %v14758_v53 = vrot.slane %v18379_v31, %v26602_v60  ;;  %v14772_v47 = vrot.slane %v14451_v27, %v26602_v60  ;;  %v14468_v21 = vrot.slane %v14454_v45, %v26602_v60  ;;  %v14469_v40 = vcombine.high %v14461_v24, %v14461_v24 }
 0x6bf   : > { %v19640_v3 = vpop.f32.mrb[243].mxu0  ;;  %v14741_v26 = vrot.slane %v14734_v13, %v26602_v60  ;;  %v14765_v59 = vrot.slane %v14751_v15, %v26602_v60  ;;  %v14297_v37 = vmax.f32 %v14268_v28, 0.0  ;;  %v14271_v30 = vadd.f32 %v14270_v6, %v25864_v46 }
 0x6c0   : > { %v14477_v56 = vrot.slane %v14461_v24, %v26602_v60  ;;  %v14453_v52 = vcombine.high %v14449_v10, %v14449_v10  ;;  %v14470_v14 = vcombine.high %v14468_v21, %v14468_v21  ;;  %v14491_v20 = vrot.slane %v14469_v40, %v26602_v60 }
 0x6c1   : > { %v14773_v17 = vcombine.low %v14758_v53, %v14765_v59  ;;  %v14321_v33 = vld [vmem:[#allocation3 + $0x30] ss:$2 sm:$0xff]  ;;  %v14335_v19 = vld [vmem:[#allocation3 + $0x31] ss:$2 sm:$0xff]  ;;  %14310 = vst [vmem:[#allocation3 + $0x40] sm:$0xff] %v14297_v37  ;;  %v14298_v62 = vmax.f32 %v14271_v30, 0.0  ;;  %v14749_v4 = vcombine.low %v14741_v26, %v14748_v44  ;;  %v14787_v32 = vrot.slane %v14772_v47, %v26602_v60 }
 0x6c2   : > { %v14499_v36 = vcombine.high %v14477_v56, %v14477_v56  ;;  %v14789_v9 = vcombine.low %v14453_v52, %v14477_v56  ;;  %v14345_v57 = vmax.f32 %v14321_v33, %v14335_v19  ;;  %v14484_v34 = vrot.slane %v14468_v21, %v26602_v60 }
 0x6c3   : > { %14311 = vst [vmem:[#allocation3 + $0x48] sm:$0xff] %v14298_v62  ;;  %15073 = vst [vmem:[#allocation4 + $0x8] sm:$0x1f] %v14749_v4  ;;  %v14780_v46 = vrot.slane %v14773_v17, %v26602_v60  ;;  %v14498_v12 = vrot.slane %v14470_v14, %v26602_v60  ;;  %v14501_v41 = vcombine.high %v14491_v20, %v14491_v20  ;;  %v15082_v47 = vld [vmem:[#allocation4] sm:$0x1f] }
 0x6c4   : > { %v14790_v5 = vcombine.low %v14491_v20, %v14499_v36  ;;  %v14503_v39 = vcombine.high %v14345_v57, %v14345_v57  ;;  %v14510_v23 = vrot.slane %v14345_v57, %v26602_v60  ;;  %v14797_v8 = vrot.slane %v14789_v9, %v26602_v60 }
 0x6c5   : > { %v14788_v22 = vcombine.low %v14780_v46, %v14787_v32  ;;  %v14828_v1 = vcombine.low %v14484_v34, %v14498_v12  ;;  %v18380_v54 = vcombine.high %v14484_v34, %v14498_v12  ;;  %v14811_v37 = vrot.slane %v14501_v41, %v26602_v60 }
 0x6c6   : > { %v14804_v48 = vrot.slane %v14790_v5, %v26602_v60  ;;  %v14517_v43 = vrot.slane %v14503_v39, %v26602_v60  ;;  %v14518_v29 = vcombine.high %v14510_v23, %v14510_v23  ;;  %v14526_v25 = vrot.slane %v14510_v23, %v26602_v60  ;;  %v20513_v5 = vld [vmem:[#allocation13 + $0x80] sm:$0xff]  }
 0x6c7   : > { %15074 = vst [vmem:[#allocation4 + $0x10] sm:$0x1f] %v14788_v22  ;;  %v14836_v16 = vrot.slane %v14828_v1, %v26602_v60  ;;  %v14843_v50 = vrot.slane %v18380_v54, %v26602_v60  ;;  %v14826_v39 = vrot.slane %v14811_v37, %v26602_v60  ;;  %v20515_v54 = vld [vmem:[#allocation13 + $0xc8] sm:$0xff]  }
 0x6c8   : > { %v25923_v2 = vcombine.low %v14797_v8, %v14804_v48  ;;  %v14519_v0 = vcombine.high %v14517_v43, %v14517_v43  ;;  %v25929_v10 = vrot.slane %v14517_v43, %v26602_v60  ;;  %v14540_v27 = vrot.slane %v14518_v29, %v26602_v60 }
 0x6c9   : > { %v14548_v55 = vcombine.high %v14526_v25, %v14526_v25  ;;  %v14851_v7 = vcombine.low %v14836_v16, %v14843_v50  ;;  %v14850_v31 = vrot.slane %v14526_v25, %v26602_v60 }
 0x6ca   : > { %v14275_v11 = vpop.f32.mrb[244].mxu0  ;;  %v14323_v51 = vld [vmem:[#allocation3 + $0x40] ss:$2 sm:$0xff]  ;;  %v14337_v28 = vld [vmem:[#allocation3 + $0x41] ss:$2 sm:$0xff]  ;;  %v14550_v15 = vcombine.high %v14540_v27, %v14540_v27  ;;  %v14819_v4 = vrot.slane %v25923_v2, %v26602_v60 }
 0x6cb   : > { %v14276_v63 = vadd.f32 %v14275_v11, %v25868_v58  ;;  %v19643_v38 = vpop.f32.mrb[245].mxu0  ;;  %v14547_v58 = vrot.slane %v14519_v0, %v26602_v60  ;;  %v14867_v6 = vcombine.low %v14540_v27, %v14548_v55  ;;  %v14346_v53 = vmax.f32 %v14323_v51, %v14337_v28  ;;  %v15088_v45 = vld [vmem:[#allocation4 + $0x8] sm:$0x1f]  ;;  %v20519_v51 = vld [vmem:[#allocation13 + $0xd0] sm:$0xff]  }
 0x6cc   : > { %v14278_v18 = vpop.f32.mrb[246].mxu0  ;;  %v14858_v24 = vrot.slane %v14851_v7, %v26602_v60  ;;  %v14865_v3 = vrot.slane %v14850_v31, %v26602_v60  ;;  %v15093_v59 = vmax.f32 %v15082_v47, %v15088_v45  ;;  %v14868_v30 = vcombine.low %v14550_v15, %v25929_v10 }
 0x6cd   : > { %v14299_v35 = vmax.f32 %v14276_v63, 0.0  ;;  %v14279_v13 = vadd.f32 %v14278_v18, %v25870_v42  ;;  %v19644_v44 = vpop.f32.mrb[247].mxu0  ;;  %v14889_v42 = vrot.slane %v14547_v58, %v26602_v60  ;;  %v14552_v40 = vcombine.high %v14346_v53, %v14346_v53 }
 0x6ce   : > { %v14866_v21 = vcombine.low %v14858_v24, %v14865_v3  ;;  %v14559_v56 = vrot.slane %v14346_v53, %v26602_v60  ;;  %v25941_v17 = vpack.c.bf16 %v15093_v59, %v15093_v59  ;;  %v14875_v52 = vrot.slane %v14867_v6, %v26602_v60  ;;  %v20521_v53 = vld [vmem:[#allocation13 + $0x90] sm:$0xff]   ;;  %v20523_v3 = vld [vmem:[#allocation13 + $0xd8] sm:$0xff]  }
 0x6cf   : > { %14312 = vst [vmem:[#allocation3 + $0x50] sm:$0xff] %v14299_v35  ;;  %v14300_v26 = vmax.f32 %v14279_v13, 0.0  ;;  %v14882_v33 = vrot.slane %v14868_v30, %v26602_v60  ;;  %v18381_v19 = vcombine.high %v25929_v10, %v14547_v58  ;;  %v14566_v14 = vrot.slane %v14552_v40, %v26602_v60  ;;  %v20517_v10 = vld [vmem:[#allocation13 + $0x88] sm:$0xff]  }
 0x6d0   : > { %15076 = vst [vmem:[#allocation4 + $0x20] sm:$0x1f] %v14866_v21  ;;  %v14567_v20 = vcombine.high %v14559_v56, %v14559_v56  ;;  %v14575_v36 = vrot.slane %v14559_v56, %v26602_v60  ;;  %v14904_v32 = vrot.slane %v14889_v42, %v26602_v60  ;;  %v15104_v12 = vshrl.u32 %v25941_v17, 16 }
 0x6d1   : > { %14313 = vst [vmem:[#allocation3 + $0x58] sm:$0xff] %v14300_v26  ;;  %v14890_v46 = vcombine.low %v14875_v52, %v14882_v33  ;;  %v14568_v23 = vcombine.high %v14566_v14, %v14566_v14  ;;  %v14582_v22 = vrot.slane %v14566_v14, %v26602_v60  ;;  %v14827_v29 = vcombine.low %v14819_v4, %v14826_v39  ;;  %v15083_v4 = vld [vmem:[#allocation4 + $0x10] sm:$0x1f] }
 0x6d2   : > { %v14283_v62 = vpop.f32.mrb[248].mxu0  ;;  %v14589_v8 = vrot.slane %v14567_v20, %v26602_v60  ;;  %v14597_v48 = vcombine.high %v14575_v36, %v14575_v36  ;;  %16817 = vmatprep.mubr.bf16.mxu1 %v15104_v12  ;;  %v15110_v43 = vrot.slane %v15104_v12, 1  ;;  %v14914_v50 = vrot.slane %v18381_v19, %v26602_v60  ;;  %v20525_v20 = vld [vmem:[#allocation13 + $0x98] sm:$0xff]  }
 0x6d3   : > { %v14284_v9 = vadd.f32 %v14283_v62, %v25873_v49  ;;  %v19647_v57 = vpop.f32.mrb[249].mxu0  ;;  %v14897_v49 = vrot.slane %v14890_v46, %v26602_v60  ;;  %v14596_v25 = vrot.slane %v14568_v23, %v26602_v60  ;;  %v14598_v11 = vcombine.high %v14582_v22, %v14582_v22  ;;  %16818 = vmatmul.mubr.bf16.vlgmr.msra.gmra.mrb[224].mxu1 %v25941_v17 }
 0x6d4   : > { %v14286_v34 = vpop.f32.mrb[250].mxu0  ;;  %v14599_v2 = vcombine.high %v14589_v8, %v14589_v8  ;;  %v14907_v16 = vcombine.low %v14575_v36, %v14589_v8  ;;  %v14928_v63 = vrot.slane %v14597_v48, %v26602_v60  ;;  %19337 = vmatpush3.bf16.msra.mxu1 %v20513_v5  ;;  %16857 = vmatprep.mubr.bf16.mxu1 %v15110_v43  ;;  %v15112_v23 = vrot.slane %v25941_v17, 2 }
 0x6d5   : > { %v19648_v1 = vpop.f32.mrb[251].mxu0  ;;  %v14301_v41 = vmax.f32 %v14284_v9, 0.0  ;;  %15075 = vst [vmem:[#allocation4 + $0x18] sm:$0x1f] %v14827_v29  ;;  %v14905_v27 = vcombine.low %v14897_v49, %v14904_v32  ;;  %v14600_v55 = vcombine.high %v14596_v25, %v14596_v25  ;;  %v14946_v31 = vcombine.low %v14596_v25, %v14598_v11  ;;  %19338 = vmatprep.subr.bf16.mxu1 %v20515_v54  ;;  %v20527_v9 = vld [vmem:[#allocation13 + $0xe0] sm:$0xff]   ;;  %v20524_v49 = vld [vmem:[#allocation13 + $0x248] sm:$0xff]  }
 0x6d6   : > { %v14921_v18 = vrot.slane %v14907_v16, %v26602_v60  ;;  %v14945_v7 = vcombine.low %v14599_v2, %v14582_v22  ;;  %v14943_v45 = vrot.slane %v14928_v63, %v26602_v60  ;;  %v20522_v22 = vld [vmem:[#allocation13 + $0x200] sm:$0xff]   ;;  %v20531_v2 = vld [vmem:[#allocation13 + $0xe8] sm:$0xff]  }
 0x6d7   : > { %14314 = vst [vmem:[#allocation3 + $0x60] sm:$0xf] %v14301_v41  ;;  %15077 = vst [vmem:[#allocation4 + $0x28] sm:$0x1f] %v14905_v27  ;;  %v14960_v44 = vrot.slane %v14946_v31, %v26602_v60  ;;  %v14967_v58 = vrot.slane %v14600_v55, %v26602_v60  ;;  %v20529_v41 = vld [vmem:[#allocation13 + $0xa0] sm:$0xff]  }
 0x6d8   : > { %v14325_v38 = vld [vmem:[#allocation3 + $0x50] ss:$2 sm:$0xff]  ;;  %v14339_v0 = vld [vmem:[#allocation3 + $0x51] ss:$2 sm:$0xff]  ;;  %v14929_v35 = vcombine.low %v14914_v50, %v14921_v18  ;;  %v14953_v13 = vrot.slane %v14945_v7, %v26602_v60  ;;  %19339 = vmatpush3.bf16.msra.mxu1 %v20517_v10 }
 0x6d9   : > { %v14347_v28 = vmax.f32 %v14325_v38, %v14339_v0  ;;  %19340 = vmatprep.subr.bf16.mxu1 %v20519_v51  ;;  %v14982_v42 = vrot.slane %v14967_v58, %v26602_v60  ;;  %v20526_v38 = vld [vmem:[#allocation13 + $0x208] sm:$0xff]   ;;  %v20528_v0 = vld [vmem:[#allocation13 + $0x250] sm:$0xff]  }
 0x6da   : > { %v14936_v47 = vrot.slane %v14929_v35, %v26602_v60  ;;  %v14968_v24 = vcombine.low %v14953_v13, %v14960_v44  ;;  %v20533_v10 = vld [vmem:[#allocation13 + $0xa8] sm:$0xff]   ;;  %v20535_v51 = vld [vmem:[#allocation13 + $0xf0] sm:$0xff]   ;;  %v20532_v44 = vld [vmem:[#allocation13 + $0x258] sm:$0xff]  }
 0x6db   : > { %v14601_v15 = vcombine.high %v14347_v28, %v14347_v28  ;;  %v14608_v6 = vrot.slane %v14347_v28, %v26602_v60  ;;  %v20530_v13 = vld [vmem:[#allocation13 + $0x210] sm:$0xff]  }
 0x6dc   : > { %v14944_v37 = vcombine.low %v14936_v47, %v14943_v45  ;;  %v14975_v30 = vrot.slane %v14968_v24, %v26602_v60  ;;  %v15089_v14 = vld [vmem:[#allocation4 + $0x18] sm:$0x1f]  ;;  %19341 = vmatpush3.bf16.msra.mxu1 %v20521_v53  ;;  %v20537_v58 = vld [vmem:[#allocation13 + $0xb0] sm:$0xff]   ;;  %v20534_v47 = vld [vmem:[#allocation13 + $0x218] sm:$0xff]  }
 0x6dd   : > { %v14615_v26 = vrot.slane %v14601_v15, %v26602_v60  ;;  %v14616_v59 = vcombine.high %v14608_v6, %v14608_v6  ;;  %v14624_v21 = vrot.slane %v14608_v6, %v26602_v60  ;;  %v15094_v36 = vmax.f32 %v15083_v4, %v15089_v14  ;;  %19342 = vmatprep.subr.bf16.mxu1 %v20523_v3  ;;  %v20539_v15 = vld [vmem:[#allocation13 + $0xf8] sm:$0xff]   ;;  %v20536_v24 = vld [vmem:[#allocation13 + $0x260] sm:$0xff]   ;;  %v20546_v14 = vld [vmem:[#allocation13 + $0x230] sm:$0xff]  }
 0x6de   : > { %v14327_v40 = vld [vmem:[#allocation3 + $0x60] ss:$2 sm:$0x3]  ;;  %v14341_v56 = vld [vmem:[#allocation3 + $0x61] ss:$2 sm:$0x3]  ;;  %v14983_v57 = vcombine.low %v14975_v30, %v14982_v42 }
 0x6df   : > { %v14617_v52 = vcombine.high %v14615_v26, %v14615_v26  ;;  %v14631_v33 = vrot.slane %v14615_v26, %v26602_v60  ;;  %v14638_v19 = vrot.slane %v14616_v59, %v26602_v60  ;;  %v14348_v62 = vmax.f32 %v14327_v40, %v14341_v56  ;;  %15078 = vst [vmem:[#allocation4 + $0x30] sm:$0x1f] %v14944_v37  ;;  %v20541_v3 = vld [vmem:[#allocation13 + $0xb8] sm:$0xff]   ;;  %v20543_v26 = vld [vmem:[#allocation13 + $0x1c0] sm:$0xff]   ;;  %v20540_v37 = vld [vmem:[#allocation13 + $0x268] sm:$0xff]  }
 0x6e0   : > { %v25976_v39 = vpack.c.bf16 %v15094_v36, %v15094_v36  ;;  %15079 = vst [vmem:[#allocation4 + $0x38] sm:$0x1f] %v14983_v57  ;;  %19343 = vmatpush3.bf16.msra.mxu1 %v20525_v20  ;;  %v20538_v59 = vld [vmem:[#allocation13 + $0x220] sm:$0xff]   ;;  %v15108_v42 = vrot.slane %v25941_v17, 1  ;;  %v20542_v40 = vld [vmem:[#allocation13 + $0x228] sm:$0xff]   ;;  %v20548_v17 = vld [vmem:[#allocation13 + $0x278] sm:$0xff]  }
 0x6e1   : > { %v14645_v46 = vrot.slane %v14617_v52, %v26602_v60  ;;  %v14647_v32 = vcombine.high %v14631_v33, %v14631_v33  ;;  %v14984_v34 = vcombine.low %v14624_v21, %v14638_v19  ;;  %v18382_v12 = vcombine.high %v14624_v21, %v14638_v19  ;;  %19344 = vmatprep.subr.bf16.mxu1 %v20527_v9  ;;  %v20545_v30 = vld [vmem:[#allocation13 + $0x180] sm:$0xff]   ;;  %v15090_v21 = vld [vmem:[#allocation4 + $0x28] sm:$0x1f]  ;;  %v20544_v52 = vld [vmem:[#allocation13 + $0x270] sm:$0xff]  }
 0x6e2   : > { %v14656_v5 = vrot.slane %v14348_v62, %v26602_v60  ;;  %v15006_v1 = vrot.slane %v14631_v33, %v26602_v60  ;;  %16897 = vmatprep.mubr.bf16.mxu0 %v25976_v39  ;;  %v15123_v11 = vrot.slane %v25976_v39, 2  ;;  %v15119_v56 = vrot.slane %v25976_v39, 1  ;;  %v20549_v33 = vld [vmem:[#allocation13 + $0x188] sm:$0xff]   ;;  %v15084_v19 = vld [vmem:[#allocation4 + $0x20] sm:$0x1f]  ;;  %v20555_v9 = vld [vmem:[#allocation13 + $0x1d8] sm:$0xff]  }
 0x6e3   : > { %v14992_v8 = vrot.slane %v14984_v34, %v26602_v60  ;;  %v14999_v48 = vrot.slane %v18382_v12, %v26602_v60  ;;  %v14649_v54 = vcombine.high %v14645_v46, %v14645_v46  ;;  %v15023_v43 = vcombine.low %v14645_v46, %v14647_v32  ;;  %16898 = vmatmul.mubr.bf16.vlgmr.msra.gmra.mrb[252].mxu0 %v15112_v23  ;;  %v20551_v62 = vld [vmem:[#allocation13 + $0x1d0] sm:$0xff]   ;;  %v20550_v57 = vld [vmem:[#allocation13 + $0x238] sm:$0xff]   ;;  %v20552_v32 = vld [vmem:[#allocation13 + $0x340] sm:$0xff]  }
 0x6e4   : > { %v14657_v29 = vcombine.high %v14656_v5, %v14656_v5  ;;  %v14664_v25 = vrot.slane %v14656_v5, %v26602_v60  ;;  %19403 = vmatpush3.bf16.msra.mxu0 %v20522_v22  ;;  %16977 = vmatprep.mubr.bf16.mxu0 %v15123_v11  ;;  %v15021_v55 = vrot.slane %v15006_v1, %v26602_v60  ;;  %v20553_v20 = vld [vmem:[#allocation13 + $0x190] sm:$0xff]   ;;  %v15115_v46 = vshrl.u32 %v25976_v39, 16  ;;  %v20557_v34 = vld [vmem:[#allocation13 + $0x198] sm:$0xff]   ;;  %v20559_v5 = vld [vmem:[#allocation13 + $0x1e0] sm:$0xff]  }
 0x6e5   : > { %v15007_v16 = vcombine.low %v14992_v8, %v14999_v48  ;;  %19404 = vmatprep.subr.bf16.mxu0 %v20524_v49  ;;  %19345 = vmatpush3.bf16.msra.mxu1 %v20529_v41  ;;  %v15031_v18 = vrot.slane %v15023_v43, %v26602_v60  ;;  %v15095_v4 = vmax.f32 %v15084_v19, %v15090_v21  ;;  %v20554_v23 = vld [vmem:[#allocation13 + $0x300] sm:$0xff]   ;;  %v20556_v8 = vld [vmem:[#allocation13 + $0x348] sm:$0xff]   ;;  %v20560_v49 = vld [vmem:[#allocation13 + $0x350] sm:$0xff]  }
 0x6e6   : > { %v14671_v50 = vrot.slane %v14657_v29, %v26602_v60  ;;  %v15024_v63 = vcombine.low %v14649_v54, %v14664_v25  ;;  %19346 = vmatprep.subr.bf16.mxu1 %v20531_v2  ;;  %v15121_v22 = vrot.slane %v15115_v46, 1  ;;  %v20561_v48 = vld [vmem:[#allocation13 + $0x1a0] sm:$0xff]   ;;  %v20563_v54 = vld [vmem:[#allocation13 + $0x1e8] sm:$0xff]   ;;  %v20567_v43 = vld [vmem:[#allocation13 + $0x1f0] sm:$0xff]  }
 0x6e7   : > { %v15014_v27 = vrot.slane %v15007_v16, %v26602_v60  ;;  %v25995_v36 = vpack.c.bf16 %v15095_v4, %v15095_v4  ;;  %v20558_v39 = vld [vmem:[#allocation13 + $0x308] sm:$0xff]   ;;  %v20562_v29 = vld [vmem:[#allocation13 + $0x310] sm:$0xff]   ;;  %v20564_v25 = vld [vmem:[#allocation13 + $0x358] sm:$0xff]  }
 0x6e8   : > { %v15038_v7 = vrot.slane %v15024_v63, %v26602_v60  ;;  %v15045_v31 = vrot.slane %v14671_v50, %v26602_v60  ;;  %19405 = vmatpush3.bf16.msra.mxu0 %v20526_v38  ;;  %v20565_v41 = vld [vmem:[#allocation13 + $0x1a8] sm:$0xff]   ;;  %v20569_v11 = vld [vmem:[#allocation13 + $0x1b0] sm:$0xff]   ;;  %v20571_v2 = vld [vmem:[#allocation13 + $0x1f8] sm:$0xff]  }
 0x6e9   : > { %v15022_v28 = vcombine.low %v15014_v27, %v15021_v55  ;;  %19406 = vmatprep.subr.bf16.mxu0 %v20528_v0  ;;  %19347 = vmatpush3.bf16.msra.mxu1 %v20533_v10  ;;  %v15126_v12 = vshrl.u32 %v25995_v36, 16  ;;  %v20566_v16 = vld [vmem:[#allocation13 + $0x318] sm:$0xff]   ;;  %v20568_v50 = vld [vmem:[#allocation13 + $0x360] sm:$0xff]   ;;  %v15091_v0 = vld [vmem:[#allocation4 + $0x38] sm:$0x1f] }
 0x6ea   : > { %v15046_v35 = vcombine.low %v15031_v18, %v15038_v7  ;;  %19348 = vmatprep.subr.bf16.mxu1 %v20535_v51  ;;  %v15060_v53 = vrot.slane %v15045_v31, %v26602_v60  ;;  %v20573_v63 = vld [vmem:[#allocation13 + $0x1b8] sm:$0xff]   ;;  %v20575_v38 = vld [vmem:[#allocation13 + $0x2c0] sm:$0xff]   ;;  %v20572_v27 = vld [vmem:[#allocation13 + $0x368] sm:$0xff]  }
 0x6eb   : > { %15080 = vst [vmem:[#allocation4 + $0x40] sm:$0x1f] %v15022_v28  ;;  %v15132_v1 = vrot.slane %v15126_v12, 1  ;;  %v20570_v10 = vld [vmem:[#allocation13 + $0x320] sm:$0xff]   ;;  %v20579_v7 = vld [vmem:[#allocation13 + $0x2c8] sm:$0xff]   ;;  %v20576_v28 = vld [vmem:[#allocation13 + $0x370] sm:$0xff]  }
 0x6ec   : > { %v15053_v6 = vrot.slane %v15046_v35, %v26602_v60  ;;  %19407 = vmatpush3.bf16.msra.mxu0 %v20530_v13  ;;  %v20547_v60 = vld [vmem:[#allocation13 + $0x1c8] sm:$0xff]   ;;  %v20577_v55 = vld [vmem:[#allocation13 + $0x280] sm:$0xff]   ;;  %v20583_v13 = vld [vmem:[#allocation13 + $0x2d0] sm:$0xff]  }
 0x6ed   : > { %19408 = vmatprep.subr.bf16.mxu0 %v20532_v44  ;;  %19349 = vmatpush3.bf16.msra.mxu1 %v20537_v58  ;;  %v15085_v18 = vld [vmem:[#allocation4 + $0x30] sm:$0x1f]  ;;  %v20574_v51 = vld [vmem:[#allocation13 + $0x328] sm:$0xff]   ;;  %v20578_v58 = vld [vmem:[#allocation13 + $0x330] sm:$0xff]  }
 0x6ee   : > { %v15061_v45 = vcombine.low %v15053_v6, %v15060_v53  ;;  %19350 = vmatprep.subr.bf16.mxu1 %v20539_v15  ;;  %v15096_v31 = vmax.f32 %v15085_v18, %v15091_v0  ;;  %v20581_v35 = vld [vmem:[#allocation13 + $0x288] sm:$0xff]   ;;  %v20580_v15 = vld [vmem:[#allocation13 + $0x378] sm:$0xff]   ;;  %v20585_v6 = vld [vmem:[#allocation13 + $0x290] sm:$0xff]  }
 0x6ef   : > { %v20599_v19 = vld [vmem:[#allocation13 + $0x2f0] sm:$0xff]   ;;  %v20596_v4 = vld [vmem:[#allocation13 + $0x458] sm:$0xff]   ;;  %v20620_v0 = vld [vmem:[#allocation13 + $0x548] sm:$0xff]  }
 0x6f0   : > { %15081 = vst [vmem:[#allocation4 + $0x48] sm:$0x1f] %v15061_v45  ;;  %19409 = vmatpush3.bf16.msra.mxu0 %v20534_v47  ;;  %v25999_v44 = vpack.c.bf16 %v15096_v31, %v15096_v31  ;;  %v20587_v47 = vld [vmem:[#allocation13 + $0x2d8] sm:$0xff]   ;;  %v20622_v18 = vld [vmem:[#allocation13 + $0x508] sm:$0xff]  }
 0x6f1   : > { %19410 = vmatprep.subr.bf16.mxu0 %v20536_v24  ;;  %19351 = vmatpush3.bf16.msra.mxu1 %v20541_v3  ;;  %v20582_v45 = vld [vmem:[#allocation13 + $0x338] sm:$0xff]   ;;  %v20584_v24 = vld [vmem:[#allocation13 + $0x440] sm:$0xff]   ;;  %v20629_v31 = vld [vmem:[#allocation13 + $0x3a8] sm:$0xff]  }
 0x6f2   : > { %19380 = vmatprep.subr.bf16.mxu1 %v20543_v26  ;;  %v15137_v53 = vshll.u32 %v25999_v44, 16  ;;  %v20589_v3 = vld [vmem:[#allocation13 + $0x298] sm:$0xff]  }
 0x6f4   : > { %19411 = vmatpush3.bf16.msra.mxu0 %v20538_v59  ;;  %16858 = vmatmul.mubr.bf16.vlgmr.msra.gmra.mrb[228].mxu1 %v15108_v42  ;;  %v15139_v26 = vrot.slane %v15137_v53, 1  ;;  %v20591_v59 = vld [vmem:[#allocation13 + $0x2e0] sm:$0xff]   ;;  %v20588_v42 = vld [vmem:[#allocation13 + $0x448] sm:$0xff]  }
 0x6f5   : > { %19412 = vmatprep.subr.bf16.mxu0 %v20540_v37  ;;  %19381 = vmatpush3.bf16.msra.mxu1 %v20545_v30  ;;  %v20586_v37 = vld [vmem:[#allocation13 + $0x400] sm:$0xff]   ;;  %v15130_v30 = vrot.slane %v25995_v36, 1 }
 0x6f6   : > { %16937 = vmatprep.mubr.bf16.mxu1 %v15119_v56  ;;  %19382 = vmatprep.subr.bf16.mxu1 %v20547_v60  ;;  %v20593_v60 = vld [vmem:[#allocation13 + $0x2a0] sm:$0xff]   ;;  %v15153_v21 = vshrl.u32 %v15139_v26, 16  ;;  %v20590_v56 = vld [vmem:[#allocation13 + $0x408] sm:$0xff]  }
 0x6f7   : > { %v20636_v26 = vld [vmem:[#allocation13 + $0x568] sm:$0xff]  }
 0x6f8   : > { %19413 = vmatpush3.bf16.msra.mxu0 %v20542_v40  ;;  %v20595_v40 = vld [vmem:[#allocation13 + $0x2e8] sm:$0xff]  }
 0x6f9   : > { %19414 = vmatprep.subr.bf16.mxu0 %v20544_v52  ;;  %19383 = vmatpush3.bf16.msra.mxu1 %v20549_v33  ;;  %v20592_v52 = vld [vmem:[#allocation13 + $0x450] sm:$0xff]   ;;  %v20597_v33 = vld [vmem:[#allocation13 + $0x2a8] sm:$0xff]  }
 0x6fa   : > { %19384 = vmatprep.subr.bf16.mxu1 %v20551_v62  ;;  %v20594_v62 = vld [vmem:[#allocation13 + $0x410] sm:$0xff]  }
 0x6fc   : > { %19415 = vmatpush3.bf16.msra.mxu0 %v20546_v14  ;;  %v20601_v14 = vld [vmem:[#allocation13 + $0x2b0] sm:$0xff]  }
 0x6fd   : > { %19416 = vmatprep.subr.bf16.mxu0 %v20548_v17  ;;  %19385 = vmatpush3.bf16.msra.mxu1 %v20553_v20  ;;  %v20603_v17 = vld [vmem:[#allocation13 + $0x2f8] sm:$0xff]  }
 0x6fe   : > { %19386 = vmatprep.subr.bf16.mxu1 %v20555_v9  ;;  %v20598_v20 = vld [vmem:[#allocation13 + $0x418] sm:$0xff]   ;;  %v20600_v9 = vld [vmem:[#allocation13 + $0x460] sm:$0xff]  }
 0x700   : > { %19417 = vmatpush3.bf16.msra.mxu0 %v20550_v57  ;;  %v20605_v57 = vld [vmem:[#allocation13 + $0x2b8] sm:$0xff]  }
 0x701   : > { %19446 = vmatprep.subr.bf16.mxu0 %v20552_v32  ;;  %19387 = vmatpush3.bf16.msra.mxu1 %v20557_v34  ;;  %v20602_v32 = vld [vmem:[#allocation13 + $0x420] sm:$0xff]   ;;  %v20604_v34 = vld [vmem:[#allocation13 + $0x468] sm:$0xff]  }
 0x702   : > { %19388 = vmatprep.subr.bf16.mxu1 %v20559_v5  ;;  %v20611_v5 = vld [vmem:[#allocation13 + $0x3c8] sm:$0xff]  }
 0x703   : > { %16978 = vmatmul.mubr.bf16.vlgmr.msra.gmra.mrb[0].mxu0 %v15121_v22  ;;  %v20608_v22 = vld [vmem:[#allocation13 + $0x470] sm:$0xff]  }
 0x704   : > { %19447 = vmatpush3.bf16.msra.mxu0 %v20554_v23  ;;  %17057 = vmatprep.mubr.bf16.mxu0 %v15132_v1  ;;  %v20606_v23 = vld [vmem:[#allocation13 + $0x428] sm:$0xff]   ;;  %v15092_v1 = vld [vmem:[#allocation4 + $0x48] sm:$0x1f] }
 0x705   : > { %19448 = vmatprep.subr.bf16.mxu0 %v20556_v8  ;;  %19389 = vmatpush3.bf16.msra.mxu1 %v20561_v48  ;;  %v20613_v8 = vld [vmem:[#allocation13 + $0x388] sm:$0xff]   ;;  %v20615_v48 = vld [vmem:[#allocation13 + $0x3d0] sm:$0xff]  }
 0x706   : > { %19390 = vmatprep.subr.bf16.mxu1 %v20563_v54  ;;  %v20610_v54 = vld [vmem:[#allocation13 + $0x430] sm:$0xff]  }
 0x708   : > { %19449 = vmatpush3.bf16.msra.mxu0 %v20558_v39  ;;  %v20612_v39 = vld [vmem:[#allocation13 + $0x478] sm:$0xff]  }
 0x709   : > { %19450 = vmatprep.subr.bf16.mxu0 %v20560_v49  ;;  %19391 = vmatpush3.bf16.msra.mxu1 %v20565_v41  ;;  %v20617_v49 = vld [vmem:[#allocation13 + $0x390] sm:$0xff]  }
 0x70a   : > { %19392 = vmatprep.subr.bf16.mxu1 %v20567_v43  ;;  %v15086_v41 = vld [vmem:[#allocation4 + $0x40] sm:$0x1f] }
 0x70b   : > { %v15097_v43 = vmax.f32 %v15086_v41, %v15092_v1  ;;  %v20665_v1 = vld [vmem:[#allocation13 + $0x5c0] sm:$0xff]  }
 0x70c   : > { %19451 = vmatpush3.bf16.msra.mxu0 %v20562_v29  ;;  %v20619_v29 = vld [vmem:[#allocation13 + $0x3d8] sm:$0xff]  }
 0x70d   : > { %19452 = vmatprep.subr.bf16.mxu0 %v20564_v25  ;;  %19393 = vmatpush3.bf16.msra.mxu1 %v20569_v11  ;;  %v20614_v25 = vld [vmem:[#allocation13 + $0x438] sm:$0xff]   ;;  %v20616_v11 = vld [vmem:[#allocation13 + $0x540] sm:$0xff]  }
 0x70e   : > { %19394 = vmatprep.subr.bf16.mxu1 %v20571_v2  ;;  %v20621_v2 = vld [vmem:[#allocation13 + $0x398] sm:$0xff]  }
 0x710   : > { %19453 = vmatpush3.bf16.msra.mxu0 %v20566_v16  ;;  %v26007_v16 = vpack.c.bf16 %v15097_v43, %v15097_v43  ;;  %v20668_v43 = vld [vmem:[#allocation13 + $0x5c8] sm:$0xff]  }
 0x711   : > { %19454 = vmatprep.subr.bf16.mxu0 %v20568_v50  ;;  %19395 = vmatpush3.bf16.msra.mxu1 %v20573_v63  ;;  %v20623_v50 = vld [vmem:[#allocation13 + $0x3e0] sm:$0xff]  }
 0x712   : > { %19424 = vmatprep.subr.bf16.mxu1 %v20575_v38  ;;  %v20618_v63 = vld [vmem:[#allocation13 + $0x500] sm:$0xff]   ;;  %v15150_v38 = vshrl.u32 %v25999_v44, 16 }
 0x714   : > { %19455 = vmatpush3.bf16.msra.mxu0 %v20570_v10  ;;  %16938 = vmatmul.mubr.bf16.vlgmr.msra.gmra.mrb[232].mxu1 %v15115_v46  ;;  %v20607_v46 = vld [vmem:[#allocation13 + $0x3c0] sm:$0xff]  }
 0x715   : > { %19456 = vmatprep.subr.bf16.mxu0 %v20572_v27  ;;  %19425 = vmatpush3.bf16.msra.mxu1 %v20577_v55  ;;  %v20625_v10 = vld [vmem:[#allocation13 + $0x3a0] sm:$0xff]   ;;  %v15164_v27 = vshrl.u32 %v26007_v16, 16  ;;  %v20627_v55 = vld [vmem:[#allocation13 + $0x3e8] sm:$0xff]  }
 0x716   : > { %17017 = vmatprep.mubr.bf16.mxu1 %v15126_v12  ;;  %19426 = vmatprep.subr.bf16.mxu1 %v20579_v7  ;;  %v20609_v12 = vld [vmem:[#allocation13 + $0x380] sm:$0xff]   ;;  %v20624_v7 = vld [vmem:[#allocation13 + $0x550] sm:$0xff]  }
 0x718   : > { %19457 = vmatpush3.bf16.msra.mxu0 %v20574_v51  ;;  %v20631_v51 = vld [vmem:[#allocation13 + $0x3f0] sm:$0xff]  }
 0x719   : > { %19458 = vmatprep.subr.bf16.mxu0 %v20576_v28  ;;  %19427 = vmatpush3.bf16.msra.mxu1 %v20581_v35  ;;  %v20626_v28 = vld [vmem:[#allocation13 + $0x510] sm:$0xff]   ;;  %v20628_v35 = vld [vmem:[#allocation13 + $0x558] sm:$0xff]  }
 0x71a   : > { %19428 = vmatprep.subr.bf16.mxu1 %v20583_v13  ;;  %v20633_v13 = vld [vmem:[#allocation13 + $0x3b0] sm:$0xff]  }
 0x71c   : > { %19459 = vmatpush3.bf16.msra.mxu0 %v20578_v58  ;;  %v20635_v58 = vld [vmem:[#allocation13 + $0x3f8] sm:$0xff]  }
 0x71d   : > { %19460 = vmatprep.subr.bf16.mxu0 %v20580_v15  ;;  %19429 = vmatpush3.bf16.msra.mxu1 %v20585_v6  ;;  %v20630_v15 = vld [vmem:[#allocation13 + $0x518] sm:$0xff]   ;;  %v20632_v6 = vld [vmem:[#allocation13 + $0x560] sm:$0xff]  }
 0x71e   : > { %19430 = vmatprep.subr.bf16.mxu1 %v20587_v47  ;;  %v20637_v47 = vld [vmem:[#allocation13 + $0x3b8] sm:$0xff]  }
 0x720   : > { %19461 = vmatpush3.bf16.msra.mxu0 %v20582_v45  ;;  %v20639_v45 = vld [vmem:[#allocation13 + $0x4c0] sm:$0xff]  }
 0x721   : > { %19490 = vmatprep.subr.bf16.mxu0 %v20584_v24  ;;  %19431 = vmatpush3.bf16.msra.mxu1 %v20589_v3  ;;  %v20634_v24 = vld [vmem:[#allocation13 + $0x520] sm:$0xff]   ;;  %v15142_v3 = vrot.slane %v15137_v53, 2  ;;  %v20642_v53 = vld [vmem:[#allocation13 + $0x530] sm:$0xff]  }
 0x722   : > { %19432 = vmatprep.subr.bf16.mxu1 %v20591_v59  ;;  %v20641_v59 = vld [vmem:[#allocation13 + $0x480] sm:$0xff]  }
 0x723   : > { %17058 = vmatmul.mubr.bf16.vlgmr.msra.gmra.mrb[4].mxu0 %v15130_v30  ;;  %v20643_v30 = vld [vmem:[#allocation13 + $0x4c8] sm:$0xff]  }
 0x724   : > { %19491 = vmatpush3.bf16.msra.mxu0 %v20586_v37  ;;  %17137 = vmatprep.mubr.bf16.mxu0 %v15153_v21  ;;  %v15134_v37 = vrot.slane %v25995_v36, 2  ;;  %v20640_v21 = vld [vmem:[#allocation13 + $0x570] sm:$0xff]  }
 0x725   : > { %19492 = vmatprep.subr.bf16.mxu0 %v20588_v42  ;;  %19433 = vmatpush3.bf16.msra.mxu1 %v20593_v60  ;;  %v20638_v42 = vld [vmem:[#allocation13 + $0x528] sm:$0xff]   ;;  %v15159_v60 = vshrl.u32 %v15142_v3, 16 }
 0x726   : > { %19434 = vmatprep.subr.bf16.mxu1 %v20595_v40  ;;  %v20645_v40 = vld [vmem:[#allocation13 + $0x488] sm:$0xff]  }
 0x728   : > { %19493 = vmatpush3.bf16.msra.mxu0 %v20590_v56  ;;  %v20647_v56 = vld [vmem:[#allocation13 + $0x4d0] sm:$0xff]  }
 0x729   : > { %19494 = vmatprep.subr.bf16.mxu0 %v20592_v52  ;;  %19435 = vmatpush3.bf16.msra.mxu1 %v20597_v33  ;;  %v20644_v52 = vld [vmem:[#allocation13 + $0x578] sm:$0xff]   ;;  %v20648_v33 = vld [vmem:[#allocation13 + $0x490] sm:$0xff]  }
 0x72a   : > { %19436 = vmatprep.subr.bf16.mxu1 %v20599_v19  ;;  %v20646_v19 = vld [vmem:[#allocation13 + $0x538] sm:$0xff]  }
 0x72c   : > { %19495 = vmatpush3.bf16.msra.mxu0 %v20594_v62  ;;  %v26015_v62 = vshll.u32 %v26007_v16, 16 }
 0x72d   : > { %19496 = vmatprep.subr.bf16.mxu0 %v20596_v4  ;;  %19437 = vmatpush3.bf16.msra.mxu1 %v20601_v14  ;;  %v20651_v4 = vld [vmem:[#allocation13 + $0x498] sm:$0xff]   ;;  %v20653_v14 = vld [vmem:[#allocation13 + $0x4e0] sm:$0xff]  }
 0x72e   : > { %19438 = vmatprep.subr.bf16.mxu1 %v20603_v17  ;;  %v20649_v17 = vld [vmem:[#allocation13 + $0x600] sm:$0xff]  }
 0x730   : > { %19497 = vmatpush3.bf16.msra.mxu0 %v20598_v20  ;;  %v15162_v20 = vshrl.u32 %v26015_v62, 16 }
 0x731   : > { %19498 = vmatprep.subr.bf16.mxu0 %v20600_v9  ;;  %19439 = vmatpush3.bf16.msra.mxu1 %v20605_v57  ;;  %v20654_v9 = vld [vmem:[#allocation13 + $0x4a0] sm:$0xff]   ;;  %v20656_v57 = vld [vmem:[#allocation13 + $0x4e8] sm:$0xff]  }
 0x732   : > { %19468 = vmatprep.subr.bf16.mxu1 %v20607_v46  ;;  %v20652_v46 = vld [vmem:[#allocation13 + $0x608] sm:$0xff]  }
 0x734   : > { %19499 = vmatpush3.bf16.msra.mxu0 %v20602_v32  ;;  %17018 = vmatmul.mubr.bf16.vlgmr.msra.gmra.mrb[236].mxu1 %v25995_v36  ;;  %v20650_v36 = vld [vmem:[#allocation13 + $0x4d8] sm:$0xff]   ;;  %v20657_v32 = vld [vmem:[#allocation13 + $0x4a8] sm:$0xff]  }
 0x735   : > { %19500 = vmatprep.subr.bf16.mxu0 %v20604_v34  ;;  %19469 = vmatpush3.bf16.msra.mxu1 %v20609_v12  ;;  %v20659_v34 = vld [vmem:[#allocation13 + $0x4f0] sm:$0xff]  }
 0x736   : > { %17097 = vmatprep.mubr.bf16.mxu1 %v25999_v44  ;;  %19470 = vmatprep.subr.bf16.mxu1 %v20611_v5  ;;  %v20655_v12 = vld [vmem:[#allocation13 + $0x610] sm:$0xff]  }
 0x737   : > { %v20660_v5 = vld [vmem:[#allocation13 + $0x4b0] sm:$0xff]  }
 0x738   : > { %19501 = vmatpush3.bf16.msra.mxu0 %v20606_v23  ;;  %v20662_v23 = vld [vmem:[#allocation13 + $0x4f8] sm:$0xff]  }
 0x739   : > { %19502 = vmatprep.subr.bf16.mxu0 %v20608_v22  ;;  %19471 = vmatpush3.bf16.msra.mxu1 %v20613_v8  ;;  %v20658_v22 = vld [vmem:[#allocation13 + $0x618] sm:$0xff]  }
 0x73a   : > { %19472 = vmatprep.subr.bf16.mxu1 %v20615_v48  ;;  %v20663_v8 = vld [vmem:[#allocation13 + $0x4b8] sm:$0xff]   ;;  %v15141_v48 = vrot.slane %v25999_v44, 1  ;;  %v20669_v44 = vld [vmem:[#allocation13 + $0x588] sm:$0xff]  }
 0x73c   : > { %19503 = vmatpush3.bf16.msra.mxu0 %v20610_v54  ;;  %v20661_v54 = vld [vmem:[#allocation13 + $0x620] sm:$0xff]   ;;  %v15156_v41 = vshrl.u32 %v15141_v48, 16 }
 0x73d   : > { %19504 = vmatprep.subr.bf16.mxu0 %v20612_v39  ;;  %19473 = vmatpush3.bf16.msra.mxu1 %v20617_v49  ;;  %v15148_v39 = vrot.slane %v26007_v16, 1  ;;  %v20666_v49 = vld [vmem:[#allocation13 + $0x580] sm:$0xff]   ;;  %v20672_v16 = vld [vmem:[#allocation13 + $0x590] sm:$0xff]  }
 0x73e   : > { %19474 = vmatprep.subr.bf16.mxu1 %v20619_v29  ;;  %v20664_v29 = vld [vmem:[#allocation13 + $0x628] sm:$0xff]  }
 0x740   : > { %19505 = vmatpush3.bf16.msra.mxu0 %v20614_v25  ;;  %v15170_v25 = vshrl.u32 %v15148_v39, 16  ;;  %v20691_v39 = vld [vmem:[#allocation19] sm:$0xff]  }
 0x741   : > { %19534 = vmatprep.subr.bf16.mxu0 %v20616_v11  ;;  %19475 = vmatpush3.bf16.msra.mxu1 %v20621_v2  ;;  %v20671_v11 = vld [vmem:[#allocation13 + $0x5d0] sm:$0xff]  }
 0x742   : > { %19476 = vmatprep.subr.bf16.mxu1 %v20623_v50  ;;  %v20667_v2 = vld [vmem:[#allocation13 + $0x630] sm:$0xff]   ;;  %v20673_v50 = vld [vmem:[#allocation13 + $0x5d8] sm:$0xff]  }
 0x743   : > { %17138 = vmatmul.mubr.bf16.vlgmr.msra.gmra.mrb[8].mxu0 %v15150_v38  ;;  %v15149_v38 = vrot.slane %v26015_v62, 2 }
 0x744   : > { %19535 = vmatpush3.bf16.msra.mxu0 %v20618_v63  ;;  %17217 = vmatprep.mubr.bf16.mxu0 %v15164_v27  ;;  %v20670_v63 = vld [vmem:[#allocation13 + $0x638] sm:$0xff]  }
 0x745   : > { %19536 = vmatprep.subr.bf16.mxu0 %v20620_v0  ;;  %19477 = vmatpush3.bf16.msra.mxu1 %v20625_v10  ;;  %v20674_v0 = vld [vmem:[#allocation13 + $0x598] sm:$0xff]   ;;  %v20675_v10 = vld [vmem:[#allocation13 + $0x5e0] sm:$0xff]   ;;  %v15173_v27 = vshrl.u32 %v15149_v38, 16 }
 0x746   : > { %19478 = vmatprep.subr.bf16.mxu1 %v20627_v55  ;;  %v20676_v55 = vld [vmem:[#allocation13 + $0x5a0] sm:$0xff]  }
 0x748   : > { %19537 = vmatpush3.bf16.msra.mxu0 %v20622_v18  ;;  %v20677_v18 = vld [vmem:[#allocation13 + $0x5e8] sm:$0xff]  }
 0x749   : > { %19538 = vmatprep.subr.bf16.mxu0 %v20624_v7  ;;  %19479 = vmatpush3.bf16.msra.mxu1 %v20629_v31  ;;  %v20678_v7 = vld [vmem:[#allocation13 + $0x5a8] sm:$0xff]   ;;  %v20679_v31 = vld [vmem:[#allocation13 + $0x5f0] sm:$0xff]  }
 0x74a   : > { %19480 = vmatprep.subr.bf16.mxu1 %v20631_v51  ;;  %v20680_v51 = vld [vmem:[#allocation13 + $0x5b0] sm:$0xff]  }
 0x74c   : > { %19539 = vmatpush3.bf16.msra.mxu0 %v20626_v28  ;;  %v20681_v28 = vld [vmem:[#allocation13 + $0x5f8] sm:$0xff]  }
 0x74d   : > { %19540 = vmatprep.subr.bf16.mxu0 %v20628_v35  ;;  %19481 = vmatpush3.bf16.msra.mxu1 %v20633_v13  ;;  %v20682_v35 = vld [vmem:[#allocation13 + $0x5b8] sm:$0xff]   ;;  %v15146_v13 = vrot.slane %v26015_v62, 1 }
 0x74e   : > { %19482 = vmatprep.subr.bf16.mxu1 %v20635_v58 }
 0x74f   : > { %v15167_v58 = vshrl.u32 %v15146_v13, 16 }
 0x750   : > { %19541 = vmatpush3.bf16.msra.mxu0 %v20630_v15 }
 0x751   : > { %19542 = vmatprep.subr.bf16.mxu0 %v20632_v6  ;;  %19483 = vmatpush3.bf16.msra.mxu1 %v20637_v47 }
 0x752   : > { %19512 = vmatprep.subr.bf16.mxu1 %v20639_v45 }
 0x754   : > { %19543 = vmatpush3.bf16.msra.mxu0 %v20634_v24  ;;  %17098 = vmatmul.mubr.bf16.vlgmr.msra.gmra.mrb[240].mxu1 %v15134_v37 }
 0x755   : > { %19544 = vmatprep.subr.bf16.mxu0 %v20636_v26  ;;  %19513 = vmatpush3.bf16.msra.mxu1 %v20641_v59 }
 0x756   : > { %17177 = vmatprep.mubr.bf16.mxu1 %v15159_v60  ;;  %19514 = vmatprep.subr.bf16.mxu1 %v20643_v30 }
 0x758   : > { %19545 = vmatpush3.bf16.msra.mxu0 %v20638_v42  ;;  %v15584_v42 = vld [vmem:[#allocation14] sm:$0x1] }
 0x759   : > { %19546 = vmatprep.subr.bf16.mxu0 %v20640_v21  ;;  %19515 = vmatpush3.bf16.msra.mxu1 %v20645_v40 }
 0x75a   : > { %19516 = vmatprep.subr.bf16.mxu1 %v20647_v56 }
 0x75c   : > { %19547 = vmatpush3.bf16.msra.mxu0 %v20642_v53 }
 0x75d   : > { %19548 = vmatprep.subr.bf16.mxu0 %v20644_v52  ;;  %19517 = vmatpush3.bf16.msra.mxu1 %v20648_v33 }
 0x75e   : > { %19518 = vmatprep.subr.bf16.mxu1 %v20650_v36 }
 0x760   : > { %19549 = vmatpush3.bf16.msra.mxu0 %v20646_v19 }
 0x761   : > { %19649 = vmatprep.subr.bf16.mxu0 %v27021_v61  ;;  %19519 = vmatpush3.bf16.msra.mxu1 %v20651_v4 }
 0x762   : > { %19520 = vmatprep.subr.bf16.mxu1 %v20653_v14 }
 0x763   : > { %17218 = vmatmul.mubr.bf16.vlgmr.msra.gmra.mrb[12].mxu0 %v15162_v20  ;;  %v20683_v20 = vld [vmem:[#allocation16] sm:$0xff]  }
 0x764   : > { %19650 = vmatpush3.bf16.msra.mxu0 %v20649_v17  ;;  %19665 = vmatprep.mubr.msk.bf16.mxu0 %vm21089_vm7, %v27021_v61 }
 0x765   : > { %19651 = vmatprep.subr.bf16.mxu0 %v27021_v61  ;;  %19521 = vmatpush3.bf16.msra.mxu1 %v20654_v9  ;;  %v20684_v9 = vld [vmem:[#allocation16 + $0x8] sm:$0xff]  }
 0x766   : > { %19522 = vmatprep.subr.bf16.mxu1 %v20656_v57  ;;  %v20685_v57 = vld [vmem:[#allocation16 + $0x10] sm:$0xff]  }
 0x768   : > { %19652 = vmatpush3.bf16.msra.mxu0 %v20652_v46  ;;  %v20686_v46 = vld [vmem:[#allocation16 + $0x18] sm:$0xff]  }
 0x769   : > { %19653 = vmatprep.subr.bf16.mxu0 %v27021_v61  ;;  %19523 = vmatpush3.bf16.msra.mxu1 %v20657_v32 }
 0x76a   : > { %19524 = vmatprep.subr.bf16.mxu1 %v20659_v34  ;;  %v20687_v34 = vld [vmem:[#allocation16 + $0x20] sm:$0xff]  }
 0x76c   : > { %19654 = vmatpush3.bf16.msra.mxu0 %v20655_v12 }
 0x76d   : > { %19655 = vmatprep.subr.bf16.mxu0 %v27021_v61  ;;  %19525 = vmatpush3.bf16.msra.mxu1 %v20660_v5 }
 0x76e   : > { %19526 = vmatprep.subr.bf16.mxu1 %v20662_v23 }
 0x770   : > { %19656 = vmatpush3.bf16.msra.mxu0 %v20658_v22 }
 0x771   : > { %19657 = vmatprep.subr.bf16.mxu0 %v27021_v61  ;;  %19527 = vmatpush3.bf16.msra.mxu1 %v20663_v8 }
 0x772   : > { %19556 = vmatprep.subr.bf16.mxu1 %v20665_v1  ;;  %v20688_v1 = vld [vmem:[#allocation16 + $0x28] sm:$0xff]  }
 0x774   : > { %19658 = vmatpush3.bf16.msra.mxu0 %v20661_v54  ;;  %17178 = vmatmul.mubr.bf16.vlgmr.msra.gmra.mrb[244].mxu1 %v15156_v41  ;;  %v20689_v54 = vld [vmem:[#allocation16 + $0x30] sm:$0xff]  }
 0x775   : > { %19659 = vmatprep.subr.bf16.mxu0 %v27021_v61  ;;  %19557 = vmatpush3.bf16.msra.mxu1 %v20666_v49  ;;  %v20692_v49 = vld [vmem:[#allocation19 + $0x8] sm:$0xff]  }
 0x776   : > { %17257 = vmatprep.mubr.bf16.mxu1 %v15170_v25  ;;  %19558 = vmatprep.subr.bf16.mxu1 %v20668_v43 }
 0x778   : > { %19660 = vmatpush3.bf16.msra.mxu0 %v20664_v29  ;;  %v20690_v29 = vld [vmem:[#allocation16 + $0x38] sm:$0xff]  }
 0x779   : > { %19661 = vmatprep.subr.bf16.mxu0 %v27021_v61  ;;  %19559 = vmatpush3.bf16.msra.mxu1 %v20669_v44 }
 0x77a   : > { %19560 = vmatprep.subr.bf16.mxu1 %v20671_v11 }
 0x77c   : > { %19662 = vmatpush3.bf16.msra.mxu0 %v20667_v2  ;;  %v20693_v2 = vld [vmem:[#allocation19 + $0x10] sm:$0xff]  }
 0x77d   : > { %19663 = vmatprep.subr.bf16.mxu0 %v27021_v61  ;;  %19561 = vmatpush3.bf16.msra.mxu1 %v20672_v16  ;;  %v20694_v16 = vld [vmem:[#allocation19 + $0x18] sm:$0xff]  }
 0x77e   : > { %19562 = vmatprep.subr.bf16.mxu1 %v20673_v50  ;;  %v20695_v50 = vld [vmem:[#allocation19 + $0x20] sm:$0xff]  }
 0x780   : > { %19664 = vmatpush3.bf16.msra.mxu0 %v20670_v63  ;;  %v20696_v63 = vld [vmem:[#allocation19 + $0x28] sm:$0xff]  }
 0x781   : > { %19563 = vmatpush3.bf16.msra.mxu1 %v20674_v0  ;;  %19689 = vmatprep.subr.bf16.mxu0 %v27021_v61 }
 0x782   : > { %19564 = vmatprep.subr.bf16.mxu1 %v20675_v10 }
 0x783   : > { %19666 = vmatmul.mubr.bf16.vlgmr.msra.gmra.mrb[16].mxu0 %v15173_v27 }
 0x784   : > { %19705 = vmatprep.mubr.msk.bf16.mxu0 %vm21089_vm7, %v27021_v61  ;;  %19690 = vmatpush3.bf16.msra.mxu0 %v20691_v39 }
 0x785   : > { %19565 = vmatpush3.bf16.msra.mxu1 %v20676_v55  ;;  %19691 = vmatprep.subr.bf16.mxu0 %v27021_v61 }
 0x786   : > { %19566 = vmatprep.subr.bf16.mxu1 %v20677_v18 }
 0x788   : > { %19692 = vmatpush3.bf16.msra.mxu0 %v20692_v49 }
 0x789   : > { %19567 = vmatpush3.bf16.msra.mxu1 %v20678_v7  ;;  %19693 = vmatprep.subr.bf16.mxu0 %v27021_v61 }
 0x78a   : > { %19568 = vmatprep.subr.bf16.mxu1 %v20679_v31 }
 0x78c   : > { %19694 = vmatpush3.bf16.msra.mxu0 %v20693_v2 }
 0x78d   : > { %19569 = vmatpush3.bf16.msra.mxu1 %v20680_v51  ;;  %19695 = vmatprep.subr.bf16.mxu0 %v27021_v61 }
 0x78e   : > { %19570 = vmatprep.subr.bf16.mxu1 %v20681_v28 }
 0x790   : > { %19696 = vmatpush3.bf16.msra.mxu0 %v20694_v16 }
 0x791   : > { %19571 = vmatpush3.bf16.msra.mxu1 %v20682_v35  ;;  %19697 = vmatprep.subr.bf16.mxu0 %v27021_v61 }
 0x792   : > { %19669 = vmatprep.subr.bf16.mxu1 %v27021_v61 }
 0x794   : > { %17258 = vmatmul.mubr.bf16.vlgmr.msra.gmra.mrb[248].mxu1 %v15167_v58  ;;  %19698 = vmatpush3.bf16.msra.mxu0 %v20695_v50 }
 0x795   : > { %19685 = vmatprep.mubr.msk.bf16.mxu1 %vm21089_vm7, %v27021_v61  ;;  %19670 = vmatpush3.bf16.msra.mxu1 %v20683_v20 }
 0x796   : > { %19671 = vmatprep.subr.bf16.mxu1 %v27021_v61  ;;  %19699 = vmatprep.subr.bf16.mxu0 %v27021_v61 }
 0x798   : > { %19700 = vmatpush3.bf16.msra.mxu0 %v20696_v63 }
 0x799   : > { %19672 = vmatpush3.bf16.msra.mxu1 %v20684_v9  ;;  %19701 = vmatprep.subr.bf16.mxu0 %v27021_v61 }
 0x79a   : > { %19673 = vmatprep.subr.bf16.mxu1 %v27021_v61 }
 0x79d   : > { %19674 = vmatpush3.bf16.msra.mxu1 %v20685_v57 }
 0x79e   : > { %19675 = vmatprep.subr.bf16.mxu1 %v27021_v61 }
 0x7a1   : > { %19676 = vmatpush3.bf16.msra.mxu1 %v20686_v46 }
 0x7a2   : > { %19677 = vmatprep.subr.bf16.mxu1 %v27021_v61 }
 0x7a5   : > { %19678 = vmatpush3.bf16.msra.mxu1 %v20687_v34 }
 0x7a6   : > { %v19330_v15 = vpop.f32.mrb[224].mxu1  ;;  %19679 = vmatprep.subr.bf16.mxu1 %v27021_v61 }
 0x7a7   : > { %v19331_v6 = vpop.f32.mrb[225].mxu1 }
 0x7a8   : > { %v19332_v47 = vadd.f32 %v19331_v6, %v19330_v15  ;;  %v19333_v45 = vpop.f32.mrb[226].mxu1 }
 0x7a9   : > { %v19334_v24 = vpop.f32.mrb[227].mxu1  ;;  %19680 = vmatpush3.bf16.msra.mxu1 %v20688_v1 }
 0x7aa   : > { %v16820_v40 = vadd.f32 %v19332_v47, %v15584_v42  ;;  %19681 = vmatprep.subr.bf16.mxu1 %v27021_v61 }
 0x7ad   : > { %19682 = vmatpush3.bf16.msra.mxu1 %v20689_v54 }
 0x7ae   : > { %19683 = vmatprep.subr.bf16.mxu1 %v27021_v61 }
 0x7b1   : > { %19684 = vmatpush3.bf16.msra.mxu1 %v20690_v29 }
 0x7b6   : > { %v19374_v3 = vpop.f32.mrb[252].mxu0 }
 0x7b7   : > { %v19375_v26 = vpop.f32.mrb[253].mxu0 }
 0x7b8   : > { %v19376_v59 = vadd.f32 %v19375_v26, %v19374_v3  ;;  %v19377_v37 = vpop.f32.mrb[254].mxu0 }
 0x7b9   : > { %v19378_v30 = vpop.f32.mrb[255].mxu0 }
 0x7c7   : > { %v19352_v60 = vpop.f32.mrb[228].mxu1 }
 0x7c8   : > { %v19353_v21 = vpop.f32.mrb[229].mxu1 }
 0x7c9   : > { %v19354_v56 = vadd.f32 %v19353_v21, %v19352_v60  ;;  %v19355_v53 = vpop.f32.mrb[230].mxu1 }
 0x7ca   : > { %v19356_v52 = vpop.f32.mrb[231].mxu1 }
 0x7cb   : > { %v16860_v33 = vadd.f32 %v19354_v56, %v16820_v40 }
 0x7cd   : > { %v16900_v36 = vadd.f32 %v19376_v59, %v16860_v33 }
 0x7d6   : > { %v19418_v19 = vpop.f32.mrb[0].mxu0 }
 0x7d7   : > { %v19419_v62 = vpop.f32.mrb[1].mxu0 }
 0x7d8   : > { %v19420_v4 = vadd.f32 %v19419_v62, %v19418_v19  ;;  %v19421_v14 = vpop.f32.mrb[2].mxu0 }
 0x7d9   : > { %v19422_v17 = vpop.f32.mrb[3].mxu0 }
 0x7e7   : > { %v19396_v32 = vpop.f32.mrb[232].mxu1 }
 0x7e8   : > { %v19397_v12 = vpop.f32.mrb[233].mxu1 }
 0x7e9   : > { %v19398_v5 = vadd.f32 %v19397_v12, %v19396_v32  ;;  %v19399_v23 = vpop.f32.mrb[234].mxu1 }
 0x7ea   : > { %v19400_v22 = vpop.f32.mrb[235].mxu1  ;;  %v20698_v23 = vld [vmem:[#allocation19 + $0x38] sm:$0xff]  }
 0x7eb   : > { %v16940_v8 = vadd.f32 %v19398_v5, %v16900_v36  ;;  %v20697_v5 = vld [vmem:[#allocation19 + $0x30] sm:$0xff]   ;;  %v17323_v22 = vld [vmem:[#allocation17] sm:$0x1] }
 0x7ec   : > { %19702 = vmatpush3.bf16.msra.mxu0 %v20697_v5 }
 0x7ed   : > { %v16980_v48 = vadd.f32 %v19420_v4, %v16940_v8  ;;  %19703 = vmatprep.subr.bf16.mxu0 %v27021_v61 }
 0x7f0   : > { %19704 = vmatpush3.bf16.msra.mxu0 %v20698_v23 }
 0x7f6   : > { %v19462_v41 = vpop.f32.mrb[4].mxu0 }
 0x7f7   : > { %v19463_v43 = vpop.f32.mrb[5].mxu0 }
 0x7f8   : > { %v19464_v25 = vadd.f32 %v19463_v43, %v19462_v41  ;;  %v19465_v44 = vpop.f32.mrb[6].mxu0  ;;  %v17430_v43 = vld [vmem:[#allocation20] sm:$0x1] }
 0x7f9   : > { %v19466_v11 = vpop.f32.mrb[7].mxu0 }
 0x807   : > { %v19440_v38 = vpop.f32.mrb[236].mxu1 }
 0x808   : > { %v19441_v0 = vpop.f32.mrb[237].mxu1 }
 0x809   : > { %v19442_v10 = vadd.f32 %v19441_v0, %v19440_v38  ;;  %v19443_v27 = vpop.f32.mrb[238].mxu1 }
 0x80a   : > { %v19444_v55 = vpop.f32.mrb[239].mxu1 }
 0x80b   : > { %v17020_v18 = vadd.f32 %v19442_v10, %v16980_v48 }
 0x80d   : > { %v17060_v7 = vadd.f32 %v19464_v25, %v17020_v18 }
 0x816   : > { %v19506_v31 = vpop.f32.mrb[8].mxu0 }
 0x817   : > { %v19507_v51 = vpop.f32.mrb[9].mxu0 }
 0x818   : > { %v19508_v28 = vadd.f32 %v19507_v51, %v19506_v31  ;;  %v19509_v35 = vpop.f32.mrb[10].mxu0 }
 0x819   : > { %v19510_v13 = vpop.f32.mrb[11].mxu0 }
 0x827   : > { %v19484_v58 = vpop.f32.mrb[240].mxu1 }
 0x828   : > { %v19485_v15 = vpop.f32.mrb[241].mxu1 }
 0x829   : > { %v19486_v6 = vadd.f32 %v19485_v15, %v19484_v58  ;;  %v19487_v47 = vpop.f32.mrb[242].mxu1 }
 0x82a   : > { %v19488_v45 = vpop.f32.mrb[243].mxu1 }
 0x82b   : > { %v17100_v24 = vadd.f32 %v19486_v6, %v17060_v7 }
 0x82d   : > { %v17140_v3 = vadd.f32 %v19508_v28, %v17100_v24 }
 0x836   : > { %v19550_v26 = vpop.f32.mrb[12].mxu0 }
 0x837   : > { %v19551_v59 = vpop.f32.mrb[13].mxu0 }
 0x838   : > { %v19552_v37 = vadd.f32 %v19551_v59, %v19550_v26  ;;  %v19553_v30 = vpop.f32.mrb[14].mxu0 }
 0x839   : > { %v19554_v42 = vpop.f32.mrb[15].mxu0 }
 0x847   : > { %v19528_v60 = vpop.f32.mrb[244].mxu1 }
 0x848   : > { %v19529_v21 = vpop.f32.mrb[245].mxu1 }
 0x849   : > { %v19530_v40 = vadd.f32 %v19529_v21, %v19528_v60  ;;  %v19531_v56 = vpop.f32.mrb[246].mxu1 }
 0x84a   : > { %v19532_v53 = vpop.f32.mrb[247].mxu1 }
 0x84b   : > { %v17180_v52 = vadd.f32 %v19530_v40, %v17140_v3 }
 0x84d   : > { %v17220_v33 = vadd.f32 %v19552_v37, %v17180_v52 }
 0x856   : > { %v17299_v36 = vpop.f32.mrb[16].mxu0 }
 0x857   : > { %v19667_v19 = vpop.f32.mrb[17].mxu0 }
 0x858   : > { %v17302_v62 = vpop.f32.mrb[18].mxu0 }
 0x859   : > { %v19668_v4 = vpop.f32.mrb[19].mxu0 }
 0x867   : > { %v19572_v14 = vpop.f32.mrb[248].mxu1 }
 0x868   : > { %v19573_v17 = vpop.f32.mrb[249].mxu1 }
 0x869   : > { %v19574_v20 = vadd.f32 %v19573_v17, %v19572_v14  ;;  %v19575_v9 = vpop.f32.mrb[250].mxu1 }
 0x86a   : > { %v19576_v57 = vpop.f32.mrb[251].mxu1 }
 0x86b   : > { %v17260_v46 = vadd.f32 %v19574_v20, %v17220_v33 }
 0x86d   : > { %v17300_v32 = vadd.f32 %v17299_v36, %v17260_v46 }
 0x86f   : > { %v17305_v34 = vmax.f32 %v17300_v32, 0.0 }
 0x871   : > { %v17306_v12 = vpack.c.bf16 %v17305_v34, %v17305_v34 }
 0x873   : > { %19686 = vmatmul.mubr.bf16.vlgmr.msra.gmra.mrb[252].mxu1 %v17306_v12 }
 0x946   : > { %v17406_v8 = vpop.f32.mrb[252].mxu1 }
 0x947   : > { %v17407_v48 = vadd.f32 %v17406_v8, %v17323_v22  ;;  %v19687_v1 = vpop.f32.mrb[253].mxu1 }
 0x948   : > { %v17409_v54 = vpop.f32.mrb[254].mxu1 }
 0x949   : > { %v17412_v39 = vmax.f32 %v17407_v48, 0.0  ;;  %v19688_v49 = vpop.f32.mrb[255].mxu1 }
 0x94b   : > { %v17413_v41 = vpack.c.bf16 %v17412_v39, %v17412_v39 }
 0x94d   : > { %19706 = vmatmul.mubr.bf16.vlgmr.msra.gmra.mrb[20].mxu0 %v17413_v41 }
 0xa20   : > { %v17513_v29 = vpop.f32.mrb[20].mxu0 }
 0xa21   : > { %v17514_v25 = vadd.f32 %v17513_v29, %v17430_v43  ;;  %v19707_v44 = vpop.f32.mrb[21].mxu0 }
 0xa22   : > { %v17516_v61 = vpop.f32.mrb[22].mxu0 }
 0xa23   : > { %17519 = vst [vmem:[%s514_s2] sm:$0x1] %v17514_v25  ;;  %v19708_v11 = vpop.f32.mrb[23].mxu0 }
 0xa24   : > { %20993 = shalt.err (!%p20990_p10)
}
 0xa25   : > { %s20994_s13 = scalar_lea.hbm %s26057_s19, 16  ;;  %s20998_s28 = scalar_lea.hbm %s26110_s11, 32 }
 0xa26   : > { %p20995_p2 = scmp.ne.s32.totalorder %s26057_s19, %s20994_s13  ;;  %p20999_p7 = scmp.lt.u32.totalorder %s26057_s19, %s26110_s11 }
 0xa27   : > { %p21000_p8 = scmp.lt.u32.totalorder %s20998_s28, %s20994_s13  ;;  %p21002_p13 = scmp.lt.u32.totalorder %s20994_s13, %s26057_s19 }
 0xa28   : > { %p20996_p3 = pnand %p20995_p2, %p27208_p0 }
 0xa29   : > { %p21001_p11 = por %p21000_p8, %p20999_p7 }
 0xa2a   : > { %p20997_p4 = pneg %p20996_p3 }
 0xa2b   : > { %p21003_p1 = por %p21002_p13, %p21001_p11 }
 0xa2d   : > { %p21004_p6 = pnand %p21003_p1, %p20997_p4 }
 0xa2f   : > { %21007 = shalt.err (!%p21004_p6)
}
 0xa30   : > { %19749 = dma.vmem_to_hbm [thread:$0]  (%p27208_p0), %s26059_s26, 16, %s26057_s19, %s17521_s14  }
 0xa31 PF: > { %s27209_s4 = sld [smem:[#allocation30_spill]]  ;;  %s27210_s16 = sld [smem:[#allocation34_spill]] }
 0xa32   : > { %p19806_p5 = scmp.ge.s32.totalorder %s21066_s20, 2 }
 0xa37   : > { %s17545_s2 = sand.u32 1, %s27209_s4   ;;  %p27211_p9 = scmp.ne.s32.totalorder %s27210_s16, 0 }
 0xa38   : > { %s17546_s12 = scalar_lea.sflag [#allocation7], %s17545_s2 }
 0xa39   : > { %p19783_p12 = pnand %p19806_p5, %p27211_p9 }
 0xa3b   : > { %21049 = dma.done.wait (!%p19783_p12), %s17546_s12, 16  }
 0xa3c   : > { %21051 = vsyncadd (!%p19783_p12), %s17546_s12, 4294967280  ;;  %s27212_s20 = sld [smem:[#allocation32_spill]]  ;;  %s27213_s23 = sld [smem:[#allocation31_spill]] }
 0xa3d   : > { %s27214_s19 = sld [smem:[#allocation33_spill]]  ;;  %s27215_s17 = smov %s21058_s18 }
 0xa42   : > { %p27_p10 = scmp.ge.s32.totalorder %s27212_s20, 4   ;;  %s27216_s18 = smov %s27213_s23 }
 0xa44   :  { %29 = sbr.rel (!%p27_p10) target bundleno = 12 (0xc), region = 155 }
 0xa4b   :  { %17550 = vsyncpa [#allocation6], 1 }
 0xa4c   :  { %17552 = vsyncpa [#allocation6 + $0x1], 1 }
 0xa4d   :  { %17553 = vsyncpa [#allocation9], 1 }
 0xa4e   :  { %17554 = vsyncpa [#allocation12], 1 }
 0xa4f   :  { %17555 = vsyncpa [#allocation15], 1 }
 0xa50   :  { %17556 = vsyncpa [#allocation18], 1 }
 0xa51   :  { %17557 = vsyncpa [#allocation21], 1 }
 0xa52   :  { %17558 = vsyncpa [#allocation7], 1 }
 0xa53   :  { %17560 = vsyncpa [#allocation7 + $0x1], 1 }

</bundles_post_ra>
